<compile_context>
chip_gen: v6e
topology: v6e:2x2x1
jax: 0.10.0
libtpu: 0.0.40
codegen_flags: <defaults>
</compile_context>

<pallas_src>
import functools

import jax
import jax.numpy as jnp
from jax import lax
from jax.experimental import pallas as pl
from jax.experimental.pallas import tpu as pltpu

EPS = 1e-5  # PyTorch BatchNorm2d default eps


# ----------------------------------------------------------------------------
# Fused Pallas kernel: conv3x3 -> bn1 affine -> conv3x3 (bn2 folded) -> +resid
# ----------------------------------------------------------------------------
def _standard_unit_kernel(x_ref, w1_ref, w2_ref, s1_ref, b1_ref, b2_ref,
                          o_ref, zpad_ref, *, H, W, residual):
    # x_ref   : (1, H+2, W+2, Cin_p)  bf16, spatially zero-padded input tile
    # w1_ref  : (9, Cin_p, C_p)       bf16
    # w2_ref  : (9, C_p,  C_p)        bf16 (bn2 scale folded in)
    # s1/b1/b2: (1, C_p)              f32
    # o_ref   : (1, H*W, C_p)         f32 (lane-dense store)
    # zpad_ref: (H+2, W+2, C_p)       bf16 VMEM scratch (halo for conv2)
    Cin = x_ref.shape[-1]
    C = w1_ref.shape[-1]
    taps = [(ky, kx) for ky in range(3) for kx in range(3)]

    # Zero-pad halo for conv2 (cheap VPU memset each grid step).
    zpad_ref[...] = jnp.zeros_like(zpad_ref)

    x = x_ref[0]                                   # (H+2, W+2, Cin) in VMEM

    # ---- conv1: in-kernel "im2col" as 9 shifted MXU dots, f32 accumulate ----
    acc1 = jnp.zeros((H * W, C), jnp.float32)
    for t, (ky, kx) in enumerate(taps):
        lhs = x[ky:ky + H, kx:kx + W, :].reshape(H * W, Cin)
        acc1 = acc1 + jnp.dot(lhs, w1_ref[t],
                              preferred_element_type=jnp.float32)
    y1 = acc1                                      # pre-BN conv1 out (residual)

    # ---- bn1 (eval) affine on the VPU, cast to bf16 for the next MXU pass ---
    z1 = y1 * s1_ref[...] + b1_ref[...]
    zpad_ref[1:H + 1, 1:W + 1, :] = z1.reshape(H, W, C).astype(zpad_ref.dtype)

    # ---- conv2 (bn2 scale pre-folded into w2): 9 shifted dots over padded z1
    acc2 = jnp.zeros((H * W, C), jnp.float32)
    for t, (ky, kx) in enumerate(taps):
        lhs = zpad_ref[ky:ky + H, kx:kx + W, :].reshape(H * W, C)
        acc2 = acc2 + jnp.dot(lhs, w2_ref[t],
                              preferred_element_type=jnp.float32)

    out = acc2 + b2_ref[...]
    if residual:
        out = out + y1
    o_ref[0] = out.astype(o_ref.dtype)


# ----------------------------------------------------------------------------
# Wrapper: weight prep (BN fold, channel padding, bf16) + pallas_call
# ----------------------------------------------------------------------------
def _round_up(x, m):
    return (x + m - 1) // m * m


def standard_unit_forward(x_nchw, params, *, residual=True):
    w1 = params["w1"]                 # (nb, in, 3, 3)  OIHW
    w2 = params["w2"]                 # (nb, nb, 3, 3)  OIHW
    g1, be1, m1, v1 = params["bn1"]
    g2, be2, m2, v2 = params["bn2"]

    N, Cin, H, W = x_nchw.shape
    Cout = w1.shape[0]

    Cin_p = _round_up(Cin, 16)        # bf16 sublane packing for conv1's K dim
    C_p = _round_up(Cout, 128)        # lane-dense intermediate / output

    # --- BN folding (eval-mode running statistics) ---
    s1 = g1 / jnp.sqrt(v1 + EPS)
    b1 = be1 - m1 * s1
    s2 = g2 / jnp.sqrt(v2 + EPS)
    b2 = be2 - m2 * s2

    # --- Weights: OIHW -> HWIO, fold s2 into w2 (exact), pad channels, bf16 --
    w1_hwio = jnp.transpose(w1, (2, 3, 1, 0))                       # (3,3,in,nb)
    w2_hwio = jnp.transpose(w2, (2, 3, 1, 0)) * s2[None, None, None, :]
    w1_p = jnp.zeros((3, 3, Cin_p, C_p), jnp.float32)
    w1_p = w1_p.at[:, :, :Cin, :Cout].set(w1_hwio).reshape(9, Cin_p, C_p)
    w2_p = jnp.zeros((3, 3, C_p, C_p), jnp.float32)
    w2_p = w2_p.at[:, :, :Cout, :Cout].set(w2_hwio).reshape(9, C_p, C_p)
    w1_p = w1_p.astype(jnp.bfloat16)
    w2_p = w2_p.astype(jnp.bfloat16)

    s1_p = jnp.zeros((1, C_p), jnp.float32).at[0, :Cout].set(s1)
    b1_p = jnp.zeros((1, C_p), jnp.float32).at[0, :Cout].set(b1)
    b2_p = jnp.zeros((1, C_p), jnp.float32).at[0, :Cout].set(b2)

    # --- Input: NCHW -> NHWC, conv pad=1 baked in, channel pad, bf16 ---------
    x = jnp.transpose(x_nchw, (0, 2, 3, 1))
    xp = jnp.zeros((N, H + 2, W + 2, Cin_p), jnp.bfloat16)
    xp = xp.at[:, 1:H + 1, 1:W + 1, :Cin].set(x.astype(jnp.bfloat16))

    out = pl.pallas_call(
        functools.partial(_standard_unit_kernel, H=H, W=W, residual=residual),
        out_shape=jax.ShapeDtypeStruct((N, H * W, C_p), jnp.float32),
        grid=(N,),
        in_specs=[
            pl.BlockSpec((1, H + 2, W + 2, Cin_p), lambda n: (n, 0, 0, 0)),
            pl.BlockSpec((9, Cin_p, C_p), lambda n: (0, 0, 0)),
            pl.BlockSpec((9, C_p, C_p), lambda n: (0, 0, 0)),
            pl.BlockSpec((1, C_p), lambda n: (0, 0)),
            pl.BlockSpec((1, C_p), lambda n: (0, 0)),
            pl.BlockSpec((1, C_p), lambda n: (0, 0)),
        ],
        out_specs=pl.BlockSpec((1, H * W, C_p), lambda n: (n, 0, 0)),
        scratch_shapes=[pltpu.VMEM((H + 2, W + 2, C_p), jnp.bfloat16)],
        compiler_params=pltpu.CompilerParams(
            dimension_semantics=("parallel",)),
    )(xp, w1_p, w2_p, s1_p, b1_p, b2_p)

    out = out.reshape(N, H, W, C_p)[..., :Cout]     # drop lane padding
    return jnp.transpose(out, (0, 3, 1, 2))         # back to NCHW


# ----------------------------------------------------------------------------
# Pure-JAX reference (f32) for validation
# ----------------------------------------------------------------------------
def standard_unit_reference(x_nchw, params, *, residual=True):
    w1 = params["w1"]
    w2 = params["w2"]
    g1, be1, m1, v1 = params["bn1"]
    g2, be2, m2, v2 = params["bn2"]
    dn = ("NHWC", "HWIO", "NHWC")

    x = jnp.transpose(x_nchw, (0, 2, 3, 1))
    y1 = lax.conv_general_dilated(x, jnp.transpose(w1, (2, 3, 1, 0)),
                                  (1, 1), "SAME", dimension_numbers=dn)
    z1 = (y1 - m1) / jnp.sqrt(v1 + EPS) * g1 + be1
    y2 = lax.conv_general_dilated(z1, jnp.transpose(w2, (2, 3, 1, 0)),
                                  (1, 1), "SAME", dimension_numbers=dn)
    z2 = (y2 - m2) / jnp.sqrt(v2 + EPS) * g2 + be2
    out = z2 + y1 if residual else z2
    return jnp.transpose(out, (0, 3, 1, 2))


# ----------------------------------------------------------------------------
if __name__ == "__main__":
    key = jax.random.PRNGKey(0)
    k = jax.random.split(key, 10)

    N, Cin, H, W = 2, 4, 16, 16   # input: (2, 4, 16, 16) NCHW
    nb = 32                       # nb_filter

    x = jax.random.normal(k[0], (N, Cin, H, W), jnp.float32)

    params = {
        "w1": 0.1 * jax.random.normal(k[1], (nb, Cin, 3, 3), jnp.float32),
        "bn1": (1.0 + 0.1 * jax.random.normal(k[2], (nb,), jnp.float32),
                0.1 * jax.random.normal(k[3], (nb,), jnp.float32),
                0.1 * jax.random.normal(k[4], (nb,), jnp.float32),
                1.0 + 0.1 * jnp.abs(jax.random.normal(k[5], (nb,), jnp.float32))),
        "w2": 0.1 * jax.random.normal(k[6], (nb, nb, 3, 3), jnp.float32),
        "bn2": (1.0 + 0.1 * jax.random.normal(k[7], (nb,), jnp.float32),
                0.1 * jax.random.normal(k[8], (nb,), jnp.float32),
                0.1 * jax.random.normal(k[9], (nb,), jnp.float32),
                1.0 + 0.1 * jnp.abs(jax.random.normal(k[0], (nb,), jnp.float32))),
    }

    fwd = jax.jit(functools.partial(standard_unit_forward, residual=True))
    out = fwd(x, params)
    jax.block_until_ready(out)

    assert out.shape == (N, nb, H, W), out.shape
    assert bool(jnp.all(jnp.isfinite(out)))

    ref = standard_unit_reference(x, params, residual=True)
    rel_err = float(jnp.max(jnp.abs(out - ref)) /
                    (jnp.max(jnp.abs(ref)) + 1e-12))
    # bf16 MXU operands + f32 accumulation -> small, expected drift vs f32 ref.
    assert rel_err < 5e-2, f"relative max error too large: {rel_err}"

    print("KERNEL_OK")
</pallas_src>

<mosaic_0001>
module attributes {stable_mosaic.version = 11 : i64} {
  func.func @_standard_unit_kernel(%arg0: i32, %arg1: memref<1x18x18x16xbf16, #tpu.memory_space<vmem>>, %arg2: memref<9x16x128xbf16, #tpu.memory_space<vmem>>, %arg3: memref<9x128x128xbf16, #tpu.memory_space<vmem>>, %arg4: memref<1x128xf32, #tpu.memory_space<vmem>>, %arg5: memref<1x128xf32, #tpu.memory_space<vmem>>, %arg6: memref<1x128xf32, #tpu.memory_space<vmem>>, %arg7: memref<1x256x128xf32, #tpu.memory_space<vmem>>, %arg8: memref<18x18x128xbf16, #tpu.memory_space<vmem>>) attributes {dimension_semantics = [#tpu.dimension_semantics<parallel>], iteration_bounds = array<i64: 2>, scalar_prefetch = 0 : i64, scratch_operands = 1 : i64, tpu.core_type = #tpu.core_type<tc>, window_params = [{transform_indices = @transform_0, window_bounds = array<i64: 1, 18, 18, 16>}, {pipeline_mode = #tpu.pipeline_mode<synchronous>, transform_indices = @transform_1, window_bounds = array<i64: 9, 16, 128>}, {pipeline_mode = #tpu.pipeline_mode<synchronous>, transform_indices = @transform_2, window_bounds = array<i64: 9, 128, 128>}, {pipeline_mode = #tpu.pipeline_mode<synchronous>, transform_indices = @transform_3, window_bounds = array<i64: 1, 128>}, {pipeline_mode = #tpu.pipeline_mode<synchronous>, transform_indices = @transform_4, window_bounds = array<i64: 1, 128>}, {pipeline_mode = #tpu.pipeline_mode<synchronous>, transform_indices = @transform_5, window_bounds = array<i64: 1, 128>}, {transform_indices = @transform_6, window_bounds = array<i64: 1, 256, 128>}]} {
    %cst = arith.constant 0.000000e+00 : bf16
    %0 = vector.broadcast %cst : bf16 to vector<18x18x128xbf16>
    %c0 = arith.constant 0 : index
    %c0_0 = arith.constant 0 : index
    %c0_1 = arith.constant 0 : index
    %1 = vector.load %arg8[%c0, %c0_0, %c0_1] : memref<18x18x128xbf16, #tpu.memory_space<vmem>>, vector<18x18x128xbf16>
    tpu.vector_store %arg8[%c0, %c0_0, %c0_1], %0 {strides = array<i32>} : memref<18x18x128xbf16, #tpu.memory_space<vmem>>, vector<18x18x128xbf16>,
    %c0_2 = arith.constant 0 : index
    %c0_3 = arith.constant 0 : index
    %c0_4 = arith.constant 0 : index
    %c0_5 = arith.constant 0 : index
    %2 = vector.load %arg1[%c0_2, %c0_3, %c0_4, %c0_5] : memref<1x18x18x16xbf16, #tpu.memory_space<vmem>>, vector<1x18x18x16xbf16>
    %3 = vector.shape_cast %2 : vector<1x18x18x16xbf16> to vector<18x18x16xbf16>
    %cst_6 = arith.constant 0.000000e+00 : f32
    %4 = vector.broadcast %cst_6 : f32 to vector<256x128xf32>
    %5 = vector.extract_strided_slice %3 {offsets = [0, 0, 0], sizes = [16, 16, 16], strides = [1, 1, 1]} : vector<18x18x16xbf16> to vector<16x16x16xbf16>
    %6 = vector.shape_cast %5 : vector<16x16x16xbf16> to vector<256x16xbf16>
    %c0_7 = arith.constant 0 : index
    %c0_8 = arith.constant 0 : index
    %c0_9 = arith.constant 0 : index
    %7 = vector.load %arg2[%c0_7, %c0_8, %c0_9] : memref<9x16x128xbf16, #tpu.memory_space<vmem>>, vector<1x16x128xbf16>
    %8 = vector.shape_cast %7 : vector<1x16x128xbf16> to vector<16x128xbf16>
    %cst_10 = arith.constant dense<0.000000e+00> : vector<256x128xf32>
    %9 = tpu.matmul %6, %8, %cst_10 {dimension_numbers = #tpu.dot_dimension_numbers<[1], [0], [0], [1], [0, 0, 1, 1], [], []>} : vector<256x16xbf16>, vector<16x128xbf16>, vector<256x128xf32> -> vector<256x128xf32>
    %10 = arith.addf %4, %9 : vector<256x128xf32>
    %11 = vector.extract_strided_slice %3 {offsets = [0, 1, 0], sizes = [16, 16, 16], strides = [1, 1, 1]} : vector<18x18x16xbf16> to vector<16x16x16xbf16>
    %12 = vector.shape_cast %11 : vector<16x16x16xbf16> to vector<256x16xbf16>
    %c1 = arith.constant 1 : index
    %c0_11 = arith.constant 0 : index
    %c0_12 = arith.constant 0 : index
    %13 = vector.load %arg2[%c1, %c0_11, %c0_12] : memref<9x16x128xbf16, #tpu.memory_space<vmem>>, vector<1x16x128xbf16>
    %14 = vector.shape_cast %13 : vector<1x16x128xbf16> to vector<16x128xbf16>
    %cst_13 = arith.constant dense<0.000000e+00> : vector<256x128xf32>
    %15 = tpu.matmul %12, %14, %cst_13 {dimension_numbers = #tpu.dot_dimension_numbers<[1], [0], [0], [1], [0, 0, 1, 1], [], []>} : vector<256x16xbf16>, vector<16x128xbf16>, vector<256x128xf32> -> vector<256x128xf32>
    %16 = arith.addf %10, %15 : vector<256x128xf32>
    %17 = vector.extract_strided_slice %3 {offsets = [0, 2, 0], sizes = [16, 16, 16], strides = [1, 1, 1]} : vector<18x18x16xbf16> to vector<16x16x16xbf16>
    %18 = vector.shape_cast %17 : vector<16x16x16xbf16> to vector<256x16xbf16>
    %c2 = arith.constant 2 : index
    %c0_14 = arith.constant 0 : index
    %c0_15 = arith.constant 0 : index
    %19 = vector.load %arg2[%c2, %c0_14, %c0_15] : memref<9x16x128xbf16, #tpu.memory_space<vmem>>, vector<1x16x128xbf16>
    %20 = vector.shape_cast %19 : vector<1x16x128xbf16> to vector<16x128xbf16>
    %cst_16 = arith.constant dense<0.000000e+00> : vector<256x128xf32>
    %21 = tpu.matmul %18, %20, %cst_16 {dimension_numbers = #tpu.dot_dimension_numbers<[1], [0], [0], [1], [0, 0, 1, 1], [], []>} : vector<256x16xbf16>, vector<16x128xbf16>, vector<256x128xf32> -> vector<256x128xf32>
    %22 = arith.addf %16, %21 : vector<256x128xf32>
    %23 = vector.extract_strided_slice %3 {offsets = [1, 0, 0], sizes = [16, 16, 16], strides = [1, 1, 1]} : vector<18x18x16xbf16> to vector<16x16x16xbf16>
    %24 = vector.shape_cast %23 : vector<16x16x16xbf16> to vector<256x16xbf16>
    %c3 = arith.constant 3 : index
    %c0_17 = arith.constant 0 : index
    %c0_18 = arith.constant 0 : index
    %25 = vector.load %arg2[%c3, %c0_17, %c0_18] : memref<9x16x128xbf16, #tpu.memory_space<vmem>>, vector<1x16x128xbf16>
    %26 = vector.shape_cast %25 : vector<1x16x128xbf16> to vector<16x128xbf16>
    %cst_19 = arith.constant dense<0.000000e+00> : vector<256x128xf32>
    %27 = tpu.matmul %24, %26, %cst_19 {dimension_numbers = #tpu.dot_dimension_numbers<[1], [0], [0], [1], [0, 0, 1, 1], [], []>} : vector<256x16xbf16>, vector<16x128xbf16>, vector<256x128xf32> -> vector<256x128xf32>
    %28 = arith.addf %22, %27 : vector<256x128xf32>
    %29 = vector.extract_strided_slice %3 {offsets = [1, 1, 0], sizes = [16, 16, 16], strides = [1, 1, 1]} : vector<18x18x16xbf16> to vector<16x16x16xbf16>
    %30 = vector.shape_cast %29 : vector<16x16x16xbf16> to vector<256x16xbf16>
    %c4 = arith.constant 4 : index
    %c0_20 = arith.constant 0 : index
    %c0_21 = arith.constant 0 : index
    %31 = vector.load %arg2[%c4, %c0_20, %c0_21] : memref<9x16x128xbf16, #tpu.memory_space<vmem>>, vector<1x16x128xbf16>
    %32 = vector.shape_cast %31 : vector<1x16x128xbf16> to vector<16x128xbf16>
    %cst_22 = arith.constant dense<0.000000e+00> : vector<256x128xf32>
    %33 = tpu.matmul %30, %32, %cst_22 {dimension_numbers = #tpu.dot_dimension_numbers<[1], [0], [0], [1], [0, 0, 1, 1], [], []>} : vector<256x16xbf16>, vector<16x128xbf16>, vector<256x128xf32> -> vector<256x128xf32>
    %34 = arith.addf %28, %33 : vector<256x128xf32>
    %35 = vector.extract_strided_slice %3 {offsets = [1, 2, 0], sizes = [16, 16, 16], strides = [1, 1, 1]} : vector<18x18x16xbf16> to vector<16x16x16xbf16>
    %36 = vector.shape_cast %35 : vector<16x16x16xbf16> to vector<256x16xbf16>
    %c5 = arith.constant 5 : index
    %c0_23 = arith.constant 0 : index
    %c0_24 = arith.constant 0 : index
    %37 = vector.load %arg2[%c5, %c0_23, %c0_24] : memref<9x16x128xbf16, #tpu.memory_space<vmem>>, vector<1x16x128xbf16>
    %38 = vector.shape_cast %37 : vector<1x16x128xbf16> to vector<16x128xbf16>
    %cst_25 = arith.constant dense<0.000000e+00> : vector<256x128xf32>
    %39 = tpu.matmul %36, %38, %cst_25 {dimension_numbers = #tpu.dot_dimension_numbers<[1], [0], [0], [1], [0, 0, 1, 1], [], []>} : vector<256x16xbf16>, vector<16x128xbf16>, vector<256x128xf32> -> vector<256x128xf32>
    %40 = arith.addf %34, %39 : vector<256x128xf32>
    %41 = vector.extract_strided_slice %3 {offsets = [2, 0, 0], sizes = [16, 16, 16], strides = [1, 1, 1]} : vector<18x18x16xbf16> to vector<16x16x16xbf16>
    %42 = vector.shape_cast %41 : vector<16x16x16xbf16> to vector<256x16xbf16>
    %c6 = arith.constant 6 : index
    %c0_26 = arith.constant 0 : index
    %c0_27 = arith.constant 0 : index
    %43 = vector.load %arg2[%c6, %c0_26, %c0_27] : memref<9x16x128xbf16, #tpu.memory_space<vmem>>, vector<1x16x128xbf16>
    %44 = vector.shape_cast %43 : vector<1x16x128xbf16> to vector<16x128xbf16>
    %cst_28 = arith.constant dense<0.000000e+00> : vector<256x128xf32>
    %45 = tpu.matmul %42, %44, %cst_28 {dimension_numbers = #tpu.dot_dimension_numbers<[1], [0], [0], [1], [0, 0, 1, 1], [], []>} : vector<256x16xbf16>, vector<16x128xbf16>, vector<256x128xf32> -> vector<256x128xf32>
    %46 = arith.addf %40, %45 : vector<256x128xf32>
    %47 = vector.extract_strided_slice %3 {offsets = [2, 1, 0], sizes = [16, 16, 16], strides = [1, 1, 1]} : vector<18x18x16xbf16> to vector<16x16x16xbf16>
    %48 = vector.shape_cast %47 : vector<16x16x16xbf16> to vector<256x16xbf16>
    %c7 = arith.constant 7 : index
    %c0_29 = arith.constant 0 : index
    %c0_30 = arith.constant 0 : index
    %49 = vector.load %arg2[%c7, %c0_29, %c0_30] : memref<9x16x128xbf16, #tpu.memory_space<vmem>>, vector<1x16x128xbf16>
    %50 = vector.shape_cast %49 : vector<1x16x128xbf16> to vector<16x128xbf16>
    %cst_31 = arith.constant dense<0.000000e+00> : vector<256x128xf32>
    %51 = tpu.matmul %48, %50, %cst_31 {dimension_numbers = #tpu.dot_dimension_numbers<[1], [0], [0], [1], [0, 0, 1, 1], [], []>} : vector<256x16xbf16>, vector<16x128xbf16>, vector<256x128xf32> -> vector<256x128xf32>
    %52 = arith.addf %46, %51 : vector<256x128xf32>
    %53 = vector.extract_strided_slice %3 {offsets = [2, 2, 0], sizes = [16, 16, 16], strides = [1, 1, 1]} : vector<18x18x16xbf16> to vector<16x16x16xbf16>
    %54 = vector.shape_cast %53 : vector<16x16x16xbf16> to vector<256x16xbf16>
    %c8 = arith.constant 8 : index
    %c0_32 = arith.constant 0 : index
    %c0_33 = arith.constant 0 : index
    %55 = vector.load %arg2[%c8, %c0_32, %c0_33] : memref<9x16x128xbf16, #tpu.memory_space<vmem>>, vector<1x16x128xbf16>
    %56 = vector.shape_cast %55 : vector<1x16x128xbf16> to vector<16x128xbf16>
    %cst_34 = arith.constant dense<0.000000e+00> : vector<256x128xf32>
    %57 = tpu.matmul %54, %56, %cst_34 {dimension_numbers = #tpu.dot_dimension_numbers<[1], [0], [0], [1], [0, 0, 1, 1], [], []>} : vector<256x16xbf16>, vector<16x128xbf16>, vector<256x128xf32> -> vector<256x128xf32>
    %58 = arith.addf %52, %57 : vector<256x128xf32>
    %c0_35 = arith.constant 0 : index
    %c0_36 = arith.constant 0 : index
    %59 = vector.load %arg4[%c0_35, %c0_36] : memref<1x128xf32, #tpu.memory_space<vmem>>, vector<1x128xf32>
    %60 = vector.broadcast %59 : vector<1x128xf32> to vector<256x128xf32>
    %61 = arith.mulf %58, %60 : vector<256x128xf32>
    %c0_37 = arith.constant 0 : index
    %c0_38 = arith.constant 0 : index
    %62 = vector.load %arg5[%c0_37, %c0_38] : memref<1x128xf32, #tpu.memory_space<vmem>>, vector<1x128xf32>
    %63 = vector.broadcast %62 : vector<1x128xf32> to vector<256x128xf32>
    %64 = arith.addf %61, %63 : vector<256x128xf32>
    %65 = vector.shape_cast %64 : vector<256x128xf32> to vector<16x16x128xf32>
    %66 = arith.truncf %65 : vector<16x16x128xf32> to vector<16x16x128xbf16>
    %c1_39 = arith.constant 1 : index
    %c1_40 = arith.constant 1 : index
    %c0_41 = arith.constant 0 : index
    %67 = vector.load %arg8[%c1_39, %c1_40, %c0_41] : memref<18x18x128xbf16, #tpu.memory_space<vmem>>, vector<16x16x128xbf16>
    tpu.vector_store %arg8[%c1_39, %c1_40, %c0_41], %66 {strides = array<i32>} : memref<18x18x128xbf16, #tpu.memory_space<vmem>>, vector<16x16x128xbf16>,
    %cst_42 = arith.constant 0.000000e+00 : f32
    %68 = vector.broadcast %cst_42 : f32 to vector<256x128xf32>
    %c0_43 = arith.constant 0 : index
    %c0_44 = arith.constant 0 : index
    %c0_45 = arith.constant 0 : index
    %69 = vector.load %arg8[%c0_43, %c0_44, %c0_45] : memref<18x18x128xbf16, #tpu.memory_space<vmem>>, vector<16x16x128xbf16>
    %70 = vector.shape_cast %69 : vector<16x16x128xbf16> to vector<256x128xbf16>
    %c0_46 = arith.constant 0 : index
    %c0_47 = arith.constant 0 : index
    %c0_48 = arith.constant 0 : index
    %71 = vector.load %arg3[%c0_46, %c0_47, %c0_48] : memref<9x128x128xbf16, #tpu.memory_space<vmem>>, vector<1x128x128xbf16>
    %72 = vector.shape_cast %71 : vector<1x128x128xbf16> to vector<128x128xbf16>
    %cst_49 = arith.constant dense<0.000000e+00> : vector<256x128xf32>
    %73 = tpu.matmul %70, %72, %cst_49 {dimension_numbers = #tpu.dot_dimension_numbers<[1], [0], [0], [1], [0, 0, 1, 1], [], []>} : vector<256x128xbf16>, vector<128x128xbf16>, vector<256x128xf32> -> vector<256x128xf32>
    %74 = arith.addf %68, %73 : vector<256x128xf32>
    %c0_50 = arith.constant 0 : index
    %c1_51 = arith.constant 1 : index
    %c0_52 = arith.constant 0 : index
    %75 = vector.load %arg8[%c0_50, %c1_51, %c0_52] : memref<18x18x128xbf16, #tpu.memory_space<vmem>>, vector<16x16x128xbf16>
    %76 = vector.shape_cast %75 : vector<16x16x128xbf16> to vector<256x128xbf16>
    %c1_53 = arith.constant 1 : index
    %c0_54 = arith.constant 0 : index
    %c0_55 = arith.constant 0 : index
    %77 = vector.load %arg3[%c1_53, %c0_54, %c0_55] : memref<9x128x128xbf16, #tpu.memory_space<vmem>>, vector<1x128x128xbf16>
    %78 = vector.shape_cast %77 : vector<1x128x128xbf16> to vector<128x128xbf16>
    %cst_56 = arith.constant dense<0.000000e+00> : vector<256x128xf32>
    %79 = tpu.matmul %76, %78, %cst_56 {dimension_numbers = #tpu.dot_dimension_numbers<[1], [0], [0], [1], [0, 0, 1, 1], [], []>} : vector<256x128xbf16>, vector<128x128xbf16>, vector<256x128xf32> -> vector<256x128xf32>
    %80 = arith.addf %74, %79 : vector<256x128xf32>
    %c0_57 = arith.constant 0 : index
    %c2_58 = arith.constant 2 : index
    %c0_59 = arith.constant 0 : index
    %81 = vector.load %arg8[%c0_57, %c2_58, %c0_59] : memref<18x18x128xbf16, #tpu.memory_space<vmem>>, vector<16x16x128xbf16>
    %82 = vector.shape_cast %81 : vector<16x16x128xbf16> to vector<256x128xbf16>
    %c2_60 = arith.constant 2 : index
    %c0_61 = arith.constant 0 : index
    %c0_62 = arith.constant 0 : index
    %83 = vector.load %arg3[%c2_60, %c0_61, %c0_62] : memref<9x128x128xbf16, #tpu.memory_space<vmem>>, vector<1x128x128xbf16>
    %84 = vector.shape_cast %83 : vector<1x128x128xbf16> to vector<128x128xbf16>
    %cst_63 = arith.constant dense<0.000000e+00> : vector<256x128xf32>
    %85 = tpu.matmul %82, %84, %cst_63 {dimension_numbers = #tpu.dot_dimension_numbers<[1], [0], [0], [1], [0, 0, 1, 1], [], []>} : vector<256x128xbf16>, vector<128x128xbf16>, vector<256x128xf32> -> vector<256x128xf32>
    %86 = arith.addf %80, %85 : vector<256x128xf32>
    %c1_64 = arith.constant 1 : index
    %c0_65 = arith.constant 0 : index
    %c0_66 = arith.constant 0 : index
    %87 = vector.load %arg8[%c1_64, %c0_65, %c0_66] : memref<18x18x128xbf16, #tpu.memory_space<vmem>>, vector<16x16x128xbf16>
    %88 = vector.shape_cast %87 : vector<16x16x128xbf16> to vector<256x128xbf16>
    %c3_67 = arith.constant 3 : index
    %c0_68 = arith.constant 0 : index
    %c0_69 = arith.constant 0 : index
    %89 = vector.load %arg3[%c3_67, %c0_68, %c0_69] : memref<9x128x128xbf16, #tpu.memory_space<vmem>>, vector<1x128x128xbf16>
    %90 = vector.shape_cast %89 : vector<1x128x128xbf16> to vector<128x128xbf16>
    %cst_70 = arith.constant dense<0.000000e+00> : vector<256x128xf32>
    %91 = tpu.matmul %88, %90, %cst_70 {dimension_numbers = #tpu.dot_dimension_numbers<[1], [0], [0], [1], [0, 0, 1, 1], [], []>} : vector<256x128xbf16>, vector<128x128xbf16>, vector<256x128xf32> -> vector<256x128xf32>
    %92 = arith.addf %86, %91 : vector<256x128xf32>
    %c1_71 = arith.constant 1 : index
    %c1_72 = arith.constant 1 : index
    %c0_73 = arith.constant 0 : index
    %93 = vector.load %arg8[%c1_71, %c1_72, %c0_73] : memref<18x18x128xbf16, #tpu.memory_space<vmem>>, vector<16x16x128xbf16>
    %94 = vector.shape_cast %93 : vector<16x16x128xbf16> to vector<256x128xbf16>
    %c4_74 = arith.constant 4 : index
    %c0_75 = arith.constant 0 : index
    %c0_76 = arith.constant 0 : index
    %95 = vector.load %arg3[%c4_74, %c0_75, %c0_76] : memref<9x128x128xbf16, #tpu.memory_space<vmem>>, vector<1x128x128xbf16>
    %96 = vector.shape_cast %95 : vector<1x128x128xbf16> to vector<128x128xbf16>
    %cst_77 = arith.constant dense<0.000000e+00> : vector<256x128xf32>
    %97 = tpu.matmul %94, %96, %cst_77 {dimension_numbers = #tpu.dot_dimension_numbers<[1], [0], [0], [1], [0, 0, 1, 1], [], []>} : vector<256x128xbf16>, vector<128x128xbf16>, vector<256x128xf32> -> vector<256x128xf32>
    %98 = arith.addf %92, %97 : vector<256x128xf32>
    %c1_78 = arith.constant 1 : index
    %c2_79 = arith.constant 2 : index
    %c0_80 = arith.constant 0 : index
    %99 = vector.load %arg8[%c1_78, %c2_79, %c0_80] : memref<18x18x128xbf16, #tpu.memory_space<vmem>>, vector<16x16x128xbf16>
    %100 = vector.shape_cast %99 : vector<16x16x128xbf16> to vector<256x128xbf16>
    %c5_81 = arith.constant 5 : index
    %c0_82 = arith.constant 0 : index
    %c0_83 = arith.constant 0 : index
    %101 = vector.load %arg3[%c5_81, %c0_82, %c0_83] : memref<9x128x128xbf16, #tpu.memory_space<vmem>>, vector<1x128x128xbf16>
    %102 = vector.shape_cast %101 : vector<1x128x128xbf16> to vector<128x128xbf16>
    %cst_84 = arith.constant dense<0.000000e+00> : vector<256x128xf32>
    %103 = tpu.matmul %100, %102, %cst_84 {dimension_numbers = #tpu.dot_dimension_numbers<[1], [0], [0], [1], [0, 0, 1, 1], [], []>} : vector<256x128xbf16>, vector<128x128xbf16>, vector<256x128xf32> -> vector<256x128xf32>
    %104 = arith.addf %98, %103 : vector<256x128xf32>
    %c2_85 = arith.constant 2 : index
    %c0_86 = arith.constant 0 : index
    %c0_87 = arith.constant 0 : index
    %105 = vector.load %arg8[%c2_85, %c0_86, %c0_87] : memref<18x18x128xbf16, #tpu.memory_space<vmem>>, vector<16x16x128xbf16>
    %106 = vector.shape_cast %105 : vector<16x16x128xbf16> to vector<256x128xbf16>
    %c6_88 = arith.constant 6 : index
    %c0_89 = arith.constant 0 : index
    %c0_90 = arith.constant 0 : index
    %107 = vector.load %arg3[%c6_88, %c0_89, %c0_90] : memref<9x128x128xbf16, #tpu.memory_space<vmem>>, vector<1x128x128xbf16>
    %108 = vector.shape_cast %107 : vector<1x128x128xbf16> to vector<128x128xbf16>
    %cst_91 = arith.constant dense<0.000000e+00> : vector<256x128xf32>
    %109 = tpu.matmul %106, %108, %cst_91 {dimension_numbers = #tpu.dot_dimension_numbers<[1], [0], [0], [1], [0, 0, 1, 1], [], []>} : vector<256x128xbf16>, vector<128x128xbf16>, vector<256x128xf32> -> vector<256x128xf32>
    %110 = arith.addf %104, %109 : vector<256x128xf32>
    %c2_92 = arith.constant 2 : index
    %c1_93 = arith.constant 1 : index
    %c0_94 = arith.constant 0 : index
    %111 = vector.load %arg8[%c2_92, %c1_93, %c0_94] : memref<18x18x128xbf16, #tpu.memory_space<vmem>>, vector<16x16x128xbf16>
    %112 = vector.shape_cast %111 : vector<16x16x128xbf16> to vector<256x128xbf16>
    %c7_95 = arith.constant 7 : index
    %c0_96 = arith.constant 0 : index
    %c0_97 = arith.constant 0 : index
    %113 = vector.load %arg3[%c7_95, %c0_96, %c0_97] : memref<9x128x128xbf16, #tpu.memory_space<vmem>>, vector<1x128x128xbf16>
    %114 = vector.shape_cast %113 : vector<1x128x128xbf16> to vector<128x128xbf16>
    %cst_98 = arith.constant dense<0.000000e+00> : vector<256x128xf32>
    %115 = tpu.matmul %112, %114, %cst_98 {dimension_numbers = #tpu.dot_dimension_numbers<[1], [0], [0], [1], [0, 0, 1, 1], [], []>} : vector<256x128xbf16>, vector<128x128xbf16>, vector<256x128xf32> -> vector<256x128xf32>
    %116 = arith.addf %110, %115 : vector<256x128xf32>
    %c2_99 = arith.constant 2 : index
    %c2_100 = arith.constant 2 : index
    %c0_101 = arith.constant 0 : index
    %117 = vector.load %arg8[%c2_99, %c2_100, %c0_101] : memref<18x18x128xbf16, #tpu.memory_space<vmem>>, vector<16x16x128xbf16>
    %118 = vector.shape_cast %117 : vector<16x16x128xbf16> to vector<256x128xbf16>
    %c8_102 = arith.constant 8 : index
    %c0_103 = arith.constant 0 : index
    %c0_104 = arith.constant 0 : index
    %119 = vector.load %arg3[%c8_102, %c0_103, %c0_104] : memref<9x128x128xbf16, #tpu.memory_space<vmem>>, vector<1x128x128xbf16>
    %120 = vector.shape_cast %119 : vector<1x128x128xbf16> to vector<128x128xbf16>
    %cst_105 = arith.constant dense<0.000000e+00> : vector<256x128xf32>
    %121 = tpu.matmul %118, %120, %cst_105 {dimension_numbers = #tpu.dot_dimension_numbers<[1], [0], [0], [1], [0, 0, 1, 1], [], []>} : vector<256x128xbf16>, vector<128x128xbf16>, vector<256x128xf32> -> vector<256x128xf32>
    %122 = arith.addf %116, %121 : vector<256x128xf32>
    %c0_106 = arith.constant 0 : index
    %c0_107 = arith.constant 0 : index
    %123 = vector.load %arg6[%c0_106, %c0_107] : memref<1x128xf32, #tpu.memory_space<vmem>>, vector<1x128xf32>
    %124 = vector.broadcast %123 : vector<1x128xf32> to vector<256x128xf32>
    %125 = arith.addf %122, %124 : vector<256x128xf32>
    %126 = arith.addf %125, %58 : vector<256x128xf32>
    %c0_108 = arith.constant 0 : index
    %c0_109 = arith.constant 0 : index
    %c0_110 = arith.constant 0 : index
    %127 = vector.load %arg7[%c0_108, %c0_109, %c0_110] : memref<1x256x128xf32, #tpu.memory_space<vmem>>, vector<1x256x128xf32>
    %128 = vector.shape_cast %127 : vector<1x256x128xf32> to vector<256x128xf32>
    %129 = vector.shape_cast %126 : vector<256x128xf32> to vector<1x256x128xf32>
    tpu.vector_store %arg7[%c0_108, %c0_109, %c0_110], %129 {strides = array<i32>} : memref<1x256x128xf32, #tpu.memory_space<vmem>>, vector<1x256x128xf32>,
    return
  }
  func.func @transform_0(%arg0: i32) -> (i32, i32, i32, i32) {
    %c0_i32 = arith.constant 0 : i32
    %c0_i32_0 = arith.constant 0 : i32
    %c0_i32_1 = arith.constant 0 : i32
    %c0_i32_2 = arith.constant 0 : i32
    return %arg0, %c0_i32, %c0_i32_0, %c0_i32_1 : i32, i32, i32, i32
  }
  func.func @transform_1(%arg0: i32) -> (i32, i32, i32) {
    %c0_i32 = arith.constant 0 : i32
    %c0_i32_0 = arith.constant 0 : i32
    %c0_i32_1 = arith.constant 0 : i32
    %c0_i32_2 = arith.constant 0 : i32
    return %c0_i32, %c0_i32_0, %c0_i32_1 : i32, i32, i32
  }
  func.func @transform_2(%arg0: i32) -> (i32, i32, i32) {
    %c0_i32 = arith.constant 0 : i32
    %c0_i32_0 = arith.constant 0 : i32
    %c0_i32_1 = arith.constant 0 : i32
    %c0_i32_2 = arith.constant 0 : i32
    return %c0_i32, %c0_i32_0, %c0_i32_1 : i32, i32, i32
  }
  func.func @transform_3(%arg0: i32) -> (i32, i32) {
    %c0_i32 = arith.constant 0 : i32
    %c0_i32_0 = arith.constant 0 : i32
    %c0_i32_1 = arith.constant 0 : i32
    return %c0_i32, %c0_i32_0 : i32, i32
  }
  func.func @transform_4(%arg0: i32) -> (i32, i32) {
    %c0_i32 = arith.constant 0 : i32
    %c0_i32_0 = arith.constant 0 : i32
    %c0_i32_1 = arith.constant 0 : i32
    return %c0_i32, %c0_i32_0 : i32, i32
  }
  func.func @transform_5(%arg0: i32) -> (i32, i32) {
    %c0_i32 = arith.constant 0 : i32
    %c0_i32_0 = arith.constant 0 : i32
    %c0_i32_1 = arith.constant 0 : i32
    return %c0_i32, %c0_i32_0 : i32, i32
  }
  func.func @transform_6(%arg0: i32) -> (i32, i32, i32) {
    %c0_i32 = arith.constant 0 : i32
    %c0_i32_0 = arith.constant 0 : i32
    %c0_i32_1 = arith.constant 0 : i32
    return %arg0, %c0_i32, %c0_i32_0 : i32, i32, i32
  }
}

</mosaic_0001>

<bundles_post_ra>
// kernel: standard_unit_forward.1
= control target key start
LH: loop header
LB: loop body
LE: loop exit
PB: predicated region body
PF: predicated region fallthrough
CT: control target
= control target key end

     0   :  { %s10663_s21 = smov 0   ;;  %s14928_s0 = inlined_call_operand.vmem [shape: bf16[2,18,18,16], index: 0, kind: input, shape index: {}]   ;;  %s14929_s1 = inlined_call_operand.vmem [shape: bf16[9,16,128], index: 1, kind: input, shape index: {}]   ;;  %s14930_s2 = inlined_call_operand.vmem [shape: bf16[9,128,128], index: 2, kind: input, shape index: {}]   ;;  %s14931_s3 = inlined_call_operand.vmem [shape: f32[1,128], index: 3, kind: input, shape index: {}]   ;;  %s14932_s4 = inlined_call_operand.vmem [shape: f32[1,128], index: 4, kind: input, shape index: {}]   ;;  %s14933_s5 = inlined_call_operand.vmem [shape: f32[1,128], index: 5, kind: input, shape index: {}]   ;;  %s14934_s6 = inlined_call_operand.vmem [shape: f32[2,256,128], index: 6, kind: output, shape index: {}]  }
   0x1 LB: > { %s8632_s22 = sadd.s32 4294967295, %s10625_s21   ;;  %p8636_p0 = scmp.ge.s32.totalorder %s10625_s21, 1  ;;  %s10625_s21 = sphi %s10663_s21, %s16_s21  }
   0x2   : > { %p212_p1 = scmp.lt.s32.totalorder %s10625_s21, 3 }
   0x4   : > { %p213_p2 = pnand %p8636_p0, %p212_p1 }
   0x6   : > { %216 = sbr.rel (%p213_p2) target bundleno = 1131 (0x46b), region = 44 }
   0xb   : > { %v10460_v0 = vld [vmem:[%s14929_s1 + $0x8] sm:$0xff]   ;;  %p242_p3 = scmp.lt.s32.totalorder %s8632_s22, 1  ;;  %v10461_v1 = vld [vmem:[%s14929_s1] sm:$0xff]   ;;  %v10682_v2 = vld [vmem:[%s14929_s1 + $0x10] sm:$0xff]   ;;  %vm807_vm0 = vcmask 130048   ;;  %v15036_v30 = vmov 0 }
   0xc   : > { %9712 = vmatprep.subr.bf16.mxu0 %v10460_v0  ;;  %9746 = vmatprep.subr.bf16.mxu1 %v10461_v1  ;;  %v10479_v3 = vld [vmem:[%s14929_s1 + $0x18] sm:$0xff]   ;;  %vm363_vm1 = vsmask.f32 3328  ;;  %vm364_vm2 = vsmask.f32 7440  ;;  %vm1328_vm4 = vcmask 1042432  }
   0xd   : > { %s15512_s22 = smov (!%p242_p3, %s8632_s22), 1  ;;  %9713 = vmatpush3.bf16.msra.mxu0 %v10460_v0  ;;  %9747 = vmatpush3.bf16.msra.mxu1 %v10461_v1  ;;  %vm10731_vm3 = vmor %vm363_vm1, %vm364_vm2  ;;  %vm1329_vm5 = vcmask 1046532   ;;  %vm3555_vm7 = vcmask 1043456   ;;  %vm3556_vm8 = vsmask.f32 7938  ;;  %vm3562_vm11 = vcmask 1040384  }
   0xe   : > { %s10450_s29 = smul.u32 216, %s15512_s22  ;;  %9780 = vmatprep.subr.bf16.mxu0 %v10682_v2  ;;  %9814 = vmatprep.subr.bf16.mxu1 %v10479_v3  ;;  %v15037_v30 = vsel %vm10731_vm3, 4294967295, %v15036_v30  ;;  %vm11145_vm6 = vmor %vm1328_vm4, %vm1329_vm5  ;;  %vm3231_vm9 = vsmask.f32 256  ;;  %vm3232_vm10 = vsmask.f32 4368 }
   0xf   : > { %15038 = vst [vmem:[#allocation3_spill] sm:$0xff] %v15037_v30  ;;  %vm12292_vm12 = vmand %vm3555_vm7, %vm3556_vm8  ;;  %s9310_s25 = sshll.u32 %s15512_s22, 8 }
  0x10   : > { %s10692_s10 = scalar_lea.vmem %s14928_s0, %s10450_s29  ;;  %vm12309_vm13 = vmor %vm3231_vm9, %vm3232_vm10  ;;  %s14715_s22 = scalar_lea.vmem %s14934_s6, %s9310_s25 }
  0x11   : > { %v10695_v4 = vld [vmem:[%s10692_s10] sm:$0xf]  ;;  %v10698_v5 = vld [vmem:[%s10692_s10 + $0x4] sm:$0xf]  ;;  %v10701_v6 = vld [vmem:[%s10692_s10 + $0x8] sm:$0x1] }
  0x12   : > { %v367_v7 = vshrl.u32 %v10695_v4, 16  ;;  %v370_v8 = vshll.u32 %v10695_v4, 16  ;;  %v376_v9 = vshll.u32 %v10698_v5, 16  ;;  %v380_v10 = vshrl.u32 %v10698_v5, 16  ;;  %v10708_v11 = vld [vmem:[%s10692_s10 + $0xc] sm:$0xf]  ;;  %vm12315_vm14 = vmand %vm3562_vm11, %vm3231_vm9 }
  0x13   : > { %v386_v12 = vshll.u32 %v10701_v6, 16  ;;  %v8675_v14 = vcombine.low %v10695_v4, %v10698_v5  ;;  %v10715_v15 = vld [vmem:[%s10692_s10 + $0x10] sm:$0xf]  ;;  %v10718_v16 = vld [vmem:[%s10692_s10 + $0x14] sm:$0x1]  ;;  %v391_v22 = vshrl.u32 %v10708_v11, 16 }
  0x14   : > { %v369_v17 = vrot.slane %v367_v7, 4  ;;  %v372_v18 = vrot.slane %v370_v8, 5  ;;  %v378_v19 = vrot.slane %v376_v9, 5  ;;  %v382_v20 = vrot.slane %v380_v10, 4  ;;  %v10727_v29 = vld [vmem:[%s10692_s10 + $0x18] sm:$0xf] }
  0x15   : > { %v388_v21 = vrot.slane %v386_v12, 5  ;;  %9748 = vmatprep.mubr.msk.bf16.mxu1 %vm807_vm0, %v8675_v14  ;;  %v394_v23 = vshll.u32 %v10708_v11, 16  ;;  %v400_v24 = vshll.u32 %v10715_v15, 16  ;;  %v404_v27 = vshrl.u32 %v10715_v15, 16  ;;  %v10737_v39 = vld [vmem:[%s10692_s10 + $0x1c] sm:$0xf] }
  0x16   : > { %v373_v25 = vor.u32 %v372_v18, %v369_v17  ;;  %v383_v26 = vor.u32 %v382_v20, %v378_v19  ;;  %v410_v28 = vshll.u32 %v10718_v16, 16  ;;  %v393_v31 = vrot.slane %v391_v22, 4  ;;  %v10745_v43 = vld [vmem:[%s10692_s10 + $0x20] sm:$0x1]  ;;  %v10754_v49 = vld [vmem:[%s10692_s10 + $0x24] sm:$0xf] }
  0x17   : > { %v396_v32 = vrot.slane %v394_v23, 5  ;;  %v402_v33 = vrot.slane %v400_v24, 5  ;;  %v406_v37 = vrot.slane %v404_v27, 4  ;;  %v10742_v42 = vcombine.low %v10708_v11, %v10715_v15  ;;  %v10762_v58 = vld [vmem:[%s10692_s10 + $0x28] sm:$0xf]  ;;  %v10789_v17 = vld [vmem:[%s14929_s1 + $0x20] sm:$0xff]  }
  0x18   : > { %v374_v35 = vrot.slane %v373_v25, 4  ;;  %v384_v36 = vrot.slane %v383_v26, 4  ;;  %v412_v38 = vrot.slane %v410_v28, 5  ;;  %v415_v44 = vshrl.u32 %v10727_v29, 16  ;;  %v10772_v62 = vld [vmem:[%s10692_s10 + $0x2c] sm:$0x1] }
  0x19   : > { %v397_v40 = vor.u32 %v396_v32, %v393_v31  ;;  %v407_v47 = vor.u32 %v406_v37, %v402_v33  ;;  %v418_v48 = vshll.u32 %v10727_v29, 16  ;;  %9749 = vmatmul.mubr.msk.bf16.vlgmr.msra.gmra.mxu1 %vm807_vm0, %v10742_v42  ;;  %v424_v53 = vshll.u32 %v10737_v39, 16  ;;  %v10778_v8 = vld [vmem:[%s10692_s10 + $0x30] sm:$0xf]  ;;  %15040 = vst [vmem:[#allocation5_spill] sm:$0xff] %v10789_v17  ;;  %v10809_v28 = vld [vmem:[%s14929_s1 + $0x28] sm:$0xff]  }
  0x1a   : > { %v379_v45 = vsel %vm10731_vm3, %v374_v35, %v378_v19  ;;  %v389_v46 = vsel %vm10731_vm3, %v384_v36, %v388_v21  ;;  %v417_v52 = vrot.slane %v415_v44, 4  ;;  %v428_v56 = vshrl.u32 %v10737_v39, 16  ;;  %9815 = vmatpush3.bf16.msra.mxu1 %v10479_v3  ;;  %v10794_v22 = vld [vmem:[%s10692_s10 + $0x34] sm:$0xf]  ;;  %v10803_v26 = vld [vmem:[%s10692_s10 + $0x38] sm:$0x1] }
  0x1b   : > { %v8642_v50 = vcombine.low %v379_v45, %v389_v46  ;;  %v398_v51 = vrot.slane %v397_v40, 4  ;;  %v408_v54 = vrot.slane %v407_v47, 4  ;;  %v420_v55 = vrot.slane %v418_v48, 5  ;;  %v10824_v47 = vld [vmem:[%s10692_s10 + $0x3c] sm:$0xf]  ;;  %9882 = vmatprep.subr.bf16.mxu1 %v10809_v28 }
  0x1c   : > { %v434_v57 = vshll.u32 %v10745_v43, 16  ;;  %v426_v60 = vrot.slane %v424_v53, 5  ;;  %v10769_v61 = vcombine.low %v10727_v29, %v10737_v39  ;;  %v439_v63 = vshrl.u32 %v10754_v49, 16  ;;  %v10830_v53 = vld [vmem:[%s10692_s10 + $0x40] sm:$0xf] }
  0x1d   : > { %9714 = vmatprep.mubr.msk.bf16.mxu0 %vm807_vm0, %v8642_v50  ;;  %v403_v59 = vsel %vm10731_vm3, %v398_v51, %v402_v33  ;;  %v413_v0 = vsel %vm10731_vm3, %v408_v54, %v412_v38  ;;  %v421_v1 = vor.u32 %v420_v55, %v417_v52  ;;  %v430_v3 = vrot.slane %v428_v56, 4  ;;  %v10936_v13 = vld [vmem:[%s10692_s10 + $0x70] sm:$0xf]  ;;  %v10945_v41 = vld [vmem:[%s10692_s10 + $0x74] sm:$0x1] }
  0x1e   : > { %v436_v7 = vrot.slane %v434_v57, 5  ;;  %v10780_v9 = vcombine.low %v403_v59, %v413_v0  ;;  %9752 = vmatprep.mubr.msk.bf16.mxu1 %vm807_vm0, %v10769_v61  ;;  %v441_v10 = vrot.slane %v439_v63, 4  ;;  %v442_v12 = vshll.u32 %v10754_v49, 16  ;;  %v10841_v63 = vld [vmem:[%s10692_s10 + $0x44] sm:$0x1] }
  0x1f   : > { %v448_v14 = vshll.u32 %v10762_v58, 16  ;;  %v422_v18 = vrot.slane %v421_v1, 4  ;;  %v431_v19 = vor.u32 %v430_v3, %v426_v60  ;;  %v452_v20 = vshrl.u32 %v10762_v58, 16 }
  0x20   : > { %15039 = vst [vmem:[#allocation4_spill] sm:$0xff] %v10780_v9  ;;  %v458_v21 = vshll.u32 %v10772_v62, 16  ;;  %9715 = vmatmul.mubr.msk.bf16.vlgmr.msra.gmra.mxu0 %vm807_vm0, %v10780_v9  ;;  %v444_v23 = vrot.slane %v442_v12, 5  ;;  %v10800_v25 = vcombine.low %v10754_v49, %v10762_v58  ;;  %v463_v27 = vshrl.u32 %v10778_v8, 16  ;;  %v10991_v9 = vld [vmem:[%s10692_s10 + $0x88] sm:$0xf] }
  0x21   : > { %v450_v24 = vrot.slane %v448_v14, 5  ;;  %9781 = vmatpush3.bf16.msra.mxu0 %v10682_v2  ;;  %v427_v31 = vsel %vm10731_vm3, %v422_v18, %v426_v60  ;;  %v432_v32 = vrot.slane %v431_v19, 4  ;;  %v454_v33 = vrot.slane %v452_v20, 4  ;;  %v10852_v14 = vld [vmem:[%s10692_s10 + $0x48] sm:$0xf]  ;;  %15056 = vst [vmem:[#allocation21_spill] sm:$0xff] %v10991_v9 }
  0x22   : > { %v460_v35 = vrot.slane %v458_v21, 5  ;;  %v445_v36 = vor.u32 %v444_v23, %v441_v10  ;;  %9753 = vmatmul.mubr.msk.bf16.gmra.mxu1 %vm807_vm0, %v10800_v25  ;;  %v465_v37 = vrot.slane %v463_v27, 4  ;;  %v466_v38 = vshll.u32 %v10778_v8, 16  ;;  %9848 = vmatprep.subr.bf16.mxu0 %v10789_v17 }
  0x23   : > { %v472_v40 = vshll.u32 %v10794_v22, 16  ;;  %v437_v2 = vsel %vm10731_vm3, %v432_v32, %v436_v7  ;;  %v455_v44 = vor.u32 %v454_v33, %v450_v24  ;;  %v476_v45 = vshrl.u32 %v10794_v22, 16  ;;  %v10858_v32 = vld [vmem:[%s10692_s10 + $0x4c] sm:$0xf] }
  0x24   : > { %v482_v46 = vshll.u32 %v10803_v26, 16  ;;  %v10827_v48 = vcombine.low %v427_v31, %v437_v2  ;;  %v446_v50 = vrot.slane %v445_v36, 4  ;;  %v468_v51 = vrot.slane %v466_v38, 5 }
  0x25   : > { %v474_v52 = vrot.slane %v472_v40, 5  ;;  %v456_v54 = vrot.slane %v455_v44, 4  ;;  %v478_v55 = vrot.slane %v476_v45, 4  ;;  %v10834_v57 = vcombine.low %v10778_v8, %v10794_v22 }
  0x26   : > { %15041 = vst [vmem:[#allocation6_spill] sm:$0xff] %v10827_v48  ;;  %v484_v56 = vrot.slane %v482_v46, 5  ;;  %9718 = vmatprep.mubr.msk.bf16.mxu0 %vm807_vm0, %v10827_v48  ;;  %v451_v59 = vsel %vm10731_vm3, %v446_v50, %v450_v24  ;;  %v469_v60 = vor.u32 %v468_v51, %v465_v37  ;;  %v487_v0 = vshrl.u32 %v10824_v47, 16  ;;  %v10869_v37 = vld [vmem:[%s10692_s10 + $0x50] sm:$0x1] }
  0x27   : > { %v490_v1 = vshll.u32 %v10824_v47, 16  ;;  %v461_v3 = vsel %vm10731_vm3, %v456_v54, %v460_v35  ;;  %v479_v7 = vor.u32 %v478_v55, %v474_v52  ;;  %9756 = vmatprep.mubr.msk.bf16.mxu1 %vm807_vm0, %v10834_v57  ;;  %v496_v10 = vshll.u32 %v10830_v53, 16  ;;  %v10876_v46 = vld [vmem:[%s10692_s10 + $0x54] sm:$0xf]  ;;  %v10976_v48 = vld [vmem:[%s10692_s10 + $0x84] sm:$0xf] }
  0x28   : > { %v500_v12 = vshrl.u32 %v10830_v53, 16  ;;  %v10854_v18 = vcombine.low %v451_v59, %v461_v3  ;;  %v470_v19 = vrot.slane %v469_v60, 4  ;;  %v489_v20 = vrot.slane %v487_v0, 4  ;;  %v10886_v0 = vld [vmem:[%s10692_s10 + $0x58] sm:$0xf]  ;;  %15054 = vst [vmem:[#allocation19_spill] sm:$0xff] %v10976_v48 }
  0x29   : > { %v492_v21 = vrot.slane %v490_v1, 5  ;;  %v480_v23 = vrot.slane %v479_v7, 4  ;;  %v498_v24 = vrot.slane %v496_v10, 5  ;;  %v506_v31 = vshll.u32 %v10841_v63, 16  ;;  %v10897_v10 = vld [vmem:[%s10692_s10 + $0x5c] sm:$0x1] }
  0x2a   : > { %15042 = vst [vmem:[#allocation7_spill] sm:$0xff] %v10854_v18  ;;  %v502_v27 = vrot.slane %v500_v12, 4  ;;  %9719 = vmatmul.mubr.msk.bf16.gmra.mxu0 %vm807_vm0, %v10854_v18  ;;  %v475_v33 = vsel %vm10731_vm3, %v470_v19, %v474_v52  ;;  %v10866_v36 = vcombine.low %v10824_v47, %v10830_v53  ;;  %v511_v38 = vshrl.u32 %v10852_v14, 16 }
  0x2b   : > { %v493_v35 = vor.u32 %v492_v21, %v489_v20  ;;  %v485_v40 = vsel %vm10731_vm3, %v480_v23, %v484_v56  ;;  %v508_v44 = vrot.slane %v506_v31, 5  ;;  %v514_v45 = vshll.u32 %v10852_v14, 16 }
  0x2c   : > { %15043 = vst [vmem:[#allocation8_spill] sm:$0xff] %v10866_v36  ;;  %v503_v2 = vor.u32 %v502_v27, %v498_v24  ;;  %v10878_v50 = vcombine.low %v475_v33, %v485_v40  ;;  %9757 = vmatmul.mubr.msk.bf16.gmra.mxu1 %vm807_vm0, %v10866_v36  ;;  %v513_v52 = vrot.slane %v511_v38, 4  ;;  %v520_v54 = vshll.u32 %v10858_v32, 16  ;;  %v10903_v27 = vld [vmem:[%s10692_s10 + $0x60] sm:$0xf] }
  0x2d   : > { %v494_v51 = vrot.slane %v493_v35, 4  ;;  %v516_v59 = vrot.slane %v514_v45, 5  ;;  %v524_v56 = vshrl.u32 %v10858_v32, 16  ;;  %v530_v60 = vshll.u32 %v10869_v37, 16  ;;  %v10914_v45 = vld [vmem:[%s10692_s10 + $0x64] sm:$0xf] }
  0x2e   : > { %15044 = vst [vmem:[#allocation9_spill] sm:$0xff] %v10878_v50  ;;  %v504_v55 = vrot.slane %v503_v2, 4  ;;  %9722 = vmatprep.mubr.msk.bf16.mxu0 %vm807_vm0, %v10878_v50  ;;  %v522_v3 = vrot.slane %v520_v54, 5  ;;  %v10894_v7 = vcombine.low %v10852_v14, %v10858_v32  ;;  %v535_v12 = vshrl.u32 %v10876_v46, 16 }
  0x2f   : > { %v499_v1 = vsel %vm10731_vm3, %v494_v51, %v498_v24  ;;  %v517_v20 = vor.u32 %v516_v59, %v513_v52  ;;  %v526_v21 = vrot.slane %v524_v56, 4  ;;  %v532_v23 = vrot.slane %v530_v60, 5 }
  0x30   : > { %15045 = vst [vmem:[#allocation10_spill] sm:$0xff] %v10894_v7  ;;  %v509_v19 = vsel %vm10731_vm3, %v504_v55, %v508_v44  ;;  %9760 = vmatprep.mubr.msk.bf16.mxu1 %vm807_vm0, %v10894_v7  ;;  %v537_v31 = vrot.slane %v535_v12, 4  ;;  %v538_v33 = vshll.u32 %v10876_v46, 16  ;;  %v544_v35 = vshll.u32 %v10886_v0, 16  ;;  %v10923_v55 = vld [vmem:[%s10692_s10 + $0x68] sm:$0x1] }
  0x31   : > { %v10905_v24 = vcombine.low %v499_v1, %v509_v19  ;;  %v518_v38 = vrot.slane %v517_v20, 4  ;;  %v527_v40 = vor.u32 %v526_v21, %v522_v3  ;;  %v548_v2 = vshrl.u32 %v10886_v0, 16  ;;  %v10929_v19 = vld [vmem:[%s10692_s10 + $0x6c] sm:$0xf]  ;;  %v11018_v7 = vld [vmem:[%s10692_s10 + $0x94] sm:$0xf] }
  0x32   : > { %v554_v44 = vshll.u32 %v10897_v10, 16  ;;  %v540_v51 = vrot.slane %v538_v33, 5  ;;  %v546_v52 = vrot.slane %v544_v35, 5  ;;  %v10920_v54 = vcombine.low %v10876_v46, %v10886_v0 }
  0x33   : > { %15046 = vst [vmem:[#allocation11_spill] sm:$0xff] %v10905_v24  ;;  %9723 = vmatmul.mubr.msk.bf16.gmra.mxu0 %vm807_vm0, %v10905_v24  ;;  %v559_v59 = vshrl.u32 %v10903_v27, 16  ;;  %v523_v56 = vsel %vm10731_vm3, %v518_v38, %v522_v3  ;;  %v528_v60 = vrot.slane %v527_v40, 4  ;;  %v550_v1 = vrot.slane %v548_v2, 4 }
  0x34   : > { %15047 = vst [vmem:[#allocation12_spill] sm:$0xff] %v10920_v54  ;;  %v556_v12 = vrot.slane %v554_v44, 5  ;;  %v541_v20 = vor.u32 %v540_v51, %v537_v31  ;;  %9761 = vmatmul.mubr.msk.bf16.gmra.mxu1 %vm807_vm0, %v10920_v54  ;;  %v562_v33 = vshll.u32 %v10903_v27, 16  ;;  %v568_v35 = vshll.u32 %v10914_v45, 16 }
  0x35   : > { %v561_v21 = vrot.slane %v559_v59, 4  ;;  %v533_v3 = vsel %vm10731_vm3, %v528_v60, %v532_v23  ;;  %v551_v38 = vor.u32 %v550_v1, %v546_v52  ;;  %v572_v40 = vshrl.u32 %v10914_v45, 16  ;;  %v10952_v23 = vld [vmem:[%s10692_s10 + $0x78] sm:$0xf] }
  0x36   : > { %v578_v2 = vshll.u32 %v10923_v55, 16  ;;  %v10942_v31 = vcombine.low %v523_v56, %v533_v3  ;;  %v542_v44 = vrot.slane %v541_v20, 4  ;;  %v564_v51 = vrot.slane %v562_v33, 5  ;;  %15050 = vst [vmem:[#allocation15_spill] sm:$0xff] %v10952_v23 }
  0x37   : > { %v570_v59 = vrot.slane %v568_v35, 5  ;;  %v552_v34 = vrot.slane %v551_v38, 4  ;;  %v574_v24 = vrot.slane %v572_v40, 4  ;;  %v10949_v18 = vcombine.low %v10903_v27, %v10914_v45  ;;  %v10967_v40 = vld [vmem:[%s10692_s10 + $0x7c] sm:$0xf] }
  0x38   : > { %15048 = vst [vmem:[#allocation13_spill] sm:$0xff] %v10942_v31  ;;  %v580_v50 = vrot.slane %v578_v2, 5  ;;  %9726 = vmatprep.mubr.msk.bf16.mxu0 %vm807_vm0, %v10942_v31  ;;  %v547_v56 = vsel %vm10731_vm3, %v542_v44, %v546_v52  ;;  %v565_v60 = vor.u32 %v564_v51, %v561_v21  ;;  %v583_v1 = vshrl.u32 %v10929_v19, 16  ;;  %15051 = vst [vmem:[#allocation16_spill] sm:$0xff] %v10967_v40  ;;  %v10972_v51 = vld [vmem:[%s10692_s10 + $0x80] sm:$0x1] }
  0x39   : > { %15049 = vst [vmem:[#allocation14_spill] sm:$0xff] %v10949_v18  ;;  %v586_v20 = vshll.u32 %v10929_v19, 16  ;;  %v557_v33 = vsel %vm10731_vm3, %v552_v34, %v556_v12  ;;  %v575_v35 = vor.u32 %v574_v24, %v570_v59  ;;  %9764 = vmatprep.mubr.msk.bf16.mxu1 %vm807_vm0, %v10949_v18  ;;  %v592_v3 = vshll.u32 %v10936_v13, 16  ;;  %15053 = vst [vmem:[#allocation18_spill] sm:$0xff] %v10972_v51 }
  0x3a   : > { %v596_v38 = vshrl.u32 %v10936_v13, 16  ;;  %v10969_v52 = vcombine.low %v547_v56, %v557_v33  ;;  %v566_v21 = vrot.slane %v565_v60, 4  ;;  %v585_v2 = vrot.slane %v583_v1, 4 }
  0x3b   : > { %v588_v44 = vrot.slane %v586_v20, 5  ;;  %v576_v31 = vrot.slane %v575_v35, 4  ;;  %v594_v34 = vrot.slane %v592_v3, 5  ;;  %v602_v12 = vshll.u32 %v10945_v41, 16 }
  0x3c   : > { %15052 = vst [vmem:[#allocation17_spill] sm:$0xff] %v10969_v52  ;;  %v598_v24 = vrot.slane %v596_v38, 4  ;;  %9727 = vmatmul.mubr.msk.bf16.gmra.mxu0 %vm807_vm0, %v10969_v52  ;;  %v571_v56 = vsel %vm10731_vm3, %v566_v21, %v570_v59  ;;  %v10984_v1 = vcombine.low %v10929_v19, %v10936_v13  ;;  %v607_v20 = vshrl.u32 %v10952_v23, 16 }
  0x3d   : > { %v589_v60 = vor.u32 %v588_v44, %v585_v2  ;;  %v581_v33 = vsel %vm10731_vm3, %v576_v31, %v580_v50  ;;  %v604_v3 = vrot.slane %v602_v12, 5  ;;  %v610_v38 = vshll.u32 %v10952_v23, 16  ;;  %v10999_v44 = vld [vmem:[%s10692_s10 + $0x8c] sm:$0x1]  ;;  %v11004_v12 = vld [vmem:[%s10692_s10 + $0x90] sm:$0xf] }
  0x3e   : > { %15055 = vst [vmem:[#allocation20_spill] sm:$0xff] %v10984_v1  ;;  %v599_v35 = vor.u32 %v598_v24, %v594_v34  ;;  %v10993_v52 = vcombine.low %v571_v56, %v581_v33  ;;  %9765 = vmatmul.mubr.msk.bf16.gmra.mxu1 %vm807_vm0, %v10984_v1  ;;  %v609_v21 = vrot.slane %v607_v20, 4  ;;  %v616_v2 = vshll.u32 %v10967_v40, 16  ;;  %15058 = vst [vmem:[#allocation23_spill] sm:$0xff] %v10999_v44 }
  0x3f   : > { %v590_v59 = vrot.slane %v589_v60, 4  ;;  %v612_v50 = vrot.slane %v610_v38, 5  ;;  %v620_v31 = vshrl.u32 %v10967_v40, 16  ;;  %v626_v24 = vshll.u32 %v10972_v51, 16 }
  0x40   : > { %15057 = vst [vmem:[#allocation22_spill] sm:$0xff] %v10993_v52  ;;  %v600_v18 = vrot.slane %v599_v35, 4  ;;  %9730 = vmatprep.mubr.msk.bf16.mxu0 %vm807_vm0, %v10993_v52  ;;  %v618_v60 = vrot.slane %v616_v2, 5  ;;  %v11012_v20 = vcombine.low %v10952_v23, %v10967_v40  ;;  %v631_v33 = vshrl.u32 %v10976_v48, 16  ;;  %v11027_v52 = vld [vmem:[%s10692_s10 + $0x98] sm:$0x1] }
  0x41   : > { %v595_v56 = vsel %vm10731_vm3, %v590_v59, %v594_v34  ;;  %v613_v38 = vor.u32 %v612_v50, %v609_v21  ;;  %v622_v1 = vrot.slane %v620_v31, 4  ;;  %v628_v54 = vrot.slane %v626_v24, 5  ;;  %15061 = vst [vmem:[#allocation26_spill] sm:$0xff] %v11027_v52 }
  0x42   : > { %15059 = vst [vmem:[#allocation24_spill] sm:$0xff] %v11012_v20  ;;  %v605_v35 = vsel %vm10731_vm3, %v600_v18, %v604_v3  ;;  %9768 = vmatprep.mubr.msk.bf16.mxu1 %vm807_vm0, %v11012_v20  ;;  %v633_v34 = vrot.slane %v631_v33, 4  ;;  %v634_v59 = vshll.u32 %v10976_v48, 16  ;;  %v640_v2 = vshll.u32 %v10991_v9, 16  ;;  %v11041_v20 = vld [vmem:[%s10692_s10 + $0x9c] sm:$0xf] }
  0x43   : > { %v11020_v51 = vcombine.low %v595_v56, %v605_v35  ;;  %v614_v36 = vrot.slane %v613_v38, 4  ;;  %v623_v18 = vor.u32 %v622_v1, %v618_v60  ;;  %v644_v3 = vshrl.u32 %v10991_v9, 16 }
  0x44   : > { %v650_v21 = vshll.u32 %v10999_v44, 16  ;;  %v636_v50 = vrot.slane %v634_v59, 5  ;;  %v642_v31 = vrot.slane %v640_v2, 5  ;;  %v11035_v24 = vcombine.low %v10976_v48, %v10991_v9  ;;  %v11048_v9 = vld [vmem:[%s10692_s10 + $0xa0] sm:$0xf] }
  0x45   : > { %15060 = vst [vmem:[#allocation25_spill] sm:$0xff] %v11020_v51  ;;  %9731 = vmatmul.mubr.msk.bf16.gmra.mxu0 %vm807_vm0, %v11020_v51  ;;  %v655_v56 = vshrl.u32 %v11004_v12, 16  ;;  %v619_v33 = vsel %vm10731_vm3, %v614_v36, %v618_v60  ;;  %v624_v1 = vrot.slane %v623_v18, 4  ;;  %v646_v35 = vrot.slane %v644_v3, 4  ;;  %15063 = vst [vmem:[#allocation28_spill] sm:$0xff] %v11048_v9 }
  0x46   : > { %15062 = vst [vmem:[#allocation27_spill] sm:$0xff] %v11035_v24  ;;  %v652_v38 = vrot.slane %v650_v21, 5  ;;  %v637_v44 = vor.u32 %v636_v50, %v633_v34  ;;  %9769 = vmatmul.mubr.msk.bf16.gmra.mxu1 %vm807_vm0, %v11035_v24  ;;  %v658_v2 = vshll.u32 %v11004_v12, 16  ;;  %v664_v51 = vshll.u32 %v11018_v7, 16  ;;  %v11057_v24 = vld [vmem:[%s10692_s10 + $0xa4] sm:$0x1] }
  0x47   : > { %v657_v59 = vrot.slane %v655_v56, 4  ;;  %v629_v36 = vsel %vm10731_vm3, %v624_v1, %v628_v54  ;;  %v647_v60 = vor.u32 %v646_v35, %v642_v31  ;;  %v668_v18 = vshrl.u32 %v11018_v7, 16  ;;  %15065 = vst [vmem:[#allocation30_spill] sm:$0xff] %v11057_v24  ;;  %v11064_v54 = vld [vmem:[%s10692_s10 + $0xa8] sm:$0xf] }
  0x48   : > { %v674_v3 = vshll.u32 %v11027_v52, 16  ;;  %v11054_v34 = vcombine.low %v619_v33, %v629_v36  ;;  %v638_v21 = vrot.slane %v637_v44, 4  ;;  %v660_v50 = vrot.slane %v658_v2, 5  ;;  %15067 = vst [vmem:[#allocation32_spill] sm:$0xff] %v11064_v54 }
  0x49   : > { %v666_v56 = vrot.slane %v664_v51, 5  ;;  %v648_v48 = vrot.slane %v647_v60, 4  ;;  %v670_v40 = vrot.slane %v668_v18, 4  ;;  %v11061_v23 = vcombine.low %v11004_v12, %v11018_v7  ;;  %v11079_v18 = vld [vmem:[%s10692_s10 + $0xac] sm:$0xf] }
  0x4a   : > { %15064 = vst [vmem:[#allocation29_spill] sm:$0xff] %v11054_v34  ;;  %v676_v17 = vrot.slane %v674_v3, 5  ;;  %9734 = vmatprep.mubr.msk.bf16.mxu0 %vm807_vm0, %v11054_v34  ;;  %v643_v44 = vsel %vm10731_vm3, %v638_v21, %v642_v31  ;;  %v661_v51 = vor.u32 %v660_v50, %v657_v59  ;;  %v679_v33 = vshrl.u32 %v11041_v20, 16  ;;  %15068 = vst [vmem:[#allocation33_spill] sm:$0xff] %v11079_v18  ;;  %v11084_v50 = vld [vmem:[%s10692_s10 + $0xb0] sm:$0x1] }
  0x4b   : > { %15066 = vst [vmem:[#allocation31_spill] sm:$0xff] %v11061_v23  ;;  %v682_v1 = vshll.u32 %v11041_v20, 16  ;;  %v653_v35 = vsel %vm10731_vm3, %v648_v48, %v652_v38  ;;  %v671_v2 = vor.u32 %v670_v40, %v666_v56  ;;  %9772 = vmatprep.mubr.msk.bf16.mxu1 %vm807_vm0, %v11061_v23  ;;  %v688_v36 = vshll.u32 %v11048_v9, 16  ;;  %15070 = vst [vmem:[#allocation35_spill] sm:$0xff] %v11084_v50  ;;  %v11088_v23 = vld [vmem:[%s10692_s10 + $0xb4] sm:$0xf] }
  0x4c   : > { %v692_v60 = vshrl.u32 %v11048_v9, 16  ;;  %v11081_v31 = vcombine.low %v643_v44, %v653_v35  ;;  %v662_v59 = vrot.slane %v661_v51, 4  ;;  %v681_v3 = vrot.slane %v679_v33, 4 }
  0x4d   : > { %v684_v21 = vrot.slane %v682_v1, 5  ;;  %v672_v48 = vrot.slane %v671_v2, 4  ;;  %v690_v40 = vrot.slane %v688_v36, 5  ;;  %v698_v34 = vshll.u32 %v11057_v24, 16  ;;  %v11103_v24 = vld [vmem:[%s10692_s10 + $0xb8] sm:$0xf] }
  0x4e   : > { %15069 = vst [vmem:[#allocation34_spill] sm:$0xff] %v11081_v31  ;;  %v694_v38 = vrot.slane %v692_v60, 4  ;;  %9735 = vmatmul.mubr.msk.bf16.gmra.mxu0 %vm807_vm0, %v11081_v31  ;;  %v667_v44 = vsel %vm10731_vm3, %v662_v59, %v666_v56  ;;  %v11096_v33 = vcombine.low %v11041_v20, %v11048_v9  ;;  %v703_v1 = vshrl.u32 %v11064_v54, 16 }
  0x4f   : > { %v685_v51 = vor.u32 %v684_v21, %v681_v3  ;;  %v677_v35 = vsel %vm10731_vm3, %v672_v48, %v676_v17  ;;  %v700_v36 = vrot.slane %v698_v34, 5  ;;  %v706_v60 = vshll.u32 %v11064_v54, 16  ;;  %v11111_v3 = vld [vmem:[%s10692_s10 + $0xbc] sm:$0x1] }
  0x50   : > { %15071 = vst [vmem:[#allocation36_spill] sm:$0xff] %v11096_v33  ;;  %v695_v2 = vor.u32 %v694_v38, %v690_v40  ;;  %v11105_v31 = vcombine.low %v667_v44, %v677_v35  ;;  %9773 = vmatmul.mubr.msk.bf16.gmra.mxu1 %vm807_vm0, %v11096_v33  ;;  %v705_v56 = vrot.slane %v703_v1, 4  ;;  %v712_v59 = vshll.u32 %v11079_v18, 16 }
  0x51   : > { %v686_v52 = vrot.slane %v685_v51, 4  ;;  %v708_v9 = vrot.slane %v706_v60, 5  ;;  %v716_v17 = vshrl.u32 %v11079_v18, 16  ;;  %v722_v34 = vshll.u32 %v11084_v50, 16 }
  0x52   : > { %15072 = vst [vmem:[#allocation37_spill] sm:$0xff] %v11105_v31  ;;  %v696_v21 = vrot.slane %v695_v2, 4  ;;  %9738 = vmatprep.mubr.msk.bf16.mxu0 %vm807_vm0, %v11105_v31  ;;  %v714_v38 = vrot.slane %v712_v59, 5  ;;  %v11121_v44 = vcombine.low %v11064_v54, %v11079_v18  ;;  %v727_v51 = vshrl.u32 %v11088_v23, 16 }
  0x53   : > { %v691_v48 = vsel %vm10731_vm3, %v686_v52, %v690_v40  ;;  %v709_v35 = vor.u32 %v708_v9, %v705_v56  ;;  %v718_v2 = vrot.slane %v716_v17, 4  ;;  %v724_v60 = vrot.slane %v722_v34, 5 }
  0x54   : > { %v701_v1 = vsel %vm10731_vm3, %v696_v21, %v700_v36  ;;  %9776 = vmatprep.mubr.msk.bf16.mxu1 %vm807_vm0, %v11121_v44  ;;  %v729_v31 = vrot.slane %v727_v51, 4  ;;  %v730_v52 = vshll.u32 %v11088_v23, 16  ;;  %v736_v40 = vshll.u32 %v11103_v24, 16 }
  0x55   : > { %v11126_v33 = vcombine.low %v691_v48, %v701_v1  ;;  %v710_v59 = vrot.slane %v709_v35, 4  ;;  %v719_v50 = vor.u32 %v718_v2, %v714_v38  ;;  %v740_v18 = vshrl.u32 %v11103_v24, 16 }
  0x56   : > { %v746_v54 = vshll.u32 %v11111_v3, 16  ;;  %v732_v9 = vrot.slane %v730_v52, 5  ;;  %v738_v36 = vrot.slane %v736_v40, 5  ;;  %v11138_v56 = vcombine.low %v11088_v23, %v11103_v24 }
  0x57   : > { %9739 = vmatmul.mubr.msk.bf16.gmra.mxu0 %vm807_vm0, %v11126_v33  ;;  %v8708_v21 = vrot.slane %v10695_v4, 9  ;;  %v715_v17 = vsel %vm10731_vm3, %v710_v59, %v714_v38  ;;  %v720_v34 = vrot.slane %v719_v50, 4  ;;  %v742_v48 = vrot.slane %v740_v18, 4 }
  0x58   : > { %v748_v51 = vrot.slane %v746_v54, 5  ;;  %v15073_v1 = vmov 0  ;;  %v733_v35 = vor.u32 %v732_v9, %v729_v31  ;;  %9777 = vmatmul.mubr.msk.bf16.gmra.mxu1 %vm807_vm0, %v11138_v56  ;;  %v1333_v2 = vrot.slane %v10698_v5, 5 }
  0x59   : > { %v15074_v1 = vsel %vm11145_vm6, 4294967295, %v15073_v1  ;;  %v8709_v4 = vrot.slane %v10708_v11, 9  ;;  %v15076_v52 = vrot.slane %v10715_v15, 5  ;;  %v725_v54 = vsel %vm10731_vm3, %v720_v34, %v724_v60  ;;  %9816 = vmatprep.mubr.msk.bf16.mxu1 %vm807_vm0, %v10742_v42 }
  0x5a   : > { %15075 = vst [vmem:[#allocation38_spill] sm:$0xff] %v15074_v1  ;;  %v743_v18 = vor.u32 %v742_v48, %v738_v36  ;;  %v8710_v50 = vrot.slane %v10727_v29, 9  ;;  %v1347_v31 = vrot.slane %v10737_v39, 5  ;;  %v11161_v40 = vcombine.low %v715_v17, %v725_v54 }
  0x5b   : > { %v1342_v38 = vrot.slane %v15076_v52, 4  ;;  %v734_v59 = vrot.slane %v733_v35, 4  ;;  %v1334_v5 = vsel %vm11145_vm6, %v8708_v21, %v1333_v2  ;;  %v1335_v11 = vrot.slane %v1333_v2, 4 }
  0x5c   : > { %v744_v9 = vrot.slane %v743_v18, 4  ;;  %v1341_v60 = vsel %vm11145_vm6, %v8709_v4, %v15076_v52  ;;  %v15077_v34 = vrot.slane %v10718_v16, 5  ;;  %v1348_v39 = vsel %vm11145_vm6, %v8710_v50, %v1347_v31  ;;  %9742 = vmatprep.mubr.msk.bf16.mxu0 %vm807_vm0, %v11161_v40 }
  0x5d   : > { %v739_v42 = vsel %vm10731_vm3, %v734_v59, %v738_v36  ;;  %v15078_v21 = vrot.slane %v10701_v6, 5  ;;  %v1349_v16 = vrot.slane %v1347_v31, 4  ;;  %v1350_v2 = vrot.slane %v10745_v43, 5 }
  0x5e   : > { %v1344_v29 = vsel %vm11145_vm6, %v1342_v38, %v15077_v34  ;;  %v749_v48 = vsel %vm10731_vm3, %v744_v9, %v748_v51  ;;  %v8711_v4 = vrot.slane %v10754_v49, 9  ;;  %v1354_v36 = vrot.slane %v10762_v58, 5 }
  0x5f   : > { %v1337_v15 = vsel %vm11145_vm6, %v1335_v11, %v15078_v21  ;;  %v11183_v17 = vcombine.low %v1341_v60, %v1344_v29  ;;  %v11189_v38 = vcombine.low %v739_v42, %v749_v48  ;;  %v1357_v6 = vrot.slane %v10772_v62, 5 }
  0x60   : > { %v8726_v35 = vcombine.low %v1334_v5, %v1337_v15  ;;  %v8712_v54 = vrot.slane %v10778_v8, 9  ;;  %v1351_v18 = vsel %vm11145_vm6, %v1349_v16, %v1350_v2  ;;  %v1361_v50 = vrot.slane %v10794_v22, 5  ;;  %9817 = vmatmul.mubr.msk.bf16.vlgmr.msra.gmra.mxu1 %vm807_vm0, %v10769_v61  ;;  %v11211_v8 = vld [vmem:[%s14929_s1 + $0x38] sm:$0xff]  }
  0x61   : > { %v1364_v51 = vrot.slane %v10803_v26, 5  ;;  %v8713_v31 = vrot.slane %v10824_v47, 9  ;;  %9743 = vmatmul.mubr.msk.bf16.gmra.mxu0 %vm807_vm0, %v11189_v38  ;;  %v11203_v43 = vcombine.low %v1348_v39, %v1351_v18  ;;  %v1355_v49 = vsel %vm11145_vm6, %v8711_v4, %v1354_v36  ;;  %9820 = vmatprep.mubr.msk.bf16.mxu1 %vm807_vm0, %v10800_v25  ;;  %v15079_v4 = vld [vmem:[#allocation15_spill] sm:$0xff] }
  0x62   : > { %v1356_v58 = vrot.slane %v1354_v36, 4  ;;  %v1368_v62 = vrot.slane %v10830_v53, 5  ;;  %9782 = vmatprep.mubr.msk.bf16.mxu0 %vm807_vm0, %v8726_v35  ;;  %v1362_v22 = vsel %vm11145_vm6, %v8712_v54, %v1361_v50  ;;  %v1363_v26 = vrot.slane %v1361_v50, 4  ;;  %9883 = vmatpush3.bf16.msra.mxu1 %v10809_v28  ;;  %v11252_v35 = vld [vmem:[%s14929_s1 + $0x30] sm:$0xff]   ;;  %v15081_v50 = vld [vmem:[#allocation16_spill] sm:$0xff] }
  0x63   : > { %v1371_v47 = vrot.slane %v10841_v63, 5  ;;  %v8714_v59 = vrot.slane %v10852_v14, 9  ;;  %v1375_v9 = vrot.slane %v10858_v32, 5  ;;  %v1378_v63 = vrot.slane %v10869_v37, 5  ;;  %9950 = vmatprep.subr.bf16.mxu1 %v11211_v8 }
  0x64   : > { %v1358_v53 = vsel %vm11145_vm6, %v1356_v58, %v1357_v6  ;;  %v1369_v5 = vsel %vm11145_vm6, %v8713_v31, %v1368_v62  ;;  %v1370_v11 = vrot.slane %v1368_v62, 4  ;;  %v1365_v60 = vsel %vm11145_vm6, %v1363_v26, %v1364_v51  ;;  %v15080_v6 = vld [vmem:[#allocation5_spill] sm:$0xff]  ;;  %v15082_v31 = vld [vmem:[#allocation8_spill] sm:$0xff]  ;;  %v15083_v58 = vld [vmem:[#allocation18_spill] sm:$0xff] }
  0x65   : > { %v11226_v52 = vcombine.low %v1355_v49, %v1358_v53  ;;  %v8715_v14 = vrot.slane %v10876_v46, 9  ;;  %v11233_v34 = vcombine.low %v1362_v22, %v1365_v60  ;;  %v1376_v32 = vsel %vm11145_vm6, %v8714_v59, %v1375_v9  ;;  %v15084_v22 = vld [vmem:[#allocation19_spill] sm:$0xff] }
  0x66   : > { %v1372_v29 = vsel %vm11145_vm6, %v1370_v11, %v1371_v47  ;;  %v1377_v28 = vrot.slane %v1375_v9, 4  ;;  %v1382_v42 = vrot.slane %v10886_v0, 5  ;;  %v1385_v21 = vrot.slane %v10897_v10, 5  ;;  %v15085_v9 = vld [vmem:[#allocation21_spill] sm:$0xff] }
  0x67   : > { %v11239_v39 = vcombine.low %v1369_v5, %v1372_v29  ;;  %v8716_v37 = vrot.slane %v10903_v27, 9  ;;  %v1389_v15 = vrot.slane %v10914_v45, 5  ;;  %v1392_v16 = vrot.slane %v10923_v55, 5 }
  0x68   : > { %v1379_v46 = vsel %vm11145_vm6, %v1377_v28, %v1378_v63  ;;  %v8717_v48 = vrot.slane %v10929_v19, 9  ;;  %v1383_v0 = vsel %vm11145_vm6, %v8715_v14, %v1382_v42  ;;  %v1384_v10 = vrot.slane %v1382_v42, 4  ;;  %9821 = vmatmul.mubr.msk.bf16.gmra.mxu1 %vm807_vm0, %v10834_v57  ;;  %v15086_v63 = vld [vmem:[#allocation23_spill] sm:$0xff]  ;;  %v15087_v42 = vld [vmem:[#allocation26_spill] sm:$0xff] }
  0x69   : > { %v11254_v2 = vcombine.low %v1376_v32, %v1379_v46  ;;  %v1396_v27 = vrot.slane %v10936_v13, 5  ;;  %9783 = vmatmul.mubr.msk.bf16.vlgmr.msra.gmra.mxu0 %vm807_vm0, %v11183_v17  ;;  %v1390_v45 = vsel %vm11145_vm6, %v8716_v37, %v1389_v15  ;;  %v1391_v55 = vrot.slane %v1389_v15, 4  ;;  %9824 = vmatprep.mubr.msk.bf16.mxu1 %vm807_vm0, %v15082_v31 }
  0x6a   : > { %v1399_v19 = vrot.slane %v10945_v41, 5  ;;  %v8718_v36 = vrot.slane %v15079_v4, 9  ;;  %9849 = vmatpush3.bf16.msra.mxu0 %v15080_v6  ;;  %9786 = vmatprep.mubr.msk.bf16.mxu0 %vm807_vm0, %v11203_v43  ;;  %v1386_v13 = vsel %vm11145_vm6, %v1384_v10, %v1385_v21  ;;  %v1403_v51 = vrot.slane %v15081_v50, 5  ;;  %v15092_v6 = vld [vmem:[#allocation33_spill] sm:$0xff] }
  0x6b   : > { %v1397_v54 = vsel %vm11145_vm6, %v8717_v48, %v1396_v27  ;;  %v1398_v18 = vrot.slane %v1396_v27, 4  ;;  %v11277_v41 = vcombine.low %v1383_v0, %v1386_v13  ;;  %v1393_v49 = vsel %vm11145_vm6, %v1391_v55, %v1392_v16  ;;  %9916 = vmatprep.subr.bf16.mxu0 %v11252_v35  ;;  %v15088_v48 = vld [vmem:[#allocation28_spill] sm:$0xff]  ;;  %v15089_v27 = vld [vmem:[#allocation30_spill] sm:$0xff] }
  0x6c   : > { %v1406_v62 = vrot.slane %v15083_v58, 5  ;;  %v8719_v26 = vrot.slane %v15084_v22, 9  ;;  %v11284_v47 = vcombine.low %v1390_v45, %v1393_v49  ;;  %v1404_v53 = vsel %vm11145_vm6, %v8718_v36, %v1403_v51  ;;  %v15090_v55 = vld [vmem:[#allocation32_spill] sm:$0xff] }
  0x6d   : > { %v1400_v59 = vsel %vm11145_vm6, %v1398_v18, %v1399_v19  ;;  %v1405_v5 = vrot.slane %v1403_v51, 4  ;;  %v1410_v60 = vrot.slane %v15085_v9, 5  ;;  %v1413_v14 = vrot.slane %v15086_v63, 5  ;;  %v15094_v51 = vld [vmem:[#allocation35_spill] sm:$0xff] }
  0x6e   : > { %v11290_v11 = vcombine.low %v1397_v54, %v1400_v59  ;;  %v8720_v29 = vrot.slane %v11004_v12, 9  ;;  %v1417_v28 = vrot.slane %v11018_v7, 5  ;;  %v1420_v21 = vrot.slane %v15087_v42, 5  ;;  %v15093_v54 = vld [vmem:[#allocation12_spill] sm:$0xff]  ;;  %v15098_v42 = vld [vmem:[#allocation27_spill] sm:$0xff] }
  0x6f   : > { %v1407_v32 = vsel %vm11145_vm6, %v1405_v5, %v1406_v62  ;;  %v8721_v37 = vrot.slane %v11041_v20, 9  ;;  %v1411_v15 = vsel %vm11145_vm6, %v8719_v26, %v1410_v60  ;;  %v1412_v16 = vrot.slane %v1410_v60, 4  ;;  %v15091_v20 = vld [vmem:[#allocation10_spill] sm:$0xff] }
  0x70   : > { %v11300_v46 = vcombine.low %v1404_v53, %v1407_v32  ;;  %v1424_v0 = vrot.slane %v15088_v48, 5  ;;  %v1418_v12 = vsel %vm11145_vm6, %v8720_v29, %v1417_v28  ;;  %v1419_v10 = vrot.slane %v1417_v28, 4  ;;  %9825 = vmatmul.mubr.msk.bf16.gmra.mxu1 %vm807_vm0, %v15091_v20  ;;  %v15095_v32 = vld [vmem:[#allocation14_spill] sm:$0xff]  ;;  %v15097_v28 = vld [vmem:[#allocation24_spill] sm:$0xff] }
  0x71   : > { %v1427_v45 = vrot.slane %v15089_v27, 5  ;;  %v8722_v7 = vrot.slane %v15090_v55, 9  ;;  %9787 = vmatmul.mubr.msk.bf16.gmra.mxu0 %vm807_vm0, %v11226_v52  ;;  %v1414_v19 = vsel %vm11145_vm6, %v1412_v16, %v1413_v14  ;;  %v1431_v13 = vrot.slane %v15092_v6, 5  ;;  %9828 = vmatprep.mubr.msk.bf16.mxu1 %vm807_vm0, %v15093_v54  ;;  %v356_v16 = vld [vmem:[%s10692_s10 + $0xc4] sm:$0xf]  ;;  %v15105_v27 = vld [vmem:[#allocation11_spill] sm:$0xff] }
  0x72   : > { %v1425_v4 = vsel %vm11145_vm6, %v8721_v37, %v1424_v0  ;;  %v1426_v36 = vrot.slane %v1424_v0, 4  ;;  %9790 = vmatprep.mubr.msk.bf16.mxu0 %vm807_vm0, %v11233_v34  ;;  %v11322_v18 = vcombine.low %v1411_v15, %v1414_v19  ;;  %v1421_v50 = vsel %vm11145_vm6, %v1419_v10, %v1420_v21  ;;  %v15099_v21 = vld [vmem:[#allocation31_spill] sm:$0xff]  ;;  %v15100_v37 = vld [vmem:[#allocation36_spill] sm:$0xff]  ;;  %v15108_v55 = vld [vmem:[#allocation22_spill] sm:$0xff] }
  0x73   : > { %v1434_v49 = vrot.slane %v15094_v51, 5  ;;  %v8723_v58 = vrot.slane %v11088_v23, 9  ;;  %v11328_v62 = vcombine.low %v1418_v12, %v1421_v50  ;;  %v1432_v26 = vsel %vm11145_vm6, %v8722_v7, %v1431_v13  ;;  %v355_v15 = vld [vmem:[%s10692_s10 + $0xc0] sm:$0xf]  ;;  %v15103_v10 = vld [vmem:[#allocation7_spill] sm:$0xff]  ;;  %v15109_v7 = vld [vmem:[#allocation25_spill] sm:$0xff] }
  0x74   : > { %v1428_v22 = vsel %vm11145_vm6, %v1426_v36, %v1427_v45  ;;  %v1433_v59 = vrot.slane %v1431_v13, 4  ;;  %v1438_v5 = vrot.slane %v11103_v24, 5  ;;  %v1441_v9 = vrot.slane %v11111_v3, 5  ;;  %v15096_v3 = vld [vmem:[#allocation20_spill] sm:$0xff]  ;;  %v15107_v45 = vld [vmem:[#allocation17_spill] sm:$0xff]  ;;  %v15111_v13 = vld [vmem:[#allocation34_spill] sm:$0xff] }
  0x75   : > { %v11334_v53 = vcombine.low %v1425_v4, %v1428_v22  ;;  %v11382_v48 = vcombine.low %v355_v15, %v356_v16  ;;  %v15101_v0 = vld [vmem:[#allocation4_spill] sm:$0xff]  ;;  %v1952_v19 = vshrl.u32 %v355_v15, 16  ;;  %v1955_v4 = vshll.u32 %v355_v15, 16  ;;  %v15110_v6 = vld [vmem:[#allocation29_spill] sm:$0xff] }
  0x76   : > { %v1435_v60 = vsel %vm11145_vm6, %v1433_v59, %v1434_v49  ;;  %v1439_v23 = vsel %vm11145_vm6, %v8723_v58, %v1438_v5  ;;  %v1440_v14 = vrot.slane %v1438_v5, 4  ;;  %v11404_v12 = vld [vmem:[%s14929_s1 + $0x40] sm:$0xff]   ;;  %v1965_v36 = vshrl.u32 %v356_v16, 16  ;;  %v357_v49 = vld [vmem:[%s10692_s10 + $0xc8] sm:$0x1] }
  0x77   : > { %v11340_v63 = vcombine.low %v1432_v26, %v1435_v60  ;;  %v1961_v50 = vshll.u32 %v356_v16, 16  ;;  %v2186_v51 = vrot.slane %v356_v16, 5  ;;  %v1954_v58 = vrot.slane %v1952_v19, 4 }
  0x78   : > { %v1442_v29 = vsel %vm11145_vm6, %v1440_v14, %v1441_v9  ;;  %9829 = vmatmul.mubr.msk.bf16.gmra.mxu1 %vm807_vm0, %v15095_v32  ;;  %v1957_v22 = vrot.slane %v1955_v4, 5  ;;  %v1967_v26 = vrot.slane %v1965_v36, 4  ;;  %v8799_v5 = vrot.slane %v355_v15, 9 }
  0x79   : > { %9791 = vmatmul.mubr.msk.bf16.gmra.mxu0 %vm807_vm0, %v11239_v39  ;;  %v11350_v24 = vcombine.low %v1439_v23, %v1442_v29  ;;  %9832 = vmatprep.mubr.msk.bf16.mxu1 %vm807_vm0, %v15096_v3  ;;  %v1963_v59 = vrot.slane %v1961_v50, 5  ;;  %v2188_v9 = vrot.slane %v2186_v51, 4  ;;  %v2189_v60 = vrot.slane %v357_v49, 5  ;;  %v15112_v23 = vld [vmem:[#allocation37_spill] sm:$0xff] }
  0x7a   : > { %9794 = vmatprep.mubr.msk.bf16.mxu0 %vm807_vm0, %v11254_v2  ;;  %v1958_v14 = vor.u32 %v1957_v22, %v1954_v58  ;;  %v1971_v16 = vshll.u32 %v357_v49, 16  ;;  %v2187_v15 = vsel %vm11145_vm6, %v8799_v5, %v2186_v51 }
  0x7b   : > { %v1968_v29 = vor.u32 %v1967_v26, %v1963_v59 }
  0x7c   : > { %v1959_v4 = vrot.slane %v1958_v14, 4  ;;  %v1973_v50 = vrot.slane %v1971_v16, 5 }
  0x7d   : > { %v1969_v36 = vrot.slane %v1968_v29, 4 }
  0x7e   : > { %v1964_v51 = vsel %vm10731_vm3, %v1959_v4, %v1963_v59 }
  0x7f   : > { %v1974_v49 = vsel %vm10731_vm3, %v1969_v36, %v1973_v50 }
  0x80   : > { %9833 = vmatmul.mubr.msk.bf16.gmra.mxu1 %vm807_vm0, %v15097_v28  ;;  %v11475_v22 = vcombine.low %v1964_v51, %v1974_v49 }
  0x81   : > { %9795 = vmatmul.mubr.msk.bf16.gmra.mxu0 %vm807_vm0, %v11277_v41  ;;  %9836 = vmatprep.mubr.msk.bf16.mxu1 %vm807_vm0, %v15098_v42 }
  0x82   : > { %9798 = vmatprep.mubr.msk.bf16.mxu0 %vm807_vm0, %v11284_v47 }
  0x88   : > { %9837 = vmatmul.mubr.msk.bf16.gmra.mxu1 %vm807_vm0, %v15099_v21 }
  0x89   : > { %9799 = vmatmul.mubr.msk.bf16.gmra.mxu0 %vm807_vm0, %v11290_v11  ;;  %9840 = vmatprep.mubr.msk.bf16.mxu1 %vm807_vm0, %v15100_v37 }
  0x8a   : > { %9802 = vmatprep.mubr.msk.bf16.mxu0 %vm807_vm0, %v11300_v46 }
  0x90   : > { %9841 = vmatmul.mubr.msk.bf16.gmra.mxu1 %vm807_vm0, %v11121_v44 }
  0x91   : > { %9803 = vmatmul.mubr.msk.bf16.gmra.mxu0 %vm807_vm0, %v11322_v18  ;;  %9844 = vmatprep.mubr.msk.bf16.mxu1 %vm807_vm0, %v11138_v56 }
  0x92   : > { %9806 = vmatprep.mubr.msk.bf16.mxu0 %vm807_vm0, %v11328_v62 }
  0x98   : > { %9845 = vmatmul.mubr.msk.bf16.gmra.mxu1 %vm807_vm0, %v11382_v48 }
  0x99   : > { %9807 = vmatmul.mubr.msk.bf16.gmra.mxu0 %vm807_vm0, %v11334_v53  ;;  %9884 = vmatprep.mubr.msk.bf16.mxu1 %vm807_vm0, %v11183_v17  ;;  %v15102_v17 = vld [vmem:[#allocation6_spill] sm:$0xff] }
  0x9a   : > { %9810 = vmatprep.mubr.msk.bf16.mxu0 %vm807_vm0, %v11340_v63 }
  0xa0   : > { %9885 = vmatmul.mubr.msk.bf16.vlgmr.msra.gmra.mxu1 %vm807_vm0, %v11203_v43 }
  0xa1   : > { %9811 = vmatmul.mubr.msk.bf16.gmra.mxu0 %vm807_vm0, %v11350_v24  ;;  %9888 = vmatprep.mubr.msk.bf16.mxu1 %vm807_vm0, %v11226_v52 }
  0xa2   : > { %9850 = vmatprep.mubr.msk.bf16.mxu0 %vm807_vm0, %v15101_v0  ;;  %9951 = vmatpush3.bf16.msra.mxu1 %v11211_v8  ;;  %v15104_v8 = vld [vmem:[#allocation9_spill] sm:$0xff]  ;;  %v2190_v0 = vsel %vm11145_vm6, %v2188_v9, %v2189_v60 }
  0xa3   : > { %v11461_v19 = vcombine.low %v2187_v15, %v2190_v0 }
  0xa8   : > { %9889 = vmatmul.mubr.msk.bf16.gmra.mxu1 %vm807_vm0, %v11233_v34 }
  0xa9   : > { %9851 = vmatmul.mubr.msk.bf16.vlgmr.msra.gmra.mxu0 %vm807_vm0, %v15102_v17  ;;  %9892 = vmatprep.mubr.msk.bf16.mxu1 %vm807_vm0, %v11239_v39 }
  0xaa   : > { %9917 = vmatpush3.bf16.msra.mxu0 %v11252_v35  ;;  %9854 = vmatprep.mubr.msk.bf16.mxu0 %vm807_vm0, %v15103_v10  ;;  %v15106_v35 = vld [vmem:[#allocation13_spill] sm:$0xff] }
  0xab   : > { %9984 = vmatprep.subr.bf16.mxu0 %v11404_v12 }
  0xb0   : > { %9893 = vmatmul.mubr.msk.bf16.gmra.mxu1 %vm807_vm0, %v11254_v2 }
  0xb1   : > { %9855 = vmatmul.mubr.msk.bf16.gmra.mxu0 %vm807_vm0, %v15104_v8  ;;  %9896 = vmatprep.mubr.msk.bf16.mxu1 %vm807_vm0, %v11277_v41 }
  0xb2   : > { %9858 = vmatprep.mubr.msk.bf16.mxu0 %vm807_vm0, %v15105_v27 }
  0xb8   : > { %9897 = vmatmul.mubr.msk.bf16.gmra.mxu1 %vm807_vm0, %v11284_v47 }
  0xb9   : > { %9859 = vmatmul.mubr.msk.bf16.gmra.mxu0 %vm807_vm0, %v15106_v35  ;;  %9900 = vmatprep.mubr.msk.bf16.mxu1 %vm807_vm0, %v11290_v11 }
  0xba   : > { %9862 = vmatprep.mubr.msk.bf16.mxu0 %vm807_vm0, %v15107_v45 }
  0xc0   : > { %9901 = vmatmul.mubr.msk.bf16.gmra.mxu1 %vm807_vm0, %v11300_v46 }
  0xc1   : > { %9863 = vmatmul.mubr.msk.bf16.gmra.mxu0 %vm807_vm0, %v15108_v55  ;;  %9904 = vmatprep.mubr.msk.bf16.mxu1 %vm807_vm0, %v11322_v18 }
  0xc2   : > { %9866 = vmatprep.mubr.msk.bf16.mxu0 %vm807_vm0, %v15109_v7 }
  0xc8   : > { %9905 = vmatmul.mubr.msk.bf16.gmra.mxu1 %vm807_vm0, %v11328_v62 }
  0xc9   : > { %9867 = vmatmul.mubr.msk.bf16.gmra.mxu0 %vm807_vm0, %v15110_v6  ;;  %9908 = vmatprep.mubr.msk.bf16.mxu1 %vm807_vm0, %v11334_v53 }
  0xca   : > { %9870 = vmatprep.mubr.msk.bf16.mxu0 %vm807_vm0, %v15111_v13 }
  0xd0   : > { %9909 = vmatmul.mubr.msk.bf16.gmra.mxu1 %vm807_vm0, %v11340_v63 }
  0xd1   : > { %9871 = vmatmul.mubr.msk.bf16.gmra.mxu0 %vm807_vm0, %v15112_v23  ;;  %9912 = vmatprep.mubr.msk.bf16.mxu1 %vm807_vm0, %v11350_v24 }
  0xd2   : > { %9874 = vmatprep.mubr.msk.bf16.mxu0 %vm807_vm0, %v11126_v33 }
  0xd8   : > { %9913 = vmatmul.mubr.msk.bf16.gmra.mxu1 %vm807_vm0, %v11461_v19 }
  0xd9   : > { %9875 = vmatmul.mubr.msk.bf16.gmra.mxu0 %vm807_vm0, %v11161_v40  ;;  %9952 = vmatprep.mubr.msk.bf16.mxu1 %vm807_vm0, %v15102_v17  ;;  %v9750_v58 = vpop.f32.mrf.mxu1 }
  0xda   : > { %9878 = vmatprep.mubr.msk.bf16.mxu0 %vm807_vm0, %v11189_v38 }
  0xdb   : > { %v1185_v26 = vpop.f32.mrf.mxu1 }
  0xdd   : > { %v9751_v5 = vpop.f32.mrf.mxu1 }
  0xdf   : > { %v1188_v60 = vpop.f32.mrf.mxu1 }
  0xe0   : > { %v9716_v9 = vpop.f32.mrf.mxu0  ;;  %9953 = vmatmul.mubr.msk.bf16.vlgmr.msra.gmra.mxu1 %vm807_vm0, %v15103_v10 }
  0xe1   : > { %9879 = vmatmul.mubr.msk.bf16.gmra.mxu0 %vm807_vm0, %v11475_v22  ;;  %v11483_v59 = vadd.f32 %v9750_v58, %v9716_v9  ;;  %9956 = vmatprep.mubr.msk.bf16.mxu1 %vm807_vm0, %v15104_v8 }
  0xe2   : > { %9918 = vmatprep.mubr.msk.bf16.mxu0 %vm807_vm0, %v10769_v61  ;;  %v890_v17 = vpop.f32.mrf.mxu0  ;;  %v9754_v14 = vpop.f32.mrf.mxu1 }
  0xe3   : > { %v11487_v29 = vadd.f32 %v1185_v26, %v890_v17 }
  0xe4   : > { %v9717_v16 = vpop.f32.mrf.mxu0  ;;  %v1201_v15 = vpop.f32.mrf.mxu1 }
  0xe5   : > { %v11489_v0 = vadd.f32 %v9751_v5, %v9717_v16 }
  0xe6   : > { %v893_v4 = vpop.f32.mrf.mxu0  ;;  %v9755_v36 = vpop.f32.mrf.mxu1 }
  0xe7   : > { %v11491_v10 = vadd.f32 %v1188_v60, %v893_v4 }
  0xe8   : > { %9957 = vmatmul.mubr.msk.bf16.gmra.mxu1 %vm807_vm0, %v15105_v27  ;;  %v1204_v61 = vpop.f32.mrf.mxu1 }
  0xe9   : > { %9919 = vmatmul.mubr.msk.bf16.vlgmr.msra.gmra.mxu0 %vm807_vm0, %v10800_v25  ;;  %9960 = vmatprep.mubr.msk.bf16.mxu1 %vm807_vm0, %v15106_v35 }
  0xea   : > { %9985 = vmatpush3.bf16.msra.mxu0 %v11404_v12  ;;  %9922 = vmatprep.mubr.msk.bf16.mxu0 %vm807_vm0, %v10834_v57  ;;  %v9720_v8 = vpop.f32.mrf.mxu0 }
  0xeb   : > { %v11502_v50 = vadd.f32 %v9754_v14, %v9720_v8 }
  0xec   : > { %v906_v51 = vpop.f32.mrf.mxu0  ;;  %v9758_v49 = vpop.f32.mrf.mxu1 }
  0xed   : > { %v11504_v58 = vadd.f32 %v1201_v15, %v906_v51  ;;  %v11537_v51 = vld [vmem:[%s10692_s10 + $0xcc] sm:$0xf] }
  0xee   : > { %v9721_v25 = vpop.f32.mrf.mxu0  ;;  %v1217_v26 = vpop.f32.mrf.mxu1 }
  0xef   : > { %v11506_v5 = vadd.f32 %v9755_v36, %v9721_v25  ;;  %v11540_v25 = vld [vmem:[%s10692_s10 + $0xd0] sm:$0xf] }
  0xf0   : > { %v909_v12 = vpop.f32.mrf.mxu0  ;;  %9961 = vmatmul.mubr.msk.bf16.gmra.mxu1 %vm807_vm0, %v15107_v45  ;;  %v9759_v57 = vpop.f32.mrf.mxu1 }
  0xf1   : > { %9923 = vmatmul.mubr.msk.bf16.gmra.mxu0 %vm807_vm0, %v15082_v31  ;;  %v11512_v27 = vadd.f32 %v1204_v61, %v909_v12  ;;  %9964 = vmatprep.mubr.msk.bf16.mxu1 %vm807_vm0, %v15108_v55 }
  0xf2   : > { %9926 = vmatprep.mubr.msk.bf16.mxu0 %vm807_vm0, %v15091_v20  ;;  %v1220_v9 = vpop.f32.mrf.mxu1 }
  0xf3   : > { %v9724_v35 = vpop.f32.mrf.mxu0 }
  0xf4   : > { %v11518_v60 = vadd.f32 %v9758_v49, %v9724_v35  ;;  %v9762_v31 = vpop.f32.mrf.mxu1  ;;  %v2619_v35 = vshll.u32 %v11540_v25, 16 }
  0xf5   : > { %v922_v17 = vpop.f32.mrf.mxu0 }
  0xf6   : > { %v11520_v14 = vadd.f32 %v1217_v26, %v922_v17  ;;  %v1233_v45 = vpop.f32.mrf.mxu1 }
  0xf7   : > { %v9725_v16 = vpop.f32.mrf.mxu0 }
  0xf8   : > { %v11522_v15 = vadd.f32 %v9759_v57, %v9725_v16  ;;  %9965 = vmatmul.mubr.msk.bf16.gmra.mxu1 %vm807_vm0, %v15109_v7  ;;  %v9763_v55 = vpop.f32.mrf.mxu1  ;;  %v2613_v57 = vshll.u32 %v11537_v51, 16 }
  0xf9   : > { %9927 = vmatmul.mubr.msk.bf16.gmra.mxu0 %vm807_vm0, %v15093_v54  ;;  %v925_v20 = vpop.f32.mrf.mxu0  ;;  %9968 = vmatprep.mubr.msk.bf16.mxu1 %vm807_vm0, %v15110_v6  ;;  %v2610_v6 = vshrl.u32 %v11537_v51, 16 }
  0xfa   : > { %v11528_v4 = vadd.f32 %v1220_v9, %v925_v20  ;;  %9930 = vmatprep.mubr.msk.bf16.mxu0 %vm807_vm0, %v15095_v32  ;;  %v1236_v36 = vpop.f32.mrf.mxu1 }
  0xfc   : > { %v9728_v61 = vpop.f32.mrf.mxu0 }
  0xfd   : > { %v11534_v8 = vadd.f32 %v9762_v31, %v9728_v61 }
  0xfe   : > { %v938_v54 = vpop.f32.mrf.mxu0  ;;  %v9766_v49 = vpop.f32.mrf.mxu1 }
  0xff   : > { %v11542_v7 = vadd.f32 %v1233_v45, %v938_v54  ;;  %v2612_v45 = vrot.slane %v2610_v6, 4 }
 0x100   : > { %v9729_v26 = vpop.f32.mrf.mxu0  ;;  %v1249_v32 = vpop.f32.mrf.mxu1  ;;  %9969 = vmatmul.mubr.msk.bf16.gmra.mxu1 %vm807_vm0, %v15111_v13 }
 0x101   : > { %9931 = vmatmul.mubr.msk.bf16.gmra.mxu0 %vm807_vm0, %v15096_v3  ;;  %v11549_v12 = vadd.f32 %v9763_v55, %v9729_v26  ;;  %9972 = vmatprep.mubr.msk.bf16.mxu1 %vm807_vm0, %v15112_v23  ;;  %v2623_v3 = vshrl.u32 %v11540_v25, 16  ;;  %v2621_v55 = vrot.slane %v2619_v35, 5  ;;  %v11565_v26 = vld [vmem:[%s10692_s10 + $0xd4] sm:$0x1] }
 0x102   : > { %9934 = vmatprep.mubr.msk.bf16.mxu0 %vm807_vm0, %v15097_v28  ;;  %v941_v9 = vpop.f32.mrf.mxu0  ;;  %v9767_v17 = vpop.f32.mrf.mxu1  ;;  %v2615_v28 = vrot.slane %v2613_v57, 5 }
 0x103   : > { %v11558_v13 = vadd.f32 %v1236_v36, %v941_v9  ;;  %v2625_v23 = vrot.slane %v2623_v3, 4 }
 0x104   : > { %v11560_v16 = vpop.f32.mrf.mxu1 }
 0x105   : > { %v9732_v31 = vpop.f32.mrf.mxu0  ;;  %v2626_v57 = vor.u32 %v2625_v23, %v2621_v55 }
 0x106   : > { %v11562_v20 = vadd.f32 %v9766_v49, %v9732_v31  ;;  %v9770_v54 = vpop.f32.mrf.mxu1  ;;  %v2616_v49 = vor.u32 %v2615_v28, %v2612_v45 }
 0x107   : > { %v954_v61 = vpop.f32.mrf.mxu0 }
 0x108   : > { %v11567_v1 = vadd.f32 %v1249_v32, %v954_v61  ;;  %v1265_v9 = vpop.f32.mrf.mxu1  ;;  %9973 = vmatmul.mubr.msk.bf16.gmra.mxu1 %vm807_vm0, %v11126_v33  ;;  %v2629_v32 = vshll.u32 %v11565_v26, 16  ;;  %v2617_v31 = vrot.slane %v2616_v49, 4  ;;  %v2627_v61 = vrot.slane %v2626_v57, 4 }
 0x109   : > { %9935 = vmatmul.mubr.msk.bf16.gmra.mxu0 %vm807_vm0, %v15098_v42  ;;  %v9733_v36 = vpop.f32.mrf.mxu0  ;;  %9976 = vmatprep.mubr.msk.bf16.mxu1 %vm807_vm0, %v11161_v40 }
 0x10a   : > { %v11573_v6 = vadd.f32 %v9767_v17, %v9733_v36  ;;  %9938 = vmatprep.mubr.msk.bf16.mxu0 %vm807_vm0, %v15099_v21  ;;  %v9771_v42 = vpop.f32.mrf.mxu1  ;;  %v2631_v33 = vrot.slane %v2629_v32, 5  ;;  %v2622_v28 = vsel %vm10731_vm3, %v2617_v31, %v2621_v55 }
 0x10b   : > { %v11580_v3 = vpop.f32.mrf.mxu0 }
 0x10c   : > { %v11582_v35 = vpop.f32.mrf.mxu1  ;;  %v2632_v23 = vsel %vm10731_vm3, %v2627_v61, %v2631_v33 }
 0x10d   : > { %15113 = vst [vmem:[#allocation15_spill] sm:$0xff] %v11582_v35 }
 0x10e   : > { %v9736_v17 = vpop.f32.mrf.mxu0 }
 0x10f   : > { %v11584_v36 = vadd.f32 %v9770_v54, %v9736_v17 }
 0x110   : > { %v970_v21 = vpop.f32.mrf.mxu0  ;;  %v9774_v40 = vpop.f32.mrf.mxu1  ;;  %9977 = vmatmul.mubr.msk.bf16.gmra.mxu1 %vm807_vm0, %v11189_v38 }
 0x111   : > { %9939 = vmatmul.mubr.msk.bf16.gmra.mxu0 %vm807_vm0, %v15100_v37  ;;  %v11590_v45 = vadd.f32 %v1265_v9, %v970_v21  ;;  %9980 = vmatprep.mubr.msk.bf16.mxu1 %vm807_vm0, %v11475_v22  ;;  %v8842_v9 = vcombine.low %v2622_v28, %v2632_v23 }
 0x112   : > { %9942 = vmatprep.mubr.msk.bf16.mxu0 %vm807_vm0, %v11121_v44  ;;  %v9737_v37 = vpop.f32.mrf.mxu0  ;;  %v1281_v54 = vpop.f32.mrf.mxu1 }
 0x113   : > { %v11600_v49 = vadd.f32 %v9771_v42, %v9737_v37 }
 0x114   : > { %v11602_v57 = vpop.f32.mrf.mxu0  ;;  %v9775_v38 = vpop.f32.mrf.mxu1 }
 0x116   : > { %v11604_v17 = vpop.f32.mrf.mxu1 }
 0x117   : > { %v9740_v32 = vpop.f32.mrf.mxu0  ;;  %15114 = vst [vmem:[#allocation5_spill] sm:$0xff] %v11604_v17 }
 0x118   : > { %v11606_v44 = vadd.f32 %v9774_v40, %v9740_v32  ;;  %v9778_v55 = vpop.f32.mrf.mxu1  ;;  %9981 = vmatmul.mubr.msk.bf16.gmra.mxu1 %vm807_vm0, %v8842_v9  ;;  %v8822_v40 = vcombine.low %v11537_v51, %v11540_v25 }
 0x119   : > { %9943 = vmatmul.mubr.msk.bf16.gmra.mxu0 %vm807_vm0, %v11138_v56  ;;  %v986_v22 = vpop.f32.mrf.mxu0 }
 0x11a   : > { %v11611_v31 = vadd.f32 %v1281_v54, %v986_v22  ;;  %9946 = vmatprep.mubr.msk.bf16.mxu0 %vm807_vm0, %v11382_v48  ;;  %v1297_v61 = vpop.f32.mrf.mxu1 }
 0x11b   : > { %v9741_v42 = vpop.f32.mrf.mxu0 }
 0x11c   : > { %v11615_v33 = vadd.f32 %v9775_v38, %v9741_v42  ;;  %v9779_v28 = vpop.f32.mrf.mxu1 }
 0x11d   : > { %v11617_v21 = vpop.f32.mrf.mxu0 }
 0x11e   : > { %15115 = vst [vmem:[#allocation16_spill] sm:$0xff] %v11617_v21  ;;  %v11621_v56 = vpop.f32.mrf.mxu1 }
 0x11f   : > { %15116 = vst [vmem:[#allocation8_spill] sm:$0xff] %v11621_v56 }
 0x120   : > { %v9818_v37 = vpop.f32.mrf.mxu1 }
 0x121   : > { %v9744_v23 = vpop.f32.mrf.mxu0  ;;  %9947 = vmatmul.mubr.msk.bf16.gmra.mxu0 %vm807_vm0, %v8822_v40 }
 0x122   : > { %v11624_v54 = vadd.f32 %v9778_v55, %v9744_v23  ;;  %9986 = vmatprep.mubr.msk.bf16.mxu0 %vm807_vm0, %v11203_v43  ;;  %v1792_v38 = vpop.f32.mrf.mxu1 }
 0x123   : > { %v1002_v48 = vpop.f32.mrf.mxu0 }
 0x124   : > { %v11628_v9 = vadd.f32 %v1297_v61, %v1002_v48  ;;  %v9819_v22 = vpop.f32.mrf.mxu1 }
 0x125   : > { %v9745_v32 = vpop.f32.mrf.mxu0 }
 0x126   : > { %v11630_v42 = vadd.f32 %v9779_v28, %v9745_v32  ;;  %v11634_v56 = vpop.f32.mrf.mxu1 }
 0x127   : > { %v11632_v17 = vpop.f32.mrf.mxu0  ;;  %15118 = vst [vmem:[#allocation19_spill] sm:$0xff] %v11634_v56 }
 0x128   : > { %15117 = vst [vmem:[#allocation18_spill] sm:$0xff] %v11632_v17  ;;  %v9822_v55 = vpop.f32.mrf.mxu1 }
 0x129   : > { %v9784_v21 = vpop.f32.mrf.mxu0  ;;  %9987 = vmatmul.mubr.msk.bf16.vlgmr.msra.gmra.mxu0 %vm807_vm0, %v11226_v52 }
 0x12a   : > { %v1711_v40 = vadd.f32 %v9784_v21, %v11483_v59  ;;  %9990 = vmatprep.mubr.msk.bf16.mxu0 %vm807_vm0, %v11233_v34  ;;  %v1808_v61 = vpop.f32.mrf.mxu1 }
 0x12b   : > { %v1582_v43 = vpop.f32.mrf.mxu0 }
 0x12c   : > { %v1709_v23 = vadd.f32 %v1582_v43, %v11487_v29  ;;  %v11642_v28 = vadd.f32 %v9818_v37, %v1711_v40  ;;  %v9823_v32 = vpop.f32.mrf.mxu1 }
 0x12d   : > { %v9785_v48 = vpop.f32.mrf.mxu0 }
 0x12e   : > { %v1712_v56 = vadd.f32 %v9785_v48, %v11489_v0  ;;  %v11645_v17 = vadd.f32 %v1792_v38, %v1709_v23  ;;  %v11647_v52 = vpop.f32.mrf.mxu1 }
 0x12f   : > { %v1585_v35 = vpop.f32.mrf.mxu0 }
 0x130   : > { %v11650_v59 = vadd.f32 %v1585_v35, %v11491_v10  ;;  %v11652_v21 = vadd.f32 %v9819_v22, %v1712_v56  ;;  %v9826_v29 = vpop.f32.mrf.mxu1 }
 0x131   : > { %v9788_v34 = vpop.f32.mrf.mxu0  ;;  %9991 = vmatmul.mubr.msk.bf16.gmra.mxu0 %vm807_vm0, %v11239_v39 }
 0x132   : > { %v1715_v37 = vadd.f32 %v9788_v34, %v11502_v50  ;;  %9994 = vmatprep.mubr.msk.bf16.mxu0 %vm807_vm0, %v11254_v2  ;;  %v1824_v38 = vpop.f32.mrf.mxu1 }
 0x133   : > { %v1598_v0 = vpop.f32.mrf.mxu0 }
 0x134   : > { %v1713_v40 = vadd.f32 %v1598_v0, %v11504_v58  ;;  %v11660_v43 = vadd.f32 %v9822_v55, %v1715_v37  ;;  %v9827_v35 = vpop.f32.mrf.mxu1 }
 0x135   : > { %v9789_v10 = vpop.f32.mrf.mxu0 }
 0x136   : > { %v1716_v56 = vadd.f32 %v9789_v10, %v11506_v5  ;;  %v11663_v22 = vadd.f32 %v1808_v61, %v1713_v40  ;;  %v11665_v39 = vpop.f32.mrf.mxu1 }
 0x137   : > { %v1601_v23 = vpop.f32.mrf.mxu0 }
 0x138   : > { %v11668_v50 = vadd.f32 %v1601_v23, %v11512_v27  ;;  %v11670_v48 = vadd.f32 %v9823_v32, %v1716_v56  ;;  %v9830_v58 = vpop.f32.mrf.mxu1 }
 0x139   : > { %v9792_v2 = vpop.f32.mrf.mxu0  ;;  %9995 = vmatmul.mubr.msk.bf16.gmra.mxu0 %vm807_vm0, %v11277_v41 }
 0x13a   : > { %v1719_v55 = vadd.f32 %v9792_v2, %v11518_v60  ;;  %9998 = vmatprep.mubr.msk.bf16.mxu0 %vm807_vm0, %v11284_v47  ;;  %v1840_v61 = vpop.f32.mrf.mxu1 }
 0x13b   : > { %v1614_v5 = vpop.f32.mrf.mxu0 }
 0x13c   : > { %v1717_v34 = vadd.f32 %v1614_v5, %v11520_v14  ;;  %v11678_v37 = vadd.f32 %v9826_v29, %v1719_v55  ;;  %v9831_v0 = vpop.f32.mrf.mxu1 }
 0x13d   : > { %v9793_v27 = vpop.f32.mrf.mxu0 }
 0x13e   : > { %v1720_v32 = vadd.f32 %v9793_v27, %v11522_v15  ;;  %v11681_v40 = vadd.f32 %v1824_v38, %v1717_v34  ;;  %v11683_v41 = vpop.f32.mrf.mxu1 }
 0x13f   : > { %v1617_v10 = vpop.f32.mrf.mxu0 }
 0x140   : > { %v11686_v60 = vadd.f32 %v1617_v10, %v11528_v4  ;;  %v11688_v56 = vadd.f32 %v9827_v35, %v1720_v32  ;;  %v9834_v14 = vpop.f32.mrf.mxu1 }
 0x141   : > { %v9796_v47 = vpop.f32.mrf.mxu0  ;;  %9999 = vmatmul.mubr.msk.bf16.gmra.mxu0 %vm807_vm0, %v11290_v11 }
 0x142   : > { %v1723_v29 = vadd.f32 %v9796_v47, %v11534_v8  ;;  %10002 = vmatprep.mubr.msk.bf16.mxu0 %vm807_vm0, %v11300_v46  ;;  %v1856_v38 = vpop.f32.mrf.mxu1 }
 0x143   : > { %v1630_v15 = vpop.f32.mrf.mxu0 }
 0x144   : > { %v1721_v23 = vadd.f32 %v1630_v15, %v11542_v7  ;;  %v11696_v2 = vadd.f32 %v9830_v58, %v1723_v29  ;;  %v9835_v55 = vpop.f32.mrf.mxu1 }
 0x145   : > { %v9797_v4 = vpop.f32.mrf.mxu0 }
 0x146   : > { %v1724_v35 = vadd.f32 %v9797_v4, %v11549_v12  ;;  %v11699_v5 = vadd.f32 %v1840_v61, %v1721_v23  ;;  %v11701_v11 = vpop.f32.mrf.mxu1 }
 0x147   : > { %v1633_v34 = vpop.f32.mrf.mxu0 }
 0x148   : > { %v11704_v8 = vadd.f32 %v1633_v34, %v11558_v13  ;;  %v11706_v27 = vadd.f32 %v9831_v0, %v1724_v35  ;;  %v9838_v7 = vpop.f32.mrf.mxu1 }
 0x149   : > { %v9800_v46 = vpop.f32.mrf.mxu0  ;;  %10003 = vmatmul.mubr.msk.bf16.gmra.mxu0 %vm807_vm0, %v11322_v18 }
 0x14a   : > { %v1727_v58 = vadd.f32 %v9800_v46, %v11562_v20  ;;  %10006 = vmatprep.mubr.msk.bf16.mxu0 %vm807_vm0, %v11328_v62  ;;  %v1872_v61 = vpop.f32.mrf.mxu1 }
 0x14b   : > { %v1646_v12 = vpop.f32.mrf.mxu0 }
 0x14c   : > { %v1725_v32 = vadd.f32 %v1646_v12, %v11567_v1  ;;  %v11714_v10 = vadd.f32 %v9834_v14, %v1727_v58  ;;  %v9839_v47 = vpop.f32.mrf.mxu1  ;;  %v10487_v14 = vld [vmem:[%s14930_s2 + $0x78] sm:$0xff]   ;;  %v2847_v58 = vrot.slane %v11565_v26, 5 }
 0x14d   : > { %v9801_v13 = vpop.f32.mrf.mxu0  ;;  %10018 = vmatprep.subr.bf16.mxu1 %v10487_v14 }
 0x14e   : > { %v1728_v0 = vadd.f32 %v9801_v13, %v11573_v6  ;;  %v11717_v29 = vadd.f32 %v1856_v38, %v1725_v32  ;;  %v11721_v18 = vpop.f32.mrf.mxu1  ;;  %v2844_v6 = vrot.slane %v11540_v25, 5  ;;  %10019 = vmatpush3.bf16.msra.mxu1 %v10487_v14 }
 0x14f   : > { %v11719_v15 = vpop.f32.mrf.mxu0 }
 0x150   : > { %v11723_v20 = vadd.f32 %v9835_v55, %v1728_v0  ;;  %v9842_v62 = vpop.f32.mrf.mxu1  ;;  %v2846_v25 = vrot.slane %v2844_v6, 4 }
 0x151   : > { %v9804_v23 = vpop.f32.mrf.mxu0  ;;  %10007 = vmatmul.mubr.msk.bf16.gmra.mxu0 %vm807_vm0, %v11334_v53 }
 0x152   : > { %v1731_v1 = vadd.f32 %v9804_v23, %v11584_v36  ;;  %10010 = vmatprep.mubr.msk.bf16.mxu0 %vm807_vm0, %v11340_v63  ;;  %v1888_v4 = vpop.f32.mrf.mxu1  ;;  %v8860_v36 = vrot.slane %v11537_v51, 9  ;;  %v2848_v26 = vsel %vm11145_vm6, %v2846_v25, %v2847_v58  ;;  %v10489_v25 = vld [vmem:[%s14930_s2 + $0x68] sm:$0xff]  }
 0x153   : > { %v1662_v38 = vpop.f32.mrf.mxu0 }
 0x154   : > { %v1729_v55 = vadd.f32 %v1662_v38, %v11590_v45  ;;  %v11735_v35 = vadd.f32 %v9838_v7, %v1731_v1  ;;  %v9843_v34 = vpop.f32.mrf.mxu1 }
 0x155   : > { %v9805_v53 = vpop.f32.mrf.mxu0 }
 0x156   : > { %v1732_v63 = vadd.f32 %v9805_v53, %v11600_v49  ;;  %v11739_v46 = vadd.f32 %v1872_v61, %v1729_v55  ;;  %v11744_v32 = vpop.f32.mrf.mxu1  ;;  %v2845_v61 = vsel %vm11145_vm6, %v8860_v36, %v2844_v6 }
 0x157   : > { %v11742_v12 = vpop.f32.mrf.mxu0  ;;  %v8863_v14 = vcombine.low %v2845_v61, %v2848_v26 }
 0x158   : > { %v11746_v45 = vadd.f32 %v9839_v47, %v1732_v63  ;;  %v9846_v13 = vpop.f32.mrf.mxu1  ;;  %v10488_v47 = vld [vmem:[%s14930_s2 + $0x70] sm:$0xff]  }
 0x159   : > { %v9808_v7 = vpop.f32.mrf.mxu0  ;;  %10011 = vmatmul.mubr.msk.bf16.gmra.mxu0 %vm807_vm0, %v11350_v24  ;;  %10020 = vmatprep.subr.bf16.mxu1 %v10488_v47 }
 0x15a   : > { %v1735_v51 = vadd.f32 %v9808_v7, %v11606_v44  ;;  %10014 = vmatprep.mubr.msk.bf16.mxu0 %vm807_vm0, %v11461_v19  ;;  %v1904_v23 = vpop.f32.mrf.mxu1  ;;  %10021 = vmatpush3.bf16.msra.mxu1 %v10488_v47 }
 0x15b   : > { %v1678_v0 = vpop.f32.mrf.mxu0  ;;  %10022 = vmatprep.subr.bf16.mxu1 %v10489_v25 }
 0x15c   : > { %v1733_v24 = vadd.f32 %v1678_v0, %v11611_v31  ;;  %v11761_v1 = vadd.f32 %v9842_v62, %v1735_v51  ;;  %v9847_v19 = vpop.f32.mrf.mxu1  ;;  %v10491_v0 = vld [vmem:[%s14930_s2 + $0x38] sm:$0xff]  }
 0x15d   : > { %v9809_v44 = vpop.f32.mrf.mxu0  ;;  %10066 = vmatprep.subr.bf16.mxu0 %v10491_v0 }
 0x15e   : > { %v1736_v6 = vadd.f32 %v9809_v44, %v11615_v33  ;;  %v11764_v38 = vadd.f32 %v1888_v4, %v1733_v24  ;;  %v11768_v53 = vpop.f32.mrf.mxu1  ;;  %10023 = vmatpush3.bf16.msra.mxu1 %v10489_v25  ;;  %10067 = vmatpush3.bf16.msra.mxu0 %v10491_v0 }
 0x15f   : > { %v11766_v55 = vpop.f32.mrf.mxu0 }
 0x160   : > { %v11770_v36 = vadd.f32 %v9843_v34, %v1736_v6  ;;  %v11773_v31 = vpop.f32.mrf.mxu1 }
 0x161   : > { %v9812_v63 = vpop.f32.mrf.mxu0  ;;  %10015 = vmatmul.mubr.msk.bf16.gmra.mxu0 %vm807_vm0, %v8863_v14  ;;  %15120 = vst [vmem:[#allocation21_spill] sm:$0xff] %v11773_v31  ;;  %v10627_v14 = vmov 0  }
 0x162   : > { %v1739_v62 = vadd.f32 %v9812_v63, %v11624_v54  ;;  %v11779_v4 = vpop.f32.mrf.mxu1  ;;  %259 = vst [vmem:[#allocation2 + $0x18] sm:$0xf] %v10627_v14  ;;  %253 = vst [vmem:[#allocation2] sm:$0xf] %v10627_v14 }
 0x163   : > { %v1694_v33 = vpop.f32.mrf.mxu0  ;;  %15121 = vst [vmem:[#allocation23_spill] sm:$0xff] %v11779_v4  ;;  %254 = vst [vmem:[#allocation2 + $0x4] sm:$0xf] %v10627_v14 }
 0x164   : > { %v1737_v58 = vadd.f32 %v1694_v33, %v11628_v9  ;;  %v11782_v7 = vadd.f32 %v9846_v13, %v1739_v62  ;;  %v11784_v51 = vpop.f32.mrf.mxu1  ;;  %255 = vst [vmem:[#allocation2 + $0x8] sm:$0x1] %v10627_v14  ;;  %256 = vst [vmem:[#allocation2 + $0xc] sm:$0xf] %v10627_v14 }
 0x165   : > { %v9813_v34 = vpop.f32.mrf.mxu0  ;;  %15122 = vst [vmem:[#allocation26_spill] sm:$0xff] %v11784_v51  ;;  %257 = vst [vmem:[#allocation2 + $0x10] sm:$0xf] %v10627_v14 }
 0x166   : > { %v1740_v61 = vadd.f32 %v9813_v34, %v11630_v42  ;;  %v11787_v26 = vadd.f32 %v1904_v23, %v1737_v58  ;;  %v11791_v47 = vpop.f32.mrf.mxu1  ;;  %258 = vst [vmem:[#allocation2 + $0x14] sm:$0x1] %v10627_v14  ;;  %260 = vst [vmem:[#allocation2 + $0x1c] sm:$0xf] %v10627_v14 }
 0x167   : > { %v11789_v54 = vpop.f32.mrf.mxu0  ;;  %15123 = vst [vmem:[#allocation28_spill] sm:$0xff] %v11791_v47  ;;  %261 = vst [vmem:[#allocation2 + $0x20] sm:$0x1] %v10627_v14 }
 0x168   : > { %v11796_v9 = vadd.f32 %v9847_v19, %v1740_v61  ;;  %v11798_v24 = vpop.f32.mrf.mxu1  ;;  %262 = vst [vmem:[#allocation2 + $0x24] sm:$0xf] %v10627_v14  ;;  %263 = vst [vmem:[#allocation2 + $0x28] sm:$0xf] %v10627_v14  ;;  %v10492_v19 = vld [vmem:[%s14930_s2 + $0x30] sm:$0xff]  }
 0x169   : > { %v9852_v13 = vpop.f32.mrf.mxu0  ;;  %15124 = vst [vmem:[#allocation30_spill] sm:$0xff] %v11798_v24  ;;  %264 = vst [vmem:[#allocation2 + $0x2c] sm:$0x1] %v10627_v14  ;;  %10068 = vmatprep.subr.bf16.mxu0 %v10492_v19 }
 0x16a   : > { %v11801_v44 = vadd.f32 %v9852_v13, %v11642_v28  ;;  %v11803_v23 = vpop.f32.mrf.mxu1  ;;  %265 = vst [vmem:[#allocation2 + $0x30] sm:$0xf] %v10627_v14  ;;  %266 = vst [vmem:[#allocation2 + $0x34] sm:$0xf] %v10627_v14  ;;  %10069 = vmatpush3.bf16.msra.mxu0 %v10492_v19 }
 0x16b   : > { %v2024_v42 = vpop.f32.mrf.mxu0  ;;  %15125 = vst [vmem:[#allocation32_spill] sm:$0xff] %v11803_v23  ;;  %267 = vst [vmem:[#allocation2 + $0x38] sm:$0x1] %v10627_v14 }
 0x16c   : > { %268 = vst [vmem:[#allocation2 + $0x3c] sm:$0xf] %v10627_v14  ;;  %269 = vst [vmem:[#allocation2 + $0x40] sm:$0xf] %v10627_v14  ;;  %v11806_v28 = vadd.f32 %v2024_v42, %v11645_v17  ;;  %v9891_v63 = vpop.f32.mrf.mxu1  ;;  %v10494_v17 = vld [vmem:[%s14930_s2 + $0x28] sm:$0xff]  }
 0x16d   : > { %270 = vst [vmem:[#allocation2 + $0x44] sm:$0x1] %v10627_v14  ;;  %271 = vst [vmem:[#allocation2 + $0x48] sm:$0xf] %v10627_v14  ;;  %v9853_v6 = vpop.f32.mrf.mxu0  ;;  %10070 = vmatprep.subr.bf16.mxu0 %v10494_v17 }
 0x16e   : > { %272 = vst [vmem:[#allocation2 + $0x4c] sm:$0xf] %v10627_v14  ;;  %273 = vst [vmem:[#allocation2 + $0x50] sm:$0x1] %v10627_v14  ;;  %v11812_v62 = vadd.f32 %v9853_v6, %v11652_v21  ;;  %v11816_v33 = vpop.f32.mrf.mxu1  ;;  %10071 = vmatpush3.bf16.msra.mxu0 %v10494_v17 }
 0x16f   : > { %274 = vst [vmem:[#allocation2 + $0x54] sm:$0xf] %v10627_v14  ;;  %275 = vst [vmem:[#allocation2 + $0x58] sm:$0xf] %v10627_v14  ;;  %v11814_v25 = vpop.f32.mrf.mxu0 }
 0x170   : > { %276 = vst [vmem:[#allocation2 + $0x5c] sm:$0x1] %v10627_v14  ;;  %277 = vst [vmem:[#allocation2 + $0x60] sm:$0xf] %v10627_v14  ;;  %v9894_v34 = vpop.f32.mrf.mxu1 }
 0x171   : > { %278 = vst [vmem:[#allocation2 + $0x64] sm:$0xf] %v10627_v14  ;;  %279 = vst [vmem:[#allocation2 + $0x68] sm:$0x1] %v10627_v14  ;;  %v9856_v58 = vpop.f32.mrf.mxu0 }
 0x172   : > { %280 = vst [vmem:[#allocation2 + $0x6c] sm:$0xf] %v10627_v14  ;;  %281 = vst [vmem:[#allocation2 + $0x70] sm:$0xf] %v10627_v14  ;;  %v11822_v61 = vadd.f32 %v9856_v58, %v11660_v43  ;;  %v2272_v13 = vpop.f32.mrf.mxu1  ;;  %v10495_v43 = vld [vmem:[%s14930_s2 + $0x20] sm:$0xff]  }
 0x173   : > { %282 = vst [vmem:[#allocation2 + $0x74] sm:$0x1] %v10627_v14  ;;  %283 = vst [vmem:[#allocation2 + $0x78] sm:$0xf] %v10627_v14  ;;  %v2040_v0 = vpop.f32.mrf.mxu0  ;;  %10072 = vmatprep.subr.bf16.mxu0 %v10495_v43 }
 0x174   : > { %284 = vst [vmem:[#allocation2 + $0x7c] sm:$0xf] %v10627_v14  ;;  %285 = vst [vmem:[#allocation2 + $0x80] sm:$0x1] %v10627_v14  ;;  %v11825_v21 = vadd.f32 %v2040_v0, %v11663_v22  ;;  %v10490_v22 = vld [vmem:[%s14930_s2 + $0x60] sm:$0xff]   ;;  %10073 = vmatpush3.bf16.msra.mxu0 %v10495_v43 }
 0x175   : > { %286 = vst [vmem:[#allocation2 + $0x84] sm:$0xf] %v10627_v14  ;;  %287 = vst [vmem:[#allocation2 + $0x88] sm:$0xf] %v10627_v14  ;;  %v9857_v42 = vpop.f32.mrf.mxu0  ;;  %10024 = vmatprep.subr.bf16.mxu1 %v10490_v22 }
 0x176   : > { %288 = vst [vmem:[#allocation2 + $0x8c] sm:$0x1] %v10627_v14  ;;  %289 = vst [vmem:[#allocation2 + $0x90] sm:$0xf] %v10627_v14  ;;  %v2158_v19 = vadd.f32 %v9857_v42, %v11670_v48  ;;  %10025 = vmatpush3.bf16.msra.mxu1 %v10490_v22  ;;  %v10493_v22 = vld [vmem:[%s14930_s2 + $0x58] sm:$0xff]  }
 0x177   : > { %290 = vst [vmem:[#allocation2 + $0x94] sm:$0xf] %v10627_v14  ;;  %291 = vst [vmem:[#allocation2 + $0x98] sm:$0x1] %v10627_v14  ;;  %v11828_v6 = vpop.f32.mrf.mxu0  ;;  %10026 = vmatprep.subr.bf16.mxu1 %v10493_v22 }
 0x178   : > { %292 = vst [vmem:[#allocation2 + $0x9c] sm:$0xf] %v10627_v14  ;;  %293 = vst [vmem:[#allocation2 + $0xa0] sm:$0xf] %v10627_v14  ;;  %v11835_v58 = vadd.f32 %v9891_v63, %v2158_v19  ;;  %v10497_v63 = vld [vmem:[%s14930_s2 + $0x18] sm:$0xff]  }
 0x179   : > { %294 = vst [vmem:[#allocation2 + $0xa4] sm:$0x1] %v10627_v14  ;;  %295 = vst [vmem:[#allocation2 + $0xa8] sm:$0xf] %v10627_v14  ;;  %10074 = vmatprep.subr.bf16.mxu0 %v10497_v63 }
 0x17a   : > { %296 = vst [vmem:[#allocation2 + $0xac] sm:$0xf] %v10627_v14  ;;  %297 = vst [vmem:[#allocation2 + $0xb0] sm:$0x1] %v10627_v14  ;;  %10075 = vmatpush3.bf16.msra.mxu0 %v10497_v63  ;;  %10027 = vmatpush3.bf16.msra.mxu1 %v10493_v22  ;;  %v10496_v22 = vld [vmem:[%s14930_s2 + $0x50] sm:$0xff]  }
 0x17b   : > { %298 = vst [vmem:[#allocation2 + $0xb4] sm:$0xf] %v10627_v14  ;;  %299 = vst [vmem:[#allocation2 + $0xb8] sm:$0xf] %v10627_v14  ;;  %10028 = vmatprep.subr.bf16.mxu1 %v10496_v22 }
 0x17c   : > { %300 = vst [vmem:[#allocation2 + $0xbc] sm:$0x1] %v10627_v14  ;;  %301 = vst [vmem:[#allocation2 + $0xc0] sm:$0xf] %v10627_v14 }
 0x17d   : > { %302 = vst [vmem:[#allocation2 + $0xc4] sm:$0xf] %v10627_v14  ;;  %303 = vst [vmem:[#allocation2 + $0xc8] sm:$0x1] %v10627_v14 }
 0x17e   : > { %304 = vst [vmem:[#allocation2 + $0xcc] sm:$0xf] %v10627_v14  ;;  %305 = vst [vmem:[#allocation2 + $0xd0] sm:$0xf] %v10627_v14  ;;  %10029 = vmatpush3.bf16.msra.mxu1 %v10496_v22 }
 0x17f   : > { %306 = vst [vmem:[#allocation2 + $0xd4] sm:$0x1] %v10627_v14  ;;  %15126 = vst [vmem:[#allocation10_spill] sm:$0xff] %v11806_v28  ;;  %v9895_v14 = vpop.f32.mrf.mxu1 }
 0x180   : > { %15127 = vst [vmem:[#allocation33_spill] sm:$0xff] %v11812_v62  ;;  %15128 = vst [vmem:[#allocation12_spill] sm:$0xff] %v11816_v33  ;;  %v9860_v33 = vpop.f32.mrf.mxu0  ;;  %v10503_v62 = vld [vmem:[%s14930_s2 + $0x40] sm:$0xff]  }
 0x181   : > { %15129 = vst [vmem:[#allocation35_spill] sm:$0xff] %v11822_v61  ;;  %15130 = vst [vmem:[#allocation14_spill] sm:$0xff] %v11825_v21  ;;  %v11830_v49 = vpop.f32.mrf.mxu1  ;;  %v2161_v17 = vadd.f32 %v9860_v33, %v11678_v37 }
 0x182   : > { %15131 = vst [vmem:[#allocation20_spill] sm:$0xff] %v11830_v49  ;;  %v2056_v48 = vpop.f32.mrf.mxu0 }
 0x183   : > { %v9898_v23 = vpop.f32.mrf.mxu1  ;;  %v2159_v42 = vadd.f32 %v2056_v48, %v11681_v40  ;;  %v11842_v49 = vadd.f32 %v9894_v34, %v2161_v17 }
 0x184   : > { %v9861_v19 = vpop.f32.mrf.mxu0 }
 0x185   : > { %v2288_v0 = vpop.f32.mrf.mxu1  ;;  %v2162_v24 = vadd.f32 %v9861_v19, %v11688_v56  ;;  %v11848_v61 = vadd.f32 %v2272_v13, %v2159_v42  ;;  %v10498_v56 = vld [vmem:[%s14930_s2 + $0x10] sm:$0xff]  }
 0x186   : > { %v11850_v37 = vpop.f32.mrf.mxu0  ;;  %10076 = vmatprep.subr.bf16.mxu0 %v10498_v56 }
 0x187   : > { %v9899_v21 = vpop.f32.mrf.mxu1  ;;  %15132 = vst [vmem:[#allocation24_spill] sm:$0xff] %v11850_v37  ;;  %v11854_v40 = vadd.f32 %v9895_v14, %v2162_v24  ;;  %10077 = vmatpush3.bf16.msra.mxu0 %v10498_v56 }
 0x188   : > { %v9864_v34 = vpop.f32.mrf.mxu0 }
 0x189   : > { %v11852_v33 = vpop.f32.mrf.mxu1  ;;  %v2165_v13 = vadd.f32 %v9864_v34, %v11696_v2 }
 0x18a   : > { %15133 = vst [vmem:[#allocation27_spill] sm:$0xff] %v11852_v33  ;;  %v2072_v17 = vpop.f32.mrf.mxu0 }
 0x18b   : > { %v9902_v43 = vpop.f32.mrf.mxu1  ;;  %v2163_v42 = vadd.f32 %v2072_v17, %v11699_v5  ;;  %v11864_v24 = vadd.f32 %v9898_v23, %v2165_v13  ;;  %v10500_v5 = vld [vmem:[%s14930_s2 + $0x8] sm:$0xff]   ;;  %v10501_v17 = vld [vmem:[%s14930_s2] sm:$0xff]  }
 0x18c   : > { %v9865_v14 = vpop.f32.mrf.mxu0  ;;  %10078 = vmatprep.subr.bf16.mxu0 %v10500_v5 }
 0x18d   : > { %v2304_v48 = vpop.f32.mrf.mxu1  ;;  %v2166_v19 = vadd.f32 %v9865_v14, %v11706_v27  ;;  %v11867_v33 = vadd.f32 %v2288_v0, %v2163_v42  ;;  %10079 = vmatpush3.bf16.msra.mxu0 %v10500_v5 }
 0x18e   : > { %v11869_v47 = vpop.f32.mrf.mxu0  ;;  %10080 = vmatprep.subr.bf16.mxu0 %v10501_v17 }
 0x18f   : > { %v9903_v63 = vpop.f32.mrf.mxu1  ;;  %15134 = vst [vmem:[#allocation31_spill] sm:$0xff] %v11869_v47  ;;  %v11873_v2 = vadd.f32 %v9899_v21, %v2166_v19 }
 0x190   : > { %v9868_v23 = vpop.f32.mrf.mxu0 }
 0x191   : > { %v11871_v51 = vpop.f32.mrf.mxu1  ;;  %v2169_v27 = vadd.f32 %v9868_v23, %v11714_v10  ;;  %10081 = vmatpush3.bf16.msra.mxu0 %v10501_v17 }
 0x192   : > { %15135 = vst [vmem:[#allocation36_spill] sm:$0xff] %v11871_v51  ;;  %v2088_v0 = vpop.f32.mrf.mxu0 }
 0x193   : > { %v9906_v34 = vpop.f32.mrf.mxu1  ;;  %v2167_v21 = vadd.f32 %v2088_v0, %v11717_v29  ;;  %v11883_v13 = vadd.f32 %v9902_v43, %v2169_v27  ;;  %v3672_v29 = vld [vmem:[#allocation2] sm:$0xf]  ;;  %v3673_v43 = vld [vmem:[#allocation2 + $0x4] sm:$0xf]  ;;  %v10499_v0 = vld [vmem:[%s14930_s2 + $0x48] sm:$0xff]  }
 0x194   : > { %v9869_v42 = vpop.f32.mrf.mxu0  ;;  %v8955_v47 = vcombine.low %v3672_v29, %v3673_v43  ;;  %10030 = vmatprep.subr.bf16.mxu1 %v10499_v0  ;;  %v3737_v4 = vshrl.u32 %v3672_v29, 16 }
 0x195   : > { %v2320_v56 = vpop.f32.mrf.mxu1  ;;  %v2170_v19 = vadd.f32 %v9869_v42, %v11723_v20  ;;  %v11889_v51 = vadd.f32 %v2304_v48, %v2167_v21  ;;  %10031 = vmatpush3.bf16.msra.mxu1 %v10499_v0 }
 0x196   : > { %v11891_v10 = vpop.f32.mrf.mxu0  ;;  %10082 = vmatprep.mubr.bf16.mxu0 %v8955_v47  ;;  %10032 = vmatprep.subr.bf16.mxu1 %v10503_v62 }
 0x197   : > { %v9907_v14 = vpop.f32.mrf.mxu1  ;;  %15136 = vst [vmem:[#allocation4_spill] sm:$0xff] %v11891_v10  ;;  %v11895_v5 = vadd.f32 %v9903_v63, %v2170_v19 }
 0x198   : > { %v9872_v22 = vpop.f32.mrf.mxu0 }
 0x199   : > { %v11893_v23 = vpop.f32.mrf.mxu1  ;;  %v2173_v20 = vadd.f32 %v9872_v22, %v11735_v35  ;;  %10033 = vmatpush3.bf16.msra.mxu1 %v10503_v62  ;;  %v3750_v62 = vshrl.u32 %v3673_v43, 16 }
 0x19a   : > { %15137 = vst [vmem:[#allocation6_spill] sm:$0xff] %v11893_v23  ;;  %v2104_v48 = vpop.f32.mrf.mxu0 }
 0x19b   : > { %v9910_v27 = vpop.f32.mrf.mxu1  ;;  %v2171_v42 = vadd.f32 %v2104_v48, %v11739_v46  ;;  %v11902_v17 = vadd.f32 %v9906_v34, %v2173_v20 }
 0x19c   : > { %v9873_v63 = vpop.f32.mrf.mxu0 }
 0x19d   : > { %v2336_v21 = vpop.f32.mrf.mxu1  ;;  %v2174_v23 = vadd.f32 %v9873_v63, %v11746_v45  ;;  %v11905_v10 = vadd.f32 %v2320_v56, %v2171_v42 }
 0x19e   : > { %v11910_v35 = vpop.f32.mrf.mxu0 }
 0x19f   : > { %v9911_v19 = vpop.f32.mrf.mxu1  ;;  %15138 = vst [vmem:[#allocation7_spill] sm:$0xff] %v11910_v35  ;;  %v11914_v47 = vadd.f32 %v9907_v14, %v2174_v23  ;;  %v3740_v35 = vshll.u32 %v3672_v29, 16 }
 0x1a0   : > { %v9876_v46 = vpop.f32.mrf.mxu0 }
 0x1a1   : > { %v11912_v22 = vpop.f32.mrf.mxu1  ;;  %v2177_v0 = vadd.f32 %v9876_v46, %v11761_v1 }
 0x1a2   : > { %15139 = vst [vmem:[#allocation9_spill] sm:$0xff] %v11912_v22  ;;  %v2120_v20 = vpop.f32.mrf.mxu0 }
 0x1a3   : > { %v9914_v34 = vpop.f32.mrf.mxu1  ;;  %v2175_v56 = vadd.f32 %v2120_v20, %v11764_v38  ;;  %v11918_v48 = vadd.f32 %v9910_v27, %v2177_v0  ;;  %v3739_v38 = vrot.slane %v3737_v4, 4  ;;  %v3742_v27 = vrot.slane %v3740_v35, 5 }
 0x1a4   : > { %v9877_v42 = vpop.f32.mrf.mxu0  ;;  %v3746_v0 = vshll.u32 %v3673_v43, 16 }
 0x1a5   : > { %v2352_v45 = vpop.f32.mrf.mxu1  ;;  %v2178_v22 = vadd.f32 %v9877_v42, %v11770_v36  ;;  %v11921_v14 = vadd.f32 %v2336_v21, %v2175_v56  ;;  %v3752_v21 = vrot.slane %v3750_v62, 4 }
 0x1a6   : > { %v11923_v23 = vpop.f32.mrf.mxu0  ;;  %v3748_v36 = vrot.slane %v3746_v0, 5 }
 0x1a7   : > { %v9915_v63 = vpop.f32.mrf.mxu1  ;;  %15140 = vst [vmem:[#allocation11_spill] sm:$0xff] %v11923_v23  ;;  %v11927_v1 = vadd.f32 %v9911_v19, %v2178_v22  ;;  %v3743_v23 = vor.u32 %v3742_v27, %v3739_v38 }
 0x1a8   : > { %v9880_v46 = vpop.f32.mrf.mxu0 }
 0x1a9   : > { %v11925_v28 = vpop.f32.mrf.mxu1  ;;  %v2181_v20 = vadd.f32 %v9880_v46, %v11782_v7  ;;  %v3744_v62 = vrot.slane %v3743_v23, 4 }
 0x1aa   : > { %15141 = vst [vmem:[#allocation13_spill] sm:$0xff] %v11925_v28  ;;  %v2136_v29 = vpop.f32.mrf.mxu0  ;;  %v3720_v28 = vld [vmem:[#allocation2 + $0x8] sm:$0x1] }
 0x1ab   : > { %v11929_v37 = vpop.f32.mrf.mxu1  ;;  %v2179_v56 = vadd.f32 %v2136_v29, %v11787_v26  ;;  %v11935_v42 = vadd.f32 %v9914_v34, %v2181_v20  ;;  %v3756_v4 = vshll.u32 %v3720_v28, 16  ;;  %v3749_v28 = vsel %vm10731_vm3, %v3744_v62, %v3748_v36 }
 0x1ac   : > { %15142 = vst [vmem:[#allocation17_spill] sm:$0xff] %v11929_v37  ;;  %v9881_v19 = vpop.f32.mrf.mxu0  ;;  %v3753_v37 = vor.u32 %v3752_v21, %v3748_v36  ;;  %v10507_v36 = vld [vmem:[%s14930_s2 + $0xb8] sm:$0xff]  }
 0x1ad   : > { %v11932_v31 = vpop.f32.mrf.mxu1  ;;  %v2182_v43 = vadd.f32 %v9881_v19, %v11796_v9  ;;  %v11940_v35 = vadd.f32 %v2352_v45, %v2179_v56  ;;  %v3758_v26 = vrot.slane %v3756_v4, 5  ;;  %10114 = vmatprep.subr.bf16.mxu1 %v10507_v36 }
 0x1ae   : > { %v11942_v7 = vpop.f32.mrf.mxu0  ;;  %v3754_v0 = vrot.slane %v3753_v37, 4 }
 0x1af   : > { %v11937_v22 = vpop.f32.mrf.mxu1  ;;  %v11946_v34 = vadd.f32 %v9915_v63, %v2182_v43 }
 0x1b0   : > { %v11948_v20 = vpop.f32.mrf.mxu0  ;;  %v3759_v9 = vsel %vm10731_vm3, %v3754_v0, %v3758_v26 }
 0x1b1   : > { %v11944_v46 = vpop.f32.mrf.mxu1  ;;  %v8931_v45 = vcombine.low %v3749_v28, %v3759_v9 }
 0x1b2   : > { %v11956_v38 = vpop.f32.mrf.mxu0 }
 0x1b3   : > { %v11950_v29 = vpop.f32.mrf.mxu1  ;;  %10034 = vmatprep.mubr.bf16.mxu1 %v8931_v45 }
 0x1b4   : > { %v11960_v37 = vpop.f32.mrf.mxu0 }
 0x1b5   : > { %v11958_v27 = vpop.f32.mrf.mxu1 }
 0x1b6   : > { %v11964_v23 = vpop.f32.mrf.mxu0 }
 0x1b7   : > { %v11962_v63 = vpop.f32.mrf.mxu1 }
 0x1b8   : > { %15143 = vst [vmem:[#allocation22_spill] sm:$0xff] %v11962_v63  ;;  %v11971_v56 = vpop.f32.mrf.mxu0 }
 0x1b9   : > { %v11966_v21 = vpop.f32.mrf.mxu1 }
 0x1ba   : > { %15144 = vst [vmem:[#allocation25_spill] sm:$0xff] %v11966_v21  ;;  %v11975_v4 = vpop.f32.mrf.mxu0 }
 0x1bb   : > { %v11973_v19 = vpop.f32.mrf.mxu1 }
 0x1bc   : > { %15145 = vst [vmem:[#allocation29_spill] sm:$0xff] %v11973_v19  ;;  %v9925_v62 = vpop.f32.mrf.mxu0 }
 0x1bd   : > { %v11977_v43 = vpop.f32.mrf.mxu1  ;;  %v11982_v26 = vadd.f32 %v9925_v62, %v11835_v58 }
 0x1be   : > { %15146 = vst [vmem:[#allocation34_spill] sm:$0xff] %v11977_v43  ;;  %v11984_v28 = vpop.f32.mrf.mxu0 }
 0x1bf   : > { %v11979_v0 = vpop.f32.mrf.mxu1  ;;  %15148 = vst [vmem:[#allocation39_spill] sm:$0xff] %v11982_v26 }
 0x1c0   : > { %15147 = vst [vmem:[#allocation37_spill] sm:$0xff] %v11979_v0  ;;  %v9928_v45 = vpop.f32.mrf.mxu0 }
 0x1c1   : > { %v11986_v9 = vpop.f32.mrf.mxu1  ;;  %v11991_v19 = vadd.f32 %v9928_v45, %v11842_v49 }
 0x1c2   : > { %15149 = vst [vmem:[#allocation40_spill] sm:$0xff] %v11986_v9  ;;  %v2482_v36 = vpop.f32.mrf.mxu0 }
 0x1c3   : > { %v11988_v30 = vpop.f32.mrf.mxu1  ;;  %v11996_v43 = vadd.f32 %v2482_v36, %v11848_v61 }
 0x1c4   : > { %15150 = vst [vmem:[#allocation41_spill] sm:$0xff] %v11988_v30  ;;  %v9929_v0 = vpop.f32.mrf.mxu0 }
 0x1c5   : > { %v11993_v21 = vpop.f32.mrf.mxu1  ;;  %v12001_v58 = vadd.f32 %v9929_v0, %v11854_v40 }
 0x1c6   : > { %15151 = vst [vmem:[#allocation42_spill] sm:$0xff] %v11993_v21  ;;  %v12003_v62 = vpop.f32.mrf.mxu0 }
 0x1c7   : > { %v11998_v63 = vpop.f32.mrf.mxu1  ;;  %15153 = vst [vmem:[#allocation44_spill] sm:$0xff] %v12001_v58 }
 0x1c8   : > { %15152 = vst [vmem:[#allocation43_spill] sm:$0xff] %v11998_v63  ;;  %v9932_v30 = vpop.f32.mrf.mxu0 }
 0x1c9   : > { %v12005_v9 = vpop.f32.mrf.mxu1  ;;  %v12010_v49 = vadd.f32 %v9932_v30, %v11864_v24 }
 0x1ca   : > { %15154 = vst [vmem:[#allocation45_spill] sm:$0xff] %v12005_v9  ;;  %v2498_v45 = vpop.f32.mrf.mxu0 }
 0x1cb   : > { %v12007_v26 = vpop.f32.mrf.mxu1  ;;  %v12015_v61 = vadd.f32 %v2498_v45, %v11867_v33 }
 0x1cc   : > { %15155 = vst [vmem:[#allocation46_spill] sm:$0xff] %v12007_v26  ;;  %v9933_v36 = vpop.f32.mrf.mxu0 }
 0x1cd   : > { %v12012_v21 = vpop.f32.mrf.mxu1  ;;  %v12020_v40 = vadd.f32 %v9933_v36, %v11873_v2 }
 0x1ce   : > { %15156 = vst [vmem:[#allocation47_spill] sm:$0xff] %v12012_v21  ;;  %v12022_v0 = vpop.f32.mrf.mxu0 }
 0x1cf   : > { %v12017_v63 = vpop.f32.mrf.mxu1 }
 0x1d0   : > { %15157 = vst [vmem:[#allocation48_spill] sm:$0xff] %v12017_v63  ;;  %v9936_v26 = vpop.f32.mrf.mxu0 }
 0x1d1   : > { %v12024_v9 = vpop.f32.mrf.mxu1  ;;  %v12029_v30 = vadd.f32 %v9936_v26, %v11883_v13 }
 0x1d2   : > { %15158 = vst [vmem:[#allocation49_spill] sm:$0xff] %v12024_v9  ;;  %v2514_v24 = vpop.f32.mrf.mxu0 }
 0x1d3   : > { %v12026_v58 = vpop.f32.mrf.mxu1  ;;  %15160 = vst [vmem:[#allocation51_spill] sm:$0xff] %v12029_v30  ;;  %v12034_v33 = vadd.f32 %v2514_v24, %v11889_v51 }
 0x1d4   : > { %15159 = vst [vmem:[#allocation50_spill] sm:$0xff] %v12026_v58  ;;  %v9937_v45 = vpop.f32.mrf.mxu0 }
 0x1d5   : > { %v12031_v21 = vpop.f32.mrf.mxu1  ;;  %15162 = vst [vmem:[#allocation53_spill] sm:$0xff] %v12034_v33  ;;  %v12039_v2 = vadd.f32 %v9937_v45, %v11895_v5  ;;  %v1253_v45 = vadd.f32 %v11560_v16, %v11580_v3 }
 0x1d6   : > { %15161 = vst [vmem:[#allocation52_spill] sm:$0xff] %v12031_v21  ;;  %v12041_v36 = vpop.f32.mrf.mxu0 }
 0x1d7   : > { %v12036_v63 = vpop.f32.mrf.mxu1  ;;  %15164 = vst [vmem:[#allocation55_spill] sm:$0xff] %v12039_v2 }
 0x1d8   : > { %15163 = vst [vmem:[#allocation54_spill] sm:$0xff] %v12036_v63  ;;  %v9940_v58 = vpop.f32.mrf.mxu0 }
 0x1d9   : > { %v12043_v9 = vpop.f32.mrf.mxu1  ;;  %v12046_v13 = vadd.f32 %v9940_v58, %v11902_v17  ;;  %v15171_v58 = vld [vmem:[#allocation16_spill] sm:$0xff] }
 0x1da   : > { %15165 = vst [vmem:[#allocation56_spill] sm:$0xff] %v12043_v9  ;;  %v2530_v26 = vpop.f32.mrf.mxu0  ;;  %v15170_v9 = vld [vmem:[#allocation15_spill] sm:$0xff] }
 0x1db   : > { %15166 = vst [vmem:[#allocation57_spill] sm:$0xff] %v12046_v13  ;;  %v12049_v21 = vadd.f32 %v2530_v26, %v11905_v10  ;;  %v12051_v51 = vpop.f32.mrf.mxu1  ;;  %v1269_v2 = vadd.f32 %v15170_v9, %v11602_v57  ;;  %v15172_v13 = vld [vmem:[#allocation5_spill] sm:$0xff]  ;;  %v15173_v26 = vld [vmem:[#allocation18_spill] sm:$0xff] }
 0x1dc   : > { %15168 = vst [vmem:[#allocation59_spill] sm:$0xff] %v12051_v51  ;;  %v9941_v24 = vpop.f32.mrf.mxu0  ;;  %v1285_v10 = vadd.f32 %v15172_v13, %v15171_v58  ;;  %v1924_v13 = vadd.f32 %v11647_v52, %v11668_v50 }
 0x1dd   : > { %15167 = vst [vmem:[#allocation58_spill] sm:$0xff] %v12049_v21  ;;  %v12054_v63 = vadd.f32 %v9941_v24, %v11914_v47  ;;  %v12062_v17 = vpop.f32.mrf.mxu1  ;;  %v15174_v21 = vld [vmem:[#allocation8_spill] sm:$0xff]  ;;  %v15175_v47 = vld [vmem:[#allocation19_spill] sm:$0xff]  ;;  %v1730_v30 = vadd.f32 %v11742_v12, %v1269_v2  ;;  %v1932_v12 = vadd.f32 %v11683_v41, %v11704_v8  ;;  %v15178_v8 = vld [vmem:[#allocation10_spill] sm:$0xff] }
 0x1de   : > { %v12056_v5 = vpop.f32.mrf.mxu0  ;;  %v1301_v51 = vadd.f32 %v15174_v21, %v15173_v26  ;;  %v1920_v24 = vadd.f32 %v15175_v47, %v11650_v59  ;;  %v1734_v3 = vadd.f32 %v11766_v55, %v1285_v10  ;;  %v2156_v52 = vadd.f32 %v11828_v6, %v1924_v13  ;;  %v15184_v10 = vld [vmem:[#allocation30_spill] sm:$0xff]  ;;  %v15186_v47 = vld [vmem:[#allocation32_spill] sm:$0xff]  ;;  %v15189_v13 = vld [vmem:[#allocation7_spill] sm:$0xff] }
 0x1df   : > { %15169 = vst [vmem:[#allocation60_spill] sm:$0xff] %v12054_v63  ;;  %v1726_v63 = vadd.f32 %v11719_v15, %v1253_v45  ;;  %v12083_v59 = vpop.f32.mrf.mxu1  ;;  %v1928_v15 = vadd.f32 %v11665_v39, %v11686_v60  ;;  %v15177_v60 = vld [vmem:[#allocation24_spill] sm:$0xff]  ;;  %v15183_v45 = vld [vmem:[#allocation35_spill] sm:$0xff] }
 0x1e0   : > { %v9944_v33 = vpop.f32.mrf.mxu0  ;;  %v1738_v57 = vadd.f32 %v11789_v54, %v1301_v51  ;;  %v2152_v21 = vadd.f32 %v11814_v25, %v1920_v24  ;;  %v1944_v25 = vadd.f32 %v11744_v32, %v1734_v3  ;;  %v15182_v51 = vld [vmem:[#allocation28_spill] sm:$0xff]  ;;  %v2373_v32 = vadd.f32 %v15184_v10, %v15183_v45  ;;  %v15187_v24 = vld [vmem:[#allocation31_spill] sm:$0xff] }
 0x1e1   : > { %v12073_v16 = vadd.f32 %v9944_v33, %v11918_v48  ;;  %v1936_v54 = vadd.f32 %v11701_v11, %v1726_v63  ;;  %v1940_v48 = vadd.f32 %v11721_v18, %v1730_v30  ;;  %v15176_v33 = vld [vmem:[#allocation21_spill] sm:$0xff]  ;;  %v2160_v2 = vadd.f32 %v15177_v60, %v1928_v15  ;;  %v15179_v11 = vld [vmem:[#allocation23_spill] sm:$0xff]  ;;  %v15181_v30 = vld [vmem:[#allocation26_spill] sm:$0xff]  ;;  %v12109_v26 = vpop.f32.mrf.mxu1 }
 0x1e2   : > { %v2546_v9 = vpop.f32.mrf.mxu0  ;;  %v2369_v39 = vadd.f32 %v15176_v33, %v11801_v44  ;;  %v2367_v63 = vadd.f32 %v15179_v11, %v15178_v8  ;;  %v15180_v18 = vld [vmem:[#allocation33_spill] sm:$0xff]  ;;  %v2164_v3 = vadd.f32 %v15187_v24, %v1932_v12  ;;  %v15190_v33 = vld [vmem:[#allocation12_spill] sm:$0xff]  ;;  %v15191_v8 = vld [vmem:[#allocation11_spill] sm:$0xff] }
 0x1e3   : > { %v12081_v58 = vadd.f32 %v2546_v9, %v11921_v14  ;;  %v1948_v14 = vadd.f32 %v11768_v53, %v1738_v57  ;;  %v2370_v6 = vadd.f32 %v15181_v30, %v15180_v18  ;;  %v15185_v53 = vld [vmem:[#allocation14_spill] sm:$0xff]  ;;  %v15188_v57 = vld [vmem:[#allocation4_spill] sm:$0xff]  ;;  %v2172_v15 = vadd.f32 %v15189_v13, %v1940_v48 }
 0x1e4   : > { %v9945_v55 = vpop.f32.mrf.mxu0  ;;  %v2371_v44 = vadd.f32 %v15186_v47, %v15185_v53  ;;  %v2168_v9 = vadd.f32 %v15188_v57, %v1936_v54  ;;  %v2372_v60 = vadd.f32 %v15190_v33, %v2156_v52  ;;  %v2176_v11 = vadd.f32 %v15191_v8, %v1944_v25  ;;  %v15192_v30 = vld [vmem:[#allocation20_spill] sm:$0xff]  ;;  %v15201_v33 = vld [vmem:[#allocation25_spill] sm:$0xff] }
 0x1e5   : > { %v12093_v50 = vadd.f32 %v9945_v55, %v11927_v1  ;;  %v2368_v1 = vadd.f32 %v15182_v51, %v2152_v21  ;;  %v2180_v21 = vadd.f32 %v11942_v7, %v1948_v14  ;;  %v2376_v51 = vadd.f32 %v15192_v30, %v2160_v2  ;;  %v15193_v14 = vld [vmem:[#allocation27_spill] sm:$0xff]  ;;  %v15194_v53 = vld [vmem:[#allocation36_spill] sm:$0xff] }
 0x1e6   : > { %v12100_v41 = vpop.f32.mrf.mxu0  ;;  %v2579_v45 = vadd.f32 %v11948_v20, %v2369_v39  ;;  %v2577_v12 = vadd.f32 %v11956_v38, %v2367_v63  ;;  %v2580_v54 = vadd.f32 %v11960_v37, %v2370_v6  ;;  %v2583_v52 = vadd.f32 %v11971_v56, %v2373_v32  ;;  %v15195_v39 = vld [vmem:[#allocation6_spill] sm:$0xff]  ;;  %v15196_v6 = vld [vmem:[#allocation9_spill] sm:$0xff]  ;;  %v12174_v8 = vld [vmem:[%s14931_s3] ss:$0 sm:$0xff] }
 0x1e7   : > { %v2578_v48 = vadd.f32 %v11964_v23, %v2368_v1  ;;  %v2581_v25 = vadd.f32 %v11975_v4, %v2371_v44  ;;  %v2380_v2 = vadd.f32 %v15193_v14, %v2164_v3  ;;  %v2384_v20 = vadd.f32 %v15194_v53, %v2168_v9  ;;  %v15197_v1 = vld [vmem:[#allocation13_spill] sm:$0xff] }
 0x1e8   : > { %v9948_v55 = vpop.f32.mrf.mxu0  ;;  %v2388_v38 = vadd.f32 %v15195_v39, %v2172_v15  ;;  %v2582_v37 = vadd.f32 %v11984_v28, %v2372_v60  ;;  %v2392_v23 = vadd.f32 %v15196_v6, %v2176_v11  ;;  %v2396_v56 = vadd.f32 %v15197_v1, %v2180_v21  ;;  %v15198_v32 = vld [vmem:[#allocation17_spill] sm:$0xff]  ;;  %v12179_v11 = vld [vmem:[%s14930_s2 + $0xf8] sm:$0xff]   ;;  %v15204_v21 = vld [vmem:[#allocation44_spill] sm:$0xff] }
 0x1e9   : > { %v12120_v18 = vadd.f32 %v9948_v55, %v11935_v42  ;;  %v12132_v42 = vpop.f32.mrf.mxu1  ;;  %v2586_v4 = vadd.f32 %v12003_v62, %v2376_v51  ;;  %v2811_v47 = vadd.f32 %v15198_v32, %v2579_v45  ;;  %v2809_v44 = vadd.f32 %v11932_v31, %v2577_v12  ;;  %v15199_v62 = vld [vmem:[#allocation39_spill] sm:$0xff]  ;;  %v15206_v51 = vld [vmem:[#allocation40_spill] sm:$0xff]  ;;  %10162 = vmatprep.subr.bf16.mxu0 %v12179_v11 }
 0x1ea   : > { %v2562_v10 = vpop.f32.mrf.mxu0  ;;  %v2812_v24 = vadd.f32 %v11937_v22, %v2580_v54  ;;  %v2590_v3 = vadd.f32 %v12022_v0, %v2380_v2  ;;  %v2810_v28 = vadd.f32 %v11944_v46, %v2578_v48  ;;  %v12150_v9 = vadd.f32 %v11950_v29, %v2583_v52  ;;  %v15202_v22 = vld [vmem:[#allocation29_spill] sm:$0xff]  ;;  %v15203_v46 = vld [vmem:[#allocation34_spill] sm:$0xff]  ;;  %v15210_v48 = vld [vmem:[#allocation43_spill] sm:$0xff] }
 0x1eb   : > { %v12130_v7 = vadd.f32 %v2562_v10, %v11940_v35  ;;  %v12153_v13 = vadd.f32 %v11958_v27, %v2581_v25  ;;  %v2794_v55 = vpop.f32.mrf.mxu1  ;;  %v12160_v31 = vadd.f32 %v15201_v33, %v2582_v37  ;;  %v12164_v0 = vadd.f32 %v15202_v22, %v11991_v19  ;;  %v15205_v19 = vld [vmem:[#allocation37_spill] sm:$0xff]  ;;  %v15209_v54 = vld [vmem:[#allocation42_spill] sm:$0xff]  ;;  %v15217_v1 = vld [vmem:[#allocation55_spill] sm:$0xff] }
 0x1ec   : > { %v9949_v63 = vpop.f32.mrf.mxu0  ;;  %v12168_v60 = vadd.f32 %v15203_v46, %v11996_v43  ;;  %v2594_v29 = vadd.f32 %v12041_v36, %v2384_v20  ;;  %v12183_v30 = vadd.f32 %v15205_v19, %v15204_v21  ;;  %v12186_v43 = vadd.f32 %v15206_v51, %v2586_v4  ;;  %v15207_v36 = vld [vmem:[#allocation41_spill] sm:$0xff]  ;;  %v15212_v20 = vld [vmem:[#allocation51_spill] sm:$0xff]  ;;  %v15218_v4 = vld [vmem:[#allocation48_spill] sm:$0xff] }
 0x1ed   : > { %v12142_v35 = vadd.f32 %v9949_v63, %v11946_v34  ;;  %v15200_v34 = vld [vmem:[#allocation22_spill] sm:$0xff]  ;;  %v12190_v45 = vadd.f32 %v15207_v36, %v12010_v49  ;;  %v12196_v10 = vadd.f32 %v15209_v54, %v12015_v61  ;;  %v12200_v52 = vadd.f32 %v15210_v48, %v12020_v40  ;;  %v15211_v25 = vld [vmem:[#allocation45_spill] sm:$0xff]  ;;  %v12209_v49 = vld [vmem:[%s14932_s4] ss:$0 sm:$0xff]  ;;  %v9983_v6 = vpop.f32.mrf.mxu1 }
 0x1ee   : > { %v2565_v57 = vpop.f32.mrf.mxu0  ;;  %v12157_v15 = vadd.f32 %v15200_v34, %v15199_v62  ;;  %v12203_v14 = vadd.f32 %v15211_v25, %v2590_v3  ;;  %v2598_v2 = vadd.f32 %v12056_v5, %v2388_v38  ;;  %v15213_v61 = vld [vmem:[#allocation46_spill] sm:$0xff]  ;;  %v15214_v37 = vld [vmem:[#allocation53_spill] sm:$0xff]  ;;  %v15215_v40 = vld [vmem:[#allocation47_spill] sm:$0xff]  ;;  %v12226_v32 = vadd.f32 %v15218_v4, %v15217_v1 }
 0x1ef   : > { %v12214_v39 = vadd.f32 %v15213_v61, %v15212_v20  ;;  %v12218_v63 = vadd.f32 %v15215_v40, %v15214_v37  ;;  %v15220_v62 = vld [vmem:[#allocation57_spill] sm:$0xff]  ;;  %v15221_v34 = vld [vmem:[#allocation50_spill] sm:$0xff]  ;;  %v2602_v22 = vadd.f32 %v12100_v41, %v2392_v23  ;;  %v15223_v21 = vld [vmem:[#allocation52_spill] sm:$0xff]  ;;  %v2606_v20 = vadd.f32 %v2565_v57, %v2396_v56  ;;  %v2797_v37 = vpop.f32.mrf.mxu1 }
 0x1f0   : > { %v9988_v27 = vpop.f32.mrf.mxu0  ;;  %v12233_v33 = vadd.f32 %v15221_v34, %v15220_v62  ;;  %v15225_v36 = vld [vmem:[#allocation60_spill] sm:$0xff]  ;;  %v15226_v54 = vld [vmem:[#allocation54_spill] sm:$0xff]  ;;  %v15228_v25 = vld [vmem:[#allocation59_spill] sm:$0xff]  ;;  %v12263_v4 = vadd.f32 %v12062_v17, %v12081_v58  ;;  %v12274_v56 = vadd.f32 %v12132_v42, %v12120_v18  ;;  %v12281_v58 = vadd.f32 %v9983_v6, %v12142_v35 }
 0x1f1   : > { %v12192_v12 = vadd.f32 %v9988_v27, %v2811_v47  ;;  %v15219_v47 = vld [vmem:[#allocation49_spill] sm:$0xff]  ;;  %v15222_v27 = vld [vmem:[#allocation58_spill] sm:$0xff]  ;;  %v12247_v48 = vadd.f32 %v15226_v54, %v15225_v36  ;;  %v15227_v41 = vld [vmem:[#allocation56_spill] sm:$0xff] }
 0x1f2   : > { %v2898_v53 = vpop.f32.mrf.mxu0  ;;  %v12229_v3 = vadd.f32 %v15219_v47, %v2594_v29  ;;  %v12250_v23 = vadd.f32 %v15227_v41, %v2598_v2  ;;  %v12267_v2 = vadd.f32 %v12083_v59, %v12093_v50  ;;  %v12277_v47 = vadd.f32 %v2794_v55, %v12130_v7  ;;  %v3567_v35 = vld [vmem:[#allocation2 + $0x18] sm:$0xf]  ;;  %v3558_v41 = vld [vmem:[#allocation2 + $0xc] sm:$0xf] }
 0x1f3   : > { %15208 = vst [vmem:[#allocation15_spill] sm:$0xff] %v12192_v12  ;;  %v3066_v5 = vmul.f32 %v12174_v8, %v12192_v12  ;;  %v12222_v38 = vadd.f32 %v2898_v53, %v2809_v44  ;;  %v12238_v44 = vadd.f32 %v15223_v21, %v15222_v27  ;;  %v12254_v53 = vadd.f32 %v15228_v25, %v12073_v16 }
 0x1f4   : > { %v9989_v46 = vpop.f32.mrf.mxu0  ;;  %v12270_v16 = vadd.f32 %v12109_v26, %v2602_v22  ;;  %v12283_v59 = vadd.f32 %v2797_v37, %v2606_v20 }
 0x1f5   : > { %15216 = vst [vmem:[#allocation16_spill] sm:$0xff] %v12222_v38  ;;  %v3105_v19 = vadd.f32 %v12209_v49, %v3066_v5  ;;  %v3064_v51 = vmul.f32 %v12174_v8, %v12222_v38  ;;  %v12243_v29 = vadd.f32 %v9989_v46, %v2812_v24 }
 0x1f6   : > { %v2901_v61 = vpop.f32.mrf.mxu0 }
 0x1f7   : > { %15224 = vst [vmem:[#allocation5_spill] sm:$0xff] %v12243_v29  ;;  %v9313_v40 = vpack.c.bf16 %v3105_v19, %v3105_v19  ;;  %v3103_v5 = vadd.f32 %v12209_v49, %v3064_v51  ;;  %v3067_v24 = vmul.f32 %v12174_v8, %v12243_v29  ;;  %v12259_v1 = vadd.f32 %v2901_v61, %v2810_v28 }
 0x1f8   : > { %v9992_v57 = vpop.f32.mrf.mxu0 }
 0x1f9   : > { %15229 = vst [vmem:[#allocation18_spill] sm:$0xff] %v12259_v1  ;;  %v3252_v28 = vshrl.u32 %v9313_v40, 16  ;;  %v9311_v62 = vpack.c.bf16 %v3103_v5, %v3103_v5  ;;  %v3106_v17 = vadd.f32 %v12209_v49, %v3067_v24  ;;  %v3065_v50 = vmul.f32 %v12174_v8, %v12259_v1 }
 0x1fa   : > { %v12288_v26 = vadd.f32 %v9992_v57, %v12150_v9  ;;  %v2914_v18 = vpop.f32.mrf.mxu0  ;;  %v3255_v34 = vshll.u32 %v9313_v40, 16 }
 0x1fb   : > { %v3254_v42 = vrot.slane %v3252_v28, 7  ;;  %v3235_v7 = vshrl.u32 %v9311_v62, 16  ;;  %v9314_v55 = vpack.c.bf16 %v3106_v17, %v3106_v17  ;;  %v3238_v6 = vshll.u32 %v9311_v62, 16  ;;  %v3571_v17 = vld [vmem:[#allocation2 + $0x20] sm:$0x1] }
 0x1fc   : > { %15230 = vst [vmem:[#allocation8_spill] sm:$0xff] %v12288_v26  ;;  %v3104_v46 = vadd.f32 %v12209_v49, %v3065_v50  ;;  %v3070_v27 = vmul.f32 %v12174_v8, %v12288_v26  ;;  %v12300_v9 = vadd.f32 %v2914_v18, %v12153_v13  ;;  %v9993_v21 = vpop.f32.mrf.mxu0 }
 0x1fd   : > { %v3257_v19 = vor.u32 %v3255_v34, %v3254_v42  ;;  %v3258_v51 = vrot.slane %v3254_v42, 4  ;;  %v3237_v36 = vrot.slane %v3235_v7, 7  ;;  %v3260_v54 = vshrl.u32 %v9314_v55, 16 }
 0x1fe   : > { %15233 = vst [vmem:[#allocation19_spill] sm:$0xff] %v12300_v9  ;;  %v3263_v25 = vshll.u32 %v9314_v55, 16  ;;  %v9312_v20 = vpack.c.bf16 %v3104_v46, %v3104_v46  ;;  %v3109_v61 = vadd.f32 %v12209_v49, %v3070_v27  ;;  %v3068_v37 = vmul.f32 %v12174_v8, %v12300_v9  ;;  %v2917_v40 = vpop.f32.mrf.mxu0 }
 0x1ff   : > { %v3568_v5 = vsel %vm12292_vm12, %v3257_v19, %v3567_v35  ;;  %v3240_v24 = vor.u32 %v3238_v6, %v3237_v36  ;;  %v3241_v13 = vrot.slane %v3237_v36, 4  ;;  %v3262_v28 = vrot.slane %v3260_v54, 7 }
 0x200   : > { %3569 = vst [vmem:[#allocation2 + $0x18] sm:$0xf] %v3568_v5  ;;  %v3243_v50 = vshrl.u32 %v9312_v20, 16  ;;  %v3246_v18 = vshll.u32 %v9312_v20, 16  ;;  %v9317_v42 = vpack.c.bf16 %v3109_v61, %v3109_v61  ;;  %v3107_v34 = vadd.f32 %v12209_v49, %v3068_v37  ;;  %v9996_v7 = vpop.f32.mrf.mxu0  ;;  %v3564_v37 = vld [vmem:[#allocation2 + $0x14] sm:$0x1] }
 0x201   : > { %v3559_v55 = vsel %vm12292_vm12, %v3240_v24, %v3558_v41  ;;  %v3265_v35 = vor.u32 %v3263_v25, %v3262_v28  ;;  %v3267_v6 = vrot.slane %v3262_v28, 4  ;;  %v12323_v46 = vadd.f32 %v9993_v21, %v12157_v15 }
 0x202   : > { %3560 = vst [vmem:[#allocation2 + $0xc] sm:$0xf] %v3559_v55  ;;  %v3245_v27 = vrot.slane %v3243_v50, 7  ;;  %v3286_v19 = vshrl.u32 %v9317_v42, 16  ;;  %v3289_v36 = vshll.u32 %v9317_v42, 16  ;;  %v9315_v54 = vpack.c.bf16 %v3107_v34, %v3107_v34  ;;  %v2930_v5 = vpop.f32.mrf.mxu0 }
 0x203   : > { %15238 = vst [vmem:[#allocation21_spill] sm:$0xff] %v12323_v46  ;;  %v3266_v20 = vsel %vm12309_vm13, %v3258_v51, %v3265_v35  ;;  %v3572_v61 = vsel %vm12315_vm14, %v3267_v6, %v3571_v17  ;;  %v3071_v41 = vmul.f32 %v12174_v8, %v12323_v46  ;;  %v12332_v25 = vadd.f32 %v2917_v40, %v12160_v31  ;;  %v3581_v42 = vld [vmem:[#allocation2 + $0x30] sm:$0xf] }
 0x204   : > { %3570 = vst [vmem:[#allocation2 + $0x1c] sm:$0xf] %v3266_v20  ;;  %3573 = vst [vmem:[#allocation2 + $0x20] sm:$0x1] %v3572_v61  ;;  %v3248_v15 = vor.u32 %v3246_v18, %v3245_v27  ;;  %v3250_v21 = vrot.slane %v3245_v27, 4  ;;  %v3288_v24 = vrot.slane %v3286_v19, 7  ;;  %v9997_v50 = vpop.f32.mrf.mxu0  ;;  %v12338_v55 = vadd.f32 %v9996_v7, %v12164_v0 }
 0x205   : > { %15239 = vst [vmem:[#allocation24_spill] sm:$0xff] %v12332_v25  ;;  %v3269_v28 = vshrl.u32 %v9315_v54, 16  ;;  %v3272_v34 = vshll.u32 %v9315_v54, 16  ;;  %v3110_v51 = vadd.f32 %v12209_v49, %v3071_v41  ;;  %v3069_v17 = vmul.f32 %v12174_v8, %v12332_v25  ;;  %v3574_v7 = vld [vmem:[#allocation2 + $0x24] sm:$0xf] }
 0x206   : > { %15240 = vst [vmem:[#allocation10_spill] sm:$0xff] %v12338_v55  ;;  %v3249_v31 = vsel %vm12309_vm13, %v3241_v13, %v3248_v15  ;;  %v3565_v40 = vsel %vm12315_vm14, %v3250_v21, %v3564_v37  ;;  %v3291_v18 = vor.u32 %v3289_v36, %v3288_v24  ;;  %v3292_v35 = vrot.slane %v3288_v24, 4  ;;  %v2933_v6 = vpop.f32.mrf.mxu0 }
 0x207   : > { %3561 = vst [vmem:[#allocation2 + $0x10] sm:$0xf] %v3249_v31  ;;  %3566 = vst [vmem:[#allocation2 + $0x14] sm:$0x1] %v3565_v40  ;;  %v3271_v27 = vrot.slane %v3269_v28, 7  ;;  %v9318_v19 = vpack.c.bf16 %v3110_v51, %v3110_v51  ;;  %v3108_v54 = vadd.f32 %v12209_v49, %v3069_v17  ;;  %v3074_v20 = vmul.f32 %v12174_v8, %v12338_v55 }
 0x208   : > { %v3582_v0 = vsel %vm12292_vm12, %v3291_v18, %v3581_v42  ;;  %v12350_v13 = vadd.f32 %v2930_v5, %v12168_v60  ;;  %v12353_v36 = vadd.f32 %v9997_v50, %v12183_v30  ;;  %v12356_v61 = vadd.f32 %v2933_v6, %v12186_v43  ;;  %v10000_v37 = vpop.f32.mrf.mxu0  ;;  %v3585_v17 = vld [vmem:[#allocation2 + $0x38] sm:$0x1] }
 0x209   : > { %3583 = vst [vmem:[#allocation2 + $0x30] sm:$0xf] %v3582_v0  ;;  %v3274_v41 = vor.u32 %v3272_v34, %v3271_v27  ;;  %v3275_v15 = vrot.slane %v3271_v27, 4  ;;  %v3294_v21 = vshrl.u32 %v9318_v19, 16  ;;  %v3297_v24 = vshll.u32 %v9318_v19, 16 }
 0x20a   : > { %15241 = vst [vmem:[#allocation23_spill] sm:$0xff] %v12350_v13  ;;  %15242 = vst [vmem:[#allocation33_spill] sm:$0xff] %v12353_v36  ;;  %v9316_v28 = vpack.c.bf16 %v3108_v54, %v3108_v54  ;;  %v3113_v51 = vadd.f32 %v12209_v49, %v3074_v20  ;;  %v3072_v42 = vmul.f32 %v12174_v8, %v12350_v13  ;;  %v2946_v30 = vpop.f32.mrf.mxu0 }
 0x20b   : > { %15243 = vst [vmem:[#allocation26_spill] sm:$0xff] %v12356_v61  ;;  %v3075_v60 = vmul.f32 %v12174_v8, %v12353_v36  ;;  %v3575_v43 = vsel %vm12292_vm12, %v3274_v41, %v3574_v7  ;;  %v3296_v5 = vrot.slane %v3294_v21, 7  ;;  %v3073_v50 = vmul.f32 %v12174_v8, %v12356_v61 }
 0x20c   : > { %v12368_v34 = vadd.f32 %v10000_v37, %v12190_v45  ;;  %3576 = vst [vmem:[#allocation2 + $0x24] sm:$0xf] %v3575_v43  ;;  %v3277_v31 = vshrl.u32 %v9316_v28, 16  ;;  %v3280_v40 = vshll.u32 %v9316_v28, 16  ;;  %v9321_v18 = vpack.c.bf16 %v3113_v51, %v3113_v51  ;;  %v10001_v27 = vpop.f32.mrf.mxu0  ;;  %v3578_v28 = vld [vmem:[#allocation2 + $0x2c] sm:$0x1] }
 0x20d   : > { %v3111_v6 = vadd.f32 %v12209_v49, %v3072_v42  ;;  %v3299_v19 = vor.u32 %v3297_v24, %v3296_v5  ;;  %v3301_v54 = vrot.slane %v3296_v5, 4  ;;  %v3114_v20 = vadd.f32 %v12209_v49, %v3075_v60  ;;  %v3595_v5 = vld [vmem:[#allocation2 + $0x48] sm:$0xf] }
 0x20e   : > { %15244 = vst [vmem:[#allocation28_spill] sm:$0xff] %v12368_v34  ;;  %v3112_v0 = vadd.f32 %v12209_v49, %v3073_v50  ;;  %v3279_v7 = vrot.slane %v3277_v31, 7  ;;  %v3320_v41 = vshrl.u32 %v9321_v18, 16  ;;  %v3323_v21 = vshll.u32 %v9321_v18, 16  ;;  %v2949_v31 = vpop.f32.mrf.mxu0 }
 0x20f   : > { %v9319_v61 = vpack.c.bf16 %v3111_v6, %v3111_v6  ;;  %v3300_v45 = vsel %vm12309_vm13, %v3292_v35, %v3299_v19  ;;  %v3586_v37 = vsel %vm12315_vm14, %v3301_v54, %v3585_v17  ;;  %v9322_v51 = vpack.c.bf16 %v3114_v20, %v3114_v20  ;;  %v3588_v20 = vld [vmem:[#allocation2 + $0x3c] sm:$0xf] }
 0x210   : > { %v9320_v42 = vpack.c.bf16 %v3112_v0, %v3112_v0  ;;  %3584 = vst [vmem:[#allocation2 + $0x34] sm:$0xf] %v3300_v45  ;;  %3587 = vst [vmem:[#allocation2 + $0x38] sm:$0x1] %v3586_v37  ;;  %v3282_v24 = vor.u32 %v3280_v40, %v3279_v7  ;;  %v3284_v43 = vrot.slane %v3279_v7, 4  ;;  %v3322_v60 = vrot.slane %v3320_v41, 7 }
 0x211   : > { %v3303_v50 = vshrl.u32 %v9319_v61, 16  ;;  %v3306_v36 = vshll.u32 %v9319_v61, 16  ;;  %v3328_v18 = vshrl.u32 %v9322_v51, 16  ;;  %v3331_v6 = vshll.u32 %v9322_v51, 16  ;;  %v3599_v45 = vld [vmem:[#allocation2 + $0x50] sm:$0x1] }
 0x212   : > { %v3311_v13 = vshrl.u32 %v9320_v42, 16  ;;  %v3283_v35 = vsel %vm12309_vm13, %v3275_v15, %v3282_v24  ;;  %v3579_v17 = vsel %vm12315_vm14, %v3284_v43, %v3578_v28  ;;  %v3325_v19 = vor.u32 %v3323_v21, %v3322_v60  ;;  %v3592_v37 = vld [vmem:[#allocation2 + $0x44] sm:$0x1]  ;;  %v10004_v28 = vpop.f32.mrf.mxu0  ;;  %v3680_v55 = vld [vmem:[#allocation2 + $0x30] sm:$0xf] }
 0x213   : > { %v3326_v54 = vrot.slane %v3322_v60, 4  ;;  %3577 = vst [vmem:[#allocation2 + $0x28] sm:$0xf] %v3283_v35  ;;  %3580 = vst [vmem:[#allocation2 + $0x2c] sm:$0x1] %v3579_v17  ;;  %v3305_v40 = vrot.slane %v3303_v50, 7  ;;  %v3078_v15 = vmul.f32 %v12174_v8, %v12368_v34  ;;  %v12386_v51 = vadd.f32 %v2946_v30, %v12196_v10 }
 0x214   : > { %v3330_v0 = vrot.slane %v3328_v18, 7  ;;  %v3313_v7 = vrot.slane %v3311_v13, 7  ;;  %v3314_v41 = vshll.u32 %v9320_v42, 16  ;;  %v3596_v61 = vsel %vm12292_vm12, %v3325_v19, %v3595_v5  ;;  %v3674_v35 = vld [vmem:[#allocation2 + $0xc] sm:$0xf] }
 0x215   : > { %15245 = vst [vmem:[#allocation35_spill] sm:$0xff] %v12386_v51  ;;  %v12389_v21 = vadd.f32 %v10001_v27, %v12200_v52  ;;  %3597 = vst [vmem:[#allocation2 + $0x48] sm:$0xf] %v3596_v61  ;;  %v3308_v24 = vor.u32 %v3306_v36, %v3305_v40  ;;  %v3309_v43 = vrot.slane %v3305_v40, 4  ;;  %v3117_v5 = vadd.f32 %v12209_v49, %v3078_v15  ;;  %v12407_v40 = vpop.f32.mrf.mxu0  ;;  %v3609_v15 = vld [vmem:[#allocation2 + $0x60] sm:$0xf] }
 0x216   : > { %v3333_v13 = vor.u32 %v3331_v6, %v3330_v0  ;;  %v3335_v42 = vrot.slane %v3330_v0, 4  ;;  %v3316_v60 = vor.u32 %v3314_v41, %v3313_v7  ;;  %v3318_v50 = vrot.slane %v3313_v7, 4 }
 0x217   : > { %15246 = vst [vmem:[#allocation30_spill] sm:$0xff] %v12389_v21  ;;  %v3076_v18 = vmul.f32 %v12174_v8, %v12386_v51  ;;  %v3589_v10 = vsel %vm12292_vm12, %v3308_v24, %v3588_v20  ;;  %v3079_v30 = vmul.f32 %v12174_v8, %v12389_v21  ;;  %v9325_v17 = vpack.c.bf16 %v3117_v5, %v3117_v5  ;;  %v10005_v5 = vpop.f32.mrf.mxu0  ;;  %v10586_v46 = vld [vmem:[#allocation2 + $0x30] sm:$0xff]  }
 0x218   : > { %v3334_v52 = vsel %vm12309_vm13, %v3326_v54, %v3333_v13  ;;  %v3600_v36 = vsel %vm12315_vm14, %v3335_v42, %v3599_v45  ;;  %3590 = vst [vmem:[#allocation2 + $0x3c] sm:$0xf] %v3589_v10  ;;  %v3317_v27 = vsel %vm12309_vm13, %v3309_v43, %v3316_v60  ;;  %v3593_v6 = vsel %vm12315_vm14, %v3318_v50, %v3592_v37  ;;  %v12420_v42 = vld [vmem:[#allocation2 + $0x10] sm:$0xf]  ;;  %v3676_v50 = vld [vmem:[#allocation2 + $0x18] sm:$0xf] }
 0x219   : > { %3598 = vst [vmem:[#allocation2 + $0x4c] sm:$0xf] %v3334_v52  ;;  %3601 = vst [vmem:[#allocation2 + $0x50] sm:$0x1] %v3600_v36  ;;  %v3115_v19 = vadd.f32 %v12209_v49, %v3076_v18  ;;  %v3118_v54 = vadd.f32 %v12209_v49, %v3079_v30  ;;  %v12411_v20 = vadd.f32 %v2949_v31, %v12203_v14  ;;  %v3761_v7 = vshrl.u32 %v3674_v35, 16 }
 0x21a   : > { %3591 = vst [vmem:[#allocation2 + $0x40] sm:$0xf] %v3317_v27  ;;  %3594 = vst [vmem:[#allocation2 + $0x44] sm:$0x1] %v3593_v6  ;;  %v12414_v0 = vadd.f32 %v10004_v28, %v12214_v39  ;;  %v3354_v41 = vshrl.u32 %v9325_v17, 16  ;;  %v3357_v61 = vshll.u32 %v9325_v17, 16 }
 0x21b   : > { %15247 = vst [vmem:[#allocation14_spill] sm:$0xff] %v12411_v20  ;;  %v9323_v45 = vpack.c.bf16 %v3115_v19, %v3115_v19  ;;  %v3764_v37 = vshll.u32 %v3674_v35, 16  ;;  %v9326_v24 = vpack.c.bf16 %v3118_v54, %v3118_v54  ;;  %v3077_v43 = vmul.f32 %v12174_v8, %v12411_v20  ;;  %v3602_v19 = vld [vmem:[#allocation2 + $0x54] sm:$0xf] }
 0x21c   : > { %15248 = vst [vmem:[#allocation32_spill] sm:$0xff] %v12414_v0  ;;  %v3082_v13 = vmul.f32 %v12174_v8, %v12414_v0  ;;  %v12422_v14 = vrot.slane %v3761_v7, 4  ;;  %v3356_v31 = vrot.slane %v3354_v41, 7 }
 0x21d   : > { %v3337_v39 = vshrl.u32 %v9323_v45, 16  ;;  %v3340_v28 = vshll.u32 %v9323_v45, 16  ;;  %v12424_v60 = vrot.slane %v3764_v37, 5  ;;  %v3362_v18 = vshrl.u32 %v9326_v24, 16  ;;  %v10519_v37 = vld [vmem:[%s14930_s2 + $0xf0] sm:$0xff]  }
 0x21e   : > { %v3365_v10 = vshll.u32 %v9326_v24, 16  ;;  %v3116_v52 = vadd.f32 %v12209_v49, %v3077_v43  ;;  %v3121_v36 = vadd.f32 %v12209_v49, %v3082_v13  ;;  %v3359_v30 = vor.u32 %v3357_v61, %v3356_v31  ;;  %v3613_v61 = vld [vmem:[#allocation2 + $0x68] sm:$0x1] }
 0x21f   : > { %v3360_v27 = vrot.slane %v3356_v31, 4  ;;  %v3339_v6 = vrot.slane %v3337_v39, 7  ;;  %v3364_v54 = vrot.slane %v3362_v18, 7  ;;  %v8956_v45 = vcombine.low %v3674_v35, %v12420_v42  ;;  %v2965_v39 = vpop.f32.mrf.mxu0 }
 0x220   : > { %v9324_v7 = vpack.c.bf16 %v3116_v52, %v3116_v52  ;;  %v9329_v41 = vpack.c.bf16 %v3121_v36, %v3121_v36  ;;  %v3610_v24 = vsel %vm12292_vm12, %v3359_v30, %v3609_v15  ;;  %v3785_v31 = vshrl.u32 %v3676_v50, 16  ;;  %v12435_v36 = vld [vmem:[#allocation2 + $0x1c] sm:$0xf]  ;;  %v10522_v15 = vld [vmem:[%s14930_s2 + $0xe8] sm:$0xff]  }
 0x221   : > { %v3342_v43 = vor.u32 %v3340_v28, %v3339_v6  ;;  %v3343_v13 = vrot.slane %v3339_v6, 4  ;;  %3611 = vst [vmem:[#allocation2 + $0x60] sm:$0xf] %v3610_v24  ;;  %v3367_v17 = vor.u32 %v3365_v10, %v3364_v54  ;;  %v3369_v0 = vrot.slane %v3364_v54, 4  ;;  %10083 = vmatmul.mubr.bf16.vlgmr.msra.gmra.mxu0 %v8956_v45 }
 0x222   : > { %v3345_v18 = vshrl.u32 %v9324_v7, 16  ;;  %v3348_v52 = vshll.u32 %v9324_v7, 16  ;;  %v3388_v20 = vshrl.u32 %v9329_v41, 16  ;;  %v3391_v21 = vshll.u32 %v9329_v41, 16  ;;  %10163 = vmatpush3.bf16.msra.mxu0 %v12179_v11  ;;  %v3623_v11 = vld [vmem:[#allocation2 + $0x78] sm:$0xf] }
 0x223   : > { %v3603_v35 = vsel %vm12292_vm12, %v3342_v43, %v3602_v19  ;;  %v12439_v51 = vrot.slane %v3785_v31, 4  ;;  %v3368_v28 = vsel %vm12309_vm13, %v3360_v27, %v3367_v17  ;;  %v3614_v10 = vsel %vm12315_vm14, %v3369_v0, %v3613_v61  ;;  %10164 = vmatprep.subr.bf16.mxu0 %v10519_v37  ;;  %v3606_v19 = vld [vmem:[#allocation2 + $0x5c] sm:$0x1]  ;;  %v10008_v27 = vpop.f32.mrf.mxu0  ;;  %v3678_v61 = vld [vmem:[#allocation2 + $0x24] sm:$0xf] }
 0x224   : > { %3604 = vst [vmem:[#allocation2 + $0x54] sm:$0xf] %v3603_v35  ;;  %v3347_v30 = vrot.slane %v3345_v18, 7  ;;  %v3788_v6 = vshll.u32 %v3676_v50, 16  ;;  %3612 = vst [vmem:[#allocation2 + $0x64] sm:$0xf] %v3368_v28  ;;  %v8957_v41 = vcombine.low %v3676_v50, %v12435_v36  ;;  %v12455_v45 = vadd.f32 %v12407_v40, %v12218_v63 }
 0x225   : > { %3615 = vst [vmem:[#allocation2 + $0x68] sm:$0x1] %v3614_v10  ;;  %v12449_v54 = vrot.slane %v3388_v20, 7  ;;  %v12460_v43 = vadd.f32 %v10005_v5, %v12226_v32  ;;  %v12467_v63 = vadd.f32 %v2965_v39, %v12229_v3  ;;  %v12469_v40 = vld [vmem:[#allocation2 + $0x28] sm:$0xf]  ;;  %v10524_v32 = vld [vmem:[%s14930_s2 + $0xe0] sm:$0xff]  }
 0x226   : > { %15249 = vst [vmem:[#allocation31_spill] sm:$0xff] %v12455_v45  ;;  %v3350_v17 = vor.u32 %v3348_v52, %v3347_v30  ;;  %v3352_v0 = vrot.slane %v3347_v30, 4  ;;  %v12457_v24 = vrot.slane %v3788_v6, 5  ;;  %10086 = vmatprep.mubr.bf16.mxu0 %v8957_v41  ;;  %v3080_v50 = vmul.f32 %v12174_v8, %v12455_v45  ;;  %10165 = vmatpush3.bf16.msra.mxu0 %v10519_v37  ;;  %v12496_v41 = vpop.f32.mrf.mxu0  ;;  %v3721_v31 = vld [vmem:[#allocation2 + $0x14] sm:$0x1] }
 0x227   : > { %15250 = vst [vmem:[#allocation4_spill] sm:$0xff] %v12460_v43  ;;  %v3393_v20 = vor.u32 %v3391_v21, %v12449_v54  ;;  %15251 = vst [vmem:[#allocation7_spill] sm:$0xff] %v12467_v63  ;;  %v3083_v18 = vmul.f32 %v12174_v8, %v12460_v43  ;;  %v12481_v52 = vadd.f32 %v10008_v27, %v12233_v33  ;;  %10166 = vmatprep.subr.bf16.mxu0 %v10522_v15 }
 0x228   : > { %v3351_v5 = vsel %vm12309_vm13, %v3343_v13, %v3350_v17  ;;  %v3607_v21 = vsel %vm12315_vm14, %v3352_v0, %v3606_v19  ;;  %v3119_v37 = vadd.f32 %v12209_v49, %v3080_v50  ;;  %v3081_v13 = vmul.f32 %v12174_v8, %v12467_v63  ;;  %v10527_v50 = vld [vmem:[%s14930_s2 + $0xd8] sm:$0xff]   ;;  %v12507_v10 = vpop.f32.mrf.mxu0 }
 0x229   : > { %15252 = vst [vmem:[#allocation12_spill] sm:$0xff] %v12481_v52  ;;  %3605 = vst [vmem:[#allocation2 + $0x58] sm:$0xf] %v3351_v5  ;;  %v3624_v3 = vsel %vm12292_vm12, %v3393_v20, %v3623_v11  ;;  %v3809_v39 = vshrl.u32 %v3678_v61, 16  ;;  %v3122_v35 = vadd.f32 %v12209_v49, %v3083_v18  ;;  %v3086_v28 = vmul.f32 %v12174_v8, %v12481_v52 }
 0x22a   : > { %3608 = vst [vmem:[#allocation2 + $0x5c] sm:$0x1] %v3607_v21  ;;  %3625 = vst [vmem:[#allocation2 + $0x78] sm:$0xf] %v3624_v3  ;;  %v3812_v33 = vshll.u32 %v3678_v61, 16  ;;  %v9327_v30 = vpack.c.bf16 %v3119_v37, %v3119_v37  ;;  %v3120_v6 = vadd.f32 %v12209_v49, %v3081_v13  ;;  %v8958_v11 = vcombine.low %v3678_v61, %v12469_v40 }
 0x22b   : > { %v12493_v19 = vrot.slane %v3809_v39, 4  ;;  %10167 = vmatpush3.bf16.msra.mxu0 %v10522_v15  ;;  %v9330_v27 = vpack.c.bf16 %v3122_v35, %v3122_v35  ;;  %v3125_v17 = vadd.f32 %v12209_v49, %v3086_v28  ;;  %v3767_v20 = vor.u32 %v12424_v60, %v12422_v14  ;;  %v3616_v15 = vld [vmem:[#allocation2 + $0x6c] sm:$0xf]  ;;  %v3627_v28 = vld [vmem:[#allocation2 + $0x80] sm:$0x1] }
 0x22c   : > { %v12499_v0 = vrot.slane %v3812_v33, 5  ;;  %10168 = vmatprep.subr.bf16.mxu0 %v10524_v32  ;;  %v3371_v5 = vshrl.u32 %v9327_v30, 16  ;;  %v3374_v21 = vshll.u32 %v9327_v30, 16  ;;  %v9328_v18 = vpack.c.bf16 %v3120_v6, %v3120_v6  ;;  %10087 = vmatmul.mubr.bf16.gmra.mxu0 %v8958_v11  ;;  %v10529_v30 = vld [vmem:[%s14930_s2 + $0xd0] sm:$0xff]  }
 0x22d   : > { %v3770_v61 = vshll.u32 %v12420_v42, 16  ;;  %v3396_v3 = vshrl.u32 %v9330_v27, 16  ;;  %v3399_v37 = vshll.u32 %v9330_v27, 16  ;;  %v9333_v13 = vpack.c.bf16 %v3125_v17, %v3125_v17 }
 0x22e   : > { %v3768_v39 = vrot.slane %v3767_v20, 4  ;;  %v3373_v35 = vrot.slane %v3371_v5, 7  ;;  %v3379_v33 = vshrl.u32 %v9328_v18, 16  ;;  %v3382_v14 = vshll.u32 %v9328_v18, 16  ;;  %v3620_v18 = vld [vmem:[#allocation2 + $0x74] sm:$0x1] }
 0x22f   : > { %v3772_v60 = vrot.slane %v3770_v61, 5  ;;  %10169 = vmatpush3.bf16.msra.mxu0 %v10524_v32  ;;  %v3398_v6 = vrot.slane %v3396_v3, 7  ;;  %v3422_v11 = vshrl.u32 %v9333_v13, 16  ;;  %v3425_v7 = vshll.u32 %v9333_v13, 16  ;;  %v3637_v61 = vld [vmem:[#allocation2 + $0x90] sm:$0xf] }
 0x230   : > { %v15253_v27 = vshrl.u32 %v12420_v42, 16  ;;  %10170 = vmatprep.subr.bf16.mxu0 %v10527_v50  ;;  %v3376_v20 = vor.u32 %v3374_v21, %v3373_v35  ;;  %v3377_v5 = vrot.slane %v3373_v35, 4  ;;  %v3381_v52 = vrot.slane %v3379_v33, 7  ;;  %v12520_v21 = vld [vmem:[#allocation2 + $0x34] sm:$0xf]  ;;  %v2981_v35 = vpop.f32.mrf.mxu0 }
 0x231   : > { %v3773_v32 = vsel %vm10731_vm3, %v3768_v39, %v3772_v60  ;;  %v3401_v43 = vor.u32 %v3399_v37, %v3398_v6  ;;  %v3403_v45 = vrot.slane %v3398_v6, 4  ;;  %v12516_v34 = vrot.slane %v3422_v11, 7 }
 0x232   : > { %v3776_v17 = vrot.slane %v15253_v27, 4  ;;  %v3617_v13 = vsel %vm12292_vm12, %v3376_v20, %v3616_v15  ;;  %v3384_v42 = vor.u32 %v3382_v14, %v3381_v52  ;;  %v3386_v27 = vrot.slane %v3381_v52, 4 }
 0x233   : > { %v3780_v25 = vshll.u32 %v3721_v31, 16  ;;  %10171 = vmatpush3.bf16.msra.mxu0 %v10527_v50  ;;  %3618 = vst [vmem:[#allocation2 + $0x6c] sm:$0xf] %v3617_v13  ;;  %v15255_v33 = vrot.slane %v12449_v54, 4  ;;  %v3628_v39 = vsel %vm12315_vm14, %v3403_v45, %v3627_v28  ;;  %v3428_v15 = vrot.slane %v12516_v34, 4  ;;  %v10532_v31 = vld [vmem:[%s14930_s2 + $0xc8] sm:$0xff]  }
 0x234   : > { %v3777_v3 = vor.u32 %v3776_v17, %v3772_v60  ;;  %v3427_v60 = vor.u32 %v3425_v7, %v12516_v34  ;;  %10172 = vmatprep.subr.bf16.mxu0 %v10529_v30  ;;  %3629 = vst [vmem:[#allocation2 + $0x80] sm:$0x1] %v3628_v39  ;;  %v3385_v54 = vsel %vm12309_vm13, %v3377_v5, %v3384_v42  ;;  %v3722_v45 = vld [vmem:[#allocation2 + $0x20] sm:$0x1]  ;;  %v3833_v28 = vshrl.u32 %v3680_v55, 16  ;;  %v10012_v5 = vpop.f32.mrf.mxu0 }
 0x235   : > { %v3402_v37 = vsel %vm12309_vm13, %v15255_v33, %v3401_v43  ;;  %v3621_v43 = vsel %vm12315_vm14, %v3386_v27, %v3620_v18  ;;  %v3782_v50 = vrot.slane %v3780_v25, 5  ;;  %3619 = vst [vmem:[#allocation2 + $0x70] sm:$0xf] %v3385_v54  ;;  %v3836_v14 = vshll.u32 %v3680_v55, 16  ;;  %v3682_v18 = vld [vmem:[#allocation2 + $0x3c] sm:$0xf] }
 0x236   : > { %3626 = vst [vmem:[#allocation2 + $0x7c] sm:$0xf] %v3402_v37  ;;  %v3778_v52 = vrot.slane %v3777_v3, 4  ;;  %3622 = vst [vmem:[#allocation2 + $0x74] sm:$0x1] %v3621_v43  ;;  %v3638_v7 = vsel %vm12292_vm12, %v3427_v60, %v3637_v61  ;;  %v3846_v6 = vshrl.u32 %v12520_v21, 16  ;;  %v8959_v17 = vcombine.low %v3680_v55, %v12520_v21 }
 0x237   : > { %3639 = vst [vmem:[#allocation2 + $0x90] sm:$0xf] %v3638_v7  ;;  %v12545_v20 = vadd.f32 %v12496_v41, %v12238_v44  ;;  %v3791_v25 = vor.u32 %v12457_v24, %v12439_v51  ;;  %10173 = vmatpush3.bf16.msra.mxu0 %v10529_v30  ;;  %v12549_v3 = vrot.slane %v3833_v28, 4  ;;  %v12551_v13 = vrot.slane %v3836_v14, 5  ;;  %v10510_v55 = vld [vmem:[%s14930_s2 + $0xb0] sm:$0xff]   ;;  %v12598_v14 = vld [vmem:[%s14930_s2 + $0x178] sm:$0xff]  }
 0x238   : > { %v3783_v11 = vsel %vm10731_vm3, %v3778_v52, %v3782_v50  ;;  %v3794_v42 = vshll.u32 %v12435_v36, 16  ;;  %10174 = vmatprep.subr.bf16.mxu0 %v10532_v31  ;;  %10090 = vmatprep.mubr.bf16.mxu0 %v8959_v17  ;;  %v15257_v24 = vshrl.u32 %v12435_v36, 16  ;;  %v3804_v30 = vshll.u32 %v3722_v45, 16  ;;  %v10607_v36 = vld [vmem:[%s14930_s2 + $0xb8] sm:$0xff]   ;;  %v12578_v43 = vld [vmem:[#allocation2 + $0x40] sm:$0xf] }
 0x239   : > { %15256 = vst [vmem:[#allocation11_spill] sm:$0xff] %v12545_v20  ;;  %v8932_v61 = vcombine.low %v3773_v32, %v3783_v11  ;;  %v3084_v44 = vmul.f32 %v12174_v8, %v12545_v20  ;;  %v3792_v51 = vrot.slane %v3791_v25, 4  ;;  %v10534_v32 = vld [vmem:[%s14930_s2 + $0xc0] sm:$0xff]   ;;  %v12566_v33 = vadd.f32 %v12507_v10, %v12247_v48 }
 0x23a   : > { %v3800_v41 = vrot.slane %v15257_v24, 4  ;;  %v3796_v27 = vrot.slane %v3794_v42, 5  ;;  %v12569_v37 = vadd.f32 %v2981_v35, %v12250_v23  ;;  %v12572_v39 = vadd.f32 %v10012_v5, %v12254_v53  ;;  %v10513_v35 = vld [vmem:[%s14930_s2 + $0xa8] sm:$0xff]  }
 0x23b   : > { %10035 = vmatmul.mubr.bf16.vlgmr.msra.gmra.mxu1 %v8932_v61  ;;  %15258 = vst [vmem:[#allocation20_spill] sm:$0xff] %v12566_v33  ;;  %v3123_v60 = vadd.f32 %v12209_v49, %v3084_v44  ;;  %v3806_v54 = vrot.slane %v3804_v30, 5  ;;  %v3857_v52 = vshrl.u32 %v3682_v18, 16  ;;  %v3860_v50 = vshll.u32 %v3682_v18, 16  ;;  %10175 = vmatpush3.bf16.msra.mxu0 %v10532_v31 }
 0x23c   : > { %15259 = vst [vmem:[#allocation27_spill] sm:$0xff] %v12569_v37  ;;  %15260 = vst [vmem:[#allocation36_spill] sm:$0xff] %v12572_v39  ;;  %10115 = vmatpush3.bf16.msra.mxu1 %v10607_v36  ;;  %v3797_v48 = vsel %vm10731_vm3, %v3792_v51, %v3796_v27  ;;  %v3801_v23 = vor.u32 %v3800_v41, %v3796_v27  ;;  %v3087_v53 = vmul.f32 %v12174_v8, %v12566_v33  ;;  %v12605_v51 = vpop.f32.mrf.mxu0  ;;  %v10516_v36 = vld [vmem:[%s14930_s2 + $0xa0] sm:$0xff]  }
 0x23d   : > { %v3085_v10 = vmul.f32 %v12174_v8, %v12569_v37  ;;  %10116 = vmatprep.subr.bf16.mxu1 %v10510_v55  ;;  %v9331_v45 = vpack.c.bf16 %v3123_v60, %v3123_v60  ;;  %v3090_v7 = vmul.f32 %v12174_v8, %v12572_v39  ;;  %v12591_v31 = vrot.slane %v3857_v52, 4  ;;  %10176 = vmatprep.subr.bf16.mxu0 %v10534_v32  ;;  %v3630_v60 = vld [vmem:[#allocation2 + $0x84] sm:$0xf] }
 0x23e   : > { %v12593_v28 = vrot.slane %v3860_v50, 5  ;;  %v3802_v11 = vrot.slane %v3801_v23, 4  ;;  %v3126_v17 = vadd.f32 %v12209_v49, %v3087_v53  ;;  %v8960_v44 = vcombine.low %v3682_v18, %v12578_v43  ;;  %v12616_v53 = vld [vmem:[#allocation2 + $0x2c] sm:$0x1] }
 0x23f   : > { %v3124_v25 = vadd.f32 %v12209_v49, %v3085_v10  ;;  %v3405_v61 = vshrl.u32 %v9331_v45, 16  ;;  %v3408_v42 = vshll.u32 %v9331_v45, 16  ;;  %v3129_v8 = vadd.f32 %v12209_v49, %v3090_v7  ;;  %10177 = vmatpush3.bf16.msra.mxu0 %v10534_v32  ;;  %v3641_v10 = vld [vmem:[#allocation2 + $0x98] sm:$0x1]  ;;  %v3634_v45 = vld [vmem:[#allocation2 + $0x8c] sm:$0x1] }
 0x240   : > { %10117 = vmatpush3.bf16.msra.mxu1 %v10510_v55  ;;  %v3807_v24 = vsel %vm10731_vm3, %v3802_v11, %v3806_v54  ;;  %v9334_v41 = vpack.c.bf16 %v3126_v17, %v3126_v17  ;;  %v3815_v27 = vor.u32 %v12499_v0, %v12493_v19  ;;  %10091 = vmatmul.mubr.bf16.gmra.mxu0 %v8960_v44  ;;  %v3818_v32 = vshll.u32 %v12469_v40, 16 }
 0x241   : > { %v9332_v30 = vpack.c.bf16 %v3124_v25, %v3124_v25  ;;  %10118 = vmatprep.subr.bf16.mxu1 %v10513_v35  ;;  %v3407_v49 = vrot.slane %v3405_v61, 7  ;;  %v8933_v18 = vcombine.low %v3797_v48, %v3807_v24  ;;  %v9337_v55 = vpack.c.bf16 %v3129_v8, %v3129_v8  ;;  %10258 = vmatprep.subr.bf16.mxu0 %v12598_v14  ;;  %v12618_v48 = vpop.f32.mrf.mxu0  ;;  %v3651_v61 = vld [vmem:[#allocation2 + $0xa8] sm:$0xf]  ;;  %v10521_v24 = vld [vmem:[%s14930_s2 + $0x98] sm:$0xff]  }
 0x242   : > { %v3430_v54 = vshrl.u32 %v9334_v41, 16  ;;  %v3433_v52 = vshll.u32 %v9334_v41, 16  ;;  %v3816_v8 = vrot.slane %v3815_v27, 4  ;;  %v3820_v44 = vrot.slane %v3818_v32, 5 }
 0x243   : > { %v3413_v50 = vshrl.u32 %v9332_v30, 16  ;;  %v3416_v23 = vshll.u32 %v9332_v30, 16  ;;  %v3410_v19 = vor.u32 %v3408_v42, %v3407_v49  ;;  %v3411_v0 = vrot.slane %v3407_v49, 4  ;;  %10038 = vmatprep.mubr.bf16.mxu1 %v8933_v18  ;;  %v3684_v18 = vld [vmem:[#allocation2 + $0x48] sm:$0xf] }
 0x244   : > { %v3456_v7 = vshrl.u32 %v9337_v55, 16  ;;  %v3459_v11 = vshll.u32 %v9337_v55, 16  ;;  %10119 = vmatpush3.bf16.msra.mxu1 %v10513_v35  ;;  %v3432_v17 = vrot.slane %v3430_v54, 7  ;;  %v15261_v30 = vshrl.u32 %v12469_v40, 16  ;;  %v2997_v40 = vpop.f32.mrf.mxu0 }
 0x245   : > { %v3415_v25 = vrot.slane %v3413_v50, 7  ;;  %10120 = vmatprep.subr.bf16.mxu1 %v10516_v36  ;;  %v3631_v42 = vsel %vm12292_vm12, %v3410_v19, %v3630_v60  ;;  %v3828_v35 = vshll.u32 %v12616_v53, 16  ;;  %v3821_v60 = vsel %vm10731_vm3, %v3816_v8, %v3820_v44  ;;  %v3665_v8 = vld [vmem:[#allocation2 + $0xc0] sm:$0xf] }
 0x246   : > { %v12625_v41 = vrot.slane %v3456_v7, 7  ;;  %v3824_v49 = vrot.slane %v15261_v30, 4  ;;  %3632 = vst [vmem:[#allocation2 + $0x84] sm:$0xf] %v3631_v42  ;;  %v3435_v55 = vor.u32 %v3433_v52, %v3432_v17  ;;  %v3437_v27 = vrot.slane %v3432_v17, 4 }
 0x247   : > { %v3418_v32 = vor.u32 %v3416_v23, %v3415_v25  ;;  %v3420_v54 = vrot.slane %v3415_v25, 4  ;;  %v12634_v7 = vld [vmem:[#allocation2 + $0x4c] sm:$0xf]  ;;  %v10526_v25 = vld [vmem:[%s14930_s2 + $0x90] sm:$0xff]   ;;  %v12657_v42 = vld [vmem:[#allocation2 + $0x38] sm:$0x1] }
 0x248   : > { %v3461_v50 = vor.u32 %v3459_v11, %v12625_v41  ;;  %v3462_v5 = vrot.slane %v12625_v41, 4  ;;  %v3825_v19 = vor.u32 %v3824_v49, %v3820_v44  ;;  %10121 = vmatpush3.bf16.msra.mxu1 %v10516_v36  ;;  %v3436_v52 = vsel %vm12309_vm13, %v3428_v15, %v3435_v55  ;;  %v10016_v55 = vpop.f32.mrf.mxu0 }
 0x249   : > { %v3642_v23 = vsel %vm12315_vm14, %v3437_v27, %v3641_v10  ;;  %v3419_v11 = vsel %vm12309_vm13, %v3411_v0, %v3418_v32  ;;  %v3635_v17 = vsel %vm12315_vm14, %v3420_v54, %v3634_v45  ;;  %10122 = vmatprep.subr.bf16.mxu1 %v10521_v24  ;;  %3640 = vst [vmem:[#allocation2 + $0x94] sm:$0xf] %v3436_v52  ;;  %v3830_v36 = vrot.slane %v3828_v35, 5  ;;  %v3686_v27 = vld [vmem:[#allocation2 + $0x54] sm:$0xf] }
 0x24a   : > { %3643 = vst [vmem:[#allocation2 + $0x98] sm:$0x1] %v3642_v23  ;;  %3633 = vst [vmem:[#allocation2 + $0x88] sm:$0xf] %v3419_v11  ;;  %v3652_v34 = vsel %vm12292_vm12, %v3461_v50, %v3651_v61  ;;  %v3826_v15 = vrot.slane %v3825_v19, 4  ;;  %v3881_v10 = vshrl.u32 %v3684_v18, 16  ;;  %v8961_v45 = vcombine.low %v3684_v18, %v12634_v7 }
 0x24b   : > { %3636 = vst [vmem:[#allocation2 + $0x8c] sm:$0x1] %v3635_v17  ;;  %3653 = vst [vmem:[#allocation2 + $0xa8] sm:$0xf] %v3652_v34  ;;  %v3884_v0 = vshll.u32 %v3684_v18, 16  ;;  %v12655_v44 = vadd.f32 %v12605_v51, %v12263_v4  ;;  %v3839_v61 = vor.u32 %v12551_v13, %v12549_v3  ;;  %v3842_v35 = vshll.u32 %v12520_v21, 16 }
 0x24c   : > { %v3831_v30 = vsel %vm10731_vm3, %v3826_v15, %v3830_v36  ;;  %v12661_v49 = vrot.slane %v3881_v10, 4  ;;  %10123 = vmatpush3.bf16.msra.mxu1 %v10521_v24  ;;  %10094 = vmatprep.mubr.bf16.mxu0 %v8961_v45  ;;  %v12671_v4 = vld [vmem:[%s14931_s3] ss:$0 sm:$0xff]  ;;  %v3848_v3 = vrot.slane %v3846_v6, 4  ;;  %v10531_v13 = vld [vmem:[%s14930_s2 + $0x88] sm:$0xff]   ;;  %v3852_v50 = vshll.u32 %v12657_v42, 16 }
 0x24d   : > { %15262 = vst [vmem:[#allocation6_spill] sm:$0xff] %v12655_v44  ;;  %v8934_v18 = vcombine.low %v3821_v60, %v3831_v30  ;;  %v12666_v32 = vrot.slane %v3884_v0, 5  ;;  %v3088_v51 = vmul.f32 %v12671_v4, %v12655_v44  ;;  %10124 = vmatprep.subr.bf16.mxu1 %v10526_v25  ;;  %v3840_v24 = vrot.slane %v3839_v61, 4  ;;  %v12688_v19 = vld [vmem:[%s14932_s4] ss:$0 sm:$0xff] }
 0x24e   : > { %v3844_v54 = vrot.slane %v3842_v35, 5  ;;  %v12683_v60 = vadd.f32 %v12618_v48, %v12267_v2  ;;  %v12692_v6 = vadd.f32 %v2997_v40, %v12270_v16  ;;  %v12695_v52 = vadd.f32 %v10016_v55, %v12274_v56  ;;  %v12697_v23 = vld [vmem:[#allocation2 + $0x58] sm:$0xf]  ;;  %v10535_v36 = vld [vmem:[%s14930_s2 + $0x80] sm:$0xff]  }
 0x24f   : > { %10039 = vmatmul.mubr.bf16.gmra.mxu1 %v8934_v18  ;;  %v3127_v21 = vadd.f32 %v12688_v19, %v3088_v51  ;;  %v3905_v11 = vshrl.u32 %v3686_v27, 16  ;;  %v3854_v17 = vrot.slane %v3852_v50, 5  ;;  %v3908_v45 = vshll.u32 %v3686_v27, 16 }
 0x250   : > { %15263 = vst [vmem:[#allocation9_spill] sm:$0xff] %v12683_v60  ;;  %15264 = vst [vmem:[#allocation13_spill] sm:$0xff] %v12692_v6  ;;  %v3845_v2 = vsel %vm10731_vm3, %v3840_v24, %v3844_v54  ;;  %v3849_v48 = vor.u32 %v3848_v3, %v3844_v54  ;;  %v3091_v34 = vmul.f32 %v12671_v4, %v12683_v60  ;;  %10125 = vmatpush3.bf16.msra.mxu1 %v10526_v25 }
 0x251   : > { %15265 = vst [vmem:[#allocation17_spill] sm:$0xff] %v12695_v52  ;;  %v9335_v15 = vpack.c.bf16 %v3127_v21, %v3127_v21  ;;  %v3089_v16 = vmul.f32 %v12671_v4, %v12692_v6  ;;  %v3094_v56 = vmul.f32 %v12671_v4, %v12695_v52  ;;  %v12707_v40 = vrot.slane %v3905_v11, 4  ;;  %10126 = vmatprep.subr.bf16.mxu1 %v10531_v13 }
 0x252   : > { %v3850_v10 = vrot.slane %v3849_v48, 4  ;;  %v3130_v0 = vadd.f32 %v12688_v19, %v3091_v34  ;;  %v12718_v3 = vrot.slane %v3908_v45, 5  ;;  %v8962_v24 = vcombine.low %v3686_v27, %v12697_v23  ;;  %v12724_v48 = vld [vmem:[%s14930_s2 + $0x138] sm:$0xff]   ;;  %v3010_v45 = vpop.f32.mrf.mxu0 }
 0x253   : > { %v3439_v30 = vshrl.u32 %v9335_v15, 16  ;;  %v3442_v61 = vshll.u32 %v9335_v15, 16  ;;  %v3128_v35 = vadd.f32 %v12688_v19, %v3089_v16  ;;  %v3133_v55 = vadd.f32 %v12688_v19, %v3094_v56  ;;  %v3644_v34 = vld [vmem:[#allocation2 + $0x9c] sm:$0xf] }
 0x254   : > { %v3855_v18 = vsel %vm10731_vm3, %v3850_v10, %v3854_v17  ;;  %v9338_v51 = vpack.c.bf16 %v3130_v0, %v3130_v0  ;;  %10127 = vmatpush3.bf16.msra.mxu1 %v10531_v13  ;;  %10095 = vmatmul.mubr.bf16.gmra.mxu0 %v8962_v24  ;;  %v3863_v17 = vor.u32 %v12593_v28, %v12591_v31  ;;  %v3866_v27 = vshll.u32 %v12578_v43, 16  ;;  %v12729_v0 = vld [vmem:[#allocation2 + $0x44] sm:$0x1] }
 0x255   : > { %v3441_v54 = vrot.slane %v3439_v30, 7  ;;  %v8935_v50 = vcombine.low %v3845_v2, %v3855_v18  ;;  %v9336_v21 = vpack.c.bf16 %v3128_v35, %v3128_v35  ;;  %v9341_v11 = vpack.c.bf16 %v3133_v55, %v3133_v55  ;;  %10128 = vmatprep.subr.bf16.mxu1 %v10535_v36  ;;  %v3655_v35 = vld [vmem:[#allocation2 + $0xb0] sm:$0x1]  ;;  %v3648_v28 = vld [vmem:[#allocation2 + $0xa4] sm:$0x1] }
 0x256   : > { %v3464_v15 = vshrl.u32 %v9338_v51, 16  ;;  %v3467_v16 = vshll.u32 %v9338_v51, 16  ;;  %v3864_v25 = vrot.slane %v3863_v17, 4  ;;  %v3868_v24 = vrot.slane %v3866_v27, 5  ;;  %v3688_v27 = vld [vmem:[#allocation2 + $0x60] sm:$0xf] }
 0x257   : > { %v3444_v13 = vor.u32 %v3442_v61, %v3441_v54  ;;  %v3445_v56 = vrot.slane %v3441_v54, 4  ;;  %10042 = vmatprep.mubr.bf16.mxu1 %v8935_v50  ;;  %v3447_v2 = vshrl.u32 %v9336_v21, 16  ;;  %v3450_v10 = vshll.u32 %v9336_v21, 16 }
 0x258   : > { %v3466_v30 = vrot.slane %v3464_v15, 7  ;;  %v3490_v55 = vshrl.u32 %v9341_v11, 16  ;;  %v3493_v18 = vshll.u32 %v9341_v11, 16  ;;  %10129 = vmatpush3.bf16.msra.mxu1 %v10535_v36  ;;  %v15266_v61 = vshrl.u32 %v12578_v43, 16  ;;  %v10017_v43 = vpop.f32.mrf.mxu0 }
 0x259   : > { %v3645_v51 = vsel %vm12292_vm12, %v3444_v13, %v3644_v34  ;;  %v3449_v31 = vrot.slane %v3447_v2, 7  ;;  %10210 = vmatprep.subr.bf16.mxu1 %v12724_v48  ;;  %v3876_v11 = vshll.u32 %v12729_v0, 16  ;;  %v3869_v34 = vsel %vm10731_vm3, %v3864_v25, %v3868_v24  ;;  %v12741_v2 = vld [vmem:[#allocation2 + $0x64] sm:$0xf] }
 0x25a   : > { %v3872_v54 = vrot.slane %v15266_v61, 4  ;;  %3646 = vst [vmem:[#allocation2 + $0x9c] sm:$0xf] %v3645_v51  ;;  %v3469_v50 = vor.u32 %v3467_v16, %v3466_v30  ;;  %v3471_v21 = vrot.slane %v3466_v30, 4  ;;  %v12736_v15 = vrot.slane %v3490_v55, 7 }
 0x25b   : > { %v3452_v36 = vor.u32 %v3450_v10, %v3449_v31  ;;  %v3454_v17 = vrot.slane %v3449_v31, 4  ;;  %v3878_v41 = vrot.slane %v3876_v11, 5  ;;  %v3690_v11 = vld [vmem:[#allocation2 + $0x6c] sm:$0xf]  ;;  %v12811_v10 = vld [vmem:[#allocation2 + $0x7c] sm:$0xf] }
 0x25c   : > { %v3873_v13 = vor.u32 %v3872_v54, %v3868_v24  ;;  %v3470_v16 = vsel %vm12309_vm13, %v3462_v5, %v3469_v50  ;;  %v3656_v30 = vsel %vm12315_vm14, %v3471_v21, %v3655_v35  ;;  %v3495_v55 = vor.u32 %v3493_v18, %v12736_v15  ;;  %v12755_v24 = vld [vmem:[#allocation2 + $0x50] sm:$0x1]  ;;  %v3013_v21 = vpop.f32.mrf.mxu0 }
 0x25d   : > { %3654 = vst [vmem:[#allocation2 + $0xac] sm:$0xf] %v3470_v16  ;;  %3657 = vst [vmem:[#allocation2 + $0xb0] sm:$0x1] %v3656_v30  ;;  %v3453_v25 = vsel %vm12309_vm13, %v3445_v56, %v3452_v36  ;;  %v3649_v51 = vsel %vm12315_vm14, %v3454_v17, %v3648_v28  ;;  %v3929_v35 = vshrl.u32 %v3688_v27, 16  ;;  %v3932_v18 = vshll.u32 %v3688_v27, 16 }
 0x25e   : > { %v3874_v31 = vrot.slane %v3873_v13, 4  ;;  %3647 = vst [vmem:[#allocation2 + $0xa0] sm:$0xf] %v3453_v25  ;;  %3650 = vst [vmem:[#allocation2 + $0xa4] sm:$0x1] %v3649_v51  ;;  %v3666_v5 = vsel %vm12292_vm12, %v3495_v55, %v3665_v8  ;;  %v8963_v54 = vcombine.low %v3688_v27, %v12741_v2  ;;  %v12764_v28 = vadd.f32 %v3010_v45, %v12277_v47 }
 0x25f   : > { %3667 = vst [vmem:[#allocation2 + $0xc0] sm:$0xf] %v3666_v5  ;;  %v3887_v50 = vor.u32 %v12666_v32, %v12661_v49  ;;  %v12768_v8 = vrot.slane %v3929_v35, 4  ;;  %v12770_v17 = vrot.slane %v3932_v18, 5  ;;  %v3890_v13 = vshll.u32 %v12634_v7, 16 }
 0x260   : > { %v3879_v56 = vsel %vm10731_vm3, %v3874_v31, %v3878_v41  ;;  %15267 = vst [vmem:[#allocation39_spill] sm:$0xff] %v12764_v28  ;;  %v12773_v16 = vld [vmem:[#allocation2 + $0x70] sm:$0xf]  ;;  %10098 = vmatprep.mubr.bf16.mxu0 %v8963_v54  ;;  %v3092_v27 = vmul.f32 %v12671_v4, %v12764_v28  ;;  %v15268_v45 = vshrl.u32 %v12634_v7, 16  ;;  %v3900_v49 = vshll.u32 %v12755_v24, 16 }
 0x261   : > { %v8936_v36 = vcombine.low %v3869_v34, %v3879_v56  ;;  %v3888_v47 = vrot.slane %v3887_v50, 4  ;;  %v3892_v32 = vrot.slane %v3890_v13, 5  ;;  %v12781_v34 = vadd.f32 %v10017_v43, %v12281_v58 }
 0x262   : > { %v3896_v30 = vrot.slane %v15268_v45, 4  ;;  %v12784_v55 = vadd.f32 %v3013_v21, %v12283_v59  ;;  %v3953_v25 = vshrl.u32 %v3690_v11, 16  ;;  %v3131_v51 = vadd.f32 %v12688_v19, %v3092_v27  ;;  %v12801_v27 = vld [vmem:[#allocation2 + $0x5c] sm:$0x1] }
 0x263   : > { %10043 = vmatmul.mubr.bf16.gmra.mxu1 %v8936_v36  ;;  %15269 = vst [vmem:[#allocation22_spill] sm:$0xff] %v12781_v34  ;;  %v3902_v31 = vrot.slane %v3900_v49, 5  ;;  %v3956_v41 = vshll.u32 %v3690_v11, 16  ;;  %v3893_v35 = vsel %vm10731_vm3, %v3888_v47, %v3892_v32  ;;  %v3095_v56 = vmul.f32 %v12671_v4, %v12781_v34 }
 0x264   : > { %15270 = vst [vmem:[#allocation25_spill] sm:$0xff] %v12784_v55  ;;  %v3897_v18 = vor.u32 %v3896_v30, %v3892_v32  ;;  %v3093_v58 = vmul.f32 %v12671_v4, %v12784_v55  ;;  %v9339_v43 = vpack.c.bf16 %v3131_v51, %v3131_v51  ;;  %v12794_v59 = vrot.slane %v3953_v25, 4  ;;  %v3658_v25 = vld [vmem:[#allocation2 + $0xb4] sm:$0xf] }
 0x265   : > { %v12796_v54 = vrot.slane %v3956_v41, 5  ;;  %v8964_v50 = vcombine.low %v3690_v11, %v12773_v16  ;;  %v3134_v36 = vadd.f32 %v12688_v19, %v3095_v56  ;;  %v3911_v47 = vor.u32 %v12718_v3, %v12707_v40  ;;  %v3692_v3 = vld [vmem:[#allocation2 + $0x78] sm:$0xf] }
 0x266   : > { %v3898_v21 = vrot.slane %v3897_v18, 4  ;;  %v3132_v13 = vadd.f32 %v12688_v19, %v3093_v58  ;;  %v3473_v45 = vshrl.u32 %v9339_v43, 16  ;;  %v3476_v30 = vshll.u32 %v9339_v43, 16 }
 0x267   : > { %10099 = vmatmul.mubr.bf16.gmra.mxu0 %v8964_v50  ;;  %v3914_v4 = vshll.u32 %v12697_v23, 16  ;;  %v15271_v49 = vshrl.u32 %v12697_v23, 16  ;;  %v9342_v51 = vpack.c.bf16 %v3134_v36, %v3134_v36  ;;  %v3912_v19 = vrot.slane %v3911_v47, 4 }
 0x268   : > { %v3903_v11 = vsel %vm10731_vm3, %v3898_v21, %v3902_v31  ;;  %v9340_v41 = vpack.c.bf16 %v3132_v13, %v3132_v13  ;;  %v3475_v18 = vrot.slane %v3473_v45, 7  ;;  %v3924_v40 = vshll.u32 %v12801_v27, 16  ;;  %v3669_v13 = vld [vmem:[#allocation2 + $0xc8] sm:$0x1] }
 0x269   : > { %v3920_v32 = vrot.slane %v15271_v49, 4  ;;  %v8937_v56 = vcombine.low %v3893_v35, %v3903_v11  ;;  %v3916_v58 = vrot.slane %v3914_v4, 5  ;;  %v3498_v43 = vshrl.u32 %v9342_v51, 16  ;;  %v3662_v11 = vld [vmem:[#allocation2 + $0xbc] sm:$0x1] }
 0x26a   : > { %v3501_v50 = vshll.u32 %v9342_v51, 16  ;;  %v3481_v5 = vshrl.u32 %v9340_v41, 16  ;;  %v3484_v61 = vshll.u32 %v9340_v41, 16  ;;  %v3478_v49 = vor.u32 %v3476_v30, %v3475_v18 }
 0x26b   : > { %v3479_v55 = vrot.slane %v3475_v18, 4  ;;  %10046 = vmatprep.mubr.bf16.mxu1 %v8937_v56  ;;  %v3917_v31 = vsel %vm10731_vm3, %v3912_v19, %v3916_v58  ;;  %v3921_v21 = vor.u32 %v3920_v32, %v3916_v58  ;;  %v3500_v36 = vrot.slane %v3498_v43, 7  ;;  %v12818_v19 = vld [vmem:[#allocation2 + $0x68] sm:$0x1] }
 0x26c   : > { %v3483_v35 = vrot.slane %v3481_v5, 7  ;;  %v3926_v47 = vrot.slane %v3924_v40, 5  ;;  %v3977_v45 = vshrl.u32 %v3692_v3, 16  ;;  %v3659_v4 = vsel %vm12292_vm12, %v3478_v49, %v3658_v25  ;;  %v3694_v25 = vld [vmem:[#allocation2 + $0x84] sm:$0xf] }
 0x26d   : > { %v3922_v51 = vrot.slane %v3921_v21, 4  ;;  %v3980_v41 = vshll.u32 %v3692_v3, 16  ;;  %v3990_v34 = vshrl.u32 %v12811_v10, 16  ;;  %3660 = vst [vmem:[#allocation2 + $0xb4] sm:$0xf] %v3659_v4  ;;  %v3503_v30 = vor.u32 %v3501_v50, %v3500_v36 }
 0x26e   : > { %v3505_v18 = vrot.slane %v3500_v36, 4  ;;  %v3486_v56 = vor.u32 %v3484_v61, %v3483_v35  ;;  %v3488_v28 = vrot.slane %v3483_v35, 4  ;;  %v3979_v32 = vrot.slane %v3977_v45, 4  ;;  %v12823_v40 = vld [vmem:[#allocation2 + $0x88] sm:$0xf] }
 0x26f   : > { %v3927_v5 = vsel %vm10731_vm3, %v3922_v51, %v3926_v47  ;;  %v3982_v58 = vrot.slane %v3980_v41, 5  ;;  %v8965_v22 = vcombine.low %v3692_v3, %v12811_v10  ;;  %v15272_v43 = vrot.slane %v12736_v15, 4 }
 0x270   : > { %v3670_v61 = vsel %vm12315_vm14, %v3505_v18, %v3669_v13  ;;  %v3487_v49 = vsel %vm12309_vm13, %v3479_v55, %v3486_v56  ;;  %v3663_v21 = vsel %vm12315_vm14, %v3488_v28, %v3662_v11  ;;  %v8938_v3 = vcombine.low %v3917_v31, %v3927_v5  ;;  %v12842_v28 = vld [vmem:[#allocation2 + $0x74] sm:$0x1] }
 0x271   : > { %v3504_v50 = vsel %vm12309_vm13, %v15272_v43, %v3503_v30  ;;  %3671 = vst [vmem:[#allocation2 + $0xc8] sm:$0x1] %v3670_v61  ;;  %3661 = vst [vmem:[#allocation2 + $0xb8] sm:$0xf] %v3487_v49  ;;  %10102 = vmatprep.mubr.bf16.mxu0 %v8965_v22  ;;  %v3935_v15 = vor.u32 %v12770_v17, %v12768_v8  ;;  %v3938_v36 = vshll.u32 %v12741_v2, 16  ;;  %v15273_v35 = vshrl.u32 %v12741_v2, 16 }
 0x272   : > { %3668 = vst [vmem:[#allocation2 + $0xc4] sm:$0xf] %v3504_v50  ;;  %3664 = vst [vmem:[#allocation2 + $0xbc] sm:$0x1] %v3663_v21  ;;  %v3948_v57 = vshll.u32 %v12818_v19, 16  ;;  %v4001_v55 = vshrl.u32 %v3694_v25, 16  ;;  %10047 = vmatmul.mubr.bf16.gmra.mxu1 %v8938_v3  ;;  %v8966_v4 = vcombine.low %v3694_v25, %v12823_v40  ;;  %v3959_v8 = vor.u32 %v12796_v54, %v12794_v59 }
 0x273   : > { %v3944_v13 = vrot.slane %v15273_v35, 4  ;;  %v4004_v47 = vshll.u32 %v3694_v25, 16  ;;  %v4014_v62 = vshrl.u32 %v12823_v40, 16  ;;  %v3936_v45 = vrot.slane %v3935_v15, 4  ;;  %v3696_v17 = vld [vmem:[#allocation2 + $0x90] sm:$0xf] }
 0x274   : > { %v3940_v31 = vrot.slane %v3938_v36, 5  ;;  %v3950_v11 = vrot.slane %v3948_v57, 5  ;;  %v4003_v51 = vrot.slane %v4001_v55, 4  ;;  %v3962_v30 = vshll.u32 %v12773_v16, 16  ;;  %v12848_v18 = vld [vmem:[#allocation2 + $0x94] sm:$0xf]  ;;  %10103 = vmatmul.mubr.bf16.gmra.mxu0 %v8966_v4 }
 0x275   : > { %v4006_v41 = vrot.slane %v4004_v47, 5  ;;  %v3960_v22 = vrot.slane %v3959_v8, 4  ;;  %v15274_v43 = vshrl.u32 %v12773_v16, 16  ;;  %v3972_v59 = vshll.u32 %v12842_v28, 16  ;;  %v12857_v15 = vld [vmem:[#allocation2 + $0x80] sm:$0x1] }
 0x276   : > { %v3941_v56 = vsel %vm10731_vm3, %v3936_v45, %v3940_v31  ;;  %v3945_v5 = vor.u32 %v3944_v13, %v3940_v31  ;;  %v3964_v50 = vrot.slane %v3962_v30, 5  ;;  %v4025_v54 = vshrl.u32 %v3696_v17, 16  ;;  %v3698_v47 = vld [vmem:[#allocation2 + $0x9c] sm:$0xf]  ;;  %v12861_v45 = vld [vmem:[#allocation2 + $0xa0] sm:$0xf] }
 0x277   : > { %v3968_v25 = vrot.slane %v15274_v43, 4  ;;  %v4028_v61 = vshll.u32 %v3696_v17, 16  ;;  %v4038_v21 = vshrl.u32 %v12848_v18, 16  ;;  %v8967_v3 = vcombine.low %v3696_v17, %v12848_v18 }
 0x278   : > { %v3946_v49 = vrot.slane %v3945_v5, 4  ;;  %v3983_v36 = vor.u32 %v3982_v58, %v3979_v32  ;;  %v3965_v35 = vsel %vm10731_vm3, %v3960_v22, %v3964_v50  ;;  %v3974_v57 = vrot.slane %v3972_v59, 5  ;;  %v12887_v52 = vld [vmem:[#allocation2 + $0xb8] sm:$0xf] }
 0x279   : > { %v3969_v13 = vor.u32 %v3968_v25, %v3964_v50  ;;  %v4027_v55 = vrot.slane %v4025_v54, 4  ;;  %v4030_v4 = vrot.slane %v4028_v61, 5  ;;  %10106 = vmatprep.mubr.bf16.mxu0 %v8967_v3  ;;  %v3986_v17 = vshll.u32 %v12811_v10, 16  ;;  %v12873_v61 = vld [vmem:[#allocation2 + $0x8c] sm:$0x1] }
 0x27a   : > { %v3951_v31 = vsel %vm10731_vm3, %v3946_v49, %v3950_v11  ;;  %v3984_v8 = vrot.slane %v3983_v36, 4  ;;  %v3992_v32 = vrot.slane %v3990_v34, 4  ;;  %v3996_v58 = vshll.u32 %v12857_v15, 16  ;;  %v3700_v49 = vld [vmem:[#allocation2 + $0xa8] sm:$0xf] }
 0x27b   : > { %v8939_v30 = vcombine.low %v3941_v56, %v3951_v31  ;;  %v3970_v5 = vrot.slane %v3969_v13, 4  ;;  %v3988_v22 = vrot.slane %v3986_v17, 5  ;;  %v4049_v43 = vshrl.u32 %v3698_v47, 16  ;;  %v12877_v31 = vld [vmem:[#allocation2 + $0xac] sm:$0xf] }
 0x27c   : > { %v4052_v25 = vshll.u32 %v3698_v47, 16  ;;  %v4062_v50 = vshrl.u32 %v12861_v45, 16  ;;  %v3998_v59 = vrot.slane %v3996_v58, 5  ;;  %v8968_v54 = vcombine.low %v3698_v47, %v12861_v45  ;;  %v12880_v58 = vld [vmem:[#allocation2 + $0x98] sm:$0x1] }
 0x27d   : > { %10050 = vmatprep.mubr.bf16.mxu1 %v8939_v30  ;;  %v3975_v11 = vsel %vm10731_vm3, %v3970_v5, %v3974_v57  ;;  %v4007_v56 = vor.u32 %v4006_v41, %v4003_v51  ;;  %v3989_v34 = vsel %vm10731_vm3, %v3984_v8, %v3988_v22  ;;  %v3993_v36 = vor.u32 %v3992_v32, %v3988_v22 }
 0x27e   : > { %v8940_v3 = vcombine.low %v3965_v35, %v3975_v11  ;;  %v4051_v13 = vrot.slane %v4049_v43, 4  ;;  %v4054_v17 = vrot.slane %v4052_v25, 5  ;;  %10107 = vmatmul.mubr.bf16.gmra.mxu0 %v8968_v54  ;;  %v4010_v57 = vshll.u32 %v12823_v40, 16  ;;  %v3702_v11 = vld [vmem:[#allocation2 + $0xb4] sm:$0xf] }
 0x27f   : > { %v4008_v30 = vrot.slane %v4007_v56, 4  ;;  %v4016_v5 = vrot.slane %v4014_v62, 4  ;;  %v3994_v47 = vrot.slane %v3993_v36, 4  ;;  %v4020_v51 = vshll.u32 %v12873_v61, 16 }
 0x280   : > { %10051 = vmatmul.mubr.bf16.gmra.mxu1 %v8940_v3  ;;  %v4073_v41 = vshrl.u32 %v3700_v49, 16  ;;  %v4076_v35 = vshll.u32 %v3700_v49, 16  ;;  %v4012_v8 = vrot.slane %v4010_v57, 5  ;;  %v4086_v32 = vshrl.u32 %v12877_v31, 16 }
 0x281   : > { %v8969_v22 = vcombine.low %v3700_v49, %v12877_v31  ;;  %v4031_v43 = vor.u32 %v4030_v4, %v4027_v55  ;;  %v3999_v25 = vsel %vm10731_vm3, %v3994_v47, %v3998_v59  ;;  %v4022_v54 = vrot.slane %v4020_v51, 5 }
 0x282   : > { %v4075_v62 = vrot.slane %v4073_v41, 4  ;;  %v4078_v56 = vrot.slane %v4076_v35, 5  ;;  %v8941_v3 = vcombine.low %v3989_v34, %v3999_v25  ;;  %v4013_v36 = vsel %vm10731_vm3, %v4008_v30, %v4012_v8  ;;  %v12895_v30 = vld [vmem:[#allocation2 + $0xa4] sm:$0x1]  ;;  %v12900_v25 = vld [vmem:[#allocation2 + $0xb0] sm:$0x1] }
 0x283   : > { %v4017_v6 = vor.u32 %v4016_v5, %v4012_v8  ;;  %10110 = vmatprep.mubr.bf16.mxu0 %v8969_v22  ;;  %v4032_v57 = vrot.slane %v4031_v43, 4  ;;  %v4034_v60 = vshll.u32 %v12848_v18, 16  ;;  %v4040_v44 = vrot.slane %v4038_v21, 4  ;;  %v10533_v8 = vld [vmem:[#allocation2 + $0xc] sm:$0xff]  }
 0x284   : > { %v4044_v55 = vshll.u32 %v12880_v58, 16  ;;  %v4097_v4 = vshrl.u32 %v3702_v11, 16  ;;  %10054 = vmatprep.mubr.bf16.mxu1 %v8941_v3  ;;  %v4100_v49 = vshll.u32 %v3702_v11, 16  ;;  %v4110_v47 = vshrl.u32 %v12887_v52, 16 }
 0x285   : > { %v4018_v59 = vrot.slane %v4017_v6, 4  ;;  %v8970_v51 = vcombine.low %v3702_v11, %v12887_v52  ;;  %v4036_v34 = vrot.slane %v4034_v60, 5  ;;  %v4055_v5 = vor.u32 %v4054_v17, %v4051_v13 }
 0x286   : > { %v4046_v41 = vrot.slane %v4044_v55, 5  ;;  %v4099_v35 = vrot.slane %v4097_v4, 4  ;;  %v4102_v22 = vrot.slane %v4100_v49, 5  ;;  %v4058_v43 = vshll.u32 %v12861_v45, 16 }
 0x287   : > { %v4023_v21 = vsel %vm10731_vm3, %v4018_v59, %v4022_v54  ;;  %10111 = vmatmul.mubr.bf16.gmra.mxu0 %v8970_v51  ;;  %v4064_v6 = vrot.slane %v4062_v50, 4  ;;  %v4037_v60 = vsel %vm10731_vm3, %v4032_v57, %v4036_v34  ;;  %v4041_v11 = vor.u32 %v4040_v44, %v4036_v34  ;;  %v12909_v34 = vld [vmem:[#allocation2 + $0xbc] sm:$0x1] }
 0x288   : > { %v8942_v3 = vcombine.low %v4013_v36, %v4023_v21  ;;  %v4056_v55 = vrot.slane %v4055_v5, 4  ;;  %10178 = vmatprep.mubr.bf16.mxu0 %v10533_v8  ;;  %v4060_v4 = vrot.slane %v4058_v43, 5  ;;  %v4068_v13 = vshll.u32 %v12895_v30, 16  ;;  %v4715_v5 = vld [vmem:[#allocation2] sm:$0xe] }
 0x289   : > { %v4079_v17 = vor.u32 %v4078_v56, %v4075_v62  ;;  %v4082_v54 = vshll.u32 %v12877_v31, 16  ;;  %v4042_v59 = vrot.slane %v4041_v11, 4  ;;  %v4088_v49 = vrot.slane %v4086_v32, 4  ;;  %v4716_v32 = vld [vmem:[#allocation2 + $0xc] sm:$0xe] }
 0x28a   : > { %10055 = vmatmul.mubr.bf16.gmra.mxu1 %v8942_v3  ;;  %v4092_v50 = vshll.u32 %v12900_v25, 16  ;;  %v4103_v51 = vor.u32 %v4102_v22, %v4099_v35  ;;  %v4061_v36 = vsel %vm10731_vm3, %v4056_v55, %v4060_v4  ;;  %v4065_v21 = vor.u32 %v4064_v6, %v4060_v4  ;;  %v10536_v35 = vld [vmem:[#allocation2 + $0x18] sm:$0xff]   ;;  %v10551_v6 = vld [vmem:[%s14930_s2 + $0x170] sm:$0xff]  }
 0x28b   : > { %v4070_v57 = vrot.slane %v4068_v13, 5  ;;  %v4080_v44 = vrot.slane %v4079_v17, 4  ;;  %v4047_v62 = vsel %vm10731_vm3, %v4042_v59, %v4046_v41  ;;  %v4084_v56 = vrot.slane %v4082_v54, 5  ;;  %v10537_v17 = vld [vmem:[#allocation2 + $0x24] sm:$0xff]  }
 0x28c   : > { %v4094_v8 = vrot.slane %v4092_v50, 5  ;;  %v12913_v43 = vrot.slane %v4103_v51, 4  ;;  %v8943_v3 = vcombine.low %v4037_v60, %v4047_v62  ;;  %v4066_v11 = vrot.slane %v4065_v21, 4  ;;  %v10610_v50 = vld [vmem:[#allocation2 + $0x4] sm:$0xf] }
 0x28d   : > { %v4106_v22 = vshll.u32 %v12887_v52, 16  ;;  %v4112_v55 = vrot.slane %v4110_v47, 4  ;;  %v4085_v4 = vsel %vm10731_vm3, %v4080_v44, %v4084_v56  ;;  %v4089_v13 = vor.u32 %v4088_v49, %v4084_v56  ;;  %v10611_v51 = vld [vmem:[#allocation2 + $0x8] sm:$0x1]  ;;  %v4717_v62 = vld [vmem:[#allocation2 + $0x18] sm:$0xe] }
 0x28e   : > { %v4116_v41 = vshll.u32 %v12909_v34, 16  ;;  %v8979_v54 = vrot.slane %v4715_v5, 9  ;;  %10058 = vmatprep.mubr.bf16.mxu1 %v8943_v3  ;;  %v4071_v60 = vsel %vm10731_vm3, %v4066_v11, %v4070_v57  ;;  %v4765_v47 = vrot.slane %v10610_v50, 5 }
 0x28f   : > { %10179 = vmatmul.mubr.bf16.vlgmr.msra.gmra.mxu0 %v10536_v35  ;;  %v4108_v59 = vrot.slane %v4106_v22, 5  ;;  %v4768_v21 = vrot.slane %v10611_v51, 5  ;;  %v8944_v39 = vcombine.low %v4061_v36, %v4071_v60  ;;  %v4090_v37 = vrot.slane %v4089_v13, 4  ;;  %v10554_v36 = vld [vmem:[%s14930_s2 + $0x168] sm:$0xff]   ;;  %v10613_v35 = vld [vmem:[#allocation2 + $0x14] sm:$0x1] }
 0x290   : > { %v4118_v33 = vrot.slane %v4116_v41, 5  ;;  %10182 = vmatprep.mubr.bf16.mxu0 %v10537_v17  ;;  %v8980_v49 = vrot.slane %v4716_v32, 9  ;;  %10259 = vmatpush3.bf16.msra.mxu0 %v12598_v14  ;;  %v12930_v56 = vsel %vm11145_vm6, %v8979_v54, %v4765_v47  ;;  %v4767_v3 = vrot.slane %v4765_v47, 4  ;;  %v10612_v14 = vld [vmem:[#allocation2 + $0x10] sm:$0xf] }
 0x291   : > { %v4109_v44 = vsel %vm10731_vm3, %v12913_v43, %v4108_v59  ;;  %v4113_v5 = vor.u32 %v4112_v55, %v4108_v59  ;;  %10260 = vmatprep.subr.bf16.mxu0 %v10551_v6  ;;  %v4095_v32 = vsel %vm10731_vm3, %v4090_v37, %v4094_v8  ;;  %v4772_v11 = vrot.slane %v10612_v14, 5  ;;  %v4718_v55 = vld [vmem:[#allocation2 + $0x24] sm:$0xe]  ;;  %v10614_v54 = vld [vmem:[#allocation2 + $0x1c] sm:$0xf]  ;;  %v10538_v51 = vld [vmem:[#allocation2 + $0x30] sm:$0xff]  }
 0x292   : > { %10059 = vmatmul.mubr.bf16.gmra.mxu1 %v8944_v39  ;;  %v4775_v22 = vrot.slane %v10613_v35, 5  ;;  %v8981_v43 = vrot.slane %v4717_v62, 9  ;;  %v8945_v13 = vcombine.low %v4085_v4, %v4095_v32  ;;  %v4769_v17 = vsel %vm11145_vm6, %v4767_v3, %v4768_v21  ;;  %v10615_v8 = vld [vmem:[#allocation2 + $0x20] sm:$0x1]  ;;  %v4719_v47 = vld [vmem:[#allocation2 + $0x30] sm:$0xe] }
 0x293   : > { %v4114_v41 = vrot.slane %v4113_v5, 4  ;;  %v4779_v60 = vrot.slane %v10614_v54, 5  ;;  %v9011_v59 = vcombine.low %v12930_v56, %v4769_v17  ;;  %v12942_v39 = vsel %vm11145_vm6, %v8980_v49, %v4772_v11  ;;  %v10556_v49 = vld [vmem:[%s14930_s2 + $0x160] sm:$0xff]   ;;  %v10616_v32 = vld [vmem:[#allocation2 + $0x28] sm:$0xf] }
 0x294   : > { %v4774_v37 = vrot.slane %v4772_v11, 4  ;;  %v4782_v50 = vrot.slane %v10615_v8, 5  ;;  %10261 = vmatpush3.bf16.msra.mxu0 %v10551_v6  ;;  %10062 = vmatprep.mubr.bf16.mxu1 %v8945_v13  ;;  %v8982_v5 = vrot.slane %v4718_v55, 9  ;;  %v10540_v3 = vld [vmem:[#allocation2 + $0x3c] sm:$0xff]   ;;  %v4789_v14 = vrot.slane %v12616_v53, 5 }
 0x295   : > { %v4119_v4 = vsel %vm10731_vm3, %v4114_v41, %v4118_v33  ;;  %v12948_v21 = vsel %vm11145_vm6, %v8981_v43, %v4779_v60  ;;  %v4781_v62 = vrot.slane %v4779_v60, 4  ;;  %10262 = vmatprep.subr.bf16.mxu0 %v10554_v36  ;;  %v4786_v33 = vrot.slane %v10616_v32, 5  ;;  %v4720_v11 = vld [vmem:[#allocation2 + $0x3c] sm:$0xe]  ;;  %v4721_v41 = vld [vmem:[#allocation2 + $0x48] sm:$0xe] }
 0x296   : > { %v8946_v56 = vcombine.low %v4109_v44, %v4119_v4  ;;  %v12955_v6 = vsel %vm11145_vm6, %v4774_v37, %v4775_v22  ;;  %v8983_v55 = vrot.slane %v4719_v47, 9  ;;  %v10617_v44 = vld [vmem:[#allocation2 + $0x34] sm:$0xf]  ;;  %v4796_v54 = vrot.slane %v12657_v42, 5  ;;  %v10559_v4 = vld [vmem:[%s14930_s2 + $0x158] sm:$0xff]  }
 0x297   : > { %10183 = vmatmul.mubr.bf16.gmra.mxu0 %v10538_v51  ;;  %v9012_v35 = vcombine.low %v12942_v39, %v12955_v6  ;;  %v12962_v43 = vsel %vm11145_vm6, %v4781_v62, %v4782_v50  ;;  %v4793_v13 = vrot.slane %v10617_v44, 5  ;;  %v12968_v53 = vsel %vm11145_vm6, %v8982_v5, %v4786_v33  ;;  %v10618_v50 = vld [vmem:[#allocation2 + $0x40] sm:$0xf]  ;;  %v4722_v5 = vld [vmem:[#allocation2 + $0x54] sm:$0xe] }
 0x298   : > { %10186 = vmatprep.mubr.bf16.mxu0 %v10540_v3  ;;  %v9013_v22 = vcombine.low %v12948_v21, %v12962_v43  ;;  %v4788_v17 = vrot.slane %v4786_v33, 4  ;;  %10263 = vmatpush3.bf16.msra.mxu0 %v10554_v36  ;;  %v8984_v8 = vrot.slane %v4720_v11, 9  ;;  %v4800_v47 = vrot.slane %v10618_v50, 5  ;;  %v10541_v11 = vld [vmem:[#allocation2 + $0x48] sm:$0xff]  }
 0x299   : > { %v12973_v60 = vsel %vm11145_vm6, %v8983_v55, %v4793_v13  ;;  %v4795_v37 = vrot.slane %v4793_v13, 4  ;;  %10264 = vmatprep.subr.bf16.mxu0 %v10556_v49  ;;  %v4803_v42 = vrot.slane %v12729_v0, 5  ;;  %v8985_v36 = vrot.slane %v4721_v41, 9 }
 0x29a   : > { %10063 = vmatmul.mubr.bf16.gmra.mxu1 %v8946_v56  ;;  %v12980_v51 = vsel %vm11145_vm6, %v4788_v17, %v4789_v14  ;;  %v4807_v62 = vrot.slane %v12634_v7, 5  ;;  %v12992_v56 = vsel %vm11145_vm6, %v8984_v8, %v4800_v47  ;;  %v4802_v33 = vrot.slane %v4800_v47, 4  ;;  %v4723_v14 = vld [vmem:[#allocation2 + $0x60] sm:$0xe]  ;;  %v10543_v8 = vld [vmem:[#allocation2 + $0x54] sm:$0xff]  }
 0x29b   : > { %10130 = vmatprep.mubr.bf16.mxu1 %v9011_v59  ;;  %v9014_v3 = vcombine.low %v12968_v53, %v12980_v51  ;;  %v12988_v32 = vsel %vm11145_vm6, %v4795_v37, %v4796_v54  ;;  %v4810_v55 = vrot.slane %v12755_v24, 5  ;;  %v8986_v13 = vrot.slane %v4722_v5, 9  ;;  %v4724_v54 = vld [vmem:[#allocation2 + $0x6c] sm:$0xe]  ;;  %v10561_v37 = vld [vmem:[%s14930_s2 + $0x150] sm:$0xff]  }
 0x29c   : > { %v9015_v0 = vcombine.low %v12973_v60, %v12988_v32  ;;  %v12998_v7 = vsel %vm11145_vm6, %v8985_v36, %v4807_v62  ;;  %v4809_v59 = vrot.slane %v4807_v62, 4  ;;  %10265 = vmatpush3.bf16.msra.mxu0 %v10556_v49  ;;  %v13003_v44 = vsel %vm11145_vm6, %v4802_v33, %v4803_v42  ;;  %v10542_v5 = vld [vmem:[%s14930_s2 + $0x130] sm:$0xff]  }
 0x29d   : > { %v4814_v41 = vrot.slane %v12697_v23, 5  ;;  %v4817_v17 = vrot.slane %v12801_v27, 5  ;;  %10266 = vmatprep.subr.bf16.mxu0 %v10559_v4  ;;  %v9016_v24 = vcombine.low %v12992_v56, %v13003_v44  ;;  %v8987_v50 = vrot.slane %v4723_v14, 9  ;;  %v4725_v23 = vld [vmem:[#allocation2 + $0x78] sm:$0xe] }
 0x29e   : > { %v13014_v49 = vsel %vm11145_vm6, %v4809_v59, %v4810_v55  ;;  %v4821_v47 = vrot.slane %v12741_v2, 5  ;;  %v4824_v62 = vrot.slane %v12818_v19, 5  ;;  %v8988_v14 = vrot.slane %v4724_v54, 9 }
 0x29f   : > { %10187 = vmatmul.mubr.bf16.gmra.mxu0 %v10541_v11  ;;  %v9017_v27 = vcombine.low %v12998_v7, %v13014_v49  ;;  %v13021_v42 = vsel %vm11145_vm6, %v8986_v13, %v4814_v41  ;;  %v4816_v36 = vrot.slane %v4814_v41, 4  ;;  %v4828_v11 = vrot.slane %v12773_v16, 5  ;;  %v4726_v41 = vld [vmem:[#allocation2 + $0x84] sm:$0xe]  ;;  %v10563_v7 = vld [vmem:[%s14930_s2 + $0x108] sm:$0xff]  }
 0x2a0   : > { %10190 = vmatprep.mubr.bf16.mxu0 %v10543_v8  ;;  %v13029_v2 = vsel %vm11145_vm6, %v8987_v50, %v4821_v47  ;;  %v4823_v33 = vrot.slane %v4821_v47, 4  ;;  %10267 = vmatpush3.bf16.msra.mxu0 %v10559_v4  ;;  %v4831_v19 = vrot.slane %v12842_v28, 5  ;;  %v8989_v55 = vrot.slane %v4725_v23, 9  ;;  %v10564_v8 = vld [vmem:[%s14930_s2 + $0x148] sm:$0xff]   ;;  %v4728_v23 = vld [vmem:[#allocation2 + $0x9c] sm:$0xe] }
 0x2a1   : > { %v13034_v59 = vsel %vm11145_vm6, %v4816_v36, %v4817_v17  ;;  %v4835_v13 = vrot.slane %v12811_v10, 5  ;;  %10268 = vmatprep.subr.bf16.mxu0 %v10561_v37  ;;  %v13052_v10 = vsel %vm11145_vm6, %v8988_v14, %v4828_v11  ;;  %v4830_v28 = vrot.slane %v4828_v11, 4  ;;  %v4727_v17 = vld [vmem:[#allocation2 + $0x90] sm:$0xe]  ;;  %v6337_v50 = vld [vmem:[#allocation2 + $0xc] sm:$0xe] }
 0x2a2   : > { %10131 = vmatmul.mubr.bf16.vlgmr.msra.gmra.mxu1 %v9012_v35  ;;  %v13048_v4 = vsel %vm11145_vm6, %v4823_v33, %v4824_v62  ;;  %v4838_v54 = vrot.slane %v12857_v15, 5  ;;  %v8990_v43 = vrot.slane %v4726_v41, 9  ;;  %v4845_v47 = vrot.slane %v12873_v61, 5  ;;  %v10544_v36 = vld [vmem:[#allocation2 + $0x60] sm:$0xff]   ;;  %v13081_v11 = vld [vmem:[#allocation2 + $0x10] sm:$0xf] }
 0x2a3   : > { %10211 = vmatpush3.bf16.msra.mxu1 %v12724_v48  ;;  %10134 = vmatprep.mubr.bf16.mxu1 %v9013_v22  ;;  %v13062_v6 = vsel %vm11145_vm6, %v8989_v55, %v4835_v13  ;;  %v4837_v35 = vrot.slane %v4835_v13, 4  ;;  %v10545_v48 = vld [vmem:[%s14930_s2 + $0x128] sm:$0xff]   ;;  %v13070_v21 = vsel %vm11145_vm6, %v4830_v28, %v4831_v19  ;;  %v4842_v22 = vrot.slane %v12823_v40, 5  ;;  %v13090_v13 = vld [vmem:[#allocation2 + $0x14] sm:$0x1] }
 0x2a4   : > { %10212 = vmatprep.subr.bf16.mxu1 %v10542_v5  ;;  %10269 = vmatpush3.bf16.msra.mxu0 %v10561_v37  ;;  %v8991_v33 = vrot.slane %v4727_v17, 9  ;;  %v4849_v14 = vrot.slane %v12848_v18, 5  ;;  %v10546_v19 = vld [vmem:[#allocation2 + $0x6c] sm:$0xff]   ;;  %v4852_v55 = vrot.slane %v12880_v58, 5  ;;  %v10565_v18 = vld [vmem:[%s14930_s2 + $0x140] sm:$0xff]   ;;  %v8992_v17 = vrot.slane %v4728_v23, 9 }
 0x2a5   : > { %v13078_v62 = vsel %vm11145_vm6, %v4837_v35, %v4838_v54  ;;  %10270 = vmatprep.subr.bf16.mxu0 %v10564_v8  ;;  %v13087_v61 = vsel %vm11145_vm6, %v8990_v43, %v4842_v22  ;;  %v4844_v37 = vrot.slane %v4842_v22, 4  ;;  %v4856_v35 = vrot.slane %v12861_v45, 5  ;;  %v6338_v54 = vld [vmem:[#allocation2 + $0x18] sm:$0xe]  ;;  %v10548_v58 = vld [vmem:[%s14930_s2 + $0x120] sm:$0xff]  }
 0x2a6   : > { %v13097_v41 = vsel %vm11145_vm6, %v8991_v33, %v4849_v14  ;;  %v4851_v28 = vrot.slane %v4849_v14, 4  ;;  %v9115_v22 = vrot.slane %v6337_v50, 9  ;;  %v4729_v33 = vld [vmem:[#allocation2 + $0xa8] sm:$0xe]  ;;  %v4870_v45 = vrot.slane %v12887_v52, 5  ;;  %v10558_v52 = vld [vmem:[%s14930_s2 + $0x110] sm:$0xff]  }
 0x2a7   : > { %10213 = vmatpush3.bf16.msra.mxu1 %v10542_v5  ;;  %10191 = vmatmul.mubr.bf16.gmra.mxu0 %v10544_v36  ;;  %v13105_v43 = vsel %vm11145_vm6, %v4844_v37, %v4845_v47  ;;  %v4859_v5 = vrot.slane %v12895_v30, 5  ;;  %v6403_v36 = vrot.slane %v13081_v11, 5  ;;  %v13117_v14 = vsel %vm11145_vm6, %v8992_v17, %v4856_v35  ;;  %v13119_v47 = vld [vmem:[#allocation2 + $0x1c] sm:$0xf]  ;;  %v13121_v30 = vld [vmem:[#allocation2 + $0x20] sm:$0x1] }
 0x2a8   : > { %10214 = vmatprep.subr.bf16.mxu1 %v10545_v48  ;;  %10194 = vmatprep.mubr.bf16.mxu0 %v10546_v19  ;;  %v13113_v23 = vsel %vm11145_vm6, %v4851_v28, %v4852_v55  ;;  %v4858_v19 = vrot.slane %v4856_v35, 4  ;;  %v6406_v28 = vrot.slane %v13090_v13, 5  ;;  %v13136_v17 = vld [vmem:[%s14930_s2 + $0x1f8] sm:$0xff]   ;;  %v8993_v51 = vrot.slane %v4729_v33, 9  ;;  %v10550_v50 = vld [vmem:[#allocation2 + $0x84] sm:$0xff]  }
 0x2a9   : > { %10271 = vmatpush3.bf16.msra.mxu0 %v10564_v8  ;;  %v13130_v37 = vsel %vm11145_vm6, %v9115_v22, %v6403_v36  ;;  %v6405_v55 = vrot.slane %v6403_v36, 4  ;;  %v6339_v8 = vld [vmem:[#allocation2 + $0x24] sm:$0xe]  ;;  %v4866_v35 = vrot.slane %v12900_v25, 5  ;;  %v4730_v22 = vld [vmem:[#allocation2 + $0xb4] sm:$0xe] }
 0x2aa   : > { %10135 = vmatmul.mubr.bf16.gmra.mxu1 %v9014_v3  ;;  %10272 = vmatprep.subr.bf16.mxu0 %v10565_v18  ;;  %v13143_v53 = vsel %vm11145_vm6, %v4858_v19, %v4859_v5  ;;  %v4863_v3 = vrot.slane %v12877_v31, 5  ;;  %v10553_v36 = vld [vmem:[%s14930_s2 + $0x118] sm:$0xff]   ;;  %v13157_v5 = vld [vmem:[#allocation2 + $0x28] sm:$0xf]  ;;  %v6413_v60 = vrot.slane %v13121_v30, 5  ;;  %v5645_v44 = vshrl.u32 %v13081_v11, 16 }
 0x2ab   : > { %10138 = vmatprep.mubr.bf16.mxu1 %v9015_v0  ;;  %10215 = vmatpush3.bf16.msra.mxu1 %v10545_v48  ;;  %v13154_v32 = vsel %vm11145_vm6, %v6405_v55, %v6406_v28  ;;  %v9116_v0 = vrot.slane %v6338_v54, 9  ;;  %v6410_v48 = vrot.slane %v13119_v47, 5  ;;  %v10547_v31 = vld [vmem:[#allocation2 + $0x78] sm:$0xff]   ;;  %v8994_v28 = vrot.slane %v4730_v22, 9  ;;  %v13171_v40 = vld [vmem:[#allocation2 + $0x2c] sm:$0x1] }
 0x2ac   : > { %10216 = vmatprep.subr.bf16.mxu1 %v10548_v58  ;;  %v13163_v33 = vsel %vm11145_vm6, %v8993_v51, %v4863_v3  ;;  %v4865_v19 = vrot.slane %v4863_v3, 4  ;;  %v4873_v51 = vrot.slane %v12909_v34, 5  ;;  %v9117_v3 = vrot.slane %v6339_v8, 9  ;;  %v5583_v25 = vld [vmem:[#allocation2 + $0xc] sm:$0xf] }
 0x2ad   : > { %10273 = vmatpush3.bf16.msra.mxu0 %v10565_v18  ;;  %v13168_v54 = vsel %vm11145_vm6, %v9116_v0, %v6410_v48  ;;  %v6412_v55 = vrot.slane %v6410_v48, 4  ;;  %v6417_v0 = vrot.slane %v13157_v5, 5  ;;  %v13191_v34 = vsel %vm11145_vm6, %v8994_v28, %v4870_v45  ;;  %v13208_v22 = vld [vmem:[#allocation2 + $0x34] sm:$0xf]  ;;  %v13246_v49 = vld [vmem:[#allocation2 + $0x44] sm:$0x1] }
 0x2ae   : > { %10354 = vmatprep.subr.bf16.mxu0 %v13136_v17  ;;  %v13176_v18 = vsel %vm11145_vm6, %v4865_v19, %v4866_v35  ;;  %v4872_v8 = vrot.slane %v4870_v45, 4  ;;  %v6340_v19 = vld [vmem:[#allocation2 + $0x30] sm:$0xe]  ;;  %v5632_v45 = vshrl.u32 %v5583_v25, 16  ;;  %v5641_v28 = vshll.u32 %v13081_v11, 16 }
 0x2af   : > { %10195 = vmatmul.mubr.bf16.gmra.mxu0 %v10547_v31  ;;  %10217 = vmatpush3.bf16.msra.mxu1 %v10548_v58  ;;  %v13187_v58 = vsel %vm11145_vm6, %v6412_v55, %v6413_v60  ;;  %v13197_v35 = vsel %vm11145_vm6, %v9117_v3, %v6417_v0  ;;  %v6419_v48 = vrot.slane %v6417_v0, 4  ;;  %v6420_v31 = vrot.slane %v13171_v40, 5  ;;  %v10555_v3 = vld [vmem:[#allocation2 + $0x9c] sm:$0xff]  }
 0x2b0   : > { %10198 = vmatprep.mubr.bf16.mxu0 %v10550_v50  ;;  %10218 = vmatprep.subr.bf16.mxu1 %v10553_v36  ;;  %v13205_v60 = vsel %vm11145_vm6, %v4872_v8, %v4873_v51  ;;  %v5635_v55 = vshll.u32 %v5583_v25, 16  ;;  %v13221_v25 = vld [vmem:[#allocation2 + $0x38] sm:$0x1]  ;;  %v5643_v0 = vrot.slane %v5641_v28, 5  ;;  %v10552_v8 = vld [vmem:[#allocation2 + $0x90] sm:$0xff]   ;;  %v9118_v11 = vrot.slane %v6340_v19, 9 }
 0x2b1   : > { %v13217_v56 = vsel %vm11145_vm6, %v6419_v48, %v6420_v31  ;;  %v5586_v51 = vld [vmem:[#allocation2 + $0x18] sm:$0xf]  ;;  %v5647_v48 = vrot.slane %v5645_v44, 4  ;;  %v6427_v15 = vrot.slane %v13221_v25, 5  ;;  %v5665_v28 = vshll.u32 %v13119_v47, 16 }
 0x2b2   : > { %10139 = vmatmul.mubr.bf16.gmra.mxu1 %v9016_v24  ;;  %v5651_v24 = vshll.u32 %v13090_v13, 16  ;;  %v6424_v13 = vrot.slane %v13208_v22, 5  ;;  %v5656_v39 = vshrl.u32 %v5586_v51, 16  ;;  %v5659_v16 = vshll.u32 %v5586_v51, 16  ;;  %v13235_v44 = vld [vmem:[#allocation2 + $0x40] sm:$0xf] }
 0x2b3   : > { %10142 = vmatprep.mubr.bf16.mxu1 %v9017_v27  ;;  %10219 = vmatpush3.bf16.msra.mxu1 %v10553_v36  ;;  %v5634_v27 = vrot.slane %v5632_v45, 4  ;;  %v5637_v36 = vrot.slane %v5635_v55, 5  ;;  %v5648_v20 = vor.u32 %v5647_v48, %v5643_v0  ;;  %v6341_v19 = vld [vmem:[#allocation2 + $0x3c] sm:$0xe] }
 0x2b4   : > { %10220 = vmatprep.subr.bf16.mxu1 %v10558_v52  ;;  %v5653_v31 = vrot.slane %v5651_v24, 5  ;;  %v13232_v45 = vsel %vm11145_vm6, %v9118_v11, %v6424_v13  ;;  %v6426_v55 = vrot.slane %v6424_v13, 4  ;;  %v10566_v24 = vld [vmem:[%s14930_s2 + $0x100] sm:$0xff]   ;;  %v5667_v11 = vrot.slane %v5665_v28, 5  ;;  %v13266_v28 = vld [vmem:[%s14930_s2 + $0x1b8] sm:$0xff]  }
 0x2b5   : > { %v5638_v50 = vor.u32 %v5637_v36, %v5634_v27  ;;  %v5658_v27 = vrot.slane %v5656_v39, 4  ;;  %v5669_v36 = vshrl.u32 %v13119_v47, 16  ;;  %v5675_v13 = vshll.u32 %v13121_v30, 16 }
 0x2b6   : > { %v13243_v48 = vsel %vm11145_vm6, %v6426_v55, %v6427_v15  ;;  %v15277_v15 = vcombine.low %v13029_v2, %v13048_v4  ;;  %v6434_v2 = vrot.slane %v13246_v49, 5  ;;  %v6342_v4 = vld [vmem:[#allocation2 + $0x48] sm:$0xe] }
 0x2b7   : > { %10199 = vmatmul.mubr.bf16.gmra.mxu0 %v10552_v8  ;;  %10221 = vmatpush3.bf16.msra.mxu1 %v10558_v52  ;;  %v5639_v51 = vrot.slane %v5638_v50, 4  ;;  %v5661_v52 = vrot.slane %v5659_v16, 5  ;;  %v5649_v8 = vrot.slane %v5648_v20, 4  ;;  %v5671_v47 = vrot.slane %v5669_v36, 4  ;;  %v5589_v50 = vld [vmem:[#allocation2 + $0x24] sm:$0xf] }
 0x2b8   : > { %10202 = vmatprep.mubr.bf16.mxu0 %v10555_v3  ;;  %10222 = vmatprep.subr.bf16.mxu1 %v10563_v7  ;;  %v15276_v3 = vcombine.low %v13021_v42, %v13034_v59  ;;  %v5677_v55 = vrot.slane %v5675_v13, 5  ;;  %v9119_v42 = vrot.slane %v6341_v19, 9  ;;  %v6431_v59 = vrot.slane %v13235_v44, 5  ;;  %v10560_v13 = vld [vmem:[#allocation2 + $0xb4] sm:$0xff]   ;;  %v13284_v16 = vld [vmem:[#allocation2 + $0x50] sm:$0x1] }
 0x2b9   : > { %v5644_v39 = vsel %vm10731_vm3, %v5639_v51, %v5643_v0  ;;  %v5662_v20 = vor.u32 %v5661_v52, %v5658_v27  ;;  %v5654_v30 = vsel %vm10731_vm3, %v5649_v8, %v5653_v31  ;;  %v5672_v27 = vor.u32 %v5671_v47, %v5667_v11  ;;  %v5592_v8 = vld [vmem:[#allocation2 + $0x30] sm:$0xf] }
 0x2ba   : > { %10143 = vmatmul.mubr.bf16.gmra.mxu1 %v15276_v3  ;;  %v13261_v0 = vcombine.low %v5644_v39, %v5654_v30  ;;  %v13271_v31 = vsel %vm11145_vm6, %v9119_v42, %v6431_v59  ;;  %v6433_v19 = vrot.slane %v6431_v59, 4  ;;  %v5680_v52 = vshrl.u32 %v5589_v50, 16 }
 0x2bb   : > { %10146 = vmatprep.mubr.bf16.mxu1 %v15277_v15  ;;  %10223 = vmatpush3.bf16.msra.mxu1 %v10563_v7  ;;  %v5663_v51 = vrot.slane %v5662_v20, 4  ;;  %v10557_v7 = vld [vmem:[#allocation2 + $0xa8] sm:$0xff]   ;;  %v5683_v36 = vshll.u32 %v5589_v50, 16  ;;  %v5673_v39 = vrot.slane %v5672_v27, 4  ;;  %v5689_v20 = vshll.u32 %v13157_v5, 16 }
 0x2bc   : > { %10224 = vmatprep.subr.bf16.mxu1 %v10566_v24  ;;  %v5693_v47 = vshrl.u32 %v13157_v5, 16  ;;  %v13277_v15 = vld [vmem:[#allocation2 + $0x4c] sm:$0xf]  ;;  %v13281_v30 = vsel %vm11145_vm6, %v6433_v19, %v6434_v2  ;;  %v5682_v42 = vrot.slane %v5680_v52, 4  ;;  %v5699_v59 = vshll.u32 %v13171_v40, 16 }
 0x2bd   : > { %v5668_v3 = vsel %vm10731_vm3, %v5663_v51, %v5667_v11  ;;  %v5685_v50 = vrot.slane %v5683_v36, 5  ;;  %v5678_v5 = vsel %vm10731_vm3, %v5673_v39, %v5677_v55  ;;  %v9151_v11 = vcombine.low %v13271_v31, %v13281_v30  ;;  %v10577_v31 = vld [vmem:[%s14930_s2 + $0x1d8] sm:$0xff]  }
 0x2be   : > { %v5695_v51 = vrot.slane %v5693_v47, 4  ;;  %v13291_v27 = vcombine.low %v5668_v3, %v5678_v5  ;;  %v9120_v19 = vrot.slane %v6342_v4, 9  ;;  %v15278_v40 = vcombine.low %v13052_v10, %v13070_v21 }
 0x2bf   : > { %10203 = vmatmul.mubr.bf16.gmra.mxu0 %v10557_v7  ;;  %10225 = vmatpush3.bf16.msra.mxu1 %v10566_v24  ;;  %v5691_v24 = vrot.slane %v5689_v20, 5  ;;  %v5686_v2 = vor.u32 %v5685_v50, %v5682_v42  ;;  %v5701_v7 = vrot.slane %v5699_v59, 5  ;;  %v6438_v36 = vrot.slane %v13277_v15, 5  ;;  %v6343_v42 = vld [vmem:[#allocation2 + $0x54] sm:$0xe] }
 0x2c0   : > { %10206 = vmatprep.mubr.bf16.mxu0 %v10560_v13  ;;  %10306 = vmatprep.subr.bf16.mxu1 %v13266_v28  ;;  %v6441_v13 = vrot.slane %v13284_v16, 5  ;;  %v5704_v55 = vshrl.u32 %v5592_v8, 16  ;;  %v15279_v39 = vcombine.low %v13062_v6, %v13078_v62  ;;  %v5707_v3 = vshll.u32 %v5592_v8, 16  ;;  %v5595_v50 = vld [vmem:[#allocation2 + $0x3c] sm:$0xf] }
 0x2c1   : > { %v5696_v52 = vor.u32 %v5695_v51, %v5691_v24  ;;  %v5687_v20 = vrot.slane %v5686_v2, 4  ;;  %v5713_v47 = vshll.u32 %v13208_v22, 16  ;;  %v5717_v4 = vshrl.u32 %v13208_v22, 16  ;;  %v13307_v51 = vld [vmem:[#allocation2 + $0x58] sm:$0xf] }
 0x2c2   : > { %10147 = vmatmul.mubr.bf16.gmra.mxu1 %v15278_v40  ;;  %v13305_v21 = vsel %vm11145_vm6, %v9120_v19, %v6438_v36  ;;  %v6440_v59 = vrot.slane %v6438_v36, 4  ;;  %v5706_v5 = vrot.slane %v5704_v55, 4  ;;  %v10562_v40 = vld [vmem:[#allocation2 + $0xc0] sm:$0xff]   ;;  %v5709_v62 = vrot.slane %v5707_v3, 5 }
 0x2c3   : > { %10150 = vmatprep.mubr.bf16.mxu1 %v15279_v39  ;;  %v5697_v10 = vrot.slane %v5696_v52, 4  ;;  %v5692_v6 = vsel %vm10731_vm3, %v5687_v20, %v5691_v24  ;;  %v5715_v8 = vrot.slane %v5713_v47, 5  ;;  %v5719_v2 = vrot.slane %v5717_v4, 4  ;;  %v13311_v39 = vld [vmem:[#allocation2 + $0x5c] sm:$0x1] }
 0x2c4   : > { %v13317_v19 = vsel %vm11145_vm6, %v6440_v59, %v6441_v13  ;;  %v5723_v52 = vshll.u32 %v13221_v25, 16  ;;  %v9121_v36 = vrot.slane %v6343_v42, 9  ;;  %v5710_v20 = vor.u32 %v5709_v62, %v5706_v5 }
 0x2c5   : > { %v5702_v22 = vsel %vm10731_vm3, %v5697_v10, %v5701_v7  ;;  %v9152_v24 = vcombine.low %v13305_v21, %v13317_v19  ;;  %v5720_v3 = vor.u32 %v5719_v2, %v5715_v8  ;;  %v15280_v47 = vcombine.low %v13130_v37, %v13154_v32 }
 0x2c6   : > { %v13320_v55 = vcombine.low %v5692_v6, %v5702_v22  ;;  %v5725_v7 = vrot.slane %v5723_v52, 5  ;;  %v6445_v4 = vrot.slane %v13307_v51, 5  ;;  %v6448_v13 = vrot.slane %v13311_v39, 5  ;;  %v13330_v6 = vld [vmem:[#allocation2 + $0x64] sm:$0xf] }
 0x2c7   : > { %10207 = vmatmul.mubr.bf16.gmra.mxu0 %v10562_v40  ;;  %v5728_v10 = vshrl.u32 %v5595_v50, 16  ;;  %v5711_v25 = vrot.slane %v5710_v20, 4  ;;  %v5721_v42 = vrot.slane %v5720_v3, 4  ;;  %v5731_v59 = vshll.u32 %v5595_v50, 16  ;;  %v6344_v22 = vld [vmem:[#allocation2 + $0x60] sm:$0xe] }
 0x2c8   : > { %10274 = vmatprep.mubr.bf16.mxu0 %v15280_v47  ;;  %v5737_v40 = vshll.u32 %v13235_v44, 16  ;;  %v15281_v5 = vcombine.low %v13087_v61, %v13105_v43  ;;  %v13337_v37 = vsel %vm11145_vm6, %v9121_v36, %v6445_v4  ;;  %v6447_v32 = vrot.slane %v6445_v4, 4  ;;  %v13347_v3 = vld [vmem:[#allocation2 + $0x68] sm:$0x1] }
 0x2c9   : > { %v5730_v62 = vrot.slane %v5728_v10, 4  ;;  %v5741_v2 = vshrl.u32 %v13235_v44, 16  ;;  %v15282_v50 = vcombine.low %v13097_v41, %v13113_v23  ;;  %v5716_v52 = vsel %vm10731_vm3, %v5711_v25, %v5715_v8  ;;  %v5598_v36 = vld [vmem:[#allocation2 + $0x48] sm:$0xf]  ;;  %v10572_v25 = vld [vmem:[%s14930_s2 + $0x1f0] sm:$0xff]  }
 0x2ca   : > { %10151 = vmatmul.mubr.bf16.gmra.mxu1 %v15281_v5  ;;  %v5726_v61 = vsel %vm10731_vm3, %v5721_v42, %v5725_v7  ;;  %v5733_v43 = vrot.slane %v5731_v59, 5  ;;  %v5739_v20 = vrot.slane %v5737_v40, 5  ;;  %v13353_v44 = vsel %vm11145_vm6, %v6447_v32, %v6448_v13 }
 0x2cb   : > { %10154 = vmatprep.mubr.bf16.mxu1 %v15282_v50  ;;  %v13349_v47 = vcombine.low %v5716_v52, %v5726_v61  ;;  %v5743_v4 = vrot.slane %v5741_v2, 4  ;;  %v5747_v41 = vshll.u32 %v13246_v49, 16  ;;  %v9153_v23 = vcombine.low %v13337_v37, %v13353_v44  ;;  %v5601_v50 = vld [vmem:[#allocation2 + $0x54] sm:$0xf]  ;;  %v10580_v37 = vld [vmem:[%s14930_s2 + $0x1c8] sm:$0xff]  }
 0x2cc   : > { %v5734_v8 = vor.u32 %v5733_v43, %v5730_v62  ;;  %v9122_v10 = vrot.slane %v6344_v22, 9  ;;  %v6452_v7 = vrot.slane %v13330_v6, 5  ;;  %v6455_v40 = vrot.slane %v13347_v3, 5  ;;  %v6345_v22 = vld [vmem:[#allocation2 + $0x6c] sm:$0xe] }
 0x2cd   : > { %v5744_v42 = vor.u32 %v5743_v4, %v5739_v20  ;;  %v5749_v59 = vrot.slane %v5747_v41, 5  ;;  %v5752_v13 = vshrl.u32 %v5598_v36, 16  ;;  %v15283_v5 = vcombine.low %v13168_v54, %v13187_v58  ;;  %v13375_v58 = vld [vmem:[#allocation2 + $0x70] sm:$0xf] }
 0x2ce   : > { %v5735_v49 = vrot.slane %v5734_v8, 4  ;;  %v13368_v32 = vsel %vm11145_vm6, %v9122_v10, %v6452_v7  ;;  %v6454_v62 = vrot.slane %v6452_v7, 4  ;;  %v5755_v2 = vshll.u32 %v5598_v36, 16 }
 0x2cf   : > { %10275 = vmatmul.mubr.bf16.vlgmr.msra.gmra.mxu0 %v15283_v5  ;;  %v15284_v52 = vcombine.low %v13197_v35, %v13217_v56  ;;  %v5745_v61 = vrot.slane %v5744_v42, 4  ;;  %v5754_v43 = vrot.slane %v5752_v13, 4  ;;  %v5761_v4 = vshll.u32 %v13277_v15, 16  ;;  %v13385_v56 = vld [vmem:[#allocation2 + $0x74] sm:$0x1] }
 0x2d0   : > { %v5765_v54 = vshrl.u32 %v13277_v15, 16  ;;  %10355 = vmatpush3.bf16.msra.mxu0 %v13136_v17  ;;  %v5740_v41 = vsel %vm10731_vm3, %v5735_v49, %v5739_v20  ;;  %v13382_v36 = vsel %vm11145_vm6, %v6454_v62, %v6455_v40  ;;  %v5757_v8 = vrot.slane %v5755_v2, 5  ;;  %v10574_v15 = vld [vmem:[%s14930_s2 + $0x1e8] sm:$0xff]   ;;  %v6346_v2 = vld [vmem:[#allocation2 + $0x78] sm:$0xe] }
 0x2d1   : > { %10278 = vmatprep.mubr.bf16.mxu0 %v15284_v52  ;;  %v5771_v35 = vshll.u32 %v13284_v16, 16  ;;  %10356 = vmatprep.subr.bf16.mxu0 %v10572_v25  ;;  %v15285_v17 = vcombine.low %v13117_v14, %v13143_v53  ;;  %v5750_v20 = vsel %vm10731_vm3, %v5745_v61, %v5749_v59  ;;  %v9154_v10 = vcombine.low %v13368_v32, %v13382_v36 }
 0x2d2   : > { %v5763_v7 = vrot.slane %v5761_v4, 5  ;;  %v5767_v42 = vrot.slane %v5765_v54, 4  ;;  %v15286_v16 = vcombine.low %v13163_v33, %v13176_v18  ;;  %v13400_v40 = vcombine.low %v5740_v41, %v5750_v20  ;;  %v5604_v18 = vld [vmem:[#allocation2 + $0x60] sm:$0xf] }
 0x2d3   : > { %10155 = vmatmul.mubr.bf16.gmra.mxu1 %v15285_v17  ;;  %v5758_v13 = vor.u32 %v5757_v8, %v5754_v43  ;;  %v5773_v5 = vrot.slane %v5771_v35, 5  ;;  %v9123_v49 = vrot.slane %v6345_v22, 9  ;;  %v6459_v14 = vrot.slane %v13375_v58, 5  ;;  %v10575_v22 = vld [vmem:[%s14930_s2 + $0x1e0] sm:$0xff]  }
 0x2d4   : > { %10158 = vmatprep.mubr.bf16.mxu1 %v15286_v16  ;;  %v5768_v62 = vor.u32 %v5767_v42, %v5763_v7  ;;  %v6462_v53 = vrot.slane %v13385_v56, 5  ;;  %v5776_v59 = vshrl.u32 %v5601_v50, 16  ;;  %10357 = vmatpush3.bf16.msra.mxu0 %v10572_v25  ;;  %v5779_v61 = vshll.u32 %v5601_v50, 16  ;;  %v13413_v25 = vld [vmem:[#allocation2 + $0x7c] sm:$0xf] }
 0x2d5   : > { %v5759_v52 = vrot.slane %v5758_v13, 4  ;;  %v5785_v4 = vshll.u32 %v13307_v51, 16  ;;  %v5789_v33 = vshrl.u32 %v13307_v51, 16  ;;  %10358 = vmatprep.subr.bf16.mxu0 %v10574_v15  ;;  %v13411_v54 = vsel %vm11145_vm6, %v9123_v49, %v6459_v14  ;;  %v13420_v42 = vld [vmem:[#allocation2 + $0x80] sm:$0x1] }
 0x2d6   : > { %v5769_v43 = vrot.slane %v5768_v62, 4  ;;  %v6461_v41 = vrot.slane %v6459_v14, 4  ;;  %v5778_v8 = vrot.slane %v5776_v59, 4  ;;  %v15287_v50 = vcombine.low %v13232_v45, %v13243_v48 }
 0x2d7   : > { %v5764_v51 = vsel %vm10731_vm3, %v5759_v52, %v5763_v7  ;;  %v5781_v35 = vrot.slane %v5779_v61, 5  ;;  %v5787_v17 = vrot.slane %v5785_v4, 5  ;;  %v5791_v20 = vrot.slane %v5789_v33, 4  ;;  %v5607_v4 = vld [vmem:[#allocation2 + $0x6c] sm:$0xf] }
 0x2d8   : > { %10279 = vmatmul.mubr.bf16.gmra.mxu0 %v15287_v50  ;;  %v5774_v16 = vsel %vm10731_vm3, %v5769_v43, %v5773_v5  ;;  %v13429_v13 = vsel %vm11145_vm6, %v6461_v41, %v6462_v53  ;;  %v5795_v45 = vshll.u32 %v13311_v39, 16  ;;  %v9124_v48 = vrot.slane %v6346_v2, 9  ;;  %v6347_v53 = vld [vmem:[#allocation2 + $0x84] sm:$0xe]  ;;  %v13451_v41 = vld [vmem:[#allocation2 + $0x88] sm:$0xf] }
 0x2d9   : > { %10282 = vmatprep.mubr.bf16.mxu0 %v9151_v11  ;;  %10359 = vmatpush3.bf16.msra.mxu0 %v10574_v15  ;;  %v13432_v7 = vcombine.low %v5764_v51, %v5774_v16  ;;  %v9155_v49 = vcombine.low %v13411_v54, %v13429_v13  ;;  %v5782_v62 = vor.u32 %v5781_v35, %v5778_v8  ;;  %v6466_v39 = vrot.slane %v13413_v25, 5  ;;  %v13457_v51 = vld [vmem:[#allocation2 + $0x8c] sm:$0x1]  ;;  %v10578_v35 = vld [vmem:[%s14930_s2 + $0x1d0] sm:$0xff]  }
 0x2da   : > { %v5792_v14 = vor.u32 %v5791_v20, %v5787_v17  ;;  %10360 = vmatprep.subr.bf16.mxu0 %v10575_v22  ;;  %v15288_v30 = vcombine.low %v13191_v34, %v13205_v60  ;;  %v5797_v11 = vrot.slane %v5795_v45, 5  ;;  %v6469_v15 = vrot.slane %v13420_v42, 5 }
 0x2db   : > { %v5800_v5 = vshrl.u32 %v5604_v18, 16  ;;  %v5783_v59 = vrot.slane %v5782_v62, 4  ;;  %v5803_v52 = vshll.u32 %v5604_v18, 16  ;;  %v5809_v61 = vshll.u32 %v13330_v6, 16 }
 0x2dc   : > { %10159 = vmatmul.mubr.bf16.gmra.mxu1 %v15288_v30  ;;  %v5793_v2 = vrot.slane %v5792_v14, 4  ;;  %v13448_v33 = vsel %vm11145_vm6, %v9124_v48, %v6466_v39  ;;  %v6468_v34 = vrot.slane %v6466_v39, 4  ;;  %v5813_v43 = vshrl.u32 %v13330_v6, 16  ;;  %v10568_v14 = vld [vmem:[%s14930_s2 + $0x1b0] sm:$0xff]  }
 0x2dd   : > { %10226 = vmatprep.mubr.bf16.mxu1 %v13261_v0  ;;  %v5802_v60 = vrot.slane %v5800_v5, 4  ;;  %10361 = vmatpush3.bf16.msra.mxu0 %v10575_v22  ;;  %v5788_v0 = vsel %vm10731_vm3, %v5783_v59, %v5787_v17  ;;  %v5805_v8 = vrot.slane %v5803_v52, 5  ;;  %v5811_v50 = vrot.slane %v5809_v61, 5  ;;  %v6348_v5 = vld [vmem:[#allocation2 + $0x90] sm:$0xe] }
 0x2de   : > { %v5798_v18 = vsel %vm10731_vm3, %v5793_v2, %v5797_v11  ;;  %10362 = vmatprep.subr.bf16.mxu0 %v10577_v31  ;;  %v13466_v6 = vsel %vm11145_vm6, %v6468_v34, %v6469_v15  ;;  %v5815_v22 = vrot.slane %v5813_v43, 4  ;;  %v5819_v17 = vshll.u32 %v13347_v3, 16  ;;  %v13492_v59 = vld [vmem:[#allocation2 + $0x94] sm:$0xf]  ;;  %v5610_v34 = vld [vmem:[#allocation2 + $0x78] sm:$0xf] }
 0x2df   : > { %v13462_v20 = vcombine.low %v5788_v0, %v5798_v18  ;;  %v9156_v16 = vcombine.low %v13448_v33, %v13466_v6  ;;  %v5806_v45 = vor.u32 %v5805_v8, %v5802_v60  ;;  %v9125_v48 = vrot.slane %v6347_v53, 9 }
 0x2e0   : > { %10283 = vmatmul.mubr.bf16.gmra.mxu0 %v9152_v24  ;;  %v6473_v62 = vrot.slane %v13451_v41, 5  ;;  %v5816_v3 = vor.u32 %v5815_v22, %v5811_v50  ;;  %v5821_v30 = vrot.slane %v5819_v17, 5  ;;  %v6476_v21 = vrot.slane %v13457_v51, 5 }
 0x2e1   : > { %10286 = vmatprep.mubr.bf16.mxu0 %v9153_v23  ;;  %v5824_v19 = vshrl.u32 %v5607_v4, 16  ;;  %10363 = vmatpush3.bf16.msra.mxu0 %v10577_v31  ;;  %v5807_v24 = vrot.slane %v5806_v45, 4  ;;  %v5827_v15 = vshll.u32 %v5607_v4, 16  ;;  %v5833_v53 = vshll.u32 %v13375_v58, 16  ;;  %v13503_v4 = vld [vmem:[#allocation2 + $0x98] sm:$0x1] }
 0x2e2   : > { %v13484_v11 = vsel %vm11145_vm6, %v9125_v48, %v6473_v62  ;;  %v6475_v39 = vrot.slane %v6473_v62, 4  ;;  %10364 = vmatprep.subr.bf16.mxu0 %v10578_v35  ;;  %v5817_v44 = vrot.slane %v5816_v3, 4  ;;  %v5837_v31 = vshrl.u32 %v13375_v58, 16  ;;  %v10581_v48 = vld [vmem:[%s14930_s2 + $0x1c0] sm:$0xff]  }
 0x2e3   : > { %v5826_v23 = vrot.slane %v5824_v19, 4  ;;  %v5812_v2 = vsel %vm10731_vm3, %v5807_v24, %v5811_v50  ;;  %v5843_v61 = vshll.u32 %v13385_v56, 16  ;;  %v5835_v60 = vrot.slane %v5833_v53, 5  ;;  %v5613_v19 = vld [vmem:[#allocation2 + $0x84] sm:$0xf] }
 0x2e4   : > { %10227 = vmatmul.mubr.bf16.vlgmr.msra.gmra.mxu1 %v13291_v27  ;;  %v13500_v52 = vsel %vm11145_vm6, %v6475_v39, %v6476_v21  ;;  %v5829_v27 = vrot.slane %v5827_v15, 5  ;;  %v5839_v43 = vrot.slane %v5837_v31, 4  ;;  %v9126_v8 = vrot.slane %v6348_v5, 9  ;;  %v6349_v21 = vld [vmem:[#allocation2 + $0x9c] sm:$0xe] }
 0x2e5   : > { %10307 = vmatpush3.bf16.msra.mxu1 %v13266_v28  ;;  %10230 = vmatprep.mubr.bf16.mxu1 %v13320_v55  ;;  %v10569_v28 = vld [vmem:[%s14930_s2 + $0x1a8] sm:$0xff]   ;;  %v5822_v55 = vsel %vm10731_vm3, %v5817_v44, %v5821_v30  ;;  %v9157_v58 = vcombine.low %v13484_v11, %v13500_v52  ;;  %v5845_v18 = vrot.slane %v5843_v61, 5  ;;  %v6480_v22 = vrot.slane %v13492_v59, 5  ;;  %v13534_v39 = vld [vmem:[#allocation2 + $0xa0] sm:$0xf]  ;;  %v10573_v61 = vld [vmem:[%s14930_s2 + $0x198] sm:$0xff]  }
 0x2e6   : > { %10308 = vmatprep.subr.bf16.mxu1 %v10568_v14  ;;  %10365 = vmatpush3.bf16.msra.mxu0 %v10578_v35  ;;  %v13512_v0 = vcombine.low %v5812_v2, %v5822_v55  ;;  %v5830_v56 = vor.u32 %v5829_v27, %v5826_v23  ;;  %v5840_v50 = vor.u32 %v5839_v43, %v5835_v60  ;;  %v6483_v17 = vrot.slane %v13503_v4, 5  ;;  %v13540_v5 = vld [vmem:[#allocation2 + $0xa4] sm:$0x1] }
 0x2e7   : > { %10366 = vmatprep.subr.bf16.mxu0 %v10580_v37  ;;  %v5848_v45 = vshrl.u32 %v5610_v34, 16  ;;  %v5851_v62 = vshll.u32 %v5610_v34, 16  ;;  %v5857_v3 = vshll.u32 %v13413_v25, 16  ;;  %v5861_v30 = vshrl.u32 %v13413_v25, 16  ;;  %v13536_v25 = vpop.f32.mrf.mxu0 }
 0x2e8   : > { %10287 = vmatmul.mubr.bf16.gmra.mxu0 %v9154_v10  ;;  %v5831_v35 = vrot.slane %v5830_v56, 4  ;;  %v5841_v24 = vrot.slane %v5840_v50, 4  ;;  %v13532_v32 = vsel %vm11145_vm6, %v9126_v8, %v6480_v22  ;;  %v6482_v36 = vrot.slane %v6480_v22, 4  ;;  %v5616_v8 = vld [vmem:[#allocation2 + $0x90] sm:$0xf] }
 0x2e9   : > { %10309 = vmatpush3.bf16.msra.mxu1 %v10568_v14  ;;  %10290 = vmatprep.mubr.bf16.mxu0 %v9155_v49  ;;  %v10570_v14 = vld [vmem:[%s14930_s2 + $0x1a0] sm:$0xff]   ;;  %v5850_v10 = vrot.slane %v5848_v45, 4  ;;  %v5853_v54 = vrot.slane %v5851_v62, 5  ;;  %v5859_v13 = vrot.slane %v5857_v3, 5  ;;  %v5863_v49 = vrot.slane %v5861_v30, 4 }
 0x2ea   : > { %10310 = vmatprep.subr.bf16.mxu1 %v10569_v28  ;;  %v5836_v15 = vsel %vm10731_vm3, %v5831_v35, %v5835_v60  ;;  %10367 = vmatpush3.bf16.msra.mxu0 %v10580_v37  ;;  %v5846_v44 = vsel %vm10731_vm3, %v5841_v24, %v5845_v18  ;;  %v13547_v23 = vsel %vm11145_vm6, %v6482_v36, %v6483_v17  ;;  %v5867_v53 = vshll.u32 %v13420_v42, 16  ;;  %v6350_v35 = vld [vmem:[#allocation2 + $0xa8] sm:$0xe] }
 0x2eb   : > { %v9127_v31 = vrot.slane %v6349_v21, 9  ;;  %10368 = vmatprep.subr.bf16.mxu0 %v10581_v48  ;;  %v13551_v2 = vcombine.low %v5836_v15, %v5846_v44  ;;  %v9158_v37 = vcombine.low %v13532_v32, %v13547_v23  ;;  %v6487_v27 = vrot.slane %v13534_v39, 5  ;;  %v13576_v21 = vld [vmem:[#allocation2 + $0xac] sm:$0xf] }
 0x2ec   : > { %10231 = vmatmul.mubr.bf16.gmra.mxu1 %v13349_v47  ;;  %v5854_v47 = vor.u32 %v5853_v54, %v5850_v10  ;;  %v5864_v34 = vor.u32 %v5863_v49, %v5859_v13  ;;  %v5869_v42 = vrot.slane %v5867_v53, 5  ;;  %v6490_v55 = vrot.slane %v13540_v5, 5 }
 0x2ed   : > { %10234 = vmatprep.mubr.bf16.mxu1 %v13400_v40  ;;  %10311 = vmatpush3.bf16.msra.mxu1 %v10569_v28  ;;  %v5872_v60 = vshrl.u32 %v5613_v19, 16  ;;  %v13560_v40 = vpop.f32.mrf.mxu0  ;;  %v13564_v43 = vsel %vm11145_vm6, %v9127_v31, %v6487_v27  ;;  %v6489_v56 = vrot.slane %v6487_v27, 4  ;;  %v5875_v18 = vshll.u32 %v5613_v19, 16  ;;  %v13578_v19 = vld [vmem:[#allocation2 + $0xb0] sm:$0x1] }
 0x2ee   : > { %10312 = vmatprep.subr.bf16.mxu1 %v10570_v14  ;;  %v5855_v28 = vrot.slane %v5854_v47, 4  ;;  %10369 = vmatpush3.bf16.msra.mxu0 %v10581_v48  ;;  %v5865_v50 = vrot.slane %v5864_v34, 4  ;;  %v5881_v17 = vshll.u32 %v13451_v41, 16  ;;  %v5885_v45 = vshrl.u32 %v13451_v41, 16  ;;  %v6351_v31 = vld [vmem:[#allocation2 + $0xb4] sm:$0xe] }
 0x2ef   : > { %v5874_v22 = vrot.slane %v5872_v60, 4  ;;  %v6491_v3 = vsel %vm11145_vm6, %v6489_v56, %v6490_v55  ;;  %v5877_v30 = vrot.slane %v5875_v18, 5  ;;  %v5891_v48 = vshll.u32 %v13457_v51, 16  ;;  %v10576_v51 = vld [vmem:[%s14930_s2 + $0x190] sm:$0xff]   ;;  %v5619_v47 = vld [vmem:[#allocation2 + $0x9c] sm:$0xf] }
 0x2f0   : > { %10291 = vmatmul.mubr.bf16.gmra.mxu0 %v9156_v16  ;;  %v5860_v62 = vsel %vm10731_vm3, %v5855_v28, %v5859_v13  ;;  %v5870_v33 = vsel %vm10731_vm3, %v5865_v50, %v5869_v42  ;;  %v9159_v41 = vcombine.low %v13564_v43, %v6491_v3  ;;  %v5883_v6 = vrot.slane %v5881_v17, 5  ;;  %v13603_v55 = vld [vmem:[#allocation2 + $0xb8] sm:$0xf]  ;;  %v13609_v43 = vld [vmem:[#allocation2 + $0xbc] sm:$0x1]  ;;  %v10579_v56 = vld [vmem:[%s14930_s2 + $0x188] sm:$0xff]  }
 0x2f1   : > { %10313 = vmatpush3.bf16.msra.mxu1 %v10570_v14  ;;  %10294 = vmatprep.mubr.bf16.mxu0 %v9157_v58  ;;  %v5887_v16 = vrot.slane %v5885_v45, 4  ;;  %v13589_v14 = vpop.f32.mrf.mxu0  ;;  %v13591_v24 = vcombine.low %v5860_v62, %v5870_v33  ;;  %v5878_v36 = vor.u32 %v5877_v30, %v5874_v22  ;;  %v5893_v10 = vrot.slane %v5891_v48, 5 }
 0x2f2   : > { %10314 = vmatprep.subr.bf16.mxu1 %v10573_v61  ;;  %v9128_v11 = vrot.slane %v6350_v35, 9  ;;  %v6494_v58 = vrot.slane %v13576_v21, 5  ;;  %v6497_v15 = vrot.slane %v13578_v19, 5  ;;  %v5896_v54 = vshrl.u32 %v5616_v8, 16 }
 0x2f3   : > { %v5888_v52 = vor.u32 %v5887_v16, %v5883_v6  ;;  %v5879_v13 = vrot.slane %v5878_v36, 4  ;;  %v5899_v49 = vshll.u32 %v5616_v8, 16  ;;  %v5905_v44 = vshll.u32 %v13492_v59, 16 }
 0x2f4   : > { %10235 = vmatmul.mubr.bf16.gmra.mxu1 %v13432_v7  ;;  %v5909_v53 = vshrl.u32 %v13492_v59, 16  ;;  %v13601_v7 = vsel %vm11145_vm6, %v9128_v11, %v6494_v58  ;;  %v6496_v34 = vrot.slane %v6494_v58, 4  ;;  %v5898_v42 = vrot.slane %v5896_v54, 4 }
 0x2f5   : > { %10238 = vmatprep.mubr.bf16.mxu1 %v13462_v20  ;;  %10315 = vmatpush3.bf16.msra.mxu1 %v10573_v61  ;;  %v5889_v27 = vrot.slane %v5888_v52, 4  ;;  %v13605_v20 = vpop.f32.mrf.mxu0  ;;  %v5884_v61 = vsel %vm10731_vm3, %v5879_v13, %v5883_v6  ;;  %v5901_v60 = vrot.slane %v5899_v49, 5  ;;  %v5907_v28 = vrot.slane %v5905_v44, 5  ;;  %v13637_v52 = vld [vmem:[#allocation2 + $0xc4] sm:$0xf] }
 0x2f6   : > { %10316 = vmatprep.subr.bf16.mxu1 %v10576_v51  ;;  %v5911_v59 = vrot.slane %v5909_v53, 4  ;;  %v6498_v8 = vsel %vm11145_vm6, %v6496_v34, %v6497_v15  ;;  %v5915_v50 = vshll.u32 %v13503_v4, 16  ;;  %v9129_v22 = vrot.slane %v6351_v31, 9  ;;  %v6352_v4 = vld [vmem:[#allocation2 + $0xc0] sm:$0xe] }
 0x2f7   : > { %v5894_v18 = vsel %vm10731_vm3, %v5889_v27, %v5893_v10  ;;  %v9160_v45 = vcombine.low %v13601_v7, %v6498_v8  ;;  %v5902_v35 = vor.u32 %v5901_v60, %v5898_v42  ;;  %v6501_v30 = vrot.slane %v13603_v55, 5  ;;  %v13627_v6 = vpop.f32.mrf.mxu0  ;;  %v5622_v49 = vld [vmem:[#allocation2 + $0xa8] sm:$0xf]  ;;  %v13657_v42 = vld [vmem:[%s14930_s2 + $0x238] sm:$0xff]  }
 0x2f8   : > { %10295 = vmatmul.mubr.bf16.gmra.mxu0 %v9158_v37  ;;  %v13622_v17 = vcombine.low %v5884_v61, %v5894_v18  ;;  %v5912_v62 = vor.u32 %v5911_v59, %v5907_v28  ;;  %v5917_v3 = vrot.slane %v5915_v50, 5  ;;  %v6504_v48 = vrot.slane %v13609_v43, 5 }
 0x2f9   : > { %10298 = vmatprep.mubr.bf16.mxu0 %v9159_v41  ;;  %10317 = vmatpush3.bf16.msra.mxu1 %v10576_v51  ;;  %v5920_v33 = vshrl.u32 %v5619_v47, 16  ;;  %v5903_v16 = vrot.slane %v5902_v35, 4  ;;  %v5923_v23 = vshll.u32 %v5619_v47, 16  ;;  %v5929_v37 = vshll.u32 %v13534_v39, 16  ;;  %v10582_v41 = vld [vmem:[%s14930_s2 + $0x180] sm:$0xff]  }
 0x2fa   : > { %v5913_v32 = vrot.slane %v5912_v62, 4  ;;  %10318 = vmatprep.subr.bf16.mxu1 %v10579_v56  ;;  %v6502_v36 = vsel %vm11145_vm6, %v9129_v22, %v6501_v30  ;;  %v6503_v51 = vrot.slane %v6501_v30, 4  ;;  %v5933_v11 = vshrl.u32 %v13534_v39, 16 }
 0x2fb   : > { %v5922_v10 = vrot.slane %v5920_v33, 4  ;;  %v5908_v58 = vsel %vm10731_vm3, %v5903_v16, %v5907_v28  ;;  %v5925_v54 = vrot.slane %v5923_v23, 5  ;;  %v5931_v13 = vrot.slane %v5929_v37, 5  ;;  %v13671_v16 = vld [vmem:[#allocation2 + $0x1c] sm:$0xf] }
 0x2fc   : > { %10239 = vmatmul.mubr.bf16.gmra.mxu1 %v13512_v0  ;;  %v5918_v15 = vsel %vm10731_vm3, %v5913_v32, %v5917_v3  ;;  %v13644_v0 = vld [vmem:[#allocation2 + $0xc8] sm:$0x1]  ;;  %v6505_v39 = vsel %vm11145_vm6, %v6503_v51, %v6504_v48  ;;  %v5935_v53 = vrot.slane %v5933_v11, 4  ;;  %v5939_v31 = vshll.u32 %v13540_v5, 16  ;;  %v7222_v3 = vld [vmem:[#allocation2 + $0x18] sm:$0xf] }
 0x2fd   : > { %10242 = vmatprep.mubr.bf16.mxu1 %v13551_v2  ;;  %v13646_v44 = vcombine.low %v5908_v58, %v5918_v15  ;;  %10319 = vmatpush3.bf16.msra.mxu1 %v10579_v56  ;;  %v13651_v2 = vpop.f32.mrf.mxu0  ;;  %v9161_v47 = vcombine.low %v6502_v36, %v6505_v39  ;;  %v5926_v27 = vor.u32 %v5925_v54, %v5922_v10  ;;  %v9130_v7 = vrot.slane %v6352_v4, 9  ;;  %v5625_v36 = vld [vmem:[#allocation2 + $0xb4] sm:$0xf] }
 0x2fe   : > { %v6508_v34 = vrot.slane %v13637_v52, 5  ;;  %10320 = vmatprep.subr.bf16.mxu1 %v10582_v41  ;;  %v5936_v61 = vor.u32 %v5935_v53, %v5931_v13  ;;  %v5941_v60 = vrot.slane %v5939_v31, 5  ;;  %v6511_v28 = vrot.slane %v13644_v0, 5 }
 0x2ff   : > { %v5944_v59 = vshrl.u32 %v5622_v49, 16  ;;  %v5927_v5 = vrot.slane %v5926_v27, 4  ;;  %v5947_v8 = vshll.u32 %v5622_v49, 16  ;;  %v5953_v35 = vshll.u32 %v13576_v21, 16  ;;  %v13664_v30 = vpop.f32.mrf.mxu0 }
 0x300   : > { %10299 = vmatmul.mubr.bf16.gmra.mxu0 %v9160_v45  ;;  %v6509_v56 = vsel %vm11145_vm6, %v9130_v7, %v6508_v34  ;;  %v6510_v18 = vrot.slane %v6508_v34, 4  ;;  %v5937_v50 = vrot.slane %v5936_v61, 4  ;;  %v5957_v62 = vshrl.u32 %v13576_v21, 16 }
 0x301   : > { %10302 = vmatprep.mubr.bf16.mxu0 %v9161_v47  ;;  %v5946_v22 = vrot.slane %v5944_v59, 4  ;;  %10321 = vmatpush3.bf16.msra.mxu1 %v10582_v41  ;;  %v5932_v45 = vsel %vm10731_vm3, %v5927_v5, %v5931_v13  ;;  %v5949_v33 = vrot.slane %v5947_v8, 5  ;;  %v5963_v4 = vshll.u32 %v13578_v19, 16  ;;  %v13677_v41 = vld [vmem:[#allocation2 + $0x20] sm:$0x1]  ;;  %v13682_v13 = vpop.f32.mrf.mxu1  ;;  %v13684_v49 = vpop.f32.mrf.mxu0 }
 0x302   : > { %v6512_v48 = vsel %vm11145_vm6, %v6510_v18, %v6511_v28  ;;  %10402 = vmatprep.subr.bf16.mxu1 %v13657_v42  ;;  %v5942_v21 = vsel %vm10731_vm3, %v5937_v50, %v5941_v60  ;;  %v5955_v23 = vrot.slane %v5953_v35, 5  ;;  %v5959_v37 = vrot.slane %v5957_v62, 4  ;;  %15289 = vst [vmem:[#allocation29_spill] sm:$0xff] %v13684_v49  ;;  %v7225_v5 = vld [vmem:[#allocation2 + $0x24] sm:$0xf] }
 0x303   : > { %v9162_v32 = vcombine.low %v6509_v56, %v6512_v48  ;;  %v9103_v51 = vcombine.low %v5932_v45, %v5942_v21  ;;  %v5950_v10 = vor.u32 %v5949_v33, %v5946_v22  ;;  %v5965_v19 = vrot.slane %v5963_v4, 5  ;;  %v13692_v22 = vpop.f32.mrf.mxu1  ;;  %v13694_v35 = vpop.f32.mrf.mxu0  ;;  %v13698_v33 = vld [vmem:[#allocation2 + $0x28] sm:$0xf] }
 0x304   : > { %10243 = vmatmul.mubr.bf16.gmra.mxu1 %v13591_v24  ;;  %v7271_v11 = vshrl.u32 %v7222_v3, 16  ;;  %v5960_v58 = vor.u32 %v5959_v37, %v5955_v23  ;;  %v7274_v15 = vshll.u32 %v7222_v3, 16  ;;  %v7280_v54 = vshll.u32 %v13671_v16, 16 }
 0x305   : > { %10246 = vmatprep.mubr.bf16.mxu1 %v13622_v17  ;;  %v7284_v24 = vshrl.u32 %v13671_v16, 16  ;;  %v5951_v39 = vrot.slane %v5950_v10, 4  ;;  %v7290_v31 = vshll.u32 %v13677_v41, 16  ;;  %v5968_v47 = vshrl.u32 %v5625_v36, 16 }
 0x306   : > { %v7273_v53 = vrot.slane %v7271_v11, 4  ;;  %v5961_v17 = vrot.slane %v5960_v58, 4  ;;  %v7276_v27 = vrot.slane %v7274_v15, 5  ;;  %v7282_v7 = vrot.slane %v7280_v54, 5  ;;  %v5628_v58 = vld [vmem:[#allocation2 + $0xc0] sm:$0xf]  ;;  %v13708_v54 = vpop.f32.mrf.mxu1 }
 0x307   : > { %v7286_v34 = vrot.slane %v7284_v24, 4  ;;  %v5956_v61 = vsel %vm10731_vm3, %v5951_v39, %v5955_v23  ;;  %v7292_v60 = vrot.slane %v7290_v31, 5  ;;  %v5970_v28 = vrot.slane %v5968_v47, 4  ;;  %v13701_v23 = vld [vmem:[#allocation2 + $0x2c] sm:$0x1]  ;;  %v13710_v24 = vpop.f32.mrf.mxu0 }
 0x308   : > { %10303 = vmatmul.mubr.bf16.gmra.mxu0 %v9162_v32  ;;  %v5971_v59 = vshll.u32 %v5625_v36, 16  ;;  %v5966_v56 = vsel %vm10731_vm3, %v5961_v17, %v5965_v19  ;;  %v7277_v18 = vor.u32 %v7276_v27, %v7273_v53  ;;  %v5977_v50 = vshll.u32 %v13603_v55, 16 }
 0x309   : > { %v7287_v8 = vor.u32 %v7286_v34, %v7282_v7  ;;  %v9104_v62 = vcombine.low %v5956_v61, %v5966_v56  ;;  %v5981_v45 = vshrl.u32 %v13603_v55, 16  ;;  %v5987_v48 = vshll.u32 %v13609_v43, 16 }
 0x30a   : > { %v5973_v3 = vrot.slane %v5971_v59, 5  ;;  %v7278_v4 = vrot.slane %v7277_v18, 4  ;;  %v5979_v32 = vrot.slane %v5977_v50, 5  ;;  %v7295_v37 = vshrl.u32 %v7225_v5, 16  ;;  %v13717_v50 = vpop.f32.mrf.mxu1 }
 0x30b   : > { %v7288_v21 = vrot.slane %v7287_v8, 4  ;;  %v5983_v10 = vrot.slane %v5981_v45, 4  ;;  %v5989_v19 = vrot.slane %v5987_v48, 5  ;;  %v7298_v11 = vshll.u32 %v7225_v5, 16  ;;  %v7228_v8 = vld [vmem:[#allocation2 + $0x30] sm:$0xf] }
 0x30c   : > { %10247 = vmatmul.mubr.bf16.gmra.mxu1 %v13646_v44  ;;  %v5974_v36 = vor.u32 %v5973_v3, %v5970_v28  ;;  %v7283_v55 = vsel %vm10731_vm3, %v7278_v4, %v7282_v7  ;;  %v7297_v15 = vrot.slane %v7295_v37, 4  ;;  %v7304_v44 = vshll.u32 %v13698_v33, 16  ;;  %v13719_v3 = vpop.f32.mrf.mxu0 }
 0x30d   : > { %10250 = vmatprep.mubr.bf16.mxu1 %v9103_v51  ;;  %v7293_v43 = vsel %vm10731_vm3, %v7288_v21, %v7292_v60  ;;  %v5984_v53 = vor.u32 %v5983_v10, %v5979_v32  ;;  %v7300_v31 = vrot.slane %v7298_v11, 5  ;;  %v7308_v17 = vshrl.u32 %v13698_v33, 16 }
 0x30e   : > { %v9227_v39 = vcombine.low %v7283_v55, %v7293_v43  ;;  %v5975_v51 = vrot.slane %v5974_v36, 4  ;;  %v7306_v47 = vrot.slane %v7304_v44, 5  ;;  %v7314_v27 = vshll.u32 %v13701_v23, 16 }
 0x30f   : > { %v5992_v7 = vshrl.u32 %v5628_v58, 16  ;;  %v5985_v61 = vrot.slane %v5984_v53, 4  ;;  %v7301_v60 = vor.u32 %v7300_v31, %v7297_v15  ;;  %v5995_v28 = vshll.u32 %v5628_v58, 16  ;;  %v13729_v15 = vld [vmem:[#allocation2 + $0x38] sm:$0x1]  ;;  %v13734_v53 = vpop.f32.mrf.mxu0 }
 0x310   : > { %10370 = vmatprep.mubr.bf16.mxu0 %v9227_v39  ;;  %v5980_v34 = vsel %vm10731_vm3, %v5975_v51, %v5979_v32  ;;  %v7310_v59 = vrot.slane %v7308_v17, 4  ;;  %v7316_v5 = vrot.slane %v7314_v27, 5  ;;  %v6001_v18 = vshll.u32 %v13637_v52, 16  ;;  %v13724_v32 = vld [vmem:[#allocation2 + $0x34] sm:$0xf] }
 0x311   : > { %v5994_v56 = vrot.slane %v5992_v7, 4  ;;  %v5990_v45 = vsel %vm10731_vm3, %v5985_v61, %v5989_v19  ;;  %v7302_v48 = vrot.slane %v7301_v60, 4  ;;  %v5997_v4 = vrot.slane %v5995_v28, 5  ;;  %v7231_v27 = vld [vmem:[#allocation2 + $0x3c] sm:$0xf] }
 0x312   : > { %v6005_v21 = vshrl.u32 %v13637_v52, 16  ;;  %v9105_v37 = vcombine.low %v5980_v34, %v5990_v45  ;;  %v7311_v36 = vor.u32 %v7310_v59, %v7306_v47  ;;  %v6003_v10 = vrot.slane %v6001_v18, 5  ;;  %v13740_v28 = vld [vmem:[#allocation2 + $0x40] sm:$0xf] }
 0x313   : > { %v6011_v11 = vshll.u32 %v13644_v0, 16  ;;  %v7307_v58 = vsel %vm10731_vm3, %v7302_v48, %v7306_v47  ;;  %v5998_v55 = vor.u32 %v5997_v4, %v5994_v56  ;;  %v7319_v19 = vshrl.u32 %v7228_v8, 16  ;;  %v13744_v4 = vld [vmem:[#allocation2 + $0x44] sm:$0x1] }
 0x314   : > { %10251 = vmatmul.mubr.bf16.gmra.mxu1 %v9104_v62  ;;  %v6007_v43 = vrot.slane %v6005_v21, 4  ;;  %v7312_v44 = vrot.slane %v7311_v36, 4  ;;  %v7322_v52 = vshll.u32 %v7228_v8, 16  ;;  %v7328_v51 = vshll.u32 %v13724_v32, 16  ;;  %v13732_v62 = vpop.f32.mrf.mxu1 }
 0x315   : > { %10254 = vmatprep.mubr.bf16.mxu1 %v9105_v37  ;;  %v6013_v39 = vrot.slane %v6011_v11, 5  ;;  %v5999_v31 = vrot.slane %v5998_v55, 4  ;;  %v7321_v17 = vrot.slane %v7319_v19, 4  ;;  %v7332_v47 = vshrl.u32 %v13724_v32, 16 }
 0x316   : > { %v6008_v0 = vor.u32 %v6007_v43, %v6003_v10  ;;  %v7317_v7 = vsel %vm10731_vm3, %v7312_v44, %v7316_v5  ;;  %v7324_v34 = vrot.slane %v7322_v52, 5  ;;  %v7330_v61 = vrot.slane %v7328_v51, 5  ;;  %v13746_v36 = vpop.f32.mrf.mxu1  ;;  %v13748_v5 = vpop.f32.mrf.mxu0  ;;  %v7234_v43 = vld [vmem:[#allocation2 + $0x48] sm:$0xf]  ;;  %v10583_v52 = vld [vmem:[#allocation2 + $0x18] sm:$0xff]  }
 0x317   : > { %v7338_v60 = vshll.u32 %v13729_v15, 16  ;;  %v9228_v59 = vcombine.low %v7307_v58, %v7317_v7  ;;  %v6004_v56 = vsel %vm10731_vm3, %v5999_v31, %v6003_v10  ;;  %v7334_v8 = vrot.slane %v7332_v47, 4  ;;  %v13755_v7 = vld [vmem:[#allocation2 + $0x4c] sm:$0xf] }
 0x318   : > { %v6009_v18 = vrot.slane %v6008_v0, 4  ;;  %v7325_v45 = vor.u32 %v7324_v34, %v7321_v17  ;;  %v7343_v21 = vshrl.u32 %v7231_v27, 16  ;;  %v7346_v37 = vshll.u32 %v7231_v27, 16 }
 0x319   : > { %v7340_v48 = vrot.slane %v7338_v60, 5  ;;  %10371 = vmatmul.mubr.bf16.vlgmr.msra.gmra.mxu0 %v9228_v59  ;;  %v7335_v58 = vor.u32 %v7334_v8, %v7330_v61  ;;  %v7352_v55 = vshll.u32 %v13740_v28, 16  ;;  %v7356_v10 = vshrl.u32 %v13740_v28, 16  ;;  %v13763_v59 = vld [vmem:[#allocation2 + $0x50] sm:$0x1]  ;;  %v13767_v8 = vpop.f32.mrf.mxu0 }
 0x31a   : > { %v6014_v11 = vsel %vm10731_vm3, %v6009_v18, %v6013_v39  ;;  %v7326_v44 = vrot.slane %v7325_v45, 4  ;;  %v7345_v51 = vrot.slane %v7343_v21, 4  ;;  %v7348_v31 = vrot.slane %v7346_v37, 5  ;;  %v13765_v18 = vpop.f32.mrf.mxu1 }
 0x31b   : > { %v9106_v19 = vcombine.low %v6004_v56, %v6014_v11  ;;  %v7336_v0 = vrot.slane %v7335_v58, 4  ;;  %v7354_v17 = vrot.slane %v7352_v55, 5  ;;  %v7358_v47 = vrot.slane %v7356_v10, 4 }
 0x31c   : > { %v7362_v27 = vshll.u32 %v13744_v4, 16  ;;  %v7331_v39 = vsel %vm10731_vm3, %v7326_v44, %v7330_v61  ;;  %v7349_v34 = vor.u32 %v7348_v31, %v7345_v51  ;;  %v13761_v60 = vadd.f32 %v13536_v25, %v13682_v13  ;;  %v7237_v51 = vld [vmem:[#allocation2 + $0x54] sm:$0xf] }
 0x31d   : > { %10255 = vmatmul.mubr.bf16.gmra.mxu1 %v9106_v19  ;;  %v7367_v56 = vshrl.u32 %v7234_v43, 16  ;;  %v7341_v45 = vsel %vm10731_vm3, %v7336_v0, %v7340_v48  ;;  %v7359_v21 = vor.u32 %v7358_v47, %v7354_v17  ;;  %v7370_v11 = vshll.u32 %v7234_v43, 16  ;;  %v13784_v0 = vpop.f32.mrf.mxu1  ;;  %v13786_v47 = vpop.f32.mrf.mxu0 }
 0x31e   : > { %10322 = vmatprep.mubr.bf16.mxu1 %v10583_v52  ;;  %v7364_v37 = vrot.slane %v7362_v27, 5  ;;  %v9229_v61 = vcombine.low %v7331_v39, %v7341_v45  ;;  %v7350_v58 = vrot.slane %v7349_v34, 4  ;;  %v7376_v25 = vshll.u32 %v13755_v7, 16  ;;  %v13782_v52 = vld [vmem:[#allocation2 + $0x58] sm:$0xf]  ;;  %15290 = vst [vmem:[#allocation34_spill] sm:$0xff] %v13784_v0 }
 0x31f   : > { %v7369_v55 = vrot.slane %v7367_v56, 4  ;;  %v7360_v13 = vrot.slane %v7359_v21, 4  ;;  %v7372_v10 = vrot.slane %v7370_v11, 5  ;;  %v7380_v19 = vshrl.u32 %v13755_v7, 16  ;;  %v10585_v45 = vld [vmem:[#allocation2 + $0x24] sm:$0xff]   ;;  %v10587_v11 = vld [vmem:[%s14930_s2 + $0x230] sm:$0xff]  }
 0x320   : > { %v7386_v44 = vshll.u32 %v13763_v59, 16  ;;  %10374 = vmatprep.mubr.bf16.mxu0 %v9229_v61  ;;  %v7378_v31 = vrot.slane %v7376_v25, 5  ;;  %v13776_v48 = vadd.f32 %v13560_v40, %v13692_v22  ;;  %v13780_v43 = vadd.f32 %v13589_v14, %v13708_v54  ;;  %v13792_v40 = vld [vmem:[#allocation2 + $0x5c] sm:$0x1] }
 0x321   : > { %v7355_v27 = vsel %vm10731_vm3, %v7350_v58, %v7354_v17  ;;  %v7365_v39 = vsel %vm10731_vm3, %v7360_v13, %v7364_v37  ;;  %v7373_v34 = vor.u32 %v7372_v10, %v7369_v55  ;;  %v7382_v56 = vrot.slane %v7380_v19, 4  ;;  %v7240_v58 = vld [vmem:[#allocation2 + $0x60] sm:$0xf] }
 0x322   : > { %v9230_v22 = vcombine.low %v7355_v27, %v7365_v39  ;;  %v7388_v14 = vrot.slane %v7386_v44, 5  ;;  %v7391_v54 = vshrl.u32 %v7237_v51, 16  ;;  %v7394_v21 = vshll.u32 %v7237_v51, 16  ;;  %v13804_v44 = vld [vmem:[#allocation2 + $0x64] sm:$0xf]  ;;  %v13808_v27 = vpop.f32.mrf.mxu0 }
 0x323   : > { %v7374_v61 = vrot.slane %v7373_v34, 4  ;;  %v7383_v25 = vor.u32 %v7382_v56, %v7378_v31  ;;  %v7400_v17 = vshll.u32 %v13782_v52, 16  ;;  %v7404_v37 = vshrl.u32 %v13782_v52, 16  ;;  %v13806_v51 = vpop.f32.mrf.mxu1 }
 0x324   : > { %10375 = vmatmul.mubr.bf16.gmra.mxu0 %v9230_v22  ;;  %v7393_v55 = vrot.slane %v7391_v54, 4  ;;  %v7396_v13 = vrot.slane %v7394_v21, 5  ;;  %v7410_v10 = vshll.u32 %v13792_v40, 16  ;;  %v13802_v19 = vadd.f32 %v13627_v6, %v13732_v62  ;;  %v13813_v6 = vld [vmem:[#allocation2 + $0x68] sm:$0x1] }
 0x325   : > { %10323 = vmatmul.mubr.bf16.vlgmr.msra.gmra.mxu1 %v10585_v45  ;;  %v7379_v39 = vsel %vm10731_vm3, %v7374_v61, %v7378_v31  ;;  %v7384_v34 = vrot.slane %v7383_v25, 4  ;;  %v7402_v56 = vrot.slane %v7400_v17, 5  ;;  %v7406_v22 = vrot.slane %v7404_v37, 4  ;;  %v10588_v25 = vld [vmem:[#allocation2 + $0x3c] sm:$0xff]  }
 0x326   : > { %15291 = vst [vmem:[#allocation44_spill] sm:$0xff] %v13802_v19  ;;  %10403 = vmatpush3.bf16.msra.mxu1 %v13657_v42  ;;  %10326 = vmatprep.mubr.bf16.mxu1 %v10586_v46  ;;  %v7397_v45 = vor.u32 %v7396_v13, %v7393_v55  ;;  %v7412_v54 = vrot.slane %v7410_v10, 5  ;;  %v7415_v62 = vshrl.u32 %v7240_v58, 16  ;;  %v7418_v21 = vshll.u32 %v7240_v58, 16  ;;  %v10590_v46 = vld [vmem:[%s14930_s2 + $0x228] sm:$0xff]   ;;  %v13822_v55 = vpop.f32.mrf.mxu1 }
 0x327   : > { %10404 = vmatprep.subr.bf16.mxu1 %v10587_v11  ;;  %v7389_v9 = vsel %vm10731_vm3, %v7384_v34, %v7388_v14  ;;  %v7407_v26 = vor.u32 %v7406_v22, %v7402_v56  ;;  %v7424_v1 = vshll.u32 %v13804_v44, 16  ;;  %v7428_v31 = vshrl.u32 %v13804_v44, 16  ;;  %v13824_v58 = vpop.f32.mrf.mxu0  ;;  %v7243_v22 = vld [vmem:[#allocation2 + $0x6c] sm:$0xf] }
 0x328   : > { %v9231_v42 = vcombine.low %v7379_v39, %v7389_v9  ;;  %v7398_v61 = vrot.slane %v7397_v45, 4  ;;  %v7417_v17 = vrot.slane %v7415_v62, 4  ;;  %v7420_v37 = vrot.slane %v7418_v21, 5  ;;  %v13835_v45 = vld [vmem:[#allocation2 + $0x70] sm:$0xf]  ;;  %v10045_v38 = vpop.f32.mrf.mxu1 }
 0x329   : > { %v7408_v13 = vrot.slane %v7407_v26, 4  ;;  %v7426_v14 = vrot.slane %v7424_v1, 5  ;;  %v7430_v10 = vrot.slane %v7428_v31, 4  ;;  %v7434_v34 = vshll.u32 %v13813_v6, 16  ;;  %v13837_v62 = vld [vmem:[#allocation2 + $0x74] sm:$0x1]  ;;  %v13842_v26 = vpop.f32.mrf.mxu0 }
 0x32a   : > { %10405 = vmatpush3.bf16.msra.mxu1 %v10587_v11  ;;  %10378 = vmatprep.mubr.bf16.mxu0 %v9231_v42  ;;  %v7421_v29 = vor.u32 %v7420_v37, %v7417_v17  ;;  %v13829_v9 = vadd.f32 %v13651_v2, %v13746_v36  ;;  %v13833_v39 = vadd.f32 %v13664_v30, %v13765_v18  ;;  %v10593_v1 = vld [vmem:[%s14930_s2 + $0x220] sm:$0xff]   ;;  %v10589_v30 = vld [vmem:[#allocation2 + $0x48] sm:$0xff]   ;;  %v7439_v42 = vshrl.u32 %v7243_v22, 16  ;;  %v7246_v37 = vld [vmem:[#allocation2 + $0x78] sm:$0xf] }
 0x32b   : > { %v7403_v11 = vsel %vm10731_vm3, %v7398_v61, %v7402_v56  ;;  %v7413_v2 = vsel %vm10731_vm3, %v7408_v13, %v7412_v54  ;;  %v7431_v36 = vor.u32 %v7430_v10, %v7426_v14  ;;  %v7436_v21 = vrot.slane %v7434_v34, 5  ;;  %10406 = vmatprep.subr.bf16.mxu1 %v10590_v46  ;;  %v13851_v54 = vld [vmem:[#allocation2 + $0x7c] sm:$0xf]  ;;  %v13859_v34 = vld [vmem:[#allocation2 + $0x80] sm:$0x1] }
 0x32c   : > { %15292 = vst [vmem:[#allocation37_spill] sm:$0xff] %v13829_v9  ;;  %15293 = vst [vmem:[#allocation40_spill] sm:$0xff] %v13833_v39  ;;  %v9232_v18 = vcombine.low %v7403_v11, %v7413_v2  ;;  %v7422_v31 = vrot.slane %v7421_v29, 4  ;;  %v7442_v17 = vshll.u32 %v7243_v22, 16  ;;  %v7448_v39 = vshll.u32 %v13835_v45, 16  ;;  %v13861_v22 = vpop.f32.mrf.mxu0  ;;  %v10596_v11 = vld [vmem:[%s14930_s2 + $0x218] sm:$0xff]  }
 0x32d   : > { %10327 = vmatmul.mubr.bf16.gmra.mxu1 %v10588_v25  ;;  %v7432_v12 = vrot.slane %v7431_v36, 4  ;;  %v7452_v56 = vshrl.u32 %v13835_v45, 16  ;;  %v7458_v61 = vshll.u32 %v13837_v62, 16  ;;  %v7441_v29 = vrot.slane %v7439_v42, 4  ;;  %v10592_v9 = vld [vmem:[#allocation2 + $0x60] sm:$0xff]  }
 0x32e   : > { %10330 = vmatprep.mubr.bf16.mxu1 %v10589_v30  ;;  %10407 = vmatpush3.bf16.msra.mxu1 %v10590_v46  ;;  %v7427_v25 = vsel %vm10731_vm3, %v7422_v31, %v7426_v14  ;;  %v7444_v13 = vrot.slane %v7442_v17, 5  ;;  %v13857_v10 = vadd.f32 %v13694_v35, %v13806_v51  ;;  %v7450_v2 = vrot.slane %v7448_v39, 5  ;;  %v4318_v51 = vpop.f32.mrf.mxu1  ;;  %v10591_v17 = vld [vmem:[#allocation2 + $0x54] sm:$0xff]  }
 0x32f   : > { %10379 = vmatmul.mubr.bf16.gmra.mxu0 %v9232_v18  ;;  %10408 = vmatprep.subr.bf16.mxu1 %v10593_v1  ;;  %v7437_v46 = vsel %vm10731_vm3, %v7432_v12, %v7436_v21  ;;  %v7454_v14 = vrot.slane %v7452_v56, 4  ;;  %v7460_v36 = vrot.slane %v7458_v61, 5  ;;  %v7463_v31 = vshrl.u32 %v7246_v37, 16  ;;  %v13875_v61 = vpop.f32.mrf.mxu0 }
 0x330   : > { %15294 = vst [vmem:[#allocation41_spill] sm:$0xff] %v13857_v10  ;;  %v9233_v30 = vcombine.low %v7427_v25, %v7437_v46  ;;  %v7445_v18 = vor.u32 %v7444_v13, %v7441_v29  ;;  %v7466_v35 = vshll.u32 %v7246_v37, 16  ;;  %v7472_v10 = vshll.u32 %v13851_v54, 16  ;;  %v7249_v37 = vld [vmem:[#allocation2 + $0x84] sm:$0xf]  ;;  %v10599_v25 = vld [vmem:[%s14930_s2 + $0x210] sm:$0xff]  }
 0x331   : > { %v7455_v42 = vor.u32 %v7454_v14, %v7450_v2  ;;  %v7476_v49 = vshrl.u32 %v13851_v54, 16  ;;  %v7482_v0 = vshll.u32 %v13859_v34, 16  ;;  %v7465_v39 = vrot.slane %v7463_v31, 4  ;;  %v13880_v14 = vld [vmem:[#allocation2 + $0x88] sm:$0xf] }
 0x332   : > { %10409 = vmatpush3.bf16.msra.mxu1 %v10593_v1  ;;  %10382 = vmatprep.mubr.bf16.mxu0 %v9233_v30  ;;  %v7446_v12 = vrot.slane %v7445_v18, 4  ;;  %v7468_v21 = vrot.slane %v7466_v35, 5  ;;  %v13873_v56 = vadd.f32 %v13710_v24, %v13822_v55  ;;  %v7474_v13 = vrot.slane %v7472_v10, 5  ;;  %v13890_v31 = vld [vmem:[#allocation2 + $0x8c] sm:$0x1]  ;;  %v10048_v35 = vpop.f32.mrf.mxu1 }
 0x333   : > { %10410 = vmatprep.subr.bf16.mxu1 %v10596_v11  ;;  %v7456_v29 = vrot.slane %v7455_v42, 4  ;;  %v7478_v46 = vrot.slane %v7476_v49, 4  ;;  %v7484_v1 = vrot.slane %v7482_v0, 5  ;;  %v13885_v55 = vadd.f32 %v13719_v3, %v10045_v38  ;;  %15298 = vst [vmem:[#allocation51_spill] sm:$0xff] %v13890_v31  ;;  %v7252_v3 = vld [vmem:[#allocation2 + $0x90] sm:$0xf] }
 0x334   : > { %15295 = vst [vmem:[#allocation42_spill] sm:$0xff] %v13873_v56  ;;  %v7451_v30 = vsel %vm10731_vm3, %v7446_v12, %v7450_v2  ;;  %v7469_v24 = vor.u32 %v7468_v21, %v7465_v39  ;;  %v13888_v18 = vadd.f32 %v13734_v53, %v4318_v51  ;;  %v7487_v10 = vshrl.u32 %v7249_v37, 16  ;;  %v4331_v53 = vpop.f32.mrf.mxu1  ;;  %v13896_v51 = vpop.f32.mrf.mxu0 }
 0x335   : > { %10331 = vmatmul.mubr.bf16.gmra.mxu1 %v10591_v17  ;;  %15296 = vst [vmem:[#allocation43_spill] sm:$0xff] %v13885_v55  ;;  %v7461_v49 = vsel %vm10731_vm3, %v7456_v29, %v7460_v36  ;;  %v7479_v0 = vor.u32 %v7478_v46, %v7474_v13  ;;  %v7490_v42 = vshll.u32 %v7249_v37, 16  ;;  %v7496_v12 = vshll.u32 %v13880_v14, 16  ;;  %v10602_v36 = vld [vmem:[%s14930_s2 + $0x208] sm:$0xff]   ;;  %v13902_v37 = vld [vmem:[#allocation2 + $0x94] sm:$0xf] }
 0x336   : > { %15297 = vst [vmem:[#allocation45_spill] sm:$0xff] %v13888_v18  ;;  %10334 = vmatprep.mubr.bf16.mxu1 %v10592_v9  ;;  %10411 = vmatpush3.bf16.msra.mxu1 %v10596_v11  ;;  %v9234_v2 = vcombine.low %v7451_v30, %v7461_v49  ;;  %v7470_v17 = vrot.slane %v7469_v24, 4  ;;  %v7500_v38 = vshrl.u32 %v13880_v14, 16  ;;  %v7489_v9 = vrot.slane %v7487_v10, 4  ;;  %15299 = vst [vmem:[#allocation46_spill] sm:$0xff] %v13902_v37  ;;  %v10049_v18 = vpop.f32.mrf.mxu1  ;;  %v13911_v55 = vpop.f32.mrf.mxu0 }
 0x337   : > { %10412 = vmatprep.subr.bf16.mxu1 %v10599_v25  ;;  %v7480_v39 = vrot.slane %v7479_v0, 4  ;;  %v7492_v21 = vrot.slane %v7490_v42, 5  ;;  %v7506_v11 = vshll.u32 %v13890_v31, 16  ;;  %v7498_v46 = vrot.slane %v7496_v12, 5  ;;  %v13909_v49 = vld [vmem:[#allocation2 + $0x98] sm:$0x1] }
 0x338   : > { %10383 = vmatmul.mubr.bf16.gmra.mxu0 %v9234_v2  ;;  %v7475_v29 = vsel %vm10731_vm3, %v7470_v17, %v7474_v13  ;;  %v7502_v30 = vrot.slane %v7500_v38, 4  ;;  %v13907_v24 = vadd.f32 %v13748_v5, %v10048_v35  ;;  %15301 = vst [vmem:[#allocation47_spill] sm:$0xff] %v13909_v49  ;;  %v7511_v56 = vshrl.u32 %v7252_v3, 16  ;;  %v10594_v13 = vld [vmem:[#allocation2 + $0x6c] sm:$0xff]   ;;  %v10595_v5 = vld [vmem:[#allocation2 + $0x78] sm:$0xff]   ;;  %v13916_v35 = vpop.f32.mrf.mxu0  ;;  %v10605_v38 = vld [vmem:[%s14930_s2 + $0x200] sm:$0xff]  }
 0x339   : > { %v7485_v0 = vsel %vm10731_vm3, %v7480_v39, %v7484_v1  ;;  %v7493_v10 = vor.u32 %v7492_v21, %v7489_v9  ;;  %v7508_v42 = vrot.slane %v7506_v11, 5  ;;  %v7514_v17 = vshll.u32 %v7252_v3, 16  ;;  %v4334_v9 = vpop.f32.mrf.mxu1  ;;  %v7255_v21 = vld [vmem:[#allocation2 + $0x9c] sm:$0xf] }
 0x33a   : > { %15300 = vst [vmem:[#allocation53_spill] sm:$0xff] %v13907_v24  ;;  %10413 = vmatpush3.bf16.msra.mxu1 %v10599_v25  ;;  %v9235_v2 = vcombine.low %v7475_v29, %v7485_v0  ;;  %v7503_v31 = vor.u32 %v7502_v30, %v7498_v46  ;;  %v7520_v12 = vshll.u32 %v13902_v37, 16  ;;  %v7513_v1 = vrot.slane %v7511_v56, 4  ;;  %v13926_v0 = vld [vmem:[#allocation2 + $0xa0] sm:$0xf]  ;;  %v13928_v19 = vpop.f32.mrf.mxu0 }
 0x33b   : > { %10414 = vmatprep.subr.bf16.mxu1 %v10602_v36  ;;  %v7494_v24 = vrot.slane %v7493_v10, 4  ;;  %v7524_v39 = vshrl.u32 %v13902_v37, 16  ;;  %v7530_v25 = vshll.u32 %v13909_v49, 16  ;;  %v7516_v11 = vrot.slane %v7514_v17, 5  ;;  %15303 = vst [vmem:[#allocation48_spill] sm:$0xff] %v13926_v0 }
 0x33c   : > { %10386 = vmatprep.mubr.bf16.mxu0 %v9235_v2  ;;  %v7504_v3 = vrot.slane %v7503_v31, 4  ;;  %v7522_v29 = vrot.slane %v7520_v12, 5  ;;  %v13924_v30 = vadd.f32 %v13767_v8, %v4331_v53  ;;  %v13933_v49 = vadd.f32 %v13786_v47, %v10049_v18  ;;  %v13935_v31 = vld [vmem:[#allocation2 + $0xa4] sm:$0x1] }
 0x33d   : > { %10335 = vmatmul.mubr.bf16.gmra.mxu1 %v10594_v13  ;;  %v7499_v56 = vsel %vm10731_vm3, %v7494_v24, %v7498_v46  ;;  %v7526_v10 = vrot.slane %v7524_v39, 4  ;;  %v7532_v37 = vrot.slane %v7530_v25, 5  ;;  %15305 = vst [vmem:[#allocation57_spill] sm:$0xff] %v13935_v31  ;;  %v7517_v53 = vor.u32 %v7516_v11, %v7513_v1  ;;  %v13947_v25 = vld [vmem:[#allocation2 + $0xac] sm:$0xf] }
 0x33e   : > { %15302 = vst [vmem:[#allocation55_spill] sm:$0xff] %v13924_v30  ;;  %10338 = vmatprep.mubr.bf16.mxu1 %v10595_v5  ;;  %15304 = vst [vmem:[#allocation49_spill] sm:$0xff] %v13933_v49  ;;  %10415 = vmatpush3.bf16.msra.mxu1 %v10602_v36  ;;  %v7509_v8 = vsel %vm10731_vm3, %v7504_v3, %v7508_v42  ;;  %v13940_v2 = vadd.f32 %v13808_v27, %v4334_v9  ;;  %v7535_v13 = vshrl.u32 %v7255_v21, 16  ;;  %v7258_v5 = vld [vmem:[#allocation2 + $0xa8] sm:$0xf]  ;;  %v13943_v47 = vpop.f32.mrf.mxu0 }
 0x33f   : > { %10416 = vmatprep.subr.bf16.mxu1 %v10605_v38  ;;  %v9236_v17 = vcombine.low %v7499_v56, %v7509_v8  ;;  %v7527_v46 = vor.u32 %v7526_v10, %v7522_v29  ;;  %v7538_v24 = vshll.u32 %v7255_v21, 16  ;;  %v7544_v12 = vshll.u32 %v13926_v0, 16 }
 0x340   : > { %15306 = vst [vmem:[#allocation50_spill] sm:$0xff] %v13940_v2  ;;  %v7518_v18 = vrot.slane %v7517_v53, 4  ;;  %v7537_v39 = vrot.slane %v7535_v13, 4  ;;  %v7548_v36 = vshrl.u32 %v13926_v0, 16  ;;  %v7554_v42 = vshll.u32 %v13935_v31, 16  ;;  %v10052_v1 = vpop.f32.mrf.mxu1  ;;  %v13952_v11 = vpop.f32.mrf.mxu0  ;;  %v10597_v53 = vld [vmem:[#allocation2 + $0x84] sm:$0xff]  }
 0x341   : > { %10387 = vmatmul.mubr.bf16.gmra.mxu0 %v9236_v17  ;;  %v7528_v27 = vrot.slane %v7527_v46, 4  ;;  %v7540_v9 = vrot.slane %v7538_v24, 5  ;;  %v7546_v3 = vrot.slane %v7544_v12, 5  ;;  %v13950_v21 = vadd.f32 %v13824_v58, %v10052_v1  ;;  %v13956_v13 = vld [vmem:[#allocation2 + $0xb0] sm:$0x1] }
 0x342   : > { %10417 = vmatpush3.bf16.msra.mxu1 %v10605_v38  ;;  %v7523_v56 = vsel %vm10731_vm3, %v7518_v18, %v7522_v29  ;;  %v7550_v10 = vrot.slane %v7548_v36, 4  ;;  %v7556_v8 = vrot.slane %v7554_v42, 5  ;;  %15308 = vst [vmem:[#allocation52_spill] sm:$0xff] %v13956_v13  ;;  %v7559_v2 = vshrl.u32 %v7258_v5, 16  ;;  %v4347_v49 = vpop.f32.mrf.mxu1  ;;  %v10598_v12 = vld [vmem:[#allocation2 + $0x90] sm:$0xff]   ;;  %v13961_v1 = vpop.f32.mrf.mxu0 }
 0x343   : > { %15307 = vst [vmem:[#allocation58_spill] sm:$0xff] %v13950_v21  ;;  %v7533_v17 = vsel %vm10731_vm3, %v7528_v27, %v7532_v37  ;;  %v7541_v46 = vor.u32 %v7540_v9, %v7537_v39  ;;  %v7562_v24 = vshll.u32 %v7258_v5, 16  ;;  %v7568_v58 = vshll.u32 %v13947_v25, 16  ;;  %v7261_v37 = vld [vmem:[#allocation2 + $0xb4] sm:$0xf] }
 0x344   : > { %v9237_v38 = vcombine.low %v7523_v56, %v7533_v17  ;;  %v7551_v21 = vor.u32 %v7550_v10, %v7546_v3  ;;  %v7561_v29 = vrot.slane %v7559_v2, 4  ;;  %v7572_v18 = vshrl.u32 %v13947_v25, 16  ;;  %v10053_v36 = vpop.f32.mrf.mxu1  ;;  %v13965_v5 = vpop.f32.mrf.mxu0  ;;  %v13973_v10 = vld [vmem:[#allocation2 + $0xb8] sm:$0xf] }
 0x345   : > { %10339 = vmatmul.mubr.bf16.gmra.mxu1 %v10597_v53  ;;  %v7542_v42 = vrot.slane %v7541_v46, 4  ;;  %v7564_v30 = vrot.slane %v7562_v24, 5  ;;  %v7570_v31 = vrot.slane %v7568_v58, 5  ;;  %v7578_v0 = vshll.u32 %v13956_v13, 16  ;;  %15311 = vst [vmem:[#allocation56_spill] sm:$0xff] %v13973_v10 }
 0x346   : > { %10342 = vmatprep.mubr.bf16.mxu1 %v10598_v12  ;;  %10390 = vmatprep.mubr.bf16.mxu0 %v9237_v38  ;;  %v7552_v39 = vrot.slane %v7551_v21, 4  ;;  %v7574_v27 = vrot.slane %v7572_v18, 4  ;;  %v13968_v9 = vadd.f32 %v13842_v26, %v4347_v49  ;;  %v13971_v2 = vadd.f32 %v13861_v22, %v10053_v36  ;;  %v4350_v56 = vpop.f32.mrf.mxu1  ;;  %v13980_v58 = vld [vmem:[#allocation2 + $0xbc] sm:$0x1] }
 0x347   : > { %v7547_v53 = vsel %vm10731_vm3, %v7542_v42, %v7546_v3  ;;  %v7565_v17 = vor.u32 %v7564_v30, %v7561_v29  ;;  %v7580_v46 = vrot.slane %v7578_v0, 5  ;;  %v13978_v24 = vadd.f32 %v13875_v61, %v4350_v56  ;;  %15313 = vst [vmem:[#allocation3_spill] sm:$0xff] %v13980_v58  ;;  %v13982_v21 = vpop.f32.mrf.mxu0  ;;  %v10600_v0 = vld [vmem:[#allocation2 + $0x9c] sm:$0xff]  }
 0x348   : > { %15309 = vst [vmem:[#allocation60_spill] sm:$0xff] %v13968_v9  ;;  %15310 = vst [vmem:[#allocation54_spill] sm:$0xff] %v13971_v2  ;;  %v7557_v26 = vsel %vm10731_vm3, %v7552_v39, %v7556_v8  ;;  %v7575_v22 = vor.u32 %v7574_v27, %v7570_v31  ;;  %v7583_v49 = vshrl.u32 %v7261_v37, 16  ;;  %v7586_v12 = vshll.u32 %v7261_v37, 16  ;;  %v7264_v3 = vld [vmem:[#allocation2 + $0xc0] sm:$0xf] }
 0x349   : > { %15312 = vst [vmem:[#allocation59_spill] sm:$0xff] %v13978_v24  ;;  %v9238_v38 = vcombine.low %v7547_v53, %v7557_v26  ;;  %v7566_v18 = vrot.slane %v7565_v17, 4  ;;  %v7592_v36 = vshll.u32 %v13973_v10, 16  ;;  %v7596_v30 = vshrl.u32 %v13973_v10, 16  ;;  %v13988_v61 = vpop.f32.mrf.mxu0  ;;  %v13991_v8 = vld [vmem:[#allocation2 + $0xc4] sm:$0xf] }
 0x34a   : > { %v7576_v29 = vrot.slane %v7575_v22, 4  ;;  %v7585_v42 = vrot.slane %v7583_v49, 4  ;;  %v7588_v56 = vrot.slane %v7586_v12, 5  ;;  %v7602_v24 = vshll.u32 %v13980_v58, 16  ;;  %v10056_v2 = vpop.f32.mrf.mxu1  ;;  %v13998_v17 = vld [vmem:[#allocation2 + $0xc8] sm:$0x1] }
 0x34b   : > { %10391 = vmatmul.mubr.bf16.gmra.mxu0 %v9238_v38  ;;  %v7571_v37 = vsel %vm10731_vm3, %v7566_v18, %v7570_v31  ;;  %v7594_v39 = vrot.slane %v7592_v36, 5  ;;  %v7598_v27 = vrot.slane %v7596_v30, 4  ;;  %v13996_v53 = vadd.f32 %v13896_v51, %v10056_v2  ;;  %15315 = vst [vmem:[#allocation61_spill] sm:$0xff] %v13998_v17  ;;  %v10601_v26 = vld [vmem:[#allocation2 + $0xa8] sm:$0xff]   ;;  %v14000_v22 = vpop.f32.mrf.mxu0 }
 0x34c   : > { %v7581_v49 = vsel %vm10731_vm3, %v7576_v29, %v7580_v46  ;;  %v7589_v12 = vor.u32 %v7588_v56, %v7585_v42  ;;  %v7604_v9 = vrot.slane %v7602_v24, 5  ;;  %v7607_v38 = vshrl.u32 %v7264_v3, 16  ;;  %v4363_v58 = vpop.f32.mrf.mxu1  ;;  %v7976_v56 = vld [vmem:[#allocation2 + $0x18] sm:$0xe] }
 0x34d   : > { %15314 = vst [vmem:[#allocation38_spill] sm:$0xff] %v13996_v53  ;;  %10343 = vmatmul.mubr.bf16.gmra.mxu1 %v10600_v0  ;;  %v9239_v13 = vcombine.low %v7571_v37, %v7581_v49  ;;  %v7599_v31 = vor.u32 %v7598_v27, %v7594_v39  ;;  %v7610_v18 = vshll.u32 %v7264_v3, 16  ;;  %v7616_v36 = vshll.u32 %v13991_v8, 16  ;;  %v14005_v51 = vpop.f32.mrf.mxu0 }
 0x34e   : > { %10346 = vmatprep.mubr.bf16.mxu1 %v10601_v26  ;;  %v7590_v2 = vrot.slane %v7589_v12, 4  ;;  %v7609_v30 = vrot.slane %v7607_v38, 4  ;;  %v7620_v53 = vshrl.u32 %v13991_v8, 16  ;;  %v7626_v10 = vshll.u32 %v13998_v17, 16  ;;  %v10057_v46 = vpop.f32.mrf.mxu1  ;;  %v7267_v12 = vld [vmem:[#allocation2 + $0xcc] sm:$0xf] }
 0x34f   : > { %10394 = vmatprep.mubr.bf16.mxu0 %v9239_v13  ;;  %v7600_v24 = vrot.slane %v7599_v31, 4  ;;  %v7612_v0 = vrot.slane %v7610_v18, 5  ;;  %v7618_v29 = vrot.slane %v7616_v36, 5  ;;  %v14010_v42 = vadd.f32 %v13911_v55, %v4363_v58  ;;  %v14012_v3 = vpop.f32.mrf.mxu0  ;;  %v14026_v18 = vld [vmem:[#allocation2 + $0xd0] sm:$0xf] }
 0x350   : > { %v7595_v37 = vsel %vm10731_vm3, %v7590_v2, %v7594_v39  ;;  %v7622_v27 = vrot.slane %v7620_v53, 4  ;;  %v14017_v26 = vadd.f32 %v13916_v35, %v10057_v46  ;;  %v4366_v49 = vpop.f32.mrf.mxu1  ;;  %v7628_v31 = vrot.slane %v7626_v10, 5  ;;  %v10603_v2 = vld [vmem:[#allocation2 + $0xb4] sm:$0xff]  }
 0x351   : > { %v7605_v13 = vsel %vm10731_vm3, %v7600_v24, %v7604_v9  ;;  %v7613_v38 = vor.u32 %v7612_v0, %v7609_v30  ;;  %v14022_v55 = vadd.f32 %v13928_v19, %v4366_v49  ;;  %v14024_v58 = vpop.f32.mrf.mxu0  ;;  %v9251_v35 = vrot.slane %v7976_v56, 9  ;;  %v10604_v9 = vld [vmem:[#allocation2 + $0xc0] sm:$0xff]   ;;  %v14041_v49 = vld [vmem:[#allocation2 + $0xd4] sm:$0x1] }
 0x352   : > { %15316 = vst [vmem:[#allocation62_spill] sm:$0xff] %v14017_v26  ;;  %v9240_v36 = vcombine.low %v7595_v37, %v7605_v13  ;;  %v7623_v39 = vor.u32 %v7622_v27, %v7618_v29  ;;  %v10060_v53 = vpop.f32.mrf.mxu1  ;;  %v8042_v46 = vrot.slane %v13671_v16, 5  ;;  %v7631_v10 = vshrl.u32 %v7267_v12, 16  ;;  %15319 = vst [vmem:[#allocation65_spill] sm:$0xff] %v14041_v49 }
 0x353   : > { %v7614_v26 = vrot.slane %v7613_v38, 4  ;;  %v14030_v17 = vadd.f32 %v13943_v47, %v10060_v53  ;;  %v7634_v30 = vshll.u32 %v7267_v12, 16  ;;  %v14032_v19 = vpop.f32.mrf.mxu0  ;;  %v8045_v27 = vrot.slane %v13677_v41, 5 }
 0x354   : > { %10395 = vmatmul.mubr.bf16.gmra.mxu0 %v9240_v36  ;;  %v7624_v24 = vrot.slane %v7623_v39, 4  ;;  %v4379_v0 = vpop.f32.mrf.mxu1  ;;  %v8044_v37 = vrot.slane %v8042_v46, 4  ;;  %v7640_v56 = vshll.u32 %v14026_v18, 16  ;;  %v7633_v12 = vrot.slane %v7631_v10, 4 }
 0x355   : > { %15317 = vst [vmem:[#allocation63_spill] sm:$0xff] %v14030_v17  ;;  %10347 = vmatmul.mubr.bf16.gmra.mxu1 %v10603_v2  ;;  %v7619_v16 = vsel %vm10731_vm3, %v7614_v26, %v7618_v29  ;;  %v14039_v47 = vadd.f32 %v13952_v11, %v4379_v0  ;;  %v7636_v13 = vrot.slane %v7634_v30, 5  ;;  %v14043_v38 = vpop.f32.mrf.mxu0  ;;  %v7644_v29 = vshrl.u32 %v14026_v18, 16  ;;  %v7977_v26 = vld [vmem:[#allocation2 + $0x24] sm:$0xe] }
 0x356   : > { %10350 = vmatprep.mubr.bf16.mxu1 %v10604_v9  ;;  %v7629_v36 = vsel %vm10731_vm3, %v7624_v24, %v7628_v31  ;;  %v10061_v39 = vpop.f32.mrf.mxu1  ;;  %v8046_v41 = vsel %vm11145_vm6, %v8044_v37, %v8045_v27  ;;  %v7642_v53 = vrot.slane %v7640_v56, 5  ;;  %v14052_v11 = vadd.f32 %v13605_v20, %v13717_v50  ;;  %v10606_v24 = vld [vmem:[#allocation2 + $0xcc] sm:$0xff]  }
 0x357   : > { %15318 = vst [vmem:[#allocation64_spill] sm:$0xff] %v14039_v47  ;;  %v9241_v2 = vcombine.low %v7619_v16, %v7629_v36  ;;  %v14055_v9 = vadd.f32 %v13961_v1, %v10061_v39  ;;  %v7637_v10 = vor.u32 %v7636_v13, %v7633_v12  ;;  %v14057_v30 = vpop.f32.mrf.mxu0  ;;  %v8043_v0 = vsel %vm11145_vm6, %v9251_v35, %v8042_v46  ;;  %v7978_v47 = vld [vmem:[#allocation2 + $0x30] sm:$0xe]  ;;  %v7979_v46 = vld [vmem:[#allocation2 + $0x3c] sm:$0xe] }
 0x358   : > { %v4382_v31 = vpop.f32.mrf.mxu1  ;;  %v7646_v37 = vrot.slane %v7644_v29, 4  ;;  %v7650_v27 = vshll.u32 %v14041_v49, 16  ;;  %v8049_v56 = vrot.slane %v13698_v33, 5  ;;  %v9283_v50 = vcombine.low %v8043_v0, %v8046_v41  ;;  %v15339_v49 = vld [vmem:[#allocation3_spill] sm:$0xff] }
 0x359   : > { %15320 = vst [vmem:[#allocation66_spill] sm:$0xff] %v14055_v9  ;;  %10398 = vmatprep.mubr.bf16.mxu0 %v9241_v2  ;;  %v14064_v20 = vadd.f32 %v13965_v5, %v4382_v31  ;;  %v7638_v1 = vrot.slane %v7637_v10, 4  ;;  %v9252_v16 = vrot.slane %v7977_v26, 9  ;;  %v14066_v12 = vpop.f32.mrf.mxu0  ;;  %v8052_v35 = vrot.slane %v13701_v23, 5 }
 0x35a   : > { %v10064_v13 = vpop.f32.mrf.mxu1  ;;  %v7647_v36 = vor.u32 %v7646_v37, %v7642_v53  ;;  %v7652_v39 = vrot.slane %v7650_v27, 5  ;;  %v8051_v9 = vrot.slane %v8049_v56, 4  ;;  %v9253_v5 = vrot.slane %v7978_v47, 9  ;;  %v7980_v27 = vld [vmem:[#allocation2 + $0x48] sm:$0xe] }
 0x35b   : > { %15321 = vst [vmem:[#allocation67_spill] sm:$0xff] %v14064_v20  ;;  %v14070_v29 = vadd.f32 %v13982_v21, %v10064_v13  ;;  %v8050_v33 = vsel %vm11145_vm6, %v9252_v16, %v8049_v56  ;;  %v8056_v41 = vrot.slane %v13724_v32, 5  ;;  %v14075_v2 = vpop.f32.mrf.mxu0  ;;  %v7643_v10 = vsel %vm10731_vm3, %v7638_v1, %v7642_v53 }
 0x35c   : > { %v4395_v26 = vpop.f32.mrf.mxu1  ;;  %v7648_v31 = vrot.slane %v7647_v36, 4  ;;  %v8053_v23 = vsel %vm11145_vm6, %v8051_v9, %v8052_v35  ;;  %v8063_v21 = vrot.slane %v13740_v28, 5  ;;  %v8059_v32 = vrot.slane %v13729_v15, 5  ;;  %v7981_v36 = vld [vmem:[#allocation2 + $0x54] sm:$0xe] }
 0x35d   : > { %15322 = vst [vmem:[#allocation68_spill] sm:$0xff] %v14070_v29  ;;  %10351 = vmatmul.mubr.bf16.gmra.mxu1 %v10606_v24  ;;  %v14083_v0 = vadd.f32 %v13988_v61, %v4395_v26  ;;  %v8058_v47 = vrot.slane %v8056_v41, 4  ;;  %v14086_v37 = vpop.f32.mrf.mxu0  ;;  %v9254_v24 = vrot.slane %v7979_v46, 9  ;;  %v9284_v1 = vcombine.low %v8050_v33, %v8053_v23 }
 0x35e   : > { %10418 = vmatprep.mubr.bf16.mxu1 %v9283_v50  ;;  %v7653_v53 = vsel %vm10731_vm3, %v7648_v31, %v7652_v39  ;;  %v10065_v56 = vpop.f32.mrf.mxu1  ;;  %v8065_v16 = vrot.slane %v8063_v21, 4  ;;  %v8066_v9 = vrot.slane %v13744_v4, 5  ;;  %v8057_v61 = vsel %vm11145_vm6, %v9253_v5, %v8056_v41 }
 0x35f   : > { %15323 = vst [vmem:[#allocation69_spill] sm:$0xff] %v14083_v0  ;;  %v9242_v28 = vcombine.low %v7643_v10, %v7653_v53  ;;  %v14092_v50 = vadd.f32 %v14000_v22, %v10065_v56  ;;  %v8060_v15 = vsel %vm11145_vm6, %v8058_v47, %v8059_v32  ;;  %v14098_v13 = vpop.f32.mrf.mxu0  ;;  %v14102_v39 = vsel %vm11145_vm6, %v9254_v24, %v8063_v21  ;;  %v7982_v10 = vld [vmem:[#allocation2 + $0x60] sm:$0xe]  ;;  %v7983_v32 = vld [vmem:[#allocation2 + $0x6c] sm:$0xe] }
 0x360   : > { %v4398_v63 = vpop.f32.mrf.mxu1  ;;  %v14106_v4 = vsel %vm11145_vm6, %v8065_v16, %v8066_v9  ;;  %v9255_v22 = vrot.slane %v7980_v27, 9  ;;  %v8070_v35 = vrot.slane %v13755_v7, 5  ;;  %v9285_v33 = vcombine.low %v8057_v61, %v8060_v15  ;;  %v7984_v15 = vld [vmem:[#allocation2 + $0x78] sm:$0xe] }
 0x361   : > { %15324 = vst [vmem:[#allocation70_spill] sm:$0xff] %v14092_v50  ;;  %10399 = vmatmul.mubr.bf16.gmra.mxu0 %v9242_v28  ;;  %v14110_v46 = vadd.f32 %v14005_v51, %v4398_v63  ;;  %v14112_v5 = vpop.f32.mrf.mxu0  ;;  %v8073_v41 = vrot.slane %v13763_v59, 5  ;;  %v8077_v26 = vrot.slane %v13782_v52, 5  ;;  %v9286_v23 = vcombine.low %v14102_v39, %v14106_v4  ;;  %v15334_v39 = vld [vmem:[#allocation40_spill] sm:$0xff]  ;;  %v15335_v50 = vld [vmem:[#allocation57_spill] sm:$0xff] }
 0x362   : > { %v10132_v31 = vpop.f32.mrf.mxu1  ;;  %v8071_v21 = vsel %vm11145_vm6, %v9255_v22, %v8070_v35  ;;  %v8072_v7 = vrot.slane %v8070_v35, 4  ;;  %v9256_v47 = vrot.slane %v7981_v36, 9  ;;  %v8080_v59 = vrot.slane %v13792_v40, 5 }
 0x363   : > { %15325 = vst [vmem:[#allocation71_spill] sm:$0xff] %v14110_v46  ;;  %v14121_v51 = vadd.f32 %v10132_v31, %v13761_v60  ;;  %v14123_v24 = vpop.f32.mrf.mxu0  ;;  %v8079_v27 = vrot.slane %v8077_v26, 4  ;;  %v8084_v52 = vrot.slane %v13804_v44, 5  ;;  %v9257_v9 = vrot.slane %v7982_v10, 9 }
 0x364   : > { %v5038_v53 = vpop.f32.mrf.mxu1  ;;  %v8074_v56 = vsel %vm11145_vm6, %v8072_v7, %v8073_v41  ;;  %v14131_v16 = vsel %vm11145_vm6, %v9256_v47, %v8077_v26  ;;  %v8091_v60 = vrot.slane %v13835_v45, 5  ;;  %v8087_v44 = vrot.slane %v13813_v6, 5  ;;  %v7985_v41 = vld [vmem:[#allocation2 + $0x84] sm:$0xe] }
 0x365   : > { %10419 = vmatmul.mubr.bf16.vlgmr.msra.gmra.mxu1 %v9284_v1  ;;  %v14135_v28 = vadd.f32 %v5038_v53, %v13776_v48  ;;  %v14137_v61 = vpop.f32.mrf.mxu0  ;;  %v14141_v40 = vsel %vm11145_vm6, %v8079_v27, %v8080_v59  ;;  %v9258_v1 = vrot.slane %v7983_v32, 9  ;;  %v9287_v63 = vcombine.low %v8071_v21, %v8074_v56  ;;  %v7986_v27 = vld [vmem:[#allocation2 + $0x90] sm:$0xe]  ;;  %v15326_v56 = vld [vmem:[#allocation44_spill] sm:$0xff] }
 0x366   : > { %10422 = vmatprep.mubr.bf16.mxu1 %v9285_v33  ;;  %v10133_v36 = vpop.f32.mrf.mxu1  ;;  %v8086_v45 = vrot.slane %v8084_v52, 4  ;;  %v8093_v4 = vrot.slane %v8091_v60, 4  ;;  %v14153_v35 = vsel %vm11145_vm6, %v9257_v9, %v8084_v52  ;;  %v8094_v6 = vrot.slane %v13837_v62, 5 }
 0x367   : > { %v14147_v48 = vadd.f32 %v10133_v36, %v13780_v43  ;;  %v14149_v22 = vpop.f32.mrf.mxu0  ;;  %v8098_v33 = vrot.slane %v13851_v54, 5  ;;  %v14163_v43 = vsel %vm11145_vm6, %v9258_v1, %v8091_v60  ;;  %v9259_v31 = vrot.slane %v7984_v15, 9  ;;  %v15327_v1 = vld [vmem:[#allocation51_spill] sm:$0xff] }
 0x368   : > { %v5041_v26 = vpop.f32.mrf.mxu1  ;;  %v14159_v10 = vsel %vm11145_vm6, %v8086_v45, %v8087_v44  ;;  %v8105_v21 = vrot.slane %v13880_v14, 5  ;;  %v14175_v54 = vsel %vm11145_vm6, %v8093_v4, %v8094_v6  ;;  %v8101_v32 = vrot.slane %v13859_v34, 5  ;;  %v15328_v34 = vld [vmem:[#allocation46_spill] sm:$0xff]  ;;  %v7987_v45 = vld [vmem:[#allocation2 + $0x9c] sm:$0xe] }
 0x369   : > { %v14167_v7 = vadd.f32 %v5041_v26, %v14052_v11  ;;  %v14169_v47 = vpop.f32.mrf.mxu0  ;;  %v8100_v14 = vrot.slane %v8098_v33, 4  ;;  %v9260_v53 = vrot.slane %v7985_v41, 9  ;;  %v14187_v44 = vsel %vm11145_vm6, %v9259_v31, %v8098_v33  ;;  %v15330_v33 = vld [vmem:[#allocation37_spill] sm:$0xff] }
 0x36a   : > { %v10136_v59 = vpop.f32.mrf.mxu1  ;;  %v8107_v11 = vrot.slane %v8105_v21, 4  ;;  %v8108_v15 = vrot.slane %v15327_v1, 5  ;;  %v8112_v36 = vrot.slane %v15328_v34, 5  ;;  %v9261_v26 = vrot.slane %v7986_v27, 9 }
 0x36b   : > { %v14181_v9 = vadd.f32 %v10136_v59, %v15326_v56  ;;  %v14183_v60 = vpop.f32.mrf.mxu0  ;;  %v14193_v6 = vsel %vm11145_vm6, %v8100_v14, %v8101_v32  ;;  %v14197_v41 = vsel %vm11145_vm6, %v9260_v53, %v8105_v21  ;;  %v15329_v59 = vld [vmem:[#allocation48_spill] sm:$0xff]  ;;  %v15331_v32 = vld [vmem:[#allocation47_spill] sm:$0xff]  ;;  %v9262_v53 = vrot.slane %v7987_v45, 9 }
 0x36c   : > { %v5054_v4 = vpop.f32.mrf.mxu1  ;;  %v8119_v56 = vrot.slane %v15329_v59, 5  ;;  %v14207_v34 = vsel %vm11145_vm6, %v8107_v11, %v8108_v15  ;;  %v8115_v14 = vrot.slane %v15331_v32, 5  ;;  %v8114_v27 = vrot.slane %v8112_v36, 4  ;;  %v7988_v59 = vld [vmem:[#allocation2 + $0xa8] sm:$0xe] }
 0x36d   : > { %10423 = vmatmul.mubr.bf16.gmra.mxu1 %v9286_v23  ;;  %v5169_v31 = vadd.f32 %v5054_v4, %v15330_v33  ;;  %v14201_v1 = vpop.f32.mrf.mxu0  ;;  %v15332_v4 = vld [vmem:[#allocation34_spill] sm:$0xff]  ;;  %v15333_v33 = vld [vmem:[#allocation29_spill] sm:$0xff]  ;;  %v8122_v11 = vrot.slane %v15335_v50, 5  ;;  %v8126_v15 = vrot.slane %v13947_v25, 5  ;;  %v14221_v0 = vsel %vm11145_vm6, %v9261_v26, %v8112_v36 }
 0x36e   : > { %10426 = vmatprep.mubr.bf16.mxu1 %v9287_v63  ;;  %v10137_v52 = vpop.f32.mrf.mxu1  ;;  %v8121_v63 = vrot.slane %v8119_v56, 4  ;;  %v4608_v62 = vadd.f32 %v15333_v33, %v15332_v4  ;;  %v14225_v45 = vsel %vm11145_vm6, %v8114_v27, %v8115_v14  ;;  %v14229_v4 = vsel %vm11145_vm6, %v9262_v53, %v8119_v56  ;;  %v15337_v53 = vld [vmem:[#allocation52_spill] sm:$0xff] }
 0x36f   : > { %v5172_v46 = vadd.f32 %v10137_v52, %v15334_v39  ;;  %v14215_v23 = vpop.f32.mrf.mxu0  ;;  %v7989_v39 = vld [vmem:[#allocation2 + $0xb4] sm:$0xe]  ;;  %v15336_v52 = vld [vmem:[#allocation56_spill] sm:$0xff]  ;;  %v9263_v26 = vrot.slane %v7988_v59, 9  ;;  %v8128_v56 = vrot.slane %v8126_v15, 4  ;;  %v8129_v29 = vrot.slane %v15337_v53, 5 }
 0x370   : > { %v5057_v32 = vpop.f32.mrf.mxu1  ;;  %v8133_v33 = vrot.slane %v15336_v52, 5  ;;  %v14238_v36 = vsel %vm11145_vm6, %v8121_v63, %v8122_v11  ;;  %v15338_v52 = vld [vmem:[#allocation41_spill] sm:$0xff]  ;;  %v9264_v17 = vrot.slane %v7989_v39, 9  ;;  %v8136_v25 = vrot.slane %v15339_v49, 5  ;;  %v15342_v39 = vld [vmem:[#allocation42_spill] sm:$0xff] }
 0x371   : > { %v5170_v21 = vadd.f32 %v5057_v32, %v4608_v62  ;;  %v14232_v50 = vpop.f32.mrf.mxu0  ;;  %v9294_v27 = vcombine.low %v14229_v4, %v14238_v36  ;;  %v15340_v63 = vcombine.low %v14131_v16, %v14141_v40  ;;  %v14252_v11 = vsel %vm11145_vm6, %v9263_v26, %v8126_v15  ;;  %v15359_v36 = vld [vmem:[#allocation62_spill] sm:$0xff] }
 0x372   : > { %v10140_v14 = vpop.f32.mrf.mxu1  ;;  %v8135_v20 = vrot.slane %v8133_v33, 4  ;;  %v14256_v53 = vsel %vm11145_vm6, %v8128_v56, %v8129_v29  ;;  %v14266_v40 = vsel %vm11145_vm6, %v9264_v17, %v8133_v33  ;;  %v14283_v17 = vadd.f32 %v14024_v58, %v14135_v28 }
 0x373   : > { %v5175_v62 = vadd.f32 %v10140_v14, %v15338_v52  ;;  %v14244_v32 = vpop.f32.mrf.mxu0  ;;  %v15341_v14 = vcombine.low %v14153_v35, %v14159_v10  ;;  %v9295_v16 = vcombine.low %v14252_v11, %v14256_v53  ;;  %v15343_v35 = vld [vmem:[#allocation43_spill] sm:$0xff]  ;;  %v14302_v28 = vadd.f32 %v14075_v2, %v5172_v46 }
 0x374   : > { %v5070_v59 = vpop.f32.mrf.mxu1  ;;  %v14270_v15 = vsel %vm11145_vm6, %v8135_v20, %v8136_v25  ;;  %v14287_v20 = vadd.f32 %v14032_v19, %v14147_v48  ;;  %v14291_v25 = vadd.f32 %v14043_v38, %v14167_v7  ;;  %v14305_v19 = vadd.f32 %v14086_v37, %v5170_v21  ;;  %v15345_v48 = vld [vmem:[#allocation53_spill] sm:$0xff]  ;;  %v15348_v46 = vld [vmem:[#allocation55_spill] sm:$0xff] }
 0x375   : > { %10427 = vmatmul.mubr.bf16.gmra.mxu1 %v15340_v63  ;;  %v5173_v52 = vadd.f32 %v5070_v59, %v15342_v39  ;;  %v5491_v49 = vpop.f32.mrf.mxu0  ;;  %v9296_v26 = vcombine.low %v14266_v40, %v14270_v15  ;;  %v14279_v63 = vadd.f32 %v14012_v3, %v14121_v51  ;;  %v14295_v59 = vadd.f32 %v14057_v30, %v14181_v9 }
 0x376   : > { %10430 = vmatprep.mubr.bf16.mxu1 %v15341_v14  ;;  %v10141_v29 = vpop.f32.mrf.mxu1  ;;  %v15344_v14 = vld [vmem:[#allocation45_spill] sm:$0xff]  ;;  %v14299_v39 = vadd.f32 %v14066_v12, %v5169_v31  ;;  %v14308_v38 = vadd.f32 %v14098_v13, %v5175_v62  ;;  %v15346_v2 = vcombine.low %v14163_v43, %v14175_v54  ;;  %v15347_v13 = vcombine.low %v14187_v44, %v14193_v6  ;;  %v15350_v54 = vld [vmem:[#allocation50_spill] sm:$0xff] }
 0x377   : > { %v5176_v10 = vadd.f32 %v10141_v29, %v15343_v35  ;;  %v14275_v56 = vpop.f32.mrf.mxu0  ;;  %v14314_v9 = vadd.f32 %v14112_v5, %v5173_v52  ;;  %v15349_v52 = vld [vmem:[#allocation49_spill] sm:$0xff] }
 0x378   : > { %v5073_v33 = vpop.f32.mrf.mxu1 }
 0x379   : > { %v5174_v3 = vadd.f32 %v5073_v33, %v15344_v14  ;;  %v5504_v51 = vpop.f32.mrf.mxu0  ;;  %v14317_v12 = vadd.f32 %v14123_v24, %v5176_v10  ;;  %v15351_v14 = vld [vmem:[#allocation58_spill] sm:$0xff] }
 0x37a   : > { %v10144_v58 = vpop.f32.mrf.mxu1 }
 0x37b   : > { %v5179_v7 = vadd.f32 %v10144_v58, %v15345_v48  ;;  %v14311_v30 = vpop.f32.mrf.mxu0  ;;  %v14320_v31 = vadd.f32 %v14137_v61, %v5174_v3 }
 0x37c   : > { %v5086_v37 = vpop.f32.mrf.mxu1 }
 0x37d   : > { %10431 = vmatmul.mubr.bf16.gmra.mxu1 %v15346_v2  ;;  %v5177_v21 = vadd.f32 %v5086_v37, %v15348_v46  ;;  %v5507_v62 = vpop.f32.mrf.mxu0  ;;  %v14330_v5 = vadd.f32 %v14149_v22, %v5179_v7  ;;  %v15353_v7 = vcombine.low %v14221_v0, %v14225_v45  ;;  %v15354_v2 = vld [vmem:[#allocation60_spill] sm:$0xff]  ;;  %v15356_v0 = vld [vmem:[#allocation59_spill] sm:$0xff] }
 0x37e   : > { %10434 = vmatprep.mubr.bf16.mxu1 %v15347_v13  ;;  %v10145_v24 = vpop.f32.mrf.mxu1 }
 0x37f   : > { %v5180_v29 = vadd.f32 %v10145_v24, %v15349_v52  ;;  %v14333_v61 = vpop.f32.mrf.mxu0  ;;  %v14336_v35 = vadd.f32 %v14169_v47, %v5177_v21  ;;  %v15352_v47 = vcombine.low %v14197_v41, %v14207_v34  ;;  %v15355_v21 = vld [vmem:[#allocation54_spill] sm:$0xff]  ;;  %v8140_v52 = vrot.slane %v13991_v8, 5 }
 0x380   : > { %v5089_v43 = vpop.f32.mrf.mxu1 }
 0x381   : > { %v5178_v10 = vadd.f32 %v5089_v43, %v15350_v54  ;;  %v14339_v33 = vpop.f32.mrf.mxu0  ;;  %v14342_v44 = vadd.f32 %v14183_v60, %v5180_v29  ;;  %v15357_v54 = vld [vmem:[#allocation38_spill] sm:$0xff]  ;;  %v8142_v8 = vrot.slane %v8140_v52, 4 }
 0x382   : > { %v10148_v6 = vpop.f32.mrf.mxu1 }
 0x383   : > { %v5183_v22 = vadd.f32 %v10148_v6, %v15351_v14  ;;  %v14345_v3 = vpop.f32.mrf.mxu0  ;;  %v14348_v58 = vadd.f32 %v14201_v1, %v5178_v10 }
 0x384   : > { %v5102_v48 = vpop.f32.mrf.mxu1 }
 0x385   : > { %10435 = vmatmul.mubr.bf16.gmra.mxu1 %v15352_v47  ;;  %v5181_v60 = vadd.f32 %v5102_v48, %v15354_v2  ;;  %v14357_v37 = vpop.f32.mrf.mxu0  ;;  %v14360_v13 = vadd.f32 %v14215_v23, %v5183_v22  ;;  %v7990_v22 = vld [vmem:[#allocation2 + $0xc0] sm:$0xe]  ;;  %v7991_v48 = vld [vmem:[#allocation2 + $0xcc] sm:$0xe] }
 0x386   : > { %10438 = vmatprep.mubr.bf16.mxu1 %v15353_v7  ;;  %v10149_v46 = vpop.f32.mrf.mxu1  ;;  %v8147_v7 = vrot.slane %v14026_v18, 5  ;;  %v9265_v53 = vrot.slane %v7990_v22, 9  ;;  %v15362_v22 = vld [vmem:[#allocation64_spill] sm:$0xff] }
 0x387   : > { %v5184_v1 = vadd.f32 %v10149_v46, %v15355_v21  ;;  %v14363_v24 = vpop.f32.mrf.mxu0  ;;  %v14366_v41 = vadd.f32 %v14232_v50, %v5181_v60  ;;  %v15358_v60 = vld [vmem:[#allocation61_spill] sm:$0xff] }
 0x388   : > { %v5105_v34 = vpop.f32.mrf.mxu1  ;;  %v8143_v4 = vrot.slane %v15358_v60, 5 }
 0x389   : > { %v5182_v45 = vadd.f32 %v5105_v34, %v15356_v0  ;;  %v14370_v29 = vpop.f32.mrf.mxu0  ;;  %v14373_v43 = vadd.f32 %v14244_v32, %v5184_v1  ;;  %v8149_v1 = vrot.slane %v8147_v7, 4 }
 0x38a   : > { %v10152_v23 = vpop.f32.mrf.mxu1 }
 0x38b   : > { %v5187_v10 = vadd.f32 %v10152_v23, %v15357_v54  ;;  %v14376_v6 = vpop.f32.mrf.mxu0  ;;  %v14378_v14 = vadd.f32 %v5491_v49, %v5182_v45  ;;  %v15361_v54 = vld [vmem:[#allocation63_spill] sm:$0xff] }
 0x38c   : > { %v5118_v50 = vpop.f32.mrf.mxu1 }
 0x38d   : > { %10439 = vmatmul.mubr.bf16.gmra.mxu1 %v9294_v27  ;;  %v5185_v32 = vadd.f32 %v5118_v50, %v14010_v42  ;;  %v5539_v47 = vpop.f32.mrf.mxu0  ;;  %v14389_v49 = vadd.f32 %v14275_v56, %v5187_v10  ;;  %v8144_v42 = vsel %vm11145_vm6, %v8142_v8, %v8143_v4  ;;  %v15360_v56 = vld [vmem:[#allocation65_spill] sm:$0xff]  ;;  %v15363_v4 = vld [vmem:[#allocation66_spill] sm:$0xff] }
 0x38e   : > { %10442 = vmatprep.mubr.bf16.mxu1 %v9295_v16  ;;  %v10153_v2 = vpop.f32.mrf.mxu1  ;;  %v9266_v16 = vrot.slane %v7991_v48, 9  ;;  %v8150_v34 = vrot.slane %v15360_v56, 5  ;;  %v15366_v56 = vld [vmem:[#allocation69_spill] sm:$0xff] }
 0x38f   : > { %v5188_v27 = vadd.f32 %v10153_v2, %v15359_v36  ;;  %v14393_v46 = vpop.f32.mrf.mxu0  ;;  %v14395_v21 = vadd.f32 %v5504_v51, %v5185_v32  ;;  %v8141_v51 = vsel %vm11145_vm6, %v9265_v53, %v8140_v52 }
 0x390   : > { %v5121_v11 = vpop.f32.mrf.mxu1  ;;  %v9297_v50 = vcombine.low %v8141_v51, %v8144_v42  ;;  %v8148_v48 = vsel %vm11145_vm6, %v9266_v16, %v8147_v7  ;;  %v8151_v52 = vsel %vm11145_vm6, %v8149_v1, %v8150_v34 }
 0x391   : > { %v5186_v18 = vadd.f32 %v5121_v11, %v14022_v55  ;;  %v14401_v0 = vpop.f32.mrf.mxu0  ;;  %v14404_v45 = vadd.f32 %v14311_v30, %v5188_v27  ;;  %v9298_v27 = vcombine.low %v8148_v48, %v8151_v52  ;;  %v15364_v11 = vld [vmem:[#allocation67_spill] sm:$0xff] }
 0x393   : > { %v10156_v23 = vpop.f32.mrf.mxu1  ;;  %v14409_v32 = vpop.f32.mrf.mxu0  ;;  %v14411_v8 = vadd.f32 %v5507_v62, %v5186_v18 }
 0x394   : > { %v5191_v10 = vadd.f32 %v10156_v23, %v15361_v54 }
 0x395   : > { %10443 = vmatmul.mubr.bf16.gmra.mxu1 %v9296_v26  ;;  %v5134_v55 = vpop.f32.mrf.mxu1  ;;  %v14421_v2 = vpop.f32.mrf.mxu0 }
 0x396   : > { %10446 = vmatprep.mubr.bf16.mxu1 %v9297_v50  ;;  %v5189_v30 = vadd.f32 %v5134_v55, %v15362_v22  ;;  %v14424_v60 = vadd.f32 %v14333_v61, %v5191_v10  ;;  %v15365_v61 = vld [vmem:[#allocation68_spill] sm:$0xff] }
 0x397   : > { %v10157_v62 = vpop.f32.mrf.mxu1 }
 0x398   : > { %v5192_v36 = vadd.f32 %v10157_v62, %v15363_v4  ;;  %v14427_v40 = vpop.f32.mrf.mxu0  ;;  %v14430_v15 = vadd.f32 %v14339_v33, %v5189_v30 }
 0x399   : > { %v5137_v26 = vpop.f32.mrf.mxu1 }
 0x39a   : > { %v5190_v7 = vadd.f32 %v5137_v26, %v15364_v11  ;;  %v14433_v53 = vpop.f32.mrf.mxu0  ;;  %v14436_v57 = vadd.f32 %v14345_v3, %v5192_v36  ;;  %v15367_v3 = vld [vmem:[#allocation70_spill] sm:$0xff] }
 0x39c   : > { %v10160_v42 = vpop.f32.mrf.mxu1  ;;  %v14439_v18 = vpop.f32.mrf.mxu0  ;;  %v14442_v1 = vadd.f32 %v14357_v37, %v5190_v7  ;;  %v15368_v37 = vld [vmem:[#allocation71_spill] sm:$0xff] }
 0x39d   : > { %v5195_v16 = vadd.f32 %v10160_v42, %v15365_v61  ;;  %10447 = vmatmul.mubr.bf16.gmra.mxu1 %v9298_v27 }
 0x39e   : > { %v5150_v33 = vpop.f32.mrf.mxu1  ;;  %v14445_v23 = vpop.f32.mrf.mxu0 }
 0x39f   : > { %v5193_v34 = vadd.f32 %v5150_v33, %v15366_v56  ;;  %v14448_v51 = vadd.f32 %v14363_v24, %v5195_v16 }
 0x3a0   : > { %v10161_v54 = vpop.f32.mrf.mxu1  ;;  %v14451_v50 = vpop.f32.mrf.mxu0 }
 0x3a1   : > { %v5196_v10 = vadd.f32 %v10161_v54, %v15367_v3  ;;  %v14454_v55 = vadd.f32 %v14370_v29, %v5193_v34 }
 0x3a2   : > { %v5153_v22 = vpop.f32.mrf.mxu1  ;;  %v14457_v48 = vpop.f32.mrf.mxu0 }
 0x3a3   : > { %v5194_v30 = vadd.f32 %v5153_v22, %v15368_v37  ;;  %v14460_v52 = vadd.f32 %v14376_v6, %v5196_v10 }
 0x3a4   : > { %v10228_v62 = vpop.f32.mrf.mxu1  ;;  %v14465_v4 = vpop.f32.mrf.mxu0 }
 0x3a5   : > { %v14463_v24 = vadd.f32 %v10228_v62, %v14279_v63  ;;  %v14467_v36 = vadd.f32 %v5539_v47, %v5194_v30 }
 0x3a6   : > { %v6178_v26 = vpop.f32.mrf.mxu1  ;;  %v14472_v27 = vpop.f32.mrf.mxu0 }
 0x3a7   : > { %v14470_v29 = vadd.f32 %v6178_v26, %v14283_v17 }
 0x3a8   : > { %v10229_v11 = vpop.f32.mrf.mxu1  ;;  %v14477_v6 = vpop.f32.mrf.mxu0 }
 0x3a9   : > { %v14475_v7 = vadd.f32 %v10229_v11, %v14287_v20 }
 0x3aa   : > { %v6181_v42 = vpop.f32.mrf.mxu1  ;;  %v14482_v61 = vpop.f32.mrf.mxu0 }
 0x3ab   : > { %v14480_v63 = vadd.f32 %v6181_v42, %v14291_v25 }
 0x3ac   : > { %v10232_v47 = vpop.f32.mrf.mxu1  ;;  %v14487_v17 = vpop.f32.mrf.mxu0 }
 0x3ad   : > { %v14485_v16 = vadd.f32 %v10232_v47, %v14295_v59  ;;  %15369 = vst [vmem:[#allocation44_spill] sm:$0xff] %v14487_v17 }
 0x3ae   : > { %v6194_v33 = vpop.f32.mrf.mxu1  ;;  %v14492_v20 = vpop.f32.mrf.mxu0 }
 0x3af   : > { %v14490_v56 = vadd.f32 %v6194_v33, %v14299_v39  ;;  %15370 = vst [vmem:[#allocation51_spill] sm:$0xff] %v14492_v20 }
 0x3b0   : > { %v10233_v34 = vpop.f32.mrf.mxu1  ;;  %v14497_v25 = vpop.f32.mrf.mxu0 }
 0x3b1   : > { %v14495_v54 = vadd.f32 %v10233_v34, %v14302_v28  ;;  %15371 = vst [vmem:[#allocation46_spill] sm:$0xff] %v14497_v25 }
 0x3b2   : > { %v6197_v3 = vpop.f32.mrf.mxu1  ;;  %v14502_v59 = vpop.f32.mrf.mxu0 }
 0x3b3   : > { %v14500_v10 = vadd.f32 %v6197_v3, %v14305_v19  ;;  %15372 = vst [vmem:[#allocation48_spill] sm:$0xff] %v14502_v59 }
 0x3b4   : > { %v10236_v22 = vpop.f32.mrf.mxu1  ;;  %v14507_v39 = vpop.f32.mrf.mxu0 }
 0x3b5   : > { %v14505_v37 = vadd.f32 %v10236_v22, %v14308_v38  ;;  %15373 = vst [vmem:[#allocation37_spill] sm:$0xff] %v14507_v39 }
 0x3b6   : > { %v6210_v30 = vpop.f32.mrf.mxu1  ;;  %v14512_v28 = vpop.f32.mrf.mxu0 }
 0x3b7   : > { %v14510_v62 = vadd.f32 %v6210_v30, %v14314_v9  ;;  %15374 = vst [vmem:[#allocation47_spill] sm:$0xff] %v14512_v28 }
 0x3b8   : > { %v10237_v26 = vpop.f32.mrf.mxu1  ;;  %v14517_v19 = vpop.f32.mrf.mxu0 }
 0x3b9   : > { %v14515_v11 = vadd.f32 %v10237_v26, %v14317_v12  ;;  %15375 = vst [vmem:[#allocation34_spill] sm:$0xff] %v14517_v19 }
 0x3ba   : > { %v6213_v42 = vpop.f32.mrf.mxu1  ;;  %v14522_v38 = vpop.f32.mrf.mxu0 }
 0x3bb   : > { %v14520_v47 = vadd.f32 %v6213_v42, %v14320_v31  ;;  %15376 = vst [vmem:[#allocation29_spill] sm:$0xff] %v14522_v38 }
 0x3bc   : > { %v10240_v33 = vpop.f32.mrf.mxu1  ;;  %v14527_v3 = vpop.f32.mrf.mxu0 }
 0x3bd   : > { %v14525_v34 = vadd.f32 %v10240_v33, %v14330_v5  ;;  %15377 = vst [vmem:[#allocation40_spill] sm:$0xff] %v14527_v3 }
 0x3be   : > { %v6226_v9 = vpop.f32.mrf.mxu1  ;;  %v14535_v19 = vpop.f32.mrf.mxu0 }
 0x3bf   : > { %v14530_v22 = vadd.f32 %v6226_v9, %v14336_v35  ;;  %15378 = vst [vmem:[#allocation57_spill] sm:$0xff] %v14535_v19 }
 0x3c0   : > { %v10241_v12 = vpop.f32.mrf.mxu1  ;;  %v14543_v38 = vpop.f32.mrf.mxu0 }
 0x3c1   : > { %v14533_v30 = vadd.f32 %v10241_v12, %v14342_v44  ;;  %15381 = vst [vmem:[#allocation41_spill] sm:$0xff] %v14543_v38 }
 0x3c2   : > { %v6229_v26 = vpop.f32.mrf.mxu1  ;;  %v14551_v3 = vpop.f32.mrf.mxu0 }
 0x3c3   : > { %v14538_v31 = vadd.f32 %v6229_v26, %v14348_v58  ;;  %15384 = vst [vmem:[#allocation43_spill] sm:$0xff] %v14551_v3 }
 0x3c4   : > { %v10244_v42 = vpop.f32.mrf.mxu1  ;;  %v14559_v19 = vpop.f32.mrf.mxu0 }
 0x3c5   : > { %15379 = vst [vmem:[#allocation56_spill] sm:$0xff] %v14538_v31  ;;  %v14541_v5 = vadd.f32 %v10244_v42, %v14360_v13  ;;  %15387 = vst [vmem:[#allocation55_spill] sm:$0xff] %v14559_v19 }
 0x3c6   : > { %v6242_v33 = vpop.f32.mrf.mxu1 }
 0x3c7   : > { %15380 = vst [vmem:[#allocation52_spill] sm:$0xff] %v14541_v5  ;;  %v14546_v35 = vadd.f32 %v6242_v33, %v14366_v41 }
 0x3c8   : > { %v10245_v9 = vpop.f32.mrf.mxu1 }
 0x3c9   : > { %15382 = vst [vmem:[#allocation3_spill] sm:$0xff] %v14546_v35  ;;  %v14549_v44 = vadd.f32 %v10245_v9, %v14373_v43  ;;  %v14567_v9 = vpop.f32.mrf.mxu0 }
 0x3ca   : > { %v6245_v12 = vpop.f32.mrf.mxu1  ;;  %15390 = vst [vmem:[#allocation58_spill] sm:$0xff] %v14567_v9 }
 0x3cb   : > { %15383 = vst [vmem:[#allocation42_spill] sm:$0xff] %v14549_v44  ;;  %v14554_v58 = vadd.f32 %v6245_v12, %v14378_v14 }
 0x3cc   : > { %v10248_v26 = vpop.f32.mrf.mxu1 }
 0x3cd   : > { %15385 = vst [vmem:[#allocation45_spill] sm:$0xff] %v14554_v58  ;;  %v14557_v13 = vadd.f32 %v10248_v26, %v14389_v49  ;;  %v14575_v26 = vpop.f32.mrf.mxu0 }
 0x3ce   : > { %v6258_v42 = vpop.f32.mrf.mxu1  ;;  %15393 = vst [vmem:[#allocation59_spill] sm:$0xff] %v14575_v26 }
 0x3cf   : > { %15386 = vst [vmem:[#allocation53_spill] sm:$0xff] %v14557_v13  ;;  %v14562_v41 = vadd.f32 %v6258_v42, %v14395_v21 }
 0x3d0   : > { %v10249_v33 = vpop.f32.mrf.mxu1 }
 0x3d1   : > { %15388 = vst [vmem:[#allocation49_spill] sm:$0xff] %v14562_v41  ;;  %v14565_v43 = vadd.f32 %v10249_v33, %v14404_v45  ;;  %v14583_v33 = vpop.f32.mrf.mxu0 }
 0x3d2   : > { %v6261_v3 = vpop.f32.mrf.mxu1  ;;  %15396 = vst [vmem:[#allocation62_spill] sm:$0xff] %v14583_v33 }
 0x3d3   : > { %15389 = vst [vmem:[#allocation50_spill] sm:$0xff] %v14565_v43  ;;  %v14570_v14 = vadd.f32 %v6261_v3, %v14411_v8  ;;  %v14588_v3 = vpop.f32.mrf.mxu0 }
 0x3d4   : > { %v10252_v12 = vpop.f32.mrf.mxu1  ;;  %15398 = vst [vmem:[#allocation63_spill] sm:$0xff] %v14588_v3 }
 0x3d5   : > { %15391 = vst [vmem:[#allocation60_spill] sm:$0xff] %v14570_v14  ;;  %v14573_v49 = vadd.f32 %v10252_v12, %v14424_v60 }
 0x3d6   : > { %v6274_v19 = vpop.f32.mrf.mxu1 }
 0x3d7   : > { %15392 = vst [vmem:[#allocation54_spill] sm:$0xff] %v14573_v49  ;;  %v14578_v21 = vadd.f32 %v6274_v19, %v14430_v15  ;;  %v14596_v19 = vpop.f32.mrf.mxu0 }
 0x3d8   : > { %v10253_v42 = vpop.f32.mrf.mxu1  ;;  %15401 = vst [vmem:[#allocation67_spill] sm:$0xff] %v14596_v19 }
 0x3d9   : > { %15394 = vst [vmem:[#allocation38_spill] sm:$0xff] %v14578_v21  ;;  %v14581_v45 = vadd.f32 %v10253_v42, %v14436_v57 }
 0x3da   : > { %v6277_v9 = vpop.f32.mrf.mxu1 }
 0x3db   : > { %15395 = vst [vmem:[#allocation61_spill] sm:$0xff] %v14581_v45  ;;  %v14586_v8 = vadd.f32 %v6277_v9, %v14442_v1  ;;  %v10372_v9 = vpop.f32.mrf.mxu0 }
 0x3dd   : > { %15397 = vst [vmem:[#allocation65_spill] sm:$0xff] %v14586_v8  ;;  %v10256_v60 = vpop.f32.mrf.mxu1  ;;  %v7817_v45 = vpop.f32.mrf.mxu0 }
 0x3de   : > { %v14591_v12 = vadd.f32 %v10256_v60, %v14448_v51 }
 0x3df   : > { %v6290_v26 = vpop.f32.mrf.mxu1 }
 0x3e0   : > { %15399 = vst [vmem:[#allocation64_spill] sm:$0xff] %v14591_v12  ;;  %v14594_v15 = vadd.f32 %v6290_v26, %v14454_v55  ;;  %v14604_v12 = vpop.f32.mrf.mxu0 }
 0x3e1   : > { %v10257_v57 = vpop.f32.mrf.mxu1 }
 0x3e2   : > { %15400 = vst [vmem:[#allocation66_spill] sm:$0xff] %v14594_v15  ;;  %v14599_v42 = vadd.f32 %v10257_v57, %v14460_v52  ;;  %v14608_v19 = vpop.f32.mrf.mxu0 }
 0x3e3   : > { %v6293_v33 = vpop.f32.mrf.mxu1 }
 0x3e4   : > { %15402 = vst [vmem:[#allocation68_spill] sm:$0xff] %v14599_v42  ;;  %v14602_v1 = vadd.f32 %v6293_v33, %v14467_v36  ;;  %v14614_v57 = vpop.f32.mrf.mxu0 }
 0x3e5   : > { %v10324_v3 = vpop.f32.mrf.mxu1 }
 0x3e6   : > { %15403 = vst [vmem:[#allocation69_spill] sm:$0xff] %v14602_v1  ;;  %v14620_v1 = vpop.f32.mrf.mxu0 }
 0x3e7   : > { %v7063_v8 = vpop.f32.mrf.mxu1 }
 0x3e8   : > { %v14626_v38 = vpop.f32.mrf.mxu0 }
 0x3e9   : > { %v10325_v51 = vpop.f32.mrf.mxu1 }
 0x3ea   : > { %v14632_v43 = vpop.f32.mrf.mxu0 }
 0x3eb   : > { %v7066_v60 = vpop.f32.mrf.mxu1 }
 0x3ed   : > { %v10328_v55 = vpop.f32.mrf.mxu1 }
 0x3ef   : > { %v14606_v26 = vpop.f32.mrf.mxu1  ;;  %v14638_v28 = vpop.f32.mrf.mxu0 }
 0x3f1   : > { %v14610_v15 = vpop.f32.mrf.mxu1  ;;  %v14644_v44 = vpop.f32.mrf.mxu0 }
 0x3f3   : > { %v14612_v52 = vpop.f32.mrf.mxu1  ;;  %v14650_v25 = vpop.f32.mrf.mxu0 }
 0x3f5   : > { %v14616_v36 = vpop.f32.mrf.mxu1  ;;  %v14656_v31 = vpop.f32.mrf.mxu0 }
 0x3f7   : > { %v14618_v33 = vpop.f32.mrf.mxu1 }
 0x3f9   : > { %v14622_v42 = vpop.f32.mrf.mxu1 }
 0x3fb   : > { %v14624_v21 = vpop.f32.mrf.mxu1 }
 0x3fd   : > { %v14628_v49 = vpop.f32.mrf.mxu1 }
 0x3ff   : > { %v14630_v14 = vpop.f32.mrf.mxu1 }
 0x400   : > { %15404 = vst [vmem:[#allocation70_spill] sm:$0xff] %v14630_v14 }
 0x401   : > { %v14634_v41 = vpop.f32.mrf.mxu1 }
 0x402   : > { %15405 = vst [vmem:[#allocation71_spill] sm:$0xff] %v14634_v41 }
 0x403   : > { %v14636_v13 = vpop.f32.mrf.mxu1 }
 0x404   : > { %15406 = vst [vmem:[#allocation72_spill] sm:$0xff] %v14636_v13 }
 0x405   : > { %v14640_v58 = vpop.f32.mrf.mxu1 }
 0x406   : > { %15407 = vst [vmem:[#allocation73_spill] sm:$0xff] %v14640_v58  ;;  %v14662_v58 = vpop.f32.mrf.mxu0 }
 0x407   : > { %v14642_v39 = vpop.f32.mrf.mxu1  ;;  %15415 = vst [vmem:[#allocation81_spill] sm:$0xff] %v14662_v58 }
 0x408   : > { %15408 = vst [vmem:[#allocation74_spill] sm:$0xff] %v14642_v39 }
 0x409   : > { %v14646_v59 = vpop.f32.mrf.mxu1 }
 0x40a   : > { %15409 = vst [vmem:[#allocation75_spill] sm:$0xff] %v14646_v59  ;;  %v14668_v59 = vpop.f32.mrf.mxu0 }
 0x40b   : > { %v14648_v35 = vpop.f32.mrf.mxu1  ;;  %15418 = vst [vmem:[#allocation84_spill] sm:$0xff] %v14668_v59 }
 0x40c   : > { %15410 = vst [vmem:[#allocation76_spill] sm:$0xff] %v14648_v35 }
 0x40d   : > { %v14652_v5 = vpop.f32.mrf.mxu1 }
 0x40e   : > { %15411 = vst [vmem:[#allocation77_spill] sm:$0xff] %v14652_v5  ;;  %v14674_v5 = vpop.f32.mrf.mxu0 }
 0x40f   : > { %v14654_v20 = vpop.f32.mrf.mxu1  ;;  %15421 = vst [vmem:[#allocation87_spill] sm:$0xff] %v14674_v5 }
 0x410   : > { %15412 = vst [vmem:[#allocation78_spill] sm:$0xff] %v14654_v20 }
 0x411   : > { %v14658_v13 = vpop.f32.mrf.mxu1 }
 0x412   : > { %15413 = vst [vmem:[#allocation79_spill] sm:$0xff] %v14658_v13  ;;  %v6805_v13 = vadd.f32 %v14393_v46, %v14463_v24 }
 0x413   : > { %v14660_v41 = vpop.f32.mrf.mxu1 }
 0x414   : > { %15414 = vst [vmem:[#allocation80_spill] sm:$0xff] %v14660_v41  ;;  %v7192_v58 = vadd.f32 %v10324_v3, %v6805_v13 }
 0x415   : > { %v14664_v39 = vpop.f32.mrf.mxu1 }
 0x416   : > { %15416 = vst [vmem:[#allocation82_spill] sm:$0xff] %v14664_v39  ;;  %v14684_v39 = vpop.f32.mrf.mxu0  ;;  %v7946_v24 = vadd.f32 %v10372_v9, %v7192_v58 }
 0x417   : > { %v14666_v14 = vpop.f32.mrf.mxu1 }
 0x418   : > { %15417 = vst [vmem:[#allocation83_spill] sm:$0xff] %v14666_v14  ;;  %v6803_v14 = vadd.f32 %v14401_v0, %v14470_v29  ;;  %v14694_v13 = vpop.f32.mrf.mxu0  ;;  %v14699_v0 = vld [vmem:[%s14933_s5] ss:$0 sm:$0xff]  ;;  %v6809_v29 = vadd.f32 %v14427_v40, %v14485_v16 }
 0x419   : > { %v14670_v35 = vpop.f32.mrf.mxu1 }
 0x41a   : > { %15419 = vst [vmem:[#allocation85_spill] sm:$0xff] %v14670_v35  ;;  %v7190_v35 = vadd.f32 %v7063_v8, %v6803_v14  ;;  %v6810_v8 = vadd.f32 %v14439_v18, %v14495_v54  ;;  %v14710_v9 = vpop.f32.mrf.mxu0  ;;  %v6808_v54 = vadd.f32 %v14445_v23, %v14500_v10  ;;  %v15426_v23 = vld [vmem:[#allocation5_spill] sm:$0xff] }
 0x41b   : > { %v14672_v17 = vpop.f32.mrf.mxu1 }
 0x41c   : > { %15420 = vst [vmem:[#allocation86_spill] sm:$0xff] %v14672_v17  ;;  %v6806_v17 = vadd.f32 %v14409_v32, %v14475_v7  ;;  %v7944_v7 = vadd.f32 %v7817_v45, %v7190_v35  ;;  %v7197_v18 = vadd.f32 %v14610_v15, %v6810_v8 }
 0x41d   : > { %v14676_v20 = vpop.f32.mrf.mxu1 }
 0x41e   : > { %15422 = vst [vmem:[#allocation88_spill] sm:$0xff] %v14676_v20  ;;  %v6804_v20 = vadd.f32 %v14421_v2, %v14480_v63  ;;  %v7193_v46 = vadd.f32 %v10325_v51, %v6806_v17  ;;  %v6807_v2 = vadd.f32 %v14433_v53, %v14490_v56  ;;  %v7196_v17 = vadd.f32 %v10328_v55, %v6809_v29  ;;  %v15424_v56 = vld [vmem:[#allocation15_spill] sm:$0xff] }
 0x41f   : > { %v14680_v41 = vpop.f32.mrf.mxu1 }
 0x420   : > { %15423 = vst [vmem:[#allocation89_spill] sm:$0xff] %v14680_v41  ;;  %v7191_v41 = vadd.f32 %v7066_v60, %v6804_v20  ;;  %v7947_v14 = vadd.f32 %v14604_v12, %v7193_v46  ;;  %v7194_v16 = vadd.f32 %v14606_v26, %v6807_v2  ;;  %v15425_v60 = vld [vmem:[#allocation16_spill] sm:$0xff]  ;;  %v7195_v26 = vadd.f32 %v14612_v52, %v6808_v54 }
 0x421   : > { %v14686_v59 = vpop.f32.mrf.mxu1  ;;  %v7951_v52 = vadd.f32 %v14626_v38, %v7197_v18  ;;  %v15428_v38 = vld [vmem:[#allocation8_spill] sm:$0xff] }
 0x422   : > { %v7945_v53 = vadd.f32 %v14608_v19, %v7191_v41  ;;  %v7950_v19 = vadd.f32 %v14614_v57, %v7196_v17  ;;  %v6811_v57 = vadd.f32 %v14457_v48, %v14510_v62  ;;  %v7949_v48 = vadd.f32 %v14632_v43, %v7195_v26  ;;  %v15432_v26 = vld [vmem:[#allocation44_spill] sm:$0xff] }
 0x423   : > { %v14692_v5 = vpop.f32.mrf.mxu1 }
 0x424   : > { %v7198_v62 = vadd.f32 %v14618_v33, %v6811_v57  ;;  %v15436_v57 = vld [vmem:[#allocation56_spill] sm:$0xff] }
 0x425   : > { %v10420_v3 = vpop.f32.mrf.mxu1 }
 0x426   : > { %v8444_v32 = vadd.f32 %v10420_v3, %v7946_v24  ;;  %v6813_v24 = vadd.f32 %v14451_v50, %v14505_v37  ;;  %v14731_v3 = vpop.f32.mrf.mxu0  ;;  %v15427_v37 = vld [vmem:[#allocation18_spill] sm:$0xff] }
 0x427   : > { %v8315_v63 = vpop.f32.mrf.mxu1 }
 0x428   : > { %v8483_v20 = vadd.f32 %v14699_v0, %v8444_v32  ;;  %v8442_v58 = vadd.f32 %v8315_v63, %v7944_v7  ;;  %v7948_v7 = vadd.f32 %v14620_v1, %v7194_v16  ;;  %v7200_v50 = vadd.f32 %v14616_v36, %v6813_v24 }
 0x429   : > { %v10421_v40 = vpop.f32.mrf.mxu1  ;;  %v6812_v16 = vadd.f32 %v14472_v27, %v14520_v47  ;;  %v15430_v27 = vld [vmem:[#allocation21_spill] sm:$0xff]  ;;  %v6818_v24 = vadd.f32 %v15432_v26, %v14533_v30 }
 0x42a   : > { %v8515_v35 = vadd.f32 %v8483_v20, %v15424_v56  ;;  %v8481_v45 = vadd.f32 %v14699_v0, %v8442_v58  ;;  %v8445_v12 = vadd.f32 %v10421_v40, %v7947_v14  ;;  %v6814_v58 = vadd.f32 %v14465_v4, %v14515_v11  ;;  %v14746_v14 = vpop.f32.mrf.mxu0  ;;  %v15429_v11 = vld [vmem:[#allocation19_spill] sm:$0xff] }
 0x42b   : > { %v8318_v51 = vpop.f32.mrf.mxu1 }
 0x42c   : > { %8547 = vst [vmem:[%s14715_s22 + $0x10] sm:$0xff] %v8515_v35  ;;  %v8513_v55 = vadd.f32 %v8481_v45, %v15425_v60  ;;  %v8484_v46 = vadd.f32 %v14699_v0, %v8445_v12  ;;  %v8443_v41 = vadd.f32 %v8318_v51, %v7945_v53  ;;  %v7201_v53 = vadd.f32 %v14622_v42, %v6814_v58  ;;  %v14763_v18 = vpop.f32.mrf.mxu0  ;;  %v15440_v58 = vld [vmem:[#allocation72_spill] sm:$0xff] }
 0x42d   : > { %v10424_v15 = vpop.f32.mrf.mxu1  ;;  %v7954_v35 = vadd.f32 %v14638_v28, %v7200_v50  ;;  %v7199_v45 = vadd.f32 %v14624_v21, %v6812_v16  ;;  %v6817_v12 = vadd.f32 %v14477_v6, %v14525_v34  ;;  %v7952_v60 = vadd.f32 %v14644_v44, %v7198_v62  ;;  %v15431_v34 = vld [vmem:[#allocation24_spill] sm:$0xff]  ;;  %v15438_v50 = vld [vmem:[#allocation23_spill] sm:$0xff]  ;;  %v15442_v62 = vld [vmem:[#allocation46_spill] sm:$0xff] }
 0x42e   : > { %8545 = vst [vmem:[%s14715_s22] sm:$0xff] %v8513_v55  ;;  %v8516_v10 = vadd.f32 %v8484_v46, %v15426_v23  ;;  %v8482_v29 = vadd.f32 %v14699_v0, %v8443_v41  ;;  %v8448_v32 = vadd.f32 %v10424_v15, %v7950_v19  ;;  %v6815_v28 = vadd.f32 %v14482_v61, %v14530_v22  ;;  %v14778_v15 = vpop.f32.mrf.mxu0  ;;  %v15433_v22 = vld [vmem:[#allocation70_spill] sm:$0xff] }
 0x42f   : > { %v8331_v2 = vpop.f32.mrf.mxu1  ;;  %v7955_v21 = vadd.f32 %v14650_v25, %v7201_v53  ;;  %v7204_v6 = vadd.f32 %v14628_v49, %v6817_v12  ;;  %v7953_v61 = vadd.f32 %v14656_v31, %v7199_v45  ;;  %v15434_v25 = vld [vmem:[#allocation10_spill] sm:$0xff]  ;;  %v15447_v12 = vld [vmem:[#allocation87_spill] sm:$0xff] }
 0x430   : > { %8548 = vst [vmem:[%s14715_s22 + $0x18] sm:$0xff] %v8516_v10  ;;  %v8514_v63 = vadd.f32 %v8482_v29, %v15427_v37  ;;  %v8487_v17 = vadd.f32 %v14699_v0, %v8448_v32  ;;  %v8446_v20 = vadd.f32 %v8331_v2, %v7948_v7  ;;  %v7202_v23 = vadd.f32 %v15433_v22, %v6815_v28  ;;  %v15435_v32 = vld [vmem:[#allocation71_spill] sm:$0xff] }
 0x431   : > { %v10425_v1 = vpop.f32.mrf.mxu1  ;;  %v7205_v7 = vadd.f32 %v15435_v32, %v6818_v24  ;;  %v15437_v2 = vld [vmem:[#allocation51_spill] sm:$0xff]  ;;  %v15453_v24 = vld [vmem:[#allocation28_spill] sm:$0xff] }
 0x432   : > { %8546 = vst [vmem:[%s14715_s22 + $0x8] sm:$0xff] %v8514_v63  ;;  %v8519_v36 = vadd.f32 %v8487_v17, %v15428_v38  ;;  %v8485_v8 = vadd.f32 %v14699_v0, %v8446_v20  ;;  %v8449_v40 = vadd.f32 %v10425_v1, %v7951_v52  ;;  %v6816_v52 = vadd.f32 %v15437_v2, %v15436_v57  ;;  %v15439_v17 = vld [vmem:[#allocation81_spill] sm:$0xff] }
 0x433   : > { %v8334_v4 = vpop.f32.mrf.mxu1  ;;  %v7958_v20 = vadd.f32 %v15439_v17, %v7204_v6 }
 0x434   : > { %8551 = vst [vmem:[%s14715_s22 + $0x30] sm:$0xff] %v8519_v36  ;;  %v8517_v56 = vadd.f32 %v8485_v8, %v15429_v11  ;;  %v8488_v43 = vadd.f32 %v14699_v0, %v8449_v40  ;;  %v8447_v33 = vadd.f32 %v8334_v4, %v7949_v48  ;;  %v7203_v1 = vadd.f32 %v15440_v58, %v6816_v52  ;;  %v15441_v48 = vld [vmem:[#allocation52_spill] sm:$0xff]  ;;  %v14795_v36 = vpop.f32.mrf.mxu0  ;;  %v15443_v40 = vld [vmem:[#allocation33_spill] sm:$0xff]  ;;  %v15461_v58 = vld [vmem:[#allocation30_spill] sm:$0xff] }
 0x435   : > { %v10428_v42 = vpop.f32.mrf.mxu1  ;;  %v6821_v38 = vadd.f32 %v15442_v62, %v15441_v48  ;;  %v15444_v11 = vld [vmem:[#allocation84_spill] sm:$0xff] }
 0x436   : > { %8549 = vst [vmem:[%s14715_s22 + $0x20] sm:$0xff] %v8517_v56  ;;  %v8520_v47 = vadd.f32 %v8488_v43, %v15430_v27  ;;  %v8486_v54 = vadd.f32 %v14699_v0, %v8447_v33  ;;  %v8452_v51 = vadd.f32 %v10428_v42, %v7954_v35  ;;  %v7956_v56 = vadd.f32 %v15444_v11, %v7202_v23  ;;  %v15445_v43 = vld [vmem:[#allocation3_spill] sm:$0xff]  ;;  %v15446_v33 = vld [vmem:[#allocation48_spill] sm:$0xff]  ;;  %v15448_v27 = vld [vmem:[#allocation73_spill] sm:$0xff] }
 0x437   : > { %v8347_v55 = vpop.f32.mrf.mxu1  ;;  %v6819_v35 = vadd.f32 %v15446_v33, %v15445_v43  ;;  %v7959_v42 = vadd.f32 %v15447_v12, %v7205_v7  ;;  %v15454_v23 = vld [vmem:[#allocation75_spill] sm:$0xff]  ;;  %v15466_v12 = vld [vmem:[#allocation50_spill] sm:$0xff] }
 0x438   : > { %8552 = vst [vmem:[%s14715_s22 + $0x38] sm:$0xff] %v8520_v47  ;;  %v8518_v46 = vadd.f32 %v8486_v54, %v15431_v34  ;;  %v8491_v41 = vadd.f32 %v14699_v0, %v8452_v51  ;;  %v8450_v19 = vadd.f32 %v8347_v55, %v7952_v60  ;;  %v7208_v47 = vadd.f32 %v15448_v27, %v6821_v38  ;;  %v15449_v54 = vld [vmem:[#allocation26_spill] sm:$0xff]  ;;  %v14810_v34 = vpop.f32.mrf.mxu0  ;;  %v15457_v7 = vld [vmem:[#allocation35_spill] sm:$0xff] }
 0x439   : > { %v10429_v44 = vpop.f32.mrf.mxu1  ;;  %v15450_v55 = vld [vmem:[#allocation42_spill] sm:$0xff] }
 0x43a   : > { %8550 = vst [vmem:[%s14715_s22 + $0x28] sm:$0xff] %v8518_v46  ;;  %v8523_v49 = vadd.f32 %v8491_v41, %v15434_v25  ;;  %v8489_v10 = vadd.f32 %v14699_v0, %v8450_v19  ;;  %v8453_v29 = vadd.f32 %v10429_v44, %v7955_v21  ;;  %v15451_v21 = vld [vmem:[#allocation37_spill] sm:$0xff]  ;;  %v7957_v41 = vadd.f32 %v14684_v39, %v7203_v1  ;;  %v15452_v19 = vld [vmem:[#allocation74_spill] sm:$0xff] }
 0x43b   : > { %v8350_v30 = vpop.f32.mrf.mxu1  ;;  %v6822_v6 = vadd.f32 %v15451_v21, %v15450_v55  ;;  %v7206_v26 = vadd.f32 %v15452_v19, %v6819_v35  ;;  %v7962_v52 = vadd.f32 %v14694_v13, %v7208_v47  ;;  %v15470_v21 = vld [vmem:[#allocation79_spill] sm:$0xff] }
 0x43c   : > { %8555 = vst [vmem:[%s14715_s22 + $0x50] sm:$0xff] %v8523_v49  ;;  %v8521_v37 = vadd.f32 %v8489_v10, %v15438_v50  ;;  %v8492_v31 = vadd.f32 %v14699_v0, %v8453_v29  ;;  %v8451_v63 = vadd.f32 %v8350_v30, %v7953_v61  ;;  %v15455_v49 = vld [vmem:[#allocation45_spill] sm:$0xff]  ;;  %v15456_v10 = vld [vmem:[#allocation47_spill] sm:$0xff]  ;;  %v15458_v30 = vld [vmem:[#allocation76_spill] sm:$0xff] }
 0x43d   : > { %v10432_v8 = vpop.f32.mrf.mxu1  ;;  %v7209_v25 = vadd.f32 %v15454_v23, %v6822_v6  ;;  %v6820_v29 = vadd.f32 %v15456_v10, %v15455_v49  ;;  %v7960_v38 = vadd.f32 %v14710_v9, %v7206_v26  ;;  %v15475_v10 = vld [vmem:[#allocation54_spill] sm:$0xff] }
 0x43e   : > { %8553 = vst [vmem:[%s14715_s22 + $0x40] sm:$0xff] %v8521_v37  ;;  %v8524_v53 = vadd.f32 %v8492_v31, %v15443_v40  ;;  %v8490_v16 = vadd.f32 %v14699_v0, %v8451_v63  ;;  %v8456_v4 = vadd.f32 %v10432_v8, %v7958_v20  ;;  %v14825_v37 = vpop.f32.mrf.mxu0  ;;  %v15459_v31 = vld [vmem:[#allocation53_spill] sm:$0xff]  ;;  %v15460_v63 = vld [vmem:[#allocation34_spill] sm:$0xff] }
 0x43f   : > { %v8363_v45 = vpop.f32.mrf.mxu1  ;;  %v7207_v50 = vadd.f32 %v15458_v30, %v6820_v29  ;;  %v6825_v17 = vadd.f32 %v15460_v63, %v15459_v31  ;;  %v15462_v8 = vld [vmem:[#allocation49_spill] sm:$0xff]  ;;  %v15479_v31 = vld [vmem:[#allocation43_spill] sm:$0xff] }
 0x440   : > { %8556 = vst [vmem:[%s14715_s22 + $0x58] sm:$0xff] %v8524_v53  ;;  %v8522_v51 = vadd.f32 %v8490_v16, %v15449_v54  ;;  %v8495_v60 = vadd.f32 %v14699_v0, %v8456_v4  ;;  %v8454_v28 = vadd.f32 %v8363_v45, %v7956_v56  ;;  %v15463_v40 = vld [vmem:[#allocation29_spill] sm:$0xff]  ;;  %v7963_v16 = vadd.f32 %v14731_v3, %v7209_v25  ;;  %v15465_v56 = vld [vmem:[#allocation14_spill] sm:$0xff]  ;;  %v7913_v45 = vpop.f32.mrf.mxu0  ;;  %v15469_v3 = vld [vmem:[#allocation32_spill] sm:$0xff] }
 0x441   : > { %v10433_v46 = vpop.f32.mrf.mxu1  ;;  %v6823_v13 = vadd.f32 %v15463_v40, %v15462_v8  ;;  %v15464_v4 = vld [vmem:[#allocation77_spill] sm:$0xff]  ;;  %v7961_v47 = vadd.f32 %v14746_v14, %v7207_v50  ;;  %v15468_v54 = vld [vmem:[#allocation78_spill] sm:$0xff]  ;;  %v15474_v25 = vld [vmem:[#allocation80_spill] sm:$0xff] }
 0x442   : > { %8554 = vst [vmem:[%s14715_s22 + $0x48] sm:$0xff] %v8522_v51  ;;  %v8527_v44 = vadd.f32 %v8495_v60, %v15453_v24  ;;  %v8493_v61 = vadd.f32 %v14699_v0, %v8454_v28  ;;  %v8457_v22 = vadd.f32 %v10433_v46, %v7959_v42  ;;  %v7212_v11 = vadd.f32 %v15464_v4, %v6825_v17  ;;  %v15467_v42 = vld [vmem:[#allocation40_spill] sm:$0xff]  ;;  %v15473_v24 = vld [vmem:[#allocation31_spill] sm:$0xff]  ;;  %v10397_v23 = vpop.f32.mrf.mxu0  ;;  %v15476_v29 = vld [vmem:[#allocation41_spill] sm:$0xff] }
 0x443   : > { %v8366_v32 = vpop.f32.mrf.mxu1  ;;  %v6826_v27 = vadd.f32 %v15467_v42, %v15466_v12  ;;  %v7210_v51 = vadd.f32 %v15468_v54, %v6823_v13  ;;  %v15471_v46 = vld [vmem:[#allocation60_spill] sm:$0xff]  ;;  %v15478_v50 = vld [vmem:[#allocation38_spill] sm:$0xff]  ;;  %v15482_v40 = vld [vmem:[#allocation61_spill] sm:$0xff] }
 0x444   : > { %8559 = vst [vmem:[%s14715_s22 + $0x70] sm:$0xff] %v8527_v44  ;;  %v8525_v57 = vadd.f32 %v8493_v61, %v15457_v7  ;;  %v8496_v39 = vadd.f32 %v14699_v0, %v8457_v22  ;;  %v8455_v2 = vadd.f32 %v8366_v32, %v7957_v41  ;;  %v15472_v41 = vld [vmem:[#allocation57_spill] sm:$0xff]  ;;  %v7966_v22 = vadd.f32 %v14763_v18, %v7212_v11  ;;  %v7916_v8 = vpop.f32.mrf.mxu0  ;;  %v15483_v13 = vld [vmem:[#allocation55_spill] sm:$0xff] }
 0x445   : > { %v10436_v20 = vpop.f32.mrf.mxu1  ;;  %v7213_v6 = vadd.f32 %v15470_v21, %v6826_v27  ;;  %v6824_v19 = vadd.f32 %v15472_v41, %v15471_v46  ;;  %v6829_v32 = vadd.f32 %v15476_v29, %v15475_v10  ;;  %v7964_v30 = vadd.f32 %v14778_v15, %v7210_v51  ;;  %v15484_v4 = vld [vmem:[#allocation83_spill] sm:$0xff]  ;;  %v15487_v42 = vld [vmem:[#allocation65_spill] sm:$0xff]  ;;  %v15488_v27 = vld [vmem:[#allocation58_spill] sm:$0xff] }
 0x446   : > { %8557 = vst [vmem:[%s14715_s22 + $0x60] sm:$0xff] %v8525_v57  ;;  %v8528_v1 = vadd.f32 %v8496_v39, %v15461_v58  ;;  %v8494_v48 = vadd.f32 %v14699_v0, %v8455_v2  ;;  %v8460_v62 = vadd.f32 %v10436_v20, %v7962_v52  ;;  %v15477_v57 = vld [vmem:[#allocation4_spill] sm:$0xff]  ;;  %v6827_v63 = vadd.f32 %v15479_v31, %v15478_v50  ;;  %v15480_v20 = vld [vmem:[#allocation82_spill] sm:$0xff]  ;;  %v15489_v51 = vld [vmem:[#allocation11_spill] sm:$0xff] }
 0x447   : > { %v8379_v53 = vpop.f32.mrf.mxu1  ;;  %v7211_v49 = vadd.f32 %v15474_v25, %v6824_v19  ;;  %v7967_v17 = vadd.f32 %v14795_v36, %v7213_v6  ;;  %v7216_v58 = vadd.f32 %v15480_v20, %v6829_v32  ;;  %v15485_v36 = vld [vmem:[#allocation12_spill] sm:$0xff]  ;;  %v15492_v46 = vld [vmem:[#allocation59_spill] sm:$0xff]  ;;  %v15495_v25 = vld [vmem:[#allocation62_spill] sm:$0xff] }
 0x448   : > { %8560 = vst [vmem:[%s14715_s22 + $0x78] sm:$0xff] %v8528_v1  ;;  %v8526_v43 = vadd.f32 %v8494_v48, %v15465_v56  ;;  %v8499_v33 = vadd.f32 %v14699_v0, %v8460_v62  ;;  %v8458_v35 = vadd.f32 %v8379_v53, %v7960_v38  ;;  %v15481_v1 = vld [vmem:[#allocation7_spill] sm:$0xff]  ;;  %v6830_v53 = vadd.f32 %v15483_v13, %v15482_v40  ;;  %v15491_v6 = vld [vmem:[#allocation64_spill] sm:$0xff] }
 0x449   : > { %v10437_v9 = vpop.f32.mrf.mxu1  ;;  %v7214_v11 = vadd.f32 %v15484_v4, %v6827_v63  ;;  %v6833_v41 = vadd.f32 %v15492_v46, %v15491_v6  ;;  %v15496_v32 = vld [vmem:[#allocation88_spill] sm:$0xff]  ;;  %v15499_v50 = vld [vmem:[#allocation63_spill] sm:$0xff] }
 0x44a   : > { %8558 = vst [vmem:[%s14715_s22 + $0x68] sm:$0xff] %v8526_v43  ;;  %v8531_v60 = vadd.f32 %v8499_v33, %v15469_v3  ;;  %v8497_v28 = vadd.f32 %v14699_v0, %v8458_v35  ;;  %v8461_v55 = vadd.f32 %v10437_v9, %v7963_v16  ;;  %v7965_v16 = vadd.f32 %v14810_v34, %v7211_v49  ;;  %v15486_v35 = vld [vmem:[#allocation85_spill] sm:$0xff]  ;;  %v15501_v20 = vld [vmem:[#allocation36_spill] sm:$0xff]  ;;  %v15508_v46 = vld [vmem:[#allocation39_spill] sm:$0xff] }
 0x44b   : > { %v8382_v26 = vpop.f32.mrf.mxu1  ;;  %v7217_v12 = vadd.f32 %v15486_v35, %v6830_v53  ;;  %v6828_v9 = vadd.f32 %v15488_v27, %v15487_v42 }
 0x44c   : > { %8563 = vst [vmem:[%s14715_s22 + $0x90] sm:$0xff] %v8531_v60  ;;  %v8529_v44 = vadd.f32 %v8497_v28, %v15473_v24  ;;  %v8500_v14 = vadd.f32 %v14699_v0, %v8461_v55  ;;  %v8459_v61 = vadd.f32 %v8382_v26, %v7961_v47  ;;  %v10400_v47 = vpop.f32.mrf.mxu0  ;;  %v7970_v28 = vadd.f32 %v14825_v37, %v7216_v58  ;;  %v15490_v55 = vld [vmem:[#allocation86_spill] sm:$0xff]  ;;  %v15493_v26 = vld [vmem:[#allocation20_spill] sm:$0xff] }
 0x44d   : > { %v10440_v7 = vpop.f32.mrf.mxu1  ;;  %v7215_v21 = vadd.f32 %v15490_v55, %v6828_v9  ;;  %v7971_v37 = vadd.f32 %v10397_v23, %v7217_v12 }
 0x44e   : > { %8561 = vst [vmem:[%s14715_s22 + $0x80] sm:$0xff] %v8529_v44  ;;  %v8532_v39 = vadd.f32 %v8500_v14, %v15477_v57  ;;  %v8498_v2 = vadd.f32 %v14699_v0, %v8459_v61  ;;  %v8464_v52 = vadd.f32 %v10440_v7, %v7966_v22  ;;  %v7968_v61 = vadd.f32 %v7913_v45, %v7214_v11  ;;  %v15494_v22 = vld [vmem:[#allocation66_spill] sm:$0xff]  ;;  %v7929_v10 = vpop.f32.mrf.mxu0  ;;  %v15497_v57 = vld [vmem:[#allocation27_spill] sm:$0xff] }
 0x44f   : > { %v8395_v18 = vpop.f32.mrf.mxu1  ;;  %v6831_v49 = vadd.f32 %v15495_v25, %v15494_v22  ;;  %v7220_v7 = vadd.f32 %v15496_v32, %v6833_v41  ;;  %v7969_v45 = vadd.f32 %v7916_v8, %v7215_v21  ;;  %v15504_v8 = vld [vmem:[#allocation6_spill] sm:$0xff] }
 0x450   : > { %8564 = vst [vmem:[%s14715_s22 + $0x98] sm:$0xff] %v8532_v39  ;;  %v8530_v48 = vadd.f32 %v8498_v2, %v15481_v1  ;;  %v8503_v62 = vadd.f32 %v14699_v0, %v8464_v52  ;;  %v8462_v38 = vadd.f32 %v8395_v18, %v7964_v30  ;;  %v15498_v30 = vld [vmem:[#allocation68_spill] sm:$0xff]  ;;  %v15500_v18 = vld [vmem:[#allocation89_spill] sm:$0xff]  ;;  %v10401_v13 = vpop.f32.mrf.mxu0 }
 0x451   : > { %v10441_v15 = vpop.f32.mrf.mxu1  ;;  %v6834_v31 = vadd.f32 %v15499_v50, %v15498_v30 }
 0x452   : > { %8562 = vst [vmem:[%s14715_s22 + $0x88] sm:$0xff] %v8530_v48  ;;  %v8535_v56 = vadd.f32 %v8503_v62, %v15485_v36  ;;  %v8501_v43 = vadd.f32 %v14699_v0, %v8462_v38  ;;  %v8465_v33 = vadd.f32 %v10441_v15, %v7967_v17  ;;  %v7218_v17 = vadd.f32 %v15500_v18, %v6831_v49  ;;  %v15502_v62 = vld [vmem:[#allocation69_spill] sm:$0xff]  ;;  %v15503_v38 = vld [vmem:[#allocation67_spill] sm:$0xff]  ;;  %v7932_v42 = vpop.f32.mrf.mxu0 }
 0x453   : > { %v8398_v54 = vpop.f32.mrf.mxu1  ;;  %v7221_v48 = vadd.f32 %v14686_v59, %v6834_v31  ;;  %v6832_v40 = vadd.f32 %v15503_v38, %v15502_v62  ;;  %v7974_v15 = vadd.f32 %v10400_v47, %v7220_v7  ;;  %v15505_v59 = vld [vmem:[#allocation9_spill] sm:$0xff] }
 0x454   : > { %8567 = vst [vmem:[%s14715_s22 + $0xb0] sm:$0xff] %v8535_v56  ;;  %v8533_v3 = vadd.f32 %v8501_v43, %v15489_v51  ;;  %v8504_v34 = vadd.f32 %v14699_v0, %v8465_v33  ;;  %v8463_v60 = vadd.f32 %v8398_v54, %v7965_v16  ;;  %v7972_v43 = vadd.f32 %v7929_v10, %v7218_v17  ;;  %v15506_v47 = vld [vmem:[#allocation13_spill] sm:$0xff] }
 0x455   : > { %v10444_v19 = vpop.f32.mrf.mxu1  ;;  %v7219_v36 = vadd.f32 %v14692_v5, %v6832_v40  ;;  %v7975_v9 = vadd.f32 %v10401_v13, %v7221_v48 }
 0x456   : > { %8565 = vst [vmem:[%s14715_s22 + $0xa0] sm:$0xff] %v8533_v3  ;;  %v8536_v24 = vadd.f32 %v8504_v34, %v15493_v26  ;;  %v8502_v44 = vadd.f32 %v14699_v0, %v8463_v60  ;;  %v8468_v14 = vadd.f32 %v10444_v19, %v7970_v28  ;;  %v15507_v60 = vld [vmem:[#allocation17_spill] sm:$0xff] }
 0x457   : > { %v8411_v29 = vpop.f32.mrf.mxu1  ;;  %v7973_v34 = vadd.f32 %v7932_v42, %v7219_v36 }
 0x458   : > { %8568 = vst [vmem:[%s14715_s22 + $0xb8] sm:$0xff] %v8536_v24  ;;  %v8534_v39 = vadd.f32 %v8502_v44, %v15497_v57  ;;  %v8507_v2 = vadd.f32 %v14699_v0, %v8468_v14  ;;  %v8466_v52 = vadd.f32 %v8411_v29, %v7968_v61  ;;  %v15509_v24 = vld [vmem:[#allocation22_spill] sm:$0xff]  ;;  %v15510_v61 = vld [vmem:[#allocation25_spill] sm:$0xff] }
 0x459   : > { %v10445_v63 = vpop.f32.mrf.mxu1 }
 0x45a   : > { %8566 = vst [vmem:[%s14715_s22 + $0xa8] sm:$0xff] %v8534_v39  ;;  %v8539_v23 = vadd.f32 %v8507_v2, %v15501_v20  ;;  %v8505_v58 = vadd.f32 %v14699_v0, %v8466_v52  ;;  %v8469_v1 = vadd.f32 %v10445_v63, %v7971_v37 }
 0x45b   : > { %v8414_v53 = vpop.f32.mrf.mxu1 }
 0x45c   : > { %8571 = vst [vmem:[%s14715_s22 + $0xd0] sm:$0xff] %v8539_v23  ;;  %v8537_v16 = vadd.f32 %v8505_v58, %v15504_v8  ;;  %v8508_v4 = vadd.f32 %v14699_v0, %v8469_v1  ;;  %v8467_v11 = vadd.f32 %v8414_v53, %v7969_v45 }
 0x45d   : > { %v10448_v56 = vpop.f32.mrf.mxu1 }
 0x45e   : > { %8569 = vst [vmem:[%s14715_s22 + $0xc0] sm:$0xff] %v8537_v16  ;;  %v8540_v33 = vadd.f32 %v8508_v4, %v15505_v59  ;;  %v8506_v35 = vadd.f32 %v14699_v0, %v8467_v11  ;;  %v8472_v12 = vadd.f32 %v10448_v56, %v7974_v15 }
 0x45f   : > { %v8427_v27 = vpop.f32.mrf.mxu1 }
 0x460   : > { %8572 = vst [vmem:[%s14715_s22 + $0xd8] sm:$0xff] %v8540_v33  ;;  %v8538_v54 = vadd.f32 %v8506_v35, %v15506_v47  ;;  %v8511_v51 = vadd.f32 %v14699_v0, %v8472_v12  ;;  %v8470_v5 = vadd.f32 %v8427_v27, %v7972_v43 }
 0x461   : > { %v10449_v3 = vpop.f32.mrf.mxu1 }
 0x462   : > { %8570 = vst [vmem:[%s14715_s22 + $0xc8] sm:$0xff] %v8538_v54  ;;  %v8543_v28 = vadd.f32 %v8511_v51, %v15507_v60  ;;  %v8509_v55 = vadd.f32 %v14699_v0, %v8470_v5  ;;  %v8473_v21 = vadd.f32 %v10449_v3, %v7975_v9 }
 0x463   : > { %v8430_v6 = vpop.f32.mrf.mxu1 }
 0x464   : > { %8575 = vst [vmem:[%s14715_s22 + $0xf0] sm:$0xff] %v8543_v28  ;;  %v8541_v41 = vadd.f32 %v8509_v55, %v15508_v46  ;;  %v8512_v19 = vadd.f32 %v14699_v0, %v8473_v21  ;;  %v8471_v26 = vadd.f32 %v8430_v6, %v7973_v34 }
 0x466   : > { %8573 = vst [vmem:[%s14715_s22 + $0xe0] sm:$0xff] %v8541_v41  ;;  %v8544_v44 = vadd.f32 %v8512_v19, %v15509_v24  ;;  %v8510_v14 = vadd.f32 %v14699_v0, %v8471_v26 }
 0x468   : > { %8576 = vst [vmem:[%s14715_s22 + $0xf8] sm:$0xff] %v8544_v44  ;;  %v8542_v22 = vadd.f32 %v8510_v14, %v15510_v61 }
 0x46a   : > { %8574 = vst [vmem:[%s14715_s22 + $0xe8] sm:$0xff] %v8542_v22 }
 0x46b PF: > { %s16_s21 = sadd.s32 1, %s10625_s21  }
 0x46c   : > { %p13_p4 = scmp.ge.s32.totalorder %s16_s21, 4  }
 0x46e   :  { %15 = sbr.rel (!%p13_p4) target bundleno = 1 (0x1), region = 92 }

</bundles_post_ra>
